<compile_context>
chip_gen: v6e
topology: v6e:2x2x1
jax: 0.10.0
libtpu: 0.0.40
codegen_flags: <defaults>
</compile_context>

<pallas_src>
import math
import functools

import jax
import jax.numpy as jnp
from jax.experimental import pallas as pl
from jax.experimental.pallas import tpu as pltpu


# ----------------------------------------------------------------------------
# Fused kernel: all 3 branches + all layers in one lane-batched wavefront.
# No grid; whole arrays live in VMEM.
# ----------------------------------------------------------------------------
def _make_fused_kernel(T, Bp, Dpad, L, num_layers):
    G = 4 * L  # gate lanes: [i | f | g | o], each block L=128 lanes

    def lstm_cell(gates, c_prev):
        # 128-aligned slices only; sigmoid on i/f/o, tanh only on g (EUP saving)
        i_g = jax.nn.sigmoid(gates[:, 0 * L:1 * L])
        f_g = jax.nn.sigmoid(gates[:, 1 * L:2 * L])
        g_g = jnp.tanh(gates[:, 2 * L:3 * L])
        o_g = jax.nn.sigmoid(gates[:, 3 * L:4 * L])
        c_new = f_g * c_prev + i_g * g_g
        h_new = o_g * jnp.tanh(c_new)
        return h_new, c_new

    def kernel(*args):
        x_ref = args[0]                                 # (T, Bp, Dpad) bf16
        w_refs = args[1:1 + 3 * num_layers]             # (wih, whh, bias) per layer
        out_ref = args[1 + 3 * num_layers]              # (T, Bp, L) f32
        gx_sc = args[2 + 3 * num_layers]                # VMEM (T, Bp, G) f32

        # Hoisted layer-0 input projection: one MXU pass over all time steps.
        x = x_ref[...].reshape(T * Bp, Dpad)
        gx0 = jnp.dot(x, w_refs[0][...], preferred_element_type=jnp.float32)
        gx_sc[...] = (gx0 + w_refs[2][...]).reshape(T, Bp, G)

        zeros = jnp.zeros((Bp, L), jnp.float32)
        states = [(zeros, zeros) for _ in range(num_layers)]

        # Wavefront over (time, layer): wave w runs layer l at step t = w - l.
        # All layer-steps inside a wave are independent -> latency overlap.
        for w in range(T + num_layers - 1):
            new_states = list(states)
            for l in range(num_layers):
                t = w - l
                if not (0 <= t < T):
                    continue
                h_prev, c_prev = states[l]
                whh = w_refs[3 * l + 1]
                if l == 0:
                    gates = gx_sc[t] + jnp.dot(
                        h_prev.astype(jnp.bfloat16), whh[...],
                        preferred_element_type=jnp.float32)
                else:
                    wih = w_refs[3 * l]
                    bias = w_refs[3 * l + 2]
                    h_below = states[l - 1][0]   # layer l-1 output at step t
                    gates = (jnp.dot(h_below.astype(jnp.bfloat16), wih[...],
                                     preferred_element_type=jnp.float32)
                             + jnp.dot(h_prev.astype(jnp.bfloat16), whh[...],
                                       preferred_element_type=jnp.float32)
                             + bias[...])
                h_new, c_new = lstm_cell(gates, c_prev)
                new_states[l] = (h_new, c_new)
                if l == num_layers - 1:
                    out_ref[t] = h_new          # lane-dense (Bp, 128) store
            states = new_states

    return kernel


def fused_lstm(x_all, merged_weights, T, Bp, Dpad, L, num_layers):
    """x_all: (T, Bp, Dpad) bf16.  merged_weights: flat [wih, whh, bias]*layers
    with block-diagonal branch structure.  Returns (T, Bp, L) f32 merged
    top-layer hidden states."""
    G = 4 * L
    vmem = pl.BlockSpec(memory_space=pltpu.MemorySpace.VMEM)
    return pl.pallas_call(
        _make_fused_kernel(T, Bp, Dpad, L, num_layers),
        out_shape=jax.ShapeDtypeStruct((T, Bp, L), jnp.float32),
        in_specs=[vmem] * (1 + len(merged_weights)),
        out_specs=vmem,
        scratch_shapes=[pltpu.VMEM((T, Bp, G), jnp.float32)],  # hoisted gates
    )(x_all, *merged_weights)


# ----------------------------------------------------------------------------
# Block-diagonal weight merging (3 branches -> one 128-lane hidden state)
# ----------------------------------------------------------------------------
def _merge_gate_weights(mats, row_offsets, n_rows, H, L):
    """mats[b]: (rows_b, 4H), gate order i,f,g,o along columns.  Returns
    (n_rows, 4L) with branch b at rows row_offsets[b]:+rows_b and, within each
    128-lane gate block, lanes b*H:(b+1)*H.  Everything else zero."""
    out = jnp.zeros((n_rows, 4 * L), jnp.float32)
    for b, m in enumerate(mats):
        rb = m.shape[0]
        for k in range(4):
            out = out.at[row_offsets[b]:row_offsets[b] + rb,
                         k * L + b * H: k * L + (b + 1) * H].set(
                m[:, k * H:(k + 1) * H])
    return out


def _merge_gate_bias(biases, H, L):
    out = jnp.zeros((1, 4 * L), jnp.float32)
    for b, v in enumerate(biases):               # v: (1, 4H)
        for k in range(4):
            out = out.at[:, k * L + b * H: k * L + (b + 1) * H].set(
                v[:, k * H:(k + 1) * H])
    return out


# ----------------------------------------------------------------------------
# Parameter construction (deterministic, PyTorch-style uniform init)
# ----------------------------------------------------------------------------
def _uniform(key, shape, bound):
    return jax.random.uniform(key, shape, jnp.float32, minval=-bound, maxval=bound)


def init_lstm_params(key, input_dim, hidden_dim, num_layers):
    """Returns a list of (w_ih (D,4H), w_hh (H,4H), b (1,4H)) per layer."""
    params = []
    bound = 1.0 / math.sqrt(hidden_dim)
    for layer in range(num_layers):
        d_in = input_dim if layer == 0 else hidden_dim
        key, k1, k2, k3, k4 = jax.random.split(key, 5)
        w_ih = _uniform(k1, (4 * hidden_dim, d_in), bound).T          # (D, 4H)
        w_hh = _uniform(k2, (4 * hidden_dim, hidden_dim), bound).T    # (H, 4H)
        b_ih = _uniform(k3, (4 * hidden_dim,), bound)
        b_hh = _uniform(k4, (4 * hidden_dim,), bound)
        params.append((w_ih, w_hh, (b_ih + b_hh).reshape(1, -1)))
    return params


def init_linear_params(key, in_features, out_features):
    bound = 1.0 / math.sqrt(in_features)
    k1, k2 = jax.random.split(key)
    w = _uniform(k1, (out_features, in_features), bound).T   # (Din, Dout)
    b = _uniform(k2, (out_features,), bound)
    return w, b


# ----------------------------------------------------------------------------
# Forward pass mirroring LSTMModel.forward
# ----------------------------------------------------------------------------
def lstm_model_forward(xs, xm, xl, params, input_dim_axis):
    branches = ("Xs", "Xm", "Xl")
    xs_list = (xs, xm, xl)
    nb = len(branches)
    T = xs.shape[1]
    num_layers = len(params["lstmXs"])
    H = params["lstmXs"][0][1].shape[0]
    assert nb * H <= 128, "merged hidden state must fit one 128-lane block"
    L = 128                                              # merged (padded) hidden lanes
    Bp = max(8, ((max(x.shape[0] for x in xs_list) + 7) // 8) * 8)
    dims = [x.shape[2] for x in xs_list]
    feat_off = [0, dims[0], dims[0] + dims[1]]
    Dcat = sum(dims)
    Dpad = ((Dcat + 127) // 128) * 128                   # lane-dense merged input

    # --- lane-merged, time-major input: branch b in lanes feat_off[b]..+Db,
    #     batch rows beyond each branch's size stay zero (stripped later).
    x_all = jnp.zeros((T, Bp, Dpad), jnp.float32)
    for b, x in enumerate(xs_list):
        x_all = x_all.at[:, :x.shape[0], feat_off[b]:feat_off[b] + dims[b]].set(
            jnp.transpose(x, (1, 0, 2)))
    x_all = x_all.astype(jnp.bfloat16)                   # bf16 MXU operand

    # --- block-diagonal merged weights (bf16 for MXU; bias stays f32)
    hid_off = [b * H for b in range(nb)]
    merged = []
    for l in range(num_layers):
        wih_b = [params["lstm" + br][l][0] for br in branches]
        whh_b = [params["lstm" + br][l][1] for br in branches]
        bias_b = [params["lstm" + br][l][2] for br in branches]
        if l == 0:
            wih = _merge_gate_weights(wih_b, feat_off, Dpad, H, L)
        else:
            wih = _merge_gate_weights(wih_b, hid_off, L, H, L)
        whh = _merge_gate_weights(whh_b, hid_off, L, H, L)
        merged += [wih.astype(jnp.bfloat16), whh.astype(jnp.bfloat16),
                   _merge_gate_bias(bias_b, H, L)]

    h_all = fused_lstm(x_all, merged, T, Bp, Dpad, L, num_layers)   # (T,Bp,128)

    # --- tiny per-branch Linear(H,O) + flip/concat/final Linear epilogue:
    #     plain jnp (XLA fuses; a dedicated kernel is a net loss at this size).
    res = []
    for b, br in enumerate(branches):
        fc_w, fc_b = params["fc" + br]
        h_b = h_all[:, :xs_list[b].shape[0], b * H:(b + 1) * H]     # (T, Bb, H)
        res.append(jnp.transpose(h_b, (1, 0, 2)) @ fc_w + fc_b)     # (Bb, T, O)
    xs_res, xm_res, xl_res = res

    len_xl = xl_res.shape[0]
    xs_res = jnp.flip(xs_res, axis=0)[:len_xl]   # torch.flip + split(lenXl)[0]
    xm_res = jnp.flip(xm_res, axis=0)[:len_xl]

    concat = jnp.concatenate((xs_res, xm_res, xl_res), axis=input_dim_axis)
    # final fc = nn.Linear(concat.size()[1], output_dim); valid only because
    # concat.shape[1] (seq_len) == concat.shape[-1] (3*output_dim) here.
    fc_w, fc_b = params["fc_final"]
    return jnp.dot(concat, fc_w) + fc_b


# ----------------------------------------------------------------------------
# Pure-JAX reference (for correctness checking only)
# ----------------------------------------------------------------------------
def _ref_branch(x_btd, lstm_params, fc_w, fc_b):
    h_seq = x_btd
    for (w_ih, w_hh, b) in lstm_params:
        H = w_hh.shape[0]
        B = h_seq.shape[0]

        def step(carry, x_t, w_ih=w_ih, w_hh=w_hh, b=b, H=H):
            h, c = carry
            gates = x_t @ w_ih + h @ w_hh + b[0]
            i = jax.nn.sigmoid(gates[:, 0 * H:1 * H])
            f = jax.nn.sigmoid(gates[:, 1 * H:2 * H])
            g = jnp.tanh(gates[:, 2 * H:3 * H])
            o = jax.nn.sigmoid(gates[:, 3 * H:4 * H])
            c = f * c + i * g
            h = o * jnp.tanh(c)
            return (h, c), h

        init = (jnp.zeros((B, H), jnp.float32), jnp.zeros((B, H), jnp.float32))
        _, hs = jax.lax.scan(step, init, jnp.transpose(h_seq, (1, 0, 2)))
        h_seq = jnp.transpose(hs, (1, 0, 2))
    return h_seq @ fc_w + fc_b


def _ref_model(xs, xm, xl, params, input_dim_axis):
    xs_res = _ref_branch(xs, params["lstmXs"], *params["fcXs"])
    xm_res = _ref_branch(xm, params["lstmXm"], *params["fcXm"])
    xl_res = _ref_branch(xl, params["lstmXl"], *params["fcXl"])
    len_xl = xl_res.shape[0]
    xs_res = jnp.flip(xs_res, axis=0)[:len_xl]
    xm_res = jnp.flip(xm_res, axis=0)[:len_xl]
    concat = jnp.concatenate((xs_res, xm_res, xl_res), axis=input_dim_axis)
    fc_w, fc_b = params["fc_final"]
    return jnp.dot(concat, fc_w) + fc_b


# ----------------------------------------------------------------------------
if __name__ == "__main__":
    # Module hyper-parameters
    input_dim = 2          # axis used by torch.cat in forward()
    inputXs_dim, inputXm_dim, inputXl_dim = 4, 8, 16
    hidden_dim = 32
    num_layers = 2
    output_dim = 4
    seq_len = 3 * output_dim   # required so the final Linear(seq_len, out) is valid
    Bs, Bm, Bl = 6, 5, 4

    key = jax.random.PRNGKey(0)
    (k_xs, k_xm, k_xl,
     k_lxs, k_lxm, k_lxl,
     k_fxs, k_fxm, k_fxl, k_ff) = jax.random.split(key, 10)

    xs = jax.random.normal(k_xs, (Bs, seq_len, inputXs_dim), jnp.float32)
    xm = jax.random.normal(k_xm, (Bm, seq_len, inputXm_dim), jnp.float32)
    xl = jax.random.normal(k_xl, (Bl, seq_len, inputXl_dim), jnp.float32)

    params = {
        "lstmXs": init_lstm_params(k_lxs, inputXs_dim, hidden_dim, num_layers),
        "lstmXm": init_lstm_params(k_lxm, inputXm_dim, hidden_dim, num_layers),
        "lstmXl": init_lstm_params(k_lxl, inputXl_dim, hidden_dim, num_layers),
        "fcXs": init_linear_params(k_fxs, hidden_dim, output_dim),
        "fcXm": init_linear_params(k_fxm, hidden_dim, output_dim),
        "fcXl": init_linear_params(k_fxl, hidden_dim, output_dim),
        # final fc: in_features = concat.shape[1] = seq_len (== 3*output_dim)
        "fc_final": init_linear_params(k_ff, seq_len, output_dim),
    }

    fwd = jax.jit(functools.partial(lstm_model_forward, input_dim_axis=input_dim))
    out = jax.block_until_ready(fwd(xs, xm, xl, params))

    assert out.shape == (Bl, seq_len, output_dim), out.shape
    assert bool(jnp.all(jnp.isfinite(out)))

    # correctness check against a pure-JAX f32 reference
    # (tolerance loosened vs. the pure-f32 kernel because MXU operands are bf16)
    with jax.default_matmul_precision("highest"):
        ref = _ref_model(xs, xm, xl, params, input_dim)
    assert bool(jnp.allclose(out, ref, atol=5e-2, rtol=5e-2)), \
        float(jnp.max(jnp.abs(out - ref)))

    print("KERNEL_OK")
</pallas_src>

<mosaic_0001>
module attributes {stable_mosaic.version = 11 : i64} {
  func.func @kernel(%arg0: memref<12x8x128xbf16, #tpu.memory_space<vmem>>, %arg1: memref<128x512xbf16, #tpu.memory_space<vmem>>, %arg2: memref<128x512xbf16, #tpu.memory_space<vmem>>, %arg3: memref<1x512xf32, #tpu.memory_space<vmem>>, %arg4: memref<128x512xbf16, #tpu.memory_space<vmem>>, %arg5: memref<128x512xbf16, #tpu.memory_space<vmem>>, %arg6: memref<1x512xf32, #tpu.memory_space<vmem>>, %arg7: memref<12x8x128xf32, #tpu.memory_space<vmem>>, %arg8: memref<12x8x512xf32, #tpu.memory_space<vmem>>) attributes {dimension_semantics = [], scalar_prefetch = 0 : i64, scratch_operands = 1 : i64, tpu.core_type = #tpu.core_type<tc>} {
    %c0 = arith.constant 0 : index
    %c0_0 = arith.constant 0 : index
    %c0_1 = arith.constant 0 : index
    %0 = vector.load %arg0[%c0, %c0_0, %c0_1] : memref<12x8x128xbf16, #tpu.memory_space<vmem>>, vector<12x8x128xbf16>
    %1 = vector.shape_cast %0 : vector<12x8x128xbf16> to vector<96x128xbf16>
    %c0_2 = arith.constant 0 : index
    %c0_3 = arith.constant 0 : index
    %2 = vector.load %arg1[%c0_2, %c0_3] : memref<128x512xbf16, #tpu.memory_space<vmem>>, vector<128x512xbf16>
    %cst = arith.constant dense<0.000000e+00> : vector<96x512xf32>
    %3 = tpu.matmul %1, %2, %cst {dimension_numbers = #tpu.dot_dimension_numbers<[1], [0], [0], [1], [0, 0, 1, 1], [], []>} : vector<96x128xbf16>, vector<128x512xbf16>, vector<96x512xf32> -> vector<96x512xf32>
    %c0_4 = arith.constant 0 : index
    %c0_5 = arith.constant 0 : index
    %4 = vector.load %arg3[%c0_4, %c0_5] : memref<1x512xf32, #tpu.memory_space<vmem>>, vector<1x512xf32>
    %5 = vector.broadcast %4 : vector<1x512xf32> to vector<96x512xf32>
    %6 = arith.addf %3, %5 : vector<96x512xf32>
    %7 = vector.shape_cast %6 : vector<96x512xf32> to vector<12x8x512xf32>
    %c0_6 = arith.constant 0 : index
    %c0_7 = arith.constant 0 : index
    %c0_8 = arith.constant 0 : index
    %8 = vector.load %arg8[%c0_6, %c0_7, %c0_8] : memref<12x8x512xf32, #tpu.memory_space<vmem>>, vector<12x8x512xf32>
    tpu.vector_store %arg8[%c0_6, %c0_7, %c0_8], %7 {strides = array<i32>} : memref<12x8x512xf32, #tpu.memory_space<vmem>>, vector<12x8x512xf32>,
    %cst_9 = arith.constant 0.000000e+00 : f32
    %9 = vector.broadcast %cst_9 : f32 to vector<8x128xf32>
    %c0_10 = arith.constant 0 : index
    %c0_11 = arith.constant 0 : index
    %c0_12 = arith.constant 0 : index
    %10 = vector.load %arg8[%c0_10, %c0_11, %c0_12] : memref<12x8x512xf32, #tpu.memory_space<vmem>>, vector<1x8x512xf32>
    %11 = vector.shape_cast %10 : vector<1x8x512xf32> to vector<8x512xf32>
    %12 = arith.truncf %9 : vector<8x128xf32> to vector<8x128xbf16>
    %c0_13 = arith.constant 0 : index
    %c0_14 = arith.constant 0 : index
    %13 = vector.load %arg2[%c0_13, %c0_14] : memref<128x512xbf16, #tpu.memory_space<vmem>>, vector<128x512xbf16>
    %cst_15 = arith.constant dense<0.000000e+00> : vector<8x512xf32>
    %14 = tpu.matmul %12, %13, %cst_15 {dimension_numbers = #tpu.dot_dimension_numbers<[1], [0], [0], [1], [0, 0, 1, 1], [], []>} : vector<8x128xbf16>, vector<128x512xbf16>, vector<8x512xf32> -> vector<8x512xf32>
    %15 = arith.addf %11, %14 : vector<8x512xf32>
    %16 = vector.extract_strided_slice %15 {offsets = [0, 0], sizes = [8, 128], strides = [1, 1]} : vector<8x512xf32> to vector<8x128xf32>
    %17 = arith.negf %16 : vector<8x128xf32>
    %18 = math.exp %17 : vector<8x128xf32>
    %cst_16 = arith.constant 1.000000e+00 : f32
    %19 = vector.broadcast %cst_16 : f32 to vector<8x128xf32>
    %20 = arith.addf %19, %18 : vector<8x128xf32>
    %21 = arith.divf %19, %20 : vector<8x128xf32>
    %22 = vector.extract_strided_slice %15 {offsets = [0, 128], sizes = [8, 128], strides = [1, 1]} : vector<8x512xf32> to vector<8x128xf32>
    %23 = arith.negf %22 : vector<8x128xf32>
    %24 = math.exp %23 : vector<8x128xf32>
    %cst_17 = arith.constant 1.000000e+00 : f32
    %25 = vector.broadcast %cst_17 : f32 to vector<8x128xf32>
    %26 = arith.addf %25, %24 : vector<8x128xf32>
    %27 = arith.divf %25, %26 : vector<8x128xf32>
    %28 = vector.extract_strided_slice %15 {offsets = [0, 256], sizes = [8, 128], strides = [1, 1]} : vector<8x512xf32> to vector<8x128xf32>
    %29 = math.tanh %28 : vector<8x128xf32>
    %30 = vector.extract_strided_slice %15 {offsets = [0, 384], sizes = [8, 128], strides = [1, 1]} : vector<8x512xf32> to vector<8x128xf32>
    %31 = arith.negf %30 : vector<8x128xf32>
    %32 = math.exp %31 : vector<8x128xf32>
    %cst_18 = arith.constant 1.000000e+00 : f32
    %33 = vector.broadcast %cst_18 : f32 to vector<8x128xf32>
    %34 = arith.addf %33, %32 : vector<8x128xf32>
    %35 = arith.divf %33, %34 : vector<8x128xf32>
    %36 = arith.mulf %27, %9 : vector<8x128xf32>
    %37 = arith.mulf %21, %29 : vector<8x128xf32>
    %38 = arith.addf %36, %37 : vector<8x128xf32>
    %39 = math.tanh %38 : vector<8x128xf32>
    %40 = arith.mulf %35, %39 : vector<8x128xf32>
    %c1 = arith.constant 1 : index
    %c0_19 = arith.constant 0 : index
    %c0_20 = arith.constant 0 : index
    %41 = vector.load %arg8[%c1, %c0_19, %c0_20] : memref<12x8x512xf32, #tpu.memory_space<vmem>>, vector<1x8x512xf32>
    %42 = vector.shape_cast %41 : vector<1x8x512xf32> to vector<8x512xf32>
    %43 = arith.truncf %40 : vector<8x128xf32> to vector<8x128xbf16>
    %c0_21 = arith.constant 0 : index
    %c0_22 = arith.constant 0 : index
    %44 = vector.load %arg2[%c0_21, %c0_22] : memref<128x512xbf16, #tpu.memory_space<vmem>>, vector<128x512xbf16>
    %cst_23 = arith.constant dense<0.000000e+00> : vector<8x512xf32>
    %45 = tpu.matmul %43, %44, %cst_23 {dimension_numbers = #tpu.dot_dimension_numbers<[1], [0], [0], [1], [0, 0, 1, 1], [], []>} : vector<8x128xbf16>, vector<128x512xbf16>, vector<8x512xf32> -> vector<8x512xf32>
    %46 = arith.addf %42, %45 : vector<8x512xf32>
    %47 = vector.extract_strided_slice %46 {offsets = [0, 0], sizes = [8, 128], strides = [1, 1]} : vector<8x512xf32> to vector<8x128xf32>
    %48 = arith.negf %47 : vector<8x128xf32>
    %49 = math.exp %48 : vector<8x128xf32>
    %cst_24 = arith.constant 1.000000e+00 : f32
    %50 = vector.broadcast %cst_24 : f32 to vector<8x128xf32>
    %51 = arith.addf %50, %49 : vector<8x128xf32>
    %52 = arith.divf %50, %51 : vector<8x128xf32>
    %53 = vector.extract_strided_slice %46 {offsets = [0, 128], sizes = [8, 128], strides = [1, 1]} : vector<8x512xf32> to vector<8x128xf32>
    %54 = arith.negf %53 : vector<8x128xf32>
    %55 = math.exp %54 : vector<8x128xf32>
    %cst_25 = arith.constant 1.000000e+00 : f32
    %56 = vector.broadcast %cst_25 : f32 to vector<8x128xf32>
    %57 = arith.addf %56, %55 : vector<8x128xf32>
    %58 = arith.divf %56, %57 : vector<8x128xf32>
    %59 = vector.extract_strided_slice %46 {offsets = [0, 256], sizes = [8, 128], strides = [1, 1]} : vector<8x512xf32> to vector<8x128xf32>
    %60 = math.tanh %59 : vector<8x128xf32>
    %61 = vector.extract_strided_slice %46 {offsets = [0, 384], sizes = [8, 128], strides = [1, 1]} : vector<8x512xf32> to vector<8x128xf32>
    %62 = arith.negf %61 : vector<8x128xf32>
    %63 = math.exp %62 : vector<8x128xf32>
    %cst_26 = arith.constant 1.000000e+00 : f32
    %64 = vector.broadcast %cst_26 : f32 to vector<8x128xf32>
    %65 = arith.addf %64, %63 : vector<8x128xf32>
    %66 = arith.divf %64, %65 : vector<8x128xf32>
    %67 = arith.mulf %58, %38 : vector<8x128xf32>
    %68 = arith.mulf %52, %60 : vector<8x128xf32>
    %69 = arith.addf %67, %68 : vector<8x128xf32>
    %70 = math.tanh %69 : vector<8x128xf32>
    %71 = arith.mulf %66, %70 : vector<8x128xf32>
    %72 = arith.truncf %40 : vector<8x128xf32> to vector<8x128xbf16>
    %c0_27 = arith.constant 0 : index
    %c0_28 = arith.constant 0 : index
    %73 = vector.load %arg4[%c0_27, %c0_28] : memref<128x512xbf16, #tpu.memory_space<vmem>>, vector<128x512xbf16>
    %cst_29 = arith.constant dense<0.000000e+00> : vector<8x512xf32>
    %74 = tpu.matmul %72, %73, %cst_29 {dimension_numbers = #tpu.dot_dimension_numbers<[1], [0], [0], [1], [0, 0, 1, 1], [], []>} : vector<8x128xbf16>, vector<128x512xbf16>, vector<8x512xf32> -> vector<8x512xf32>
    %75 = arith.truncf %9 : vector<8x128xf32> to vector<8x128xbf16>
    %c0_30 = arith.constant 0 : index
    %c0_31 = arith.constant 0 : index
    %76 = vector.load %arg5[%c0_30, %c0_31] : memref<128x512xbf16, #tpu.memory_space<vmem>>, vector<128x512xbf16>
    %cst_32 = arith.constant dense<0.000000e+00> : vector<8x512xf32>
    %77 = tpu.matmul %75, %76, %cst_32 {dimension_numbers = #tpu.dot_dimension_numbers<[1], [0], [0], [1], [0, 0, 1, 1], [], []>} : vector<8x128xbf16>, vector<128x512xbf16>, vector<8x512xf32> -> vector<8x512xf32>
    %78 = arith.addf %74, %77 : vector<8x512xf32>
    %c0_33 = arith.constant 0 : index
    %c0_34 = arith.constant 0 : index
    %79 = vector.load %arg6[%c0_33, %c0_34] : memref<1x512xf32, #tpu.memory_space<vmem>>, vector<1x512xf32>
    %80 = vector.broadcast %79 : vector<1x512xf32> to vector<8x512xf32>
    %81 = arith.addf %78, %80 : vector<8x512xf32>
    %82 = vector.extract_strided_slice %81 {offsets = [0, 0], sizes = [8, 128], strides = [1, 1]} : vector<8x512xf32> to vector<8x128xf32>
    %83 = arith.negf %82 : vector<8x128xf32>
    %84 = math.exp %83 : vector<8x128xf32>
    %cst_35 = arith.constant 1.000000e+00 : f32
    %85 = vector.broadcast %cst_35 : f32 to vector<8x128xf32>
    %86 = arith.addf %85, %84 : vector<8x128xf32>
    %87 = arith.divf %85, %86 : vector<8x128xf32>
    %88 = vector.extract_strided_slice %81 {offsets = [0, 128], sizes = [8, 128], strides = [1, 1]} : vector<8x512xf32> to vector<8x128xf32>
    %89 = arith.negf %88 : vector<8x128xf32>
    %90 = math.exp %89 : vector<8x128xf32>
    %cst_36 = arith.constant 1.000000e+00 : f32
    %91 = vector.broadcast %cst_36 : f32 to vector<8x128xf32>
    %92 = arith.addf %91, %90 : vector<8x128xf32>
    %93 = arith.divf %91, %92 : vector<8x128xf32>
    %94 = vector.extract_strided_slice %81 {offsets = [0, 256], sizes = [8, 128], strides = [1, 1]} : vector<8x512xf32> to vector<8x128xf32>
    %95 = math.tanh %94 : vector<8x128xf32>
    %96 = vector.extract_strided_slice %81 {offsets = [0, 384], sizes = [8, 128], strides = [1, 1]} : vector<8x512xf32> to vector<8x128xf32>
    %97 = arith.negf %96 : vector<8x128xf32>
    %98 = math.exp %97 : vector<8x128xf32>
    %cst_37 = arith.constant 1.000000e+00 : f32
    %99 = vector.broadcast %cst_37 : f32 to vector<8x128xf32>
    %100 = arith.addf %99, %98 : vector<8x128xf32>
    %101 = arith.divf %99, %100 : vector<8x128xf32>
    %102 = arith.mulf %93, %9 : vector<8x128xf32>
    %103 = arith.mulf %87, %95 : vector<8x128xf32>
    %104 = arith.addf %102, %103 : vector<8x128xf32>
    %105 = math.tanh %104 : vector<8x128xf32>
    %106 = arith.mulf %101, %105 : vector<8x128xf32>
    %c0_38 = arith.constant 0 : index
    %c0_39 = arith.constant 0 : index
    %c0_40 = arith.constant 0 : index
    %107 = vector.load %arg7[%c0_38, %c0_39, %c0_40] : memref<12x8x128xf32, #tpu.memory_space<vmem>>, vector<1x8x128xf32>
    %108 = vector.shape_cast %107 : vector<1x8x128xf32> to vector<8x128xf32>
    %109 = vector.shape_cast %106 : vector<8x128xf32> to vector<1x8x128xf32>
    tpu.vector_store %arg7[%c0_38, %c0_39, %c0_40], %109 {strides = array<i32>} : memref<12x8x128xf32, #tpu.memory_space<vmem>>, vector<1x8x128xf32>,
    %c2 = arith.constant 2 : index
    %c0_41 = arith.constant 0 : index
    %c0_42 = arith.constant 0 : index
    %110 = vector.load %arg8[%c2, %c0_41, %c0_42] : memref<12x8x512xf32, #tpu.memory_space<vmem>>, vector<1x8x512xf32>
    %111 = vector.shape_cast %110 : vector<1x8x512xf32> to vector<8x512xf32>
    %112 = arith.truncf %71 : vector<8x128xf32> to vector<8x128xbf16>
    %c0_43 = arith.constant 0 : index
    %c0_44 = arith.constant 0 : index
    %113 = vector.load %arg2[%c0_43, %c0_44] : memref<128x512xbf16, #tpu.memory_space<vmem>>, vector<128x512xbf16>
    %cst_45 = arith.constant dense<0.000000e+00> : vector<8x512xf32>
    %114 = tpu.matmul %112, %113, %cst_45 {dimension_numbers = #tpu.dot_dimension_numbers<[1], [0], [0], [1], [0, 0, 1, 1], [], []>} : vector<8x128xbf16>, vector<128x512xbf16>, vector<8x512xf32> -> vector<8x512xf32>
    %115 = arith.addf %111, %114 : vector<8x512xf32>
    %116 = vector.extract_strided_slice %115 {offsets = [0, 0], sizes = [8, 128], strides = [1, 1]} : vector<8x512xf32> to vector<8x128xf32>
    %117 = arith.negf %116 : vector<8x128xf32>
    %118 = math.exp %117 : vector<8x128xf32>
    %cst_46 = arith.constant 1.000000e+00 : f32
    %119 = vector.broadcast %cst_46 : f32 to vector<8x128xf32>
    %120 = arith.addf %119, %118 : vector<8x128xf32>
    %121 = arith.divf %119, %120 : vector<8x128xf32>
    %122 = vector.extract_strided_slice %115 {offsets = [0, 128], sizes = [8, 128], strides = [1, 1]} : vector<8x512xf32> to vector<8x128xf32>
    %123 = arith.negf %122 : vector<8x128xf32>
    %124 = math.exp %123 : vector<8x128xf32>
    %cst_47 = arith.constant 1.000000e+00 : f32
    %125 = vector.broadcast %cst_47 : f32 to vector<8x128xf32>
    %126 = arith.addf %125, %124 : vector<8x128xf32>
    %127 = arith.divf %125, %126 : vector<8x128xf32>
    %128 = vector.extract_strided_slice %115 {offsets = [0, 256], sizes = [8, 128], strides = [1, 1]} : vector<8x512xf32> to vector<8x128xf32>
    %129 = math.tanh %128 : vector<8x128xf32>
    %130 = vector.extract_strided_slice %115 {offsets = [0, 384], sizes = [8, 128], strides = [1, 1]} : vector<8x512xf32> to vector<8x128xf32>
    %131 = arith.negf %130 : vector<8x128xf32>
    %132 = math.exp %131 : vector<8x128xf32>
    %cst_48 = arith.constant 1.000000e+00 : f32
    %133 = vector.broadcast %cst_48 : f32 to vector<8x128xf32>
    %134 = arith.addf %133, %132 : vector<8x128xf32>
    %135 = arith.divf %133, %134 : vector<8x128xf32>
    %136 = arith.mulf %127, %69 : vector<8x128xf32>
    %137 = arith.mulf %121, %129 : vector<8x128xf32>
    %138 = arith.addf %136, %137 : vector<8x128xf32>
    %139 = math.tanh %138 : vector<8x128xf32>
    %140 = arith.mulf %135, %139 : vector<8x128xf32>
    %141 = arith.truncf %71 : vector<8x128xf32> to vector<8x128xbf16>
    %c0_49 = arith.constant 0 : index
    %c0_50 = arith.constant 0 : index
    %142 = vector.load %arg4[%c0_49, %c0_50] : memref<128x512xbf16, #tpu.memory_space<vmem>>, vector<128x512xbf16>
    %cst_51 = arith.constant dense<0.000000e+00> : vector<8x512xf32>
    %143 = tpu.matmul %141, %142, %cst_51 {dimension_numbers = #tpu.dot_dimension_numbers<[1], [0], [0], [1], [0, 0, 1, 1], [], []>} : vector<8x128xbf16>, vector<128x512xbf16>, vector<8x512xf32> -> vector<8x512xf32>
    %144 = arith.truncf %106 : vector<8x128xf32> to vector<8x128xbf16>
    %c0_52 = arith.constant 0 : index
    %c0_53 = arith.constant 0 : index
    %145 = vector.load %arg5[%c0_52, %c0_53] : memref<128x512xbf16, #tpu.memory_space<vmem>>, vector<128x512xbf16>
    %cst_54 = arith.constant dense<0.000000e+00> : vector<8x512xf32>
    %146 = tpu.matmul %144, %145, %cst_54 {dimension_numbers = #tpu.dot_dimension_numbers<[1], [0], [0], [1], [0, 0, 1, 1], [], []>} : vector<8x128xbf16>, vector<128x512xbf16>, vector<8x512xf32> -> vector<8x512xf32>
    %147 = arith.addf %143, %146 : vector<8x512xf32>
    %c0_55 = arith.constant 0 : index
    %c0_56 = arith.constant 0 : index
    %148 = vector.load %arg6[%c0_55, %c0_56] : memref<1x512xf32, #tpu.memory_space<vmem>>, vector<1x512xf32>
    %149 = vector.broadcast %148 : vector<1x512xf32> to vector<8x512xf32>
    %150 = arith.addf %147, %149 : vector<8x512xf32>
    %151 = vector.extract_strided_slice %150 {offsets = [0, 0], sizes = [8, 128], strides = [1, 1]} : vector<8x512xf32> to vector<8x128xf32>
    %152 = arith.negf %151 : vector<8x128xf32>
    %153 = math.exp %152 : vector<8x128xf32>
    %cst_57 = arith.constant 1.000000e+00 : f32
    %154 = vector.broadcast %cst_57 : f32 to vector<8x128xf32>
    %155 = arith.addf %154, %153 : vector<8x128xf32>
    %156 = arith.divf %154, %155 : vector<8x128xf32>
    %157 = vector.extract_strided_slice %150 {offsets = [0, 128], sizes = [8, 128], strides = [1, 1]} : vector<8x512xf32> to vector<8x128xf32>
    %158 = arith.negf %157 : vector<8x128xf32>
    %159 = math.exp %158 : vector<8x128xf32>
    %cst_58 = arith.constant 1.000000e+00 : f32
    %160 = vector.broadcast %cst_58 : f32 to vector<8x128xf32>
    %161 = arith.addf %160, %159 : vector<8x128xf32>
    %162 = arith.divf %160, %161 : vector<8x128xf32>
    %163 = vector.extract_strided_slice %150 {offsets = [0, 256], sizes = [8, 128], strides = [1, 1]} : vector<8x512xf32> to vector<8x128xf32>
    %164 = math.tanh %163 : vector<8x128xf32>
    %165 = vector.extract_strided_slice %150 {offsets = [0, 384], sizes = [8, 128], strides = [1, 1]} : vector<8x512xf32> to vector<8x128xf32>
    %166 = arith.negf %165 : vector<8x128xf32>
    %167 = math.exp %166 : vector<8x128xf32>
    %cst_59 = arith.constant 1.000000e+00 : f32
    %168 = vector.broadcast %cst_59 : f32 to vector<8x128xf32>
    %169 = arith.addf %168, %167 : vector<8x128xf32>
    %170 = arith.divf %168, %169 : vector<8x128xf32>
    %171 = arith.mulf %162, %104 : vector<8x128xf32>
    %172 = arith.mulf %156, %164 : vector<8x128xf32>
    %173 = arith.addf %171, %172 : vector<8x128xf32>
    %174 = math.tanh %173 : vector<8x128xf32>
    %175 = arith.mulf %170, %174 : vector<8x128xf32>
    %c1_60 = arith.constant 1 : index
    %c0_61 = arith.constant 0 : index
    %c0_62 = arith.constant 0 : index
    %176 = vector.load %arg7[%c1_60, %c0_61, %c0_62] : memref<12x8x128xf32, #tpu.memory_space<vmem>>, vector<1x8x128xf32>
    %177 = vector.shape_cast %176 : vector<1x8x128xf32> to vector<8x128xf32>
    %178 = vector.shape_cast %175 : vector<8x128xf32> to vector<1x8x128xf32>
    tpu.vector_store %arg7[%c1_60, %c0_61, %c0_62], %178 {strides = array<i32>} : memref<12x8x128xf32, #tpu.memory_space<vmem>>, vector<1x8x128xf32>,
    %c3 = arith.constant 3 : index
    %c0_63 = arith.constant 0 : index
    %c0_64 = arith.constant 0 : index
    %179 = vector.load %arg8[%c3, %c0_63, %c0_64] : memref<12x8x512xf32, #tpu.memory_space<vmem>>, vector<1x8x512xf32>
    %180 = vector.shape_cast %179 : vector<1x8x512xf32> to vector<8x512xf32>
    %181 = arith.truncf %140 : vector<8x128xf32> to vector<8x128xbf16>
    %c0_65 = arith.constant 0 : index
    %c0_66 = arith.constant 0 : index
    %182 = vector.load %arg2[%c0_65, %c0_66] : memref<128x512xbf16, #tpu.memory_space<vmem>>, vector<128x512xbf16>
    %cst_67 = arith.constant dense<0.000000e+00> : vector<8x512xf32>
    %183 = tpu.matmul %181, %182, %cst_67 {dimension_numbers = #tpu.dot_dimension_numbers<[1], [0], [0], [1], [0, 0, 1, 1], [], []>} : vector<8x128xbf16>, vector<128x512xbf16>, vector<8x512xf32> -> vector<8x512xf32>
    %184 = arith.addf %180, %183 : vector<8x512xf32>
    %185 = vector.extract_strided_slice %184 {offsets = [0, 0], sizes = [8, 128], strides = [1, 1]} : vector<8x512xf32> to vector<8x128xf32>
    %186 = arith.negf %185 : vector<8x128xf32>
    %187 = math.exp %186 : vector<8x128xf32>
    %cst_68 = arith.constant 1.000000e+00 : f32
    %188 = vector.broadcast %cst_68 : f32 to vector<8x128xf32>
    %189 = arith.addf %188, %187 : vector<8x128xf32>
    %190 = arith.divf %188, %189 : vector<8x128xf32>
    %191 = vector.extract_strided_slice %184 {offsets = [0, 128], sizes = [8, 128], strides = [1, 1]} : vector<8x512xf32> to vector<8x128xf32>
    %192 = arith.negf %191 : vector<8x128xf32>
    %193 = math.exp %192 : vector<8x128xf32>
    %cst_69 = arith.constant 1.000000e+00 : f32
    %194 = vector.broadcast %cst_69 : f32 to vector<8x128xf32>
    %195 = arith.addf %194, %193 : vector<8x128xf32>
    %196 = arith.divf %194, %195 : vector<8x128xf32>
    %197 = vector.extract_strided_slice %184 {offsets = [0, 256], sizes = [8, 128], strides = [1, 1]} : vector<8x512xf32> to vector<8x128xf32>
    %198 = math.tanh %197 : vector<8x128xf32>
    %199 = vector.extract_strided_slice %184 {offsets = [0, 384], sizes = [8, 128], strides = [1, 1]} : vector<8x512xf32> to vector<8x128xf32>
    %200 = arith.negf %199 : vector<8x128xf32>
    %201 = math.exp %200 : vector<8x128xf32>
    %cst_70 = arith.constant 1.000000e+00 : f32
    %202 = vector.broadcast %cst_70 : f32 to vector<8x128xf32>
    %203 = arith.addf %202, %201 : vector<8x128xf32>
    %204 = arith.divf %202, %203 : vector<8x128xf32>
    %205 = arith.mulf %196, %138 : vector<8x128xf32>
    %206 = arith.mulf %190, %198 : vector<8x128xf32>
    %207 = arith.addf %205, %206 : vector<8x128xf32>
    %208 = math.tanh %207 : vector<8x128xf32>
    %209 = arith.mulf %204, %208 : vector<8x128xf32>
    %210 = arith.truncf %140 : vector<8x128xf32> to vector<8x128xbf16>
    %c0_71 = arith.constant 0 : index
    %c0_72 = arith.constant 0 : index
    %211 = vector.load %arg4[%c0_71, %c0_72] : memref<128x512xbf16, #tpu.memory_space<vmem>>, vector<128x512xbf16>
    %cst_73 = arith.constant dense<0.000000e+00> : vector<8x512xf32>
    %212 = tpu.matmul %210, %211, %cst_73 {dimension_numbers = #tpu.dot_dimension_numbers<[1], [0], [0], [1], [0, 0, 1, 1], [], []>} : vector<8x128xbf16>, vector<128x512xbf16>, vector<8x512xf32> -> vector<8x512xf32>
    %213 = arith.truncf %175 : vector<8x128xf32> to vector<8x128xbf16>
    %c0_74 = arith.constant 0 : index
    %c0_75 = arith.constant 0 : index
    %214 = vector.load %arg5[%c0_74, %c0_75] : memref<128x512xbf16, #tpu.memory_space<vmem>>, vector<128x512xbf16>
    %cst_76 = arith.constant dense<0.000000e+00> : vector<8x512xf32>
    %215 = tpu.matmul %213, %214, %cst_76 {dimension_numbers = #tpu.dot_dimension_numbers<[1], [0], [0], [1], [0, 0, 1, 1], [], []>} : vector<8x128xbf16>, vector<128x512xbf16>, vector<8x512xf32> -> vector<8x512xf32>
    %216 = arith.addf %212, %215 : vector<8x512xf32>
    %c0_77 = arith.constant 0 : index
    %c0_78 = arith.constant 0 : index
    %217 = vector.load %arg6[%c0_77, %c0_78] : memref<1x512xf32, #tpu.memory_space<vmem>>, vector<1x512xf32>
    %218 = vector.broadcast %217 : vector<1x512xf32> to vector<8x512xf32>
    %219 = arith.addf %216, %218 : vector<8x512xf32>
    %220 = vector.extract_strided_slice %219 {offsets = [0, 0], sizes = [8, 128], strides = [1, 1]} : vector<8x512xf32> to vector<8x128xf32>
    %221 = arith.negf %220 : vector<8x128xf32>
    %222 = math.exp %221 : vector<8x128xf32>
    %cst_79 = arith.constant 1.000000e+00 : f32
    %223 = vector.broadcast %cst_79 : f32 to vector<8x128xf32>
    %224 = arith.addf %223, %222 : vector<8x128xf32>
    %225 = arith.divf %223, %224 : vector<8x128xf32>
    %226 = vector.extract_strided_slice %219 {offsets = [0, 128], sizes = [8, 128], strides = [1, 1]} : vector<8x512xf32> to vector<8x128xf32>
    %227 = arith.negf %226 : vector<8x128xf32>
    %228 = math.exp %227 : vector<8x128xf32>
    %cst_80 = arith.constant 1.000000e+00 : f32
    %229 = vector.broadcast %cst_80 : f32 to vector<8x128xf32>
    %230 = arith.addf %229, %228 : vector<8x128xf32>
    %231 = arith.divf %229, %230 : vector<8x128xf32>
    %232 = vector.extract_strided_slice %219 {offsets = [0, 256], sizes = [8, 128], strides = [1, 1]} : vector<8x512xf32> to vector<8x128xf32>
    %233 = math.tanh %232 : vector<8x128xf32>
    %234 = vector.extract_strided_slice %219 {offsets = [0, 384], sizes = [8, 128], strides = [1, 1]} : vector<8x512xf32> to vector<8x128xf32>
    %235 = arith.negf %234 : vector<8x128xf32>
    %236 = math.exp %235 : vector<8x128xf32>
    %cst_81 = arith.constant 1.000000e+00 : f32
    %237 = vector.broadcast %cst_81 : f32 to vector<8x128xf32>
    %238 = arith.addf %237, %236 : vector<8x128xf32>
    %239 = arith.divf %237, %238 : vector<8x128xf32>
    %240 = arith.mulf %231, %173 : vector<8x128xf32>
    %241 = arith.mulf %225, %233 : vector<8x128xf32>
    %242 = arith.addf %240, %241 : vector<8x128xf32>
    %243 = math.tanh %242 : vector<8x128xf32>
    %244 = arith.mulf %239, %243 : vector<8x128xf32>
    %c2_82 = arith.constant 2 : index
    %c0_83 = arith.constant 0 : index
    %c0_84 = arith.constant 0 : index
    %245 = vector.load %arg7[%c2_82, %c0_83, %c0_84] : memref<12x8x128xf32, #tpu.memory_space<vmem>>, vector<1x8x128xf32>
    %246 = vector.shape_cast %245 : vector<1x8x128xf32> to vector<8x128xf32>
    %247 = vector.shape_cast %244 : vector<8x128xf32> to vector<1x8x128xf32>
    tpu.vector_store %arg7[%c2_82, %c0_83, %c0_84], %247 {strides = array<i32>} : memref<12x8x128xf32, #tpu.memory_space<vmem>>, vector<1x8x128xf32>,
    %c4 = arith.constant 4 : index
    %c0_85 = arith.constant 0 : index
    %c0_86 = arith.constant 0 : index
    %248 = vector.load %arg8[%c4, %c0_85, %c0_86] : memref<12x8x512xf32, #tpu.memory_space<vmem>>, vector<1x8x512xf32>
    %249 = vector.shape_cast %248 : vector<1x8x512xf32> to vector<8x512xf32>
    %250 = arith.truncf %209 : vector<8x128xf32> to vector<8x128xbf16>
    %c0_87 = arith.constant 0 : index
    %c0_88 = arith.constant 0 : index
    %251 = vector.load %arg2[%c0_87, %c0_88] : memref<128x512xbf16, #tpu.memory_space<vmem>>, vector<128x512xbf16>
    %cst_89 = arith.constant dense<0.000000e+00> : vector<8x512xf32>
    %252 = tpu.matmul %250, %251, %cst_89 {dimension_numbers = #tpu.dot_dimension_numbers<[1], [0], [0], [1], [0, 0, 1, 1], [], []>} : vector<8x128xbf16>, vector<128x512xbf16>, vector<8x512xf32> -> vector<8x512xf32>
    %253 = arith.addf %249, %252 : vector<8x512xf32>
    %254 = vector.extract_strided_slice %253 {offsets = [0, 0], sizes = [8, 128], strides = [1, 1]} : vector<8x512xf32> to vector<8x128xf32>
    %255 = arith.negf %254 : vector<8x128xf32>
    %256 = math.exp %255 : vector<8x128xf32>
    %cst_90 = arith.constant 1.000000e+00 : f32
    %257 = vector.broadcast %cst_90 : f32 to vector<8x128xf32>
    %258 = arith.addf %257, %256 : vector<8x128xf32>
    %259 = arith.divf %257, %258 : vector<8x128xf32>
    %260 = vector.extract_strided_slice %253 {offsets = [0, 128], sizes = [8, 128], strides = [1, 1]} : vector<8x512xf32> to vector<8x128xf32>
    %261 = arith.negf %260 : vector<8x128xf32>
    %262 = math.exp %261 : vector<8x128xf32>
    %cst_91 = arith.constant 1.000000e+00 : f32
    %263 = vector.broadcast %cst_91 : f32 to vector<8x128xf32>
    %264 = arith.addf %263, %262 : vector<8x128xf32>
    %265 = arith.divf %263, %264 : vector<8x128xf32>
    %266 = vector.extract_strided_slice %253 {offsets = [0, 256], sizes = [8, 128], strides = [1, 1]} : vector<8x512xf32> to vector<8x128xf32>
    %267 = math.tanh %266 : vector<8x128xf32>
    %268 = vector.extract_strided_slice %253 {offsets = [0, 384], sizes = [8, 128], strides = [1, 1]} : vector<8x512xf32> to vector<8x128xf32>
    %269 = arith.negf %268 : vector<8x128xf32>
    %270 = math.exp %269 : vector<8x128xf32>
    %cst_92 = arith.constant 1.000000e+00 : f32
    %271 = vector.broadcast %cst_92 : f32 to vector<8x128xf32>
    %272 = arith.addf %271, %270 : vector<8x128xf32>
    %273 = arith.divf %271, %272 : vector<8x128xf32>
    %274 = arith.mulf %265, %207 : vector<8x128xf32>
    %275 = arith.mulf %259, %267 : vector<8x128xf32>
    %276 = arith.addf %274, %275 : vector<8x128xf32>
    %277 = math.tanh %276 : vector<8x128xf32>
    %278 = arith.mulf %273, %277 : vector<8x128xf32>
    %279 = arith.truncf %209 : vector<8x128xf32> to vector<8x128xbf16>
    %c0_93 = arith.constant 0 : index
    %c0_94 = arith.constant 0 : index
    %280 = vector.load %arg4[%c0_93, %c0_94] : memref<128x512xbf16, #tpu.memory_space<vmem>>, vector<128x512xbf16>
    %cst_95 = arith.constant dense<0.000000e+00> : vector<8x512xf32>
    %281 = tpu.matmul %279, %280, %cst_95 {dimension_numbers = #tpu.dot_dimension_numbers<[1], [0], [0], [1], [0, 0, 1, 1], [], []>} : vector<8x128xbf16>, vector<128x512xbf16>, vector<8x512xf32> -> vector<8x512xf32>
    %282 = arith.truncf %244 : vector<8x128xf32> to vector<8x128xbf16>
    %c0_96 = arith.constant 0 : index
    %c0_97 = arith.constant 0 : index
    %283 = vector.load %arg5[%c0_96, %c0_97] : memref<128x512xbf16, #tpu.memory_space<vmem>>, vector<128x512xbf16>
    %cst_98 = arith.constant dense<0.000000e+00> : vector<8x512xf32>
    %284 = tpu.matmul %282, %283, %cst_98 {dimension_numbers = #tpu.dot_dimension_numbers<[1], [0], [0], [1], [0, 0, 1, 1], [], []>} : vector<8x128xbf16>, vector<128x512xbf16>, vector<8x512xf32> -> vector<8x512xf32>
    %285 = arith.addf %281, %284 : vector<8x512xf32>
    %c0_99 = arith.constant 0 : index
    %c0_100 = arith.constant 0 : index
    %286 = vector.load %arg6[%c0_99, %c0_100] : memref<1x512xf32, #tpu.memory_space<vmem>>, vector<1x512xf32>
    %287 = vector.broadcast %286 : vector<1x512xf32> to vector<8x512xf32>
    %288 = arith.addf %285, %287 : vector<8x512xf32>
    %289 = vector.extract_strided_slice %288 {offsets = [0, 0], sizes = [8, 128], strides = [1, 1]} : vector<8x512xf32> to vector<8x128xf32>
    %290 = arith.negf %289 : vector<8x128xf32>
    %291 = math.exp %290 : vector<8x128xf32>
    %cst_101 = arith.constant 1.000000e+00 : f32
    %292 = vector.broadcast %cst_101 : f32 to vector<8x128xf32>
    %293 = arith.addf %292, %291 : vector<8x128xf32>
    %294 = arith.divf %292, %293 : vector<8x128xf32>
    %295 = vector.extract_strided_slice %288 {offsets = [0, 128], sizes = [8, 128], strides = [1, 1]} : vector<8x512xf32> to vector<8x128xf32>
    %296 = arith.negf %295 : vector<8x128xf32>
    %297 = math.exp %296 : vector<8x128xf32>
    %cst_102 = arith.constant 1.000000e+00 : f32
    %298 = vector.broadcast %cst_102 : f32 to vector<8x128xf32>
    %299 = arith.addf %298, %297 : vector<8x128xf32>
    %300 = arith.divf %298, %299 : vector<8x128xf32>
    %301 = vector.extract_strided_slice %288 {offsets = [0, 256], sizes = [8, 128], strides = [1, 1]} : vector<8x512xf32> to vector<8x128xf32>
    %302 = math.tanh %301 : vector<8x128xf32>
    %303 = vector.extract_strided_slice %288 {offsets = [0, 384], sizes = [8, 128], strides = [1, 1]} : vector<8x512xf32> to vector<8x128xf32>
    %304 = arith.negf %303 : vector<8x128xf32>
    %305 = math.exp %304 : vector<8x128xf32>
    %cst_103 = arith.constant 1.000000e+00 : f32
    %306 = vector.broadcast %cst_103 : f32 to vector<8x128xf32>
    %307 = arith.addf %306, %305 : vector<8x128xf32>
    %308 = arith.divf %306, %307 : vector<8x128xf32>
    %309 = arith.mulf %300, %242 : vector<8x128xf32>
    %310 = arith.mulf %294, %302 : vector<8x128xf32>
    %311 = arith.addf %309, %310 : vector<8x128xf32>
    %312 = math.tanh %311 : vector<8x128xf32>
    %313 = arith.mulf %308, %312 : vector<8x128xf32>
    %c3_104 = arith.constant 3 : index
    %c0_105 = arith.constant 0 : index
    %c0_106 = arith.constant 0 : index
    %314 = vector.load %arg7[%c3_104, %c0_105, %c0_106] : memref<12x8x128xf32, #tpu.memory_space<vmem>>, vector<1x8x128xf32>
    %315 = vector.shape_cast %314 : vector<1x8x128xf32> to vector<8x128xf32>
    %316 = vector.shape_cast %313 : vector<8x128xf32> to vector<1x8x128xf32>
    tpu.vector_store %arg7[%c3_104, %c0_105, %c0_106], %316 {strides = array<i32>} : memref<12x8x128xf32, #tpu.memory_space<vmem>>, vector<1x8x128xf32>,
    %c5 = arith.constant 5 : index
    %c0_107 = arith.constant 0 : index
    %c0_108 = arith.constant 0 : index
    %317 = vector.load %arg8[%c5, %c0_107, %c0_108] : memref<12x8x512xf32, #tpu.memory_space<vmem>>, vector<1x8x512xf32>
    %318 = vector.shape_cast %317 : vector<1x8x512xf32> to vector<8x512xf32>
    %319 = arith.truncf %278 : vector<8x128xf32> to vector<8x128xbf16>
    %c0_109 = arith.constant 0 : index
    %c0_110 = arith.constant 0 : index
    %320 = vector.load %arg2[%c0_109, %c0_110] : memref<128x512xbf16, #tpu.memory_space<vmem>>, vector<128x512xbf16>
    %cst_111 = arith.constant dense<0.000000e+00> : vector<8x512xf32>
    %321 = tpu.matmul %319, %320, %cst_111 {dimension_numbers = #tpu.dot_dimension_numbers<[1], [0], [0], [1], [0, 0, 1, 1], [], []>} : vector<8x128xbf16>, vector<128x512xbf16>, vector<8x512xf32> -> vector<8x512xf32>
    %322 = arith.addf %318, %321 : vector<8x512xf32>
    %323 = vector.extract_strided_slice %322 {offsets = [0, 0], sizes = [8, 128], strides = [1, 1]} : vector<8x512xf32> to vector<8x128xf32>
    %324 = arith.negf %323 : vector<8x128xf32>
    %325 = math.exp %324 : vector<8x128xf32>
    %cst_112 = arith.constant 1.000000e+00 : f32
    %326 = vector.broadcast %cst_112 : f32 to vector<8x128xf32>
    %327 = arith.addf %326, %325 : vector<8x128xf32>
    %328 = arith.divf %326, %327 : vector<8x128xf32>
    %329 = vector.extract_strided_slice %322 {offsets = [0, 128], sizes = [8, 128], strides = [1, 1]} : vector<8x512xf32> to vector<8x128xf32>
    %330 = arith.negf %329 : vector<8x128xf32>
    %331 = math.exp %330 : vector<8x128xf32>
    %cst_113 = arith.constant 1.000000e+00 : f32
    %332 = vector.broadcast %cst_113 : f32 to vector<8x128xf32>
    %333 = arith.addf %332, %331 : vector<8x128xf32>
    %334 = arith.divf %332, %333 : vector<8x128xf32>
    %335 = vector.extract_strided_slice %322 {offsets = [0, 256], sizes = [8, 128], strides = [1, 1]} : vector<8x512xf32> to vector<8x128xf32>
    %336 = math.tanh %335 : vector<8x128xf32>
    %337 = vector.extract_strided_slice %322 {offsets = [0, 384], sizes = [8, 128], strides = [1, 1]} : vector<8x512xf32> to vector<8x128xf32>
    %338 = arith.negf %337 : vector<8x128xf32>
    %339 = math.exp %338 : vector<8x128xf32>
    %cst_114 = arith.constant 1.000000e+00 : f32
    %340 = vector.broadcast %cst_114 : f32 to vector<8x128xf32>
    %341 = arith.addf %340, %339 : vector<8x128xf32>
    %342 = arith.divf %340, %341 : vector<8x128xf32>
    %343 = arith.mulf %334, %276 : vector<8x128xf32>
    %344 = arith.mulf %328, %336 : vector<8x128xf32>
    %345 = arith.addf %343, %344 : vector<8x128xf32>
    %346 = math.tanh %345 : vector<8x128xf32>
    %347 = arith.mulf %342, %346 : vector<8x128xf32>
    %348 = arith.truncf %278 : vector<8x128xf32> to vector<8x128xbf16>
    %c0_115 = arith.constant 0 : index
    %c0_116 = arith.constant 0 : index
    %349 = vector.load %arg4[%c0_115, %c0_116] : memref<128x512xbf16, #tpu.memory_space<vmem>>, vector<128x512xbf16>
    %cst_117 = arith.constant dense<0.000000e+00> : vector<8x512xf32>
    %350 = tpu.matmul %348, %349, %cst_117 {dimension_numbers = #tpu.dot_dimension_numbers<[1], [0], [0], [1], [0, 0, 1, 1], [], []>} : vector<8x128xbf16>, vector<128x512xbf16>, vector<8x512xf32> -> vector<8x512xf32>
    %351 = arith.truncf %313 : vector<8x128xf32> to vector<8x128xbf16>
    %c0_118 = arith.constant 0 : index
    %c0_119 = arith.constant 0 : index
    %352 = vector.load %arg5[%c0_118, %c0_119] : memref<128x512xbf16, #tpu.memory_space<vmem>>, vector<128x512xbf16>
    %cst_120 = arith.constant dense<0.000000e+00> : vector<8x512xf32>
    %353 = tpu.matmul %351, %352, %cst_120 {dimension_numbers = #tpu.dot_dimension_numbers<[1], [0], [0], [1], [0, 0, 1, 1], [], []>} : vector<8x128xbf16>, vector<128x512xbf16>, vector<8x512xf32> -> vector<8x512xf32>
    %354 = arith.addf %350, %353 : vector<8x512xf32>
    %c0_121 = arith.constant 0 : index
    %c0_122 = arith.constant 0 : index
    %355 = vector.load %arg6[%c0_121, %c0_122] : memref<1x512xf32, #tpu.memory_space<vmem>>, vector<1x512xf32>
    %356 = vector.broadcast %355 : vector<1x512xf32> to vector<8x512xf32>
    %357 = arith.addf %354, %356 : vector<8x512xf32>
    %358 = vector.extract_strided_slice %357 {offsets = [0, 0], sizes = [8, 128], strides = [1, 1]} : vector<8x512xf32> to vector<8x128xf32>
    %359 = arith.negf %358 : vector<8x128xf32>
    %360 = math.exp %359 : vector<8x128xf32>
    %cst_123 = arith.constant 1.000000e+00 : f32
    %361 = vector.broadcast %cst_123 : f32 to vector<8x128xf32>
    %362 = arith.addf %361, %360 : vector<8x128xf32>
    %363 = arith.divf %361, %362 : vector<8x128xf32>
    %364 = vector.extract_strided_slice %357 {offsets = [0, 128], sizes = [8, 128], strides = [1, 1]} : vector<8x512xf32> to vector<8x128xf32>
    %365 = arith.negf %364 : vector<8x128xf32>
    %366 = math.exp %365 : vector<8x128xf32>
    %cst_124 = arith.constant 1.000000e+00 : f32
    %367 = vector.broadcast %cst_124 : f32 to vector<8x128xf32>
    %368 = arith.addf %367, %366 : vector<8x128xf32>
    %369 = arith.divf %367, %368 : vector<8x128xf32>
    %370 = vector.extract_strided_slice %357 {offsets = [0, 256], sizes = [8, 128], strides = [1, 1]} : vector<8x512xf32> to vector<8x128xf32>
    %371 = math.tanh %370 : vector<8x128xf32>
    %372 = vector.extract_strided_slice %357 {offsets = [0, 384], sizes = [8, 128], strides = [1, 1]} : vector<8x512xf32> to vector<8x128xf32>
    %373 = arith.negf %372 : vector<8x128xf32>
    %374 = math.exp %373 : vector<8x128xf32>
    %cst_125 = arith.constant 1.000000e+00 : f32
    %375 = vector.broadcast %cst_125 : f32 to vector<8x128xf32>
    %376 = arith.addf %375, %374 : vector<8x128xf32>
    %377 = arith.divf %375, %376 : vector<8x128xf32>
    %378 = arith.mulf %369, %311 : vector<8x128xf32>
    %379 = arith.mulf %363, %371 : vector<8x128xf32>
    %380 = arith.addf %378, %379 : vector<8x128xf32>
    %381 = math.tanh %380 : vector<8x128xf32>
    %382 = arith.mulf %377, %381 : vector<8x128xf32>
    %c4_126 = arith.constant 4 : index
    %c0_127 = arith.constant 0 : index
    %c0_128 = arith.constant 0 : index
    %383 = vector.load %arg7[%c4_126, %c0_127, %c0_128] : memref<12x8x128xf32, #tpu.memory_space<vmem>>, vector<1x8x128xf32>
    %384 = vector.shape_cast %383 : vector<1x8x128xf32> to vector<8x128xf32>
    %385 = vector.shape_cast %382 : vector<8x128xf32> to vector<1x8x128xf32>
    tpu.vector_store %arg7[%c4_126, %c0_127, %c0_128], %385 {strides = array<i32>} : memref<12x8x128xf32, #tpu.memory_space<vmem>>, vector<1x8x128xf32>,
    %c6 = arith.constant 6 : index
    %c0_129 = arith.constant 0 : index
    %c0_130 = arith.constant 0 : index
    %386 = vector.load %arg8[%c6, %c0_129, %c0_130] : memref<12x8x512xf32, #tpu.memory_space<vmem>>, vector<1x8x512xf32>
    %387 = vector.shape_cast %386 : vector<1x8x512xf32> to vector<8x512xf32>
    %388 = arith.truncf %347 : vector<8x128xf32> to vector<8x128xbf16>
    %c0_131 = arith.constant 0 : index
    %c0_132 = arith.constant 0 : index
    %389 = vector.load %arg2[%c0_131, %c0_132] : memref<128x512xbf16, #tpu.memory_space<vmem>>, vector<128x512xbf16>
    %cst_133 = arith.constant dense<0.000000e+00> : vector<8x512xf32>
    %390 = tpu.matmul %388, %389, %cst_133 {dimension_numbers = #tpu.dot_dimension_numbers<[1], [0], [0], [1], [0, 0, 1, 1], [], []>} : vector<8x128xbf16>, vector<128x512xbf16>, vector<8x512xf32> -> vector<8x512xf32>
    %391 = arith.addf %387, %390 : vector<8x512xf32>
    %392 = vector.extract_strided_slice %391 {offsets = [0, 0], sizes = [8, 128], strides = [1, 1]} : vector<8x512xf32> to vector<8x128xf32>
    %393 = arith.negf %392 : vector<8x128xf32>
    %394 = math.exp %393 : vector<8x128xf32>
    %cst_134 = arith.constant 1.000000e+00 : f32
    %395 = vector.broadcast %cst_134 : f32 to vector<8x128xf32>
    %396 = arith.addf %395, %394 : vector<8x128xf32>
    %397 = arith.divf %395, %396 : vector<8x128xf32>
    %398 = vector.extract_strided_slice %391 {offsets = [0, 128], sizes = [8, 128], strides = [1, 1]} : vector<8x512xf32> to vector<8x128xf32>
    %399 = arith.negf %398 : vector<8x128xf32>
    %400 = math.exp %399 : vector<8x128xf32>
    %cst_135 = arith.constant 1.000000e+00 : f32
    %401 = vector.broadcast %cst_135 : f32 to vector<8x128xf32>
    %402 = arith.addf %401, %400 : vector<8x128xf32>
    %403 = arith.divf %401, %402 : vector<8x128xf32>
    %404 = vector.extract_strided_slice %391 {offsets = [0, 256], sizes = [8, 128], strides = [1, 1]} : vector<8x512xf32> to vector<8x128xf32>
    %405 = math.tanh %404 : vector<8x128xf32>
    %406 = vector.extract_strided_slice %391 {offsets = [0, 384], sizes = [8, 128], strides = [1, 1]} : vector<8x512xf32> to vector<8x128xf32>
    %407 = arith.negf %406 : vector<8x128xf32>
    %408 = math.exp %407 : vector<8x128xf32>
    %cst_136 = arith.constant 1.000000e+00 : f32
    %409 = vector.broadcast %cst_136 : f32 to vector<8x128xf32>
    %410 = arith.addf %409, %408 : vector<8x128xf32>
    %411 = arith.divf %409, %410 : vector<8x128xf32>
    %412 = arith.mulf %403, %345 : vector<8x128xf32>
    %413 = arith.mulf %397, %405 : vector<8x128xf32>
    %414 = arith.addf %412, %413 : vector<8x128xf32>
    %415 = math.tanh %414 : vector<8x128xf32>
    %416 = arith.mulf %411, %415 : vector<8x128xf32>
    %417 = arith.truncf %347 : vector<8x128xf32> to vector<8x128xbf16>
    %c0_137 = arith.constant 0 : index
    %c0_138 = arith.constant 0 : index
    %418 = vector.load %arg4[%c0_137, %c0_138] : memref<128x512xbf16, #tpu.memory_space<vmem>>, vector<128x512xbf16>
    %cst_139 = arith.constant dense<0.000000e+00> : vector<8x512xf32>
    %419 = tpu.matmul %417, %418, %cst_139 {dimension_numbers = #tpu.dot_dimension_numbers<[1], [0], [0], [1], [0, 0, 1, 1], [], []>} : vector<8x128xbf16>, vector<128x512xbf16>, vector<8x512xf32> -> vector<8x512xf32>
    %420 = arith.truncf %382 : vector<8x128xf32> to vector<8x128xbf16>
    %c0_140 = arith.constant 0 : index
    %c0_141 = arith.constant 0 : index
    %421 = vector.load %arg5[%c0_140, %c0_141] : memref<128x512xbf16, #tpu.memory_space<vmem>>, vector<128x512xbf16>
    %cst_142 = arith.constant dense<0.000000e+00> : vector<8x512xf32>
    %422 = tpu.matmul %420, %421, %cst_142 {dimension_numbers = #tpu.dot_dimension_numbers<[1], [0], [0], [1], [0, 0, 1, 1], [], []>} : vector<8x128xbf16>, vector<128x512xbf16>, vector<8x512xf32> -> vector<8x512xf32>
    %423 = arith.addf %419, %422 : vector<8x512xf32>
    %c0_143 = arith.constant 0 : index
    %c0_144 = arith.constant 0 : index
    %424 = vector.load %arg6[%c0_143, %c0_144] : memref<1x512xf32, #tpu.memory_space<vmem>>, vector<1x512xf32>
    %425 = vector.broadcast %424 : vector<1x512xf32> to vector<8x512xf32>
    %426 = arith.addf %423, %425 : vector<8x512xf32>
    %427 = vector.extract_strided_slice %426 {offsets = [0, 0], sizes = [8, 128], strides = [1, 1]} : vector<8x512xf32> to vector<8x128xf32>
    %428 = arith.negf %427 : vector<8x128xf32>
    %429 = math.exp %428 : vector<8x128xf32>
    %cst_145 = arith.constant 1.000000e+00 : f32
    %430 = vector.broadcast %cst_145 : f32 to vector<8x128xf32>
    %431 = arith.addf %430, %429 : vector<8x128xf32>
    %432 = arith.divf %430, %431 : vector<8x128xf32>
    %433 = vector.extract_strided_slice %426 {offsets = [0, 128], sizes = [8, 128], strides = [1, 1]} : vector<8x512xf32> to vector<8x128xf32>
    %434 = arith.negf %433 : vector<8x128xf32>
    %435 = math.exp %434 : vector<8x128xf32>
    %cst_146 = arith.constant 1.000000e+00 : f32
    %436 = vector.broadcast %cst_146 : f32 to vector<8x128xf32>
    %437 = arith.addf %436, %435 : vector<8x128xf32>
    %438 = arith.divf %436, %437 : vector<8x128xf32>
    %439 = vector.extract_strided_slice %426 {offsets = [0, 256], sizes = [8, 128], strides = [1, 1]} : vector<8x512xf32> to vector<8x128xf32>
    %440 = math.tanh %439 : vector<8x128xf32>
    %441 = vector.extract_strided_slice %426 {offsets = [0, 384], sizes = [8, 128], strides = [1, 1]} : vector<8x512xf32> to vector<8x128xf32>
    %442 = arith.negf %441 : vector<8x128xf32>
    %443 = math.exp %442 : vector<8x128xf32>
    %cst_147 = arith.constant 1.000000e+00 : f32
    %444 = vector.broadcast %cst_147 : f32 to vector<8x128xf32>
    %445 = arith.addf %444, %443 : vector<8x128xf32>
    %446 = arith.divf %444, %445 : vector<8x128xf32>
    %447 = arith.mulf %438, %380 : vector<8x128xf32>
    %448 = arith.mulf %432, %440 : vector<8x128xf32>
    %449 = arith.addf %447, %448 : vector<8x128xf32>
    %450 = math.tanh %449 : vector<8x128xf32>
    %451 = arith.mulf %446, %450 : vector<8x128xf32>
    %c5_148 = arith.constant 5 : index
    %c0_149 = arith.constant 0 : index
    %c0_150 = arith.constant 0 : index
    %452 = vector.load %arg7[%c5_148, %c0_149, %c0_150] : memref<12x8x128xf32, #tpu.memory_space<vmem>>, vector<1x8x128xf32>
    %453 = vector.shape_cast %452 : vector<1x8x128xf32> to vector<8x128xf32>
    %454 = vector.shape_cast %451 : vector<8x128xf32> to vector<1x8x128xf32>
    tpu.vector_store %arg7[%c5_148, %c0_149, %c0_150], %454 {strides = array<i32>} : memref<12x8x128xf32, #tpu.memory_space<vmem>>, vector<1x8x128xf32>,
    %c7 = arith.constant 7 : index
    %c0_151 = arith.constant 0 : index
    %c0_152 = arith.constant 0 : index
    %455 = vector.load %arg8[%c7, %c0_151, %c0_152] : memref<12x8x512xf32, #tpu.memory_space<vmem>>, vector<1x8x512xf32>
    %456 = vector.shape_cast %455 : vector<1x8x512xf32> to vector<8x512xf32>
    %457 = arith.truncf %416 : vector<8x128xf32> to vector<8x128xbf16>
    %c0_153 = arith.constant 0 : index
    %c0_154 = arith.constant 0 : index
    %458 = vector.load %arg2[%c0_153, %c0_154] : memref<128x512xbf16, #tpu.memory_space<vmem>>, vector<128x512xbf16>
    %cst_155 = arith.constant dense<0.000000e+00> : vector<8x512xf32>
    %459 = tpu.matmul %457, %458, %cst_155 {dimension_numbers = #tpu.dot_dimension_numbers<[1], [0], [0], [1], [0, 0, 1, 1], [], []>} : vector<8x128xbf16>, vector<128x512xbf16>, vector<8x512xf32> -> vector<8x512xf32>
    %460 = arith.addf %456, %459 : vector<8x512xf32>
    %461 = vector.extract_strided_slice %460 {offsets = [0, 0], sizes = [8, 128], strides = [1, 1]} : vector<8x512xf32> to vector<8x128xf32>
    %462 = arith.negf %461 : vector<8x128xf32>
    %463 = math.exp %462 : vector<8x128xf32>
    %cst_156 = arith.constant 1.000000e+00 : f32
    %464 = vector.broadcast %cst_156 : f32 to vector<8x128xf32>
    %465 = arith.addf %464, %463 : vector<8x128xf32>
    %466 = arith.divf %464, %465 : vector<8x128xf32>
    %467 = vector.extract_strided_slice %460 {offsets = [0, 128], sizes = [8, 128], strides = [1, 1]} : vector<8x512xf32> to vector<8x128xf32>
    %468 = arith.negf %467 : vector<8x128xf32>
    %469 = math.exp %468 : vector<8x128xf32>
    %cst_157 = arith.constant 1.000000e+00 : f32
    %470 = vector.broadcast %cst_157 : f32 to vector<8x128xf32>
    %471 = arith.addf %470, %469 : vector<8x128xf32>
    %472 = arith.divf %470, %471 : vector<8x128xf32>
    %473 = vector.extract_strided_slice %460 {offsets = [0, 256], sizes = [8, 128], strides = [1, 1]} : vector<8x512xf32> to vector<8x128xf32>
    %474 = math.tanh %473 : vector<8x128xf32>
    %475 = vector.extract_strided_slice %460 {offsets = [0, 384], sizes = [8, 128], strides = [1, 1]} : vector<8x512xf32> to vector<8x128xf32>
    %476 = arith.negf %475 : vector<8x128xf32>
    %477 = math.exp %476 : vector<8x128xf32>
    %cst_158 = arith.constant 1.000000e+00 : f32
    %478 = vector.broadcast %cst_158 : f32 to vector<8x128xf32>
    %479 = arith.addf %478, %477 : vector<8x128xf32>
    %480 = arith.divf %478, %479 : vector<8x128xf32>
    %481 = arith.mulf %472, %414 : vector<8x128xf32>
    %482 = arith.mulf %466, %474 : vector<8x128xf32>
    %483 = arith.addf %481, %482 : vector<8x128xf32>
    %484 = math.tanh %483 : vector<8x128xf32>
    %485 = arith.mulf %480, %484 : vector<8x128xf32>
    %486 = arith.truncf %416 : vector<8x128xf32> to vector<8x128xbf16>
    %c0_159 = arith.constant 0 : index
    %c0_160 = arith.constant 0 : index
    %487 = vector.load %arg4[%c0_159, %c0_160] : memref<128x512xbf16, #tpu.memory_space<vmem>>, vector<128x512xbf16>
    %cst_161 = arith.constant dense<0.000000e+00> : vector<8x512xf32>
    %488 = tpu.matmul %486, %487, %cst_161 {dimension_numbers = #tpu.dot_dimension_numbers<[1], [0], [0], [1], [0, 0, 1, 1], [], []>} : vector<8x128xbf16>, vector<128x512xbf16>, vector<8x512xf32> -> vector<8x512xf32>
    %489 = arith.truncf %451 : vector<8x128xf32> to vector<8x128xbf16>
    %c0_162 = arith.constant 0 : index
    %c0_163 = arith.constant 0 : index
    %490 = vector.load %arg5[%c0_162, %c0_163] : memref<128x512xbf16, #tpu.memory_space<vmem>>, vector<128x512xbf16>
    %cst_164 = arith.constant dense<0.000000e+00> : vector<8x512xf32>
    %491 = tpu.matmul %489, %490, %cst_164 {dimension_numbers = #tpu.dot_dimension_numbers<[1], [0], [0], [1], [0, 0, 1, 1], [], []>} : vector<8x128xbf16>, vector<128x512xbf16>, vector<8x512xf32> -> vector<8x512xf32>
    %492 = arith.addf %488, %491 : vector<8x512xf32>
    %c0_165 = arith.constant 0 : index
    %c0_166 = arith.constant 0 : index
    %493 = vector.load %arg6[%c0_165, %c0_166] : memref<1x512xf32, #tpu.memory_space<vmem>>, vector<1x512xf32>
    %494 = vector.broadcast %493 : vector<1x512xf32> to vector<8x512xf32>
    %495 = arith.addf %492, %494 : vector<8x512xf32>
    %496 = vector.extract_strided_slice %495 {offsets = [0, 0], sizes = [8, 128], strides = [1, 1]} : vector<8x512xf32> to vector<8x128xf32>
    %497 = arith.negf %496 : vector<8x128xf32>
    %498 = math.exp %497 : vector<8x128xf32>
    %cst_167 = arith.constant 1.000000e+00 : f32
    %499 = vector.broadcast %cst_167 : f32 to vector<8x128xf32>
    %500 = arith.addf %499, %498 : vector<8x128xf32>
    %501 = arith.divf %499, %500 : vector<8x128xf32>
    %502 = vector.extract_strided_slice %495 {offsets = [0, 128], sizes = [8, 128], strides = [1, 1]} : vector<8x512xf32> to vector<8x128xf32>
    %503 = arith.negf %502 : vector<8x128xf32>
    %504 = math.exp %503 : vector<8x128xf32>
    %cst_168 = arith.constant 1.000000e+00 : f32
    %505 = vector.broadcast %cst_168 : f32 to vector<8x128xf32>
    %506 = arith.addf %505, %504 : vector<8x128xf32>
    %507 = arith.divf %505, %506 : vector<8x128xf32>
    %508 = vector.extract_strided_slice %495 {offsets = [0, 256], sizes = [8, 128], strides = [1, 1]} : vector<8x512xf32> to vector<8x128xf32>
    %509 = math.tanh %508 : vector<8x128xf32>
    %510 = vector.extract_strided_slice %495 {offsets = [0, 384], sizes = [8, 128], strides = [1, 1]} : vector<8x512xf32> to vector<8x128xf32>
    %511 = arith.negf %510 : vector<8x128xf32>
    %512 = math.exp %511 : vector<8x128xf32>
    %cst_169 = arith.constant 1.000000e+00 : f32
    %513 = vector.broadcast %cst_169 : f32 to vector<8x128xf32>
    %514 = arith.addf %513, %512 : vector<8x128xf32>
    %515 = arith.divf %513, %514 : vector<8x128xf32>
    %516 = arith.mulf %507, %449 : vector<8x128xf32>
    %517 = arith.mulf %501, %509 : vector<8x128xf32>
    %518 = arith.addf %516, %517 : vector<8x128xf32>
    %519 = math.tanh %518 : vector<8x128xf32>
    %520 = arith.mulf %515, %519 : vector<8x128xf32>
    %c6_170 = arith.constant 6 : index
    %c0_171 = arith.constant 0 : index
    %c0_172 = arith.constant 0 : index
    %521 = vector.load %arg7[%c6_170, %c0_171, %c0_172] : memref<12x8x128xf32, #tpu.memory_space<vmem>>, vector<1x8x128xf32>
    %522 = vector.shape_cast %521 : vector<1x8x128xf32> to vector<8x128xf32>
    %523 = vector.shape_cast %520 : vector<8x128xf32> to vector<1x8x128xf32>
    tpu.vector_store %arg7[%c6_170, %c0_171, %c0_172], %523 {strides = array<i32>} : memref<12x8x128xf32, #tpu.memory_space<vmem>>, vector<1x8x128xf32>,
    %c8 = arith.constant 8 : index
    %c0_173 = arith.constant 0 : index
    %c0_174 = arith.constant 0 : index
    %524 = vector.load %arg8[%c8, %c0_173, %c0_174] : memref<12x8x512xf32, #tpu.memory_space<vmem>>, vector<1x8x512xf32>
    %525 = vector.shape_cast %524 : vector<1x8x512xf32> to vector<8x512xf32>
    %526 = arith.truncf %485 : vector<8x128xf32> to vector<8x128xbf16>
    %c0_175 = arith.constant 0 : index
    %c0_176 = arith.constant 0 : index
    %527 = vector.load %arg2[%c0_175, %c0_176] : memref<128x512xbf16, #tpu.memory_space<vmem>>, vector<128x512xbf16>
    %cst_177 = arith.constant dense<0.000000e+00> : vector<8x512xf32>
    %528 = tpu.matmul %526, %527, %cst_177 {dimension_numbers = #tpu.dot_dimension_numbers<[1], [0], [0], [1], [0, 0, 1, 1], [], []>} : vector<8x128xbf16>, vector<128x512xbf16>, vector<8x512xf32> -> vector<8x512xf32>
    %529 = arith.addf %525, %528 : vector<8x512xf32>
    %530 = vector.extract_strided_slice %529 {offsets = [0, 0], sizes = [8, 128], strides = [1, 1]} : vector<8x512xf32> to vector<8x128xf32>
    %531 = arith.negf %530 : vector<8x128xf32>
    %532 = math.exp %531 : vector<8x128xf32>
    %cst_178 = arith.constant 1.000000e+00 : f32
    %533 = vector.broadcast %cst_178 : f32 to vector<8x128xf32>
    %534 = arith.addf %533, %532 : vector<8x128xf32>
    %535 = arith.divf %533, %534 : vector<8x128xf32>
    %536 = vector.extract_strided_slice %529 {offsets = [0, 128], sizes = [8, 128], strides = [1, 1]} : vector<8x512xf32> to vector<8x128xf32>
    %537 = arith.negf %536 : vector<8x128xf32>
    %538 = math.exp %537 : vector<8x128xf32>
    %cst_179 = arith.constant 1.000000e+00 : f32
    %539 = vector.broadcast %cst_179 : f32 to vector<8x128xf32>
    %540 = arith.addf %539, %538 : vector<8x128xf32>
    %541 = arith.divf %539, %540 : vector<8x128xf32>
    %542 = vector.extract_strided_slice %529 {offsets = [0, 256], sizes = [8, 128], strides = [1, 1]} : vector<8x512xf32> to vector<8x128xf32>
    %543 = math.tanh %542 : vector<8x128xf32>
    %544 = vector.extract_strided_slice %529 {offsets = [0, 384], sizes = [8, 128], strides = [1, 1]} : vector<8x512xf32> to vector<8x128xf32>
    %545 = arith.negf %544 : vector<8x128xf32>
    %546 = math.exp %545 : vector<8x128xf32>
    %cst_180 = arith.constant 1.000000e+00 : f32
    %547 = vector.broadcast %cst_180 : f32 to vector<8x128xf32>
    %548 = arith.addf %547, %546 : vector<8x128xf32>
    %549 = arith.divf %547, %548 : vector<8x128xf32>
    %550 = arith.mulf %541, %483 : vector<8x128xf32>
    %551 = arith.mulf %535, %543 : vector<8x128xf32>
    %552 = arith.addf %550, %551 : vector<8x128xf32>
    %553 = math.tanh %552 : vector<8x128xf32>
    %554 = arith.mulf %549, %553 : vector<8x128xf32>
    %555 = arith.truncf %485 : vector<8x128xf32> to vector<8x128xbf16>
    %c0_181 = arith.constant 0 : index
    %c0_182 = arith.constant 0 : index
    %556 = vector.load %arg4[%c0_181, %c0_182] : memref<128x512xbf16, #tpu.memory_space<vmem>>, vector<128x512xbf16>
    %cst_183 = arith.constant dense<0.000000e+00> : vector<8x512xf32>
    %557 = tpu.matmul %555, %556, %cst_183 {dimension_numbers = #tpu.dot_dimension_numbers<[1], [0], [0], [1], [0, 0, 1, 1], [], []>} : vector<8x128xbf16>, vector<128x512xbf16>, vector<8x512xf32> -> vector<8x512xf32>
    %558 = arith.truncf %520 : vector<8x128xf32> to vector<8x128xbf16>
    %c0_184 = arith.constant 0 : index
    %c0_185 = arith.constant 0 : index
    %559 = vector.load %arg5[%c0_184, %c0_185] : memref<128x512xbf16, #tpu.memory_space<vmem>>, vector<128x512xbf16>
    %cst_186 = arith.constant dense<0.000000e+00> : vector<8x512xf32>
    %560 = tpu.matmul %558, %559, %cst_186 {dimension_numbers = #tpu.dot_dimension_numbers<[1], [0], [0], [1], [0, 0, 1, 1], [], []>} : vector<8x128xbf16>, vector<128x512xbf16>, vector<8x512xf32> -> vector<8x512xf32>
    %561 = arith.addf %557, %560 : vector<8x512xf32>
    %c0_187 = arith.constant 0 : index
    %c0_188 = arith.constant 0 : index
    %562 = vector.load %arg6[%c0_187, %c0_188] : memref<1x512xf32, #tpu.memory_space<vmem>>, vector<1x512xf32>
    %563 = vector.broadcast %562 : vector<1x512xf32> to vector<8x512xf32>
    %564 = arith.addf %561, %563 : vector<8x512xf32>
    %565 = vector.extract_strided_slice %564 {offsets = [0, 0], sizes = [8, 128], strides = [1, 1]} : vector<8x512xf32> to vector<8x128xf32>
    %566 = arith.negf %565 : vector<8x128xf32>
    %567 = math.exp %566 : vector<8x128xf32>
    %cst_189 = arith.constant 1.000000e+00 : f32
    %568 = vector.broadcast %cst_189 : f32 to vector<8x128xf32>
    %569 = arith.addf %568, %567 : vector<8x128xf32>
    %570 = arith.divf %568, %569 : vector<8x128xf32>
    %571 = vector.extract_strided_slice %564 {offsets = [0, 128], sizes = [8, 128], strides = [1, 1]} : vector<8x512xf32> to vector<8x128xf32>
    %572 = arith.negf %571 : vector<8x128xf32>
    %573 = math.exp %572 : vector<8x128xf32>
    %cst_190 = arith.constant 1.000000e+00 : f32
    %574 = vector.broadcast %cst_190 : f32 to vector<8x128xf32>
    %575 = arith.addf %574, %573 : vector<8x128xf32>
    %576 = arith.divf %574, %575 : vector<8x128xf32>
    %577 = vector.extract_strided_slice %564 {offsets = [0, 256], sizes = [8, 128], strides = [1, 1]} : vector<8x512xf32> to vector<8x128xf32>
    %578 = math.tanh %577 : vector<8x128xf32>
    %579 = vector.extract_strided_slice %564 {offsets = [0, 384], sizes = [8, 128], strides = [1, 1]} : vector<8x512xf32> to vector<8x128xf32>
    %580 = arith.negf %579 : vector<8x128xf32>
    %581 = math.exp %580 : vector<8x128xf32>
    %cst_191 = arith.constant 1.000000e+00 : f32
    %582 = vector.broadcast %cst_191 : f32 to vector<8x128xf32>
    %583 = arith.addf %582, %581 : vector<8x128xf32>
    %584 = arith.divf %582, %583 : vector<8x128xf32>
    %585 = arith.mulf %576, %518 : vector<8x128xf32>
    %586 = arith.mulf %570, %578 : vector<8x128xf32>
    %587 = arith.addf %585, %586 : vector<8x128xf32>
    %588 = math.tanh %587 : vector<8x128xf32>
    %589 = arith.mulf %584, %588 : vector<8x128xf32>
    %c7_192 = arith.constant 7 : index
    %c0_193 = arith.constant 0 : index
    %c0_194 = arith.constant 0 : index
    %590 = vector.load %arg7[%c7_192, %c0_193, %c0_194] : memref<12x8x128xf32, #tpu.memory_space<vmem>>, vector<1x8x128xf32>
    %591 = vector.shape_cast %590 : vector<1x8x128xf32> to vector<8x128xf32>
    %592 = vector.shape_cast %589 : vector<8x128xf32> to vector<1x8x128xf32>
    tpu.vector_store %arg7[%c7_192, %c0_193, %c0_194], %592 {strides = array<i32>} : memref<12x8x128xf32, #tpu.memory_space<vmem>>, vector<1x8x128xf32>,
    %c9 = arith.constant 9 : index
    %c0_195 = arith.constant 0 : index
    %c0_196 = arith.constant 0 : index
    %593 = vector.load %arg8[%c9, %c0_195, %c0_196] : memref<12x8x512xf32, #tpu.memory_space<vmem>>, vector<1x8x512xf32>
    %594 = vector.shape_cast %593 : vector<1x8x512xf32> to vector<8x512xf32>
    %595 = arith.truncf %554 : vector<8x128xf32> to vector<8x128xbf16>
    %c0_197 = arith.constant 0 : index
    %c0_198 = arith.constant 0 : index
    %596 = vector.load %arg2[%c0_197, %c0_198] : memref<128x512xbf16, #tpu.memory_space<vmem>>, vector<128x512xbf16>
    %cst_199 = arith.constant dense<0.000000e+00> : vector<8x512xf32>
    %597 = tpu.matmul %595, %596, %cst_199 {dimension_numbers = #tpu.dot_dimension_numbers<[1], [0], [0], [1], [0, 0, 1, 1], [], []>} : vector<8x128xbf16>, vector<128x512xbf16>, vector<8x512xf32> -> vector<8x512xf32>
    %598 = arith.addf %594, %597 : vector<8x512xf32>
    %599 = vector.extract_strided_slice %598 {offsets = [0, 0], sizes = [8, 128], strides = [1, 1]} : vector<8x512xf32> to vector<8x128xf32>
    %600 = arith.negf %599 : vector<8x128xf32>
    %601 = math.exp %600 : vector<8x128xf32>
    %cst_200 = arith.constant 1.000000e+00 : f32
    %602 = vector.broadcast %cst_200 : f32 to vector<8x128xf32>
    %603 = arith.addf %602, %601 : vector<8x128xf32>
    %604 = arith.divf %602, %603 : vector<8x128xf32>
    %605 = vector.extract_strided_slice %598 {offsets = [0, 128], sizes = [8, 128], strides = [1, 1]} : vector<8x512xf32> to vector<8x128xf32>
    %606 = arith.negf %605 : vector<8x128xf32>
    %607 = math.exp %606 : vector<8x128xf32>
    %cst_201 = arith.constant 1.000000e+00 : f32
    %608 = vector.broadcast %cst_201 : f32 to vector<8x128xf32>
    %609 = arith.addf %608, %607 : vector<8x128xf32>
    %610 = arith.divf %608, %609 : vector<8x128xf32>
    %611 = vector.extract_strided_slice %598 {offsets = [0, 256], sizes = [8, 128], strides = [1, 1]} : vector<8x512xf32> to vector<8x128xf32>
    %612 = math.tanh %611 : vector<8x128xf32>
    %613 = vector.extract_strided_slice %598 {offsets = [0, 384], sizes = [8, 128], strides = [1, 1]} : vector<8x512xf32> to vector<8x128xf32>
    %614 = arith.negf %613 : vector<8x128xf32>
    %615 = math.exp %614 : vector<8x128xf32>
    %cst_202 = arith.constant 1.000000e+00 : f32
    %616 = vector.broadcast %cst_202 : f32 to vector<8x128xf32>
    %617 = arith.addf %616, %615 : vector<8x128xf32>
    %618 = arith.divf %616, %617 : vector<8x128xf32>
    %619 = arith.mulf %610, %552 : vector<8x128xf32>
    %620 = arith.mulf %604, %612 : vector<8x128xf32>
    %621 = arith.addf %619, %620 : vector<8x128xf32>
    %622 = math.tanh %621 : vector<8x128xf32>
    %623 = arith.mulf %618, %622 : vector<8x128xf32>
    %624 = arith.truncf %554 : vector<8x128xf32> to vector<8x128xbf16>
    %c0_203 = arith.constant 0 : index
    %c0_204 = arith.constant 0 : index
    %625 = vector.load %arg4[%c0_203, %c0_204] : memref<128x512xbf16, #tpu.memory_space<vmem>>, vector<128x512xbf16>
    %cst_205 = arith.constant dense<0.000000e+00> : vector<8x512xf32>
    %626 = tpu.matmul %624, %625, %cst_205 {dimension_numbers = #tpu.dot_dimension_numbers<[1], [0], [0], [1], [0, 0, 1, 1], [], []>} : vector<8x128xbf16>, vector<128x512xbf16>, vector<8x512xf32> -> vector<8x512xf32>
    %627 = arith.truncf %589 : vector<8x128xf32> to vector<8x128xbf16>
    %c0_206 = arith.constant 0 : index
    %c0_207 = arith.constant 0 : index
    %628 = vector.load %arg5[%c0_206, %c0_207] : memref<128x512xbf16, #tpu.memory_space<vmem>>, vector<128x512xbf16>
    %cst_208 = arith.constant dense<0.000000e+00> : vector<8x512xf32>
    %629 = tpu.matmul %627, %628, %cst_208 {dimension_numbers = #tpu.dot_dimension_numbers<[1], [0], [0], [1], [0, 0, 1, 1], [], []>} : vector<8x128xbf16>, vector<128x512xbf16>, vector<8x512xf32> -> vector<8x512xf32>
    %630 = arith.addf %626, %629 : vector<8x512xf32>
    %c0_209 = arith.constant 0 : index
    %c0_210 = arith.constant 0 : index
    %631 = vector.load %arg6[%c0_209, %c0_210] : memref<1x512xf32, #tpu.memory_space<vmem>>, vector<1x512xf32>
    %632 = vector.broadcast %631 : vector<1x512xf32> to vector<8x512xf32>
    %633 = arith.addf %630, %632 : vector<8x512xf32>
    %634 = vector.extract_strided_slice %633 {offsets = [0, 0], sizes = [8, 128], strides = [1, 1]} : vector<8x512xf32> to vector<8x128xf32>
    %635 = arith.negf %634 : vector<8x128xf32>
    %636 = math.exp %635 : vector<8x128xf32>
    %cst_211 = arith.constant 1.000000e+00 : f32
    %637 = vector.broadcast %cst_211 : f32 to vector<8x128xf32>
    %638 = arith.addf %637, %636 : vector<8x128xf32>
    %639 = arith.divf %637, %638 : vector<8x128xf32>
    %640 = vector.extract_strided_slice %633 {offsets = [0, 128], sizes = [8, 128], strides = [1, 1]} : vector<8x512xf32> to vector<8x128xf32>
    %641 = arith.negf %640 : vector<8x128xf32>
    %642 = math.exp %641 : vector<8x128xf32>
    %cst_212 = arith.constant 1.000000e+00 : f32
    %643 = vector.broadcast %cst_212 : f32 to vector<8x128xf32>
    %644 = arith.addf %643, %642 : vector<8x128xf32>
    %645 = arith.divf %643, %644 : vector<8x128xf32>
    %646 = vector.extract_strided_slice %633 {offsets = [0, 256], sizes = [8, 128], strides = [1, 1]} : vector<8x512xf32> to vector<8x128xf32>
    %647 = math.tanh %646 : vector<8x128xf32>
    %648 = vector.extract_strided_slice %633 {offsets = [0, 384], sizes = [8, 128], strides = [1, 1]} : vector<8x512xf32> to vector<8x128xf32>
    %649 = arith.negf %648 : vector<8x128xf32>
    %650 = math.exp %649 : vector<8x128xf32>
    %cst_213 = arith.constant 1.000000e+00 : f32
    %651 = vector.broadcast %cst_213 : f32 to vector<8x128xf32>
    %652 = arith.addf %651, %650 : vector<8x128xf32>
    %653 = arith.divf %651, %652 : vector<8x128xf32>
    %654 = arith.mulf %645, %587 : vector<8x128xf32>
    %655 = arith.mulf %639, %647 : vector<8x128xf32>
    %656 = arith.addf %654, %655 : vector<8x128xf32>
    %657 = math.tanh %656 : vector<8x128xf32>
    %658 = arith.mulf %653, %657 : vector<8x128xf32>
    %c8_214 = arith.constant 8 : index
    %c0_215 = arith.constant 0 : index
    %c0_216 = arith.constant 0 : index
    %659 = vector.load %arg7[%c8_214, %c0_215, %c0_216] : memref<12x8x128xf32, #tpu.memory_space<vmem>>, vector<1x8x128xf32>
    %660 = vector.shape_cast %659 : vector<1x8x128xf32> to vector<8x128xf32>
    %661 = vector.shape_cast %658 : vector<8x128xf32> to vector<1x8x128xf32>
    tpu.vector_store %arg7[%c8_214, %c0_215, %c0_216], %661 {strides = array<i32>} : memref<12x8x128xf32, #tpu.memory_space<vmem>>, vector<1x8x128xf32>,
    %c10 = arith.constant 10 : index
    %c0_217 = arith.constant 0 : index
    %c0_218 = arith.constant 0 : index
    %662 = vector.load %arg8[%c10, %c0_217, %c0_218] : memref<12x8x512xf32, #tpu.memory_space<vmem>>, vector<1x8x512xf32>
    %663 = vector.shape_cast %662 : vector<1x8x512xf32> to vector<8x512xf32>
    %664 = arith.truncf %623 : vector<8x128xf32> to vector<8x128xbf16>
    %c0_219 = arith.constant 0 : index
    %c0_220 = arith.constant 0 : index
    %665 = vector.load %arg2[%c0_219, %c0_220] : memref<128x512xbf16, #tpu.memory_space<vmem>>, vector<128x512xbf16>
    %cst_221 = arith.constant dense<0.000000e+00> : vector<8x512xf32>
    %666 = tpu.matmul %664, %665, %cst_221 {dimension_numbers = #tpu.dot_dimension_numbers<[1], [0], [0], [1], [0, 0, 1, 1], [], []>} : vector<8x128xbf16>, vector<128x512xbf16>, vector<8x512xf32> -> vector<8x512xf32>
    %667 = arith.addf %663, %666 : vector<8x512xf32>
    %668 = vector.extract_strided_slice %667 {offsets = [0, 0], sizes = [8, 128], strides = [1, 1]} : vector<8x512xf32> to vector<8x128xf32>
    %669 = arith.negf %668 : vector<8x128xf32>
    %670 = math.exp %669 : vector<8x128xf32>
    %cst_222 = arith.constant 1.000000e+00 : f32
    %671 = vector.broadcast %cst_222 : f32 to vector<8x128xf32>
    %672 = arith.addf %671, %670 : vector<8x128xf32>
    %673 = arith.divf %671, %672 : vector<8x128xf32>
    %674 = vector.extract_strided_slice %667 {offsets = [0, 128], sizes = [8, 128], strides = [1, 1]} : vector<8x512xf32> to vector<8x128xf32>
    %675 = arith.negf %674 : vector<8x128xf32>
    %676 = math.exp %675 : vector<8x128xf32>
    %cst_223 = arith.constant 1.000000e+00 : f32
    %677 = vector.broadcast %cst_223 : f32 to vector<8x128xf32>
    %678 = arith.addf %677, %676 : vector<8x128xf32>
    %679 = arith.divf %677, %678 : vector<8x128xf32>
    %680 = vector.extract_strided_slice %667 {offsets = [0, 256], sizes = [8, 128], strides = [1, 1]} : vector<8x512xf32> to vector<8x128xf32>
    %681 = math.tanh %680 : vector<8x128xf32>
    %682 = vector.extract_strided_slice %667 {offsets = [0, 384], sizes = [8, 128], strides = [1, 1]} : vector<8x512xf32> to vector<8x128xf32>
    %683 = arith.negf %682 : vector<8x128xf32>
    %684 = math.exp %683 : vector<8x128xf32>
    %cst_224 = arith.constant 1.000000e+00 : f32
    %685 = vector.broadcast %cst_224 : f32 to vector<8x128xf32>
    %686 = arith.addf %685, %684 : vector<8x128xf32>
    %687 = arith.divf %685, %686 : vector<8x128xf32>
    %688 = arith.mulf %679, %621 : vector<8x128xf32>
    %689 = arith.mulf %673, %681 : vector<8x128xf32>
    %690 = arith.addf %688, %689 : vector<8x128xf32>
    %691 = math.tanh %690 : vector<8x128xf32>
    %692 = arith.mulf %687, %691 : vector<8x128xf32>
    %693 = arith.truncf %623 : vector<8x128xf32> to vector<8x128xbf16>
    %c0_225 = arith.constant 0 : index
    %c0_226 = arith.constant 0 : index
    %694 = vector.load %arg4[%c0_225, %c0_226] : memref<128x512xbf16, #tpu.memory_space<vmem>>, vector<128x512xbf16>
    %cst_227 = arith.constant dense<0.000000e+00> : vector<8x512xf32>
    %695 = tpu.matmul %693, %694, %cst_227 {dimension_numbers = #tpu.dot_dimension_numbers<[1], [0], [0], [1], [0, 0, 1, 1], [], []>} : vector<8x128xbf16>, vector<128x512xbf16>, vector<8x512xf32> -> vector<8x512xf32>
    %696 = arith.truncf %658 : vector<8x128xf32> to vector<8x128xbf16>
    %c0_228 = arith.constant 0 : index
    %c0_229 = arith.constant 0 : index
    %697 = vector.load %arg5[%c0_228, %c0_229] : memref<128x512xbf16, #tpu.memory_space<vmem>>, vector<128x512xbf16>
    %cst_230 = arith.constant dense<0.000000e+00> : vector<8x512xf32>
    %698 = tpu.matmul %696, %697, %cst_230 {dimension_numbers = #tpu.dot_dimension_numbers<[1], [0], [0], [1], [0, 0, 1, 1], [], []>} : vector<8x128xbf16>, vector<128x512xbf16>, vector<8x512xf32> -> vector<8x512xf32>
    %699 = arith.addf %695, %698 : vector<8x512xf32>
    %c0_231 = arith.constant 0 : index
    %c0_232 = arith.constant 0 : index
    %700 = vector.load %arg6[%c0_231, %c0_232] : memref<1x512xf32, #tpu.memory_space<vmem>>, vector<1x512xf32>
    %701 = vector.broadcast %700 : vector<1x512xf32> to vector<8x512xf32>
    %702 = arith.addf %699, %701 : vector<8x512xf32>
    %703 = vector.extract_strided_slice %702 {offsets = [0, 0], sizes = [8, 128], strides = [1, 1]} : vector<8x512xf32> to vector<8x128xf32>
    %704 = arith.negf %703 : vector<8x128xf32>
    %705 = math.exp %704 : vector<8x128xf32>
    %cst_233 = arith.constant 1.000000e+00 : f32
    %706 = vector.broadcast %cst_233 : f32 to vector<8x128xf32>
    %707 = arith.addf %706, %705 : vector<8x128xf32>
    %708 = arith.divf %706, %707 : vector<8x128xf32>
    %709 = vector.extract_strided_slice %702 {offsets = [0, 128], sizes = [8, 128], strides = [1, 1]} : vector<8x512xf32> to vector<8x128xf32>
    %710 = arith.negf %709 : vector<8x128xf32>
    %711 = math.exp %710 : vector<8x128xf32>
    %cst_234 = arith.constant 1.000000e+00 : f32
    %712 = vector.broadcast %cst_234 : f32 to vector<8x128xf32>
    %713 = arith.addf %712, %711 : vector<8x128xf32>
    %714 = arith.divf %712, %713 : vector<8x128xf32>
    %715 = vector.extract_strided_slice %702 {offsets = [0, 256], sizes = [8, 128], strides = [1, 1]} : vector<8x512xf32> to vector<8x128xf32>
    %716 = math.tanh %715 : vector<8x128xf32>
    %717 = vector.extract_strided_slice %702 {offsets = [0, 384], sizes = [8, 128], strides = [1, 1]} : vector<8x512xf32> to vector<8x128xf32>
    %718 = arith.negf %717 : vector<8x128xf32>
    %719 = math.exp %718 : vector<8x128xf32>
    %cst_235 = arith.constant 1.000000e+00 : f32
    %720 = vector.broadcast %cst_235 : f32 to vector<8x128xf32>
    %721 = arith.addf %720, %719 : vector<8x128xf32>
    %722 = arith.divf %720, %721 : vector<8x128xf32>
    %723 = arith.mulf %714, %656 : vector<8x128xf32>
    %724 = arith.mulf %708, %716 : vector<8x128xf32>
    %725 = arith.addf %723, %724 : vector<8x128xf32>
    %726 = math.tanh %725 : vector<8x128xf32>
    %727 = arith.mulf %722, %726 : vector<8x128xf32>
    %c9_236 = arith.constant 9 : index
    %c0_237 = arith.constant 0 : index
    %c0_238 = arith.constant 0 : index
    %728 = vector.load %arg7[%c9_236, %c0_237, %c0_238] : memref<12x8x128xf32, #tpu.memory_space<vmem>>, vector<1x8x128xf32>
    %729 = vector.shape_cast %728 : vector<1x8x128xf32> to vector<8x128xf32>
    %730 = vector.shape_cast %727 : vector<8x128xf32> to vector<1x8x128xf32>
    tpu.vector_store %arg7[%c9_236, %c0_237, %c0_238], %730 {strides = array<i32>} : memref<12x8x128xf32, #tpu.memory_space<vmem>>, vector<1x8x128xf32>,
    %c11 = arith.constant 11 : index
    %c0_239 = arith.constant 0 : index
    %c0_240 = arith.constant 0 : index
    %731 = vector.load %arg8[%c11, %c0_239, %c0_240] : memref<12x8x512xf32, #tpu.memory_space<vmem>>, vector<1x8x512xf32>
    %732 = vector.shape_cast %731 : vector<1x8x512xf32> to vector<8x512xf32>
    %733 = arith.truncf %692 : vector<8x128xf32> to vector<8x128xbf16>
    %c0_241 = arith.constant 0 : index
    %c0_242 = arith.constant 0 : index
    %734 = vector.load %arg2[%c0_241, %c0_242] : memref<128x512xbf16, #tpu.memory_space<vmem>>, vector<128x512xbf16>
    %cst_243 = arith.constant dense<0.000000e+00> : vector<8x512xf32>
    %735 = tpu.matmul %733, %734, %cst_243 {dimension_numbers = #tpu.dot_dimension_numbers<[1], [0], [0], [1], [0, 0, 1, 1], [], []>} : vector<8x128xbf16>, vector<128x512xbf16>, vector<8x512xf32> -> vector<8x512xf32>
    %736 = arith.addf %732, %735 : vector<8x512xf32>
    %737 = vector.extract_strided_slice %736 {offsets = [0, 0], sizes = [8, 128], strides = [1, 1]} : vector<8x512xf32> to vector<8x128xf32>
    %738 = arith.negf %737 : vector<8x128xf32>
    %739 = math.exp %738 : vector<8x128xf32>
    %cst_244 = arith.constant 1.000000e+00 : f32
    %740 = vector.broadcast %cst_244 : f32 to vector<8x128xf32>
    %741 = arith.addf %740, %739 : vector<8x128xf32>
    %742 = arith.divf %740, %741 : vector<8x128xf32>
    %743 = vector.extract_strided_slice %736 {offsets = [0, 128], sizes = [8, 128], strides = [1, 1]} : vector<8x512xf32> to vector<8x128xf32>
    %744 = arith.negf %743 : vector<8x128xf32>
    %745 = math.exp %744 : vector<8x128xf32>
    %cst_245 = arith.constant 1.000000e+00 : f32
    %746 = vector.broadcast %cst_245 : f32 to vector<8x128xf32>
    %747 = arith.addf %746, %745 : vector<8x128xf32>
    %748 = arith.divf %746, %747 : vector<8x128xf32>
    %749 = vector.extract_strided_slice %736 {offsets = [0, 256], sizes = [8, 128], strides = [1, 1]} : vector<8x512xf32> to vector<8x128xf32>
    %750 = math.tanh %749 : vector<8x128xf32>
    %751 = vector.extract_strided_slice %736 {offsets = [0, 384], sizes = [8, 128], strides = [1, 1]} : vector<8x512xf32> to vector<8x128xf32>
    %752 = arith.negf %751 : vector<8x128xf32>
    %753 = math.exp %752 : vector<8x128xf32>
    %cst_246 = arith.constant 1.000000e+00 : f32
    %754 = vector.broadcast %cst_246 : f32 to vector<8x128xf32>
    %755 = arith.addf %754, %753 : vector<8x128xf32>
    %756 = arith.divf %754, %755 : vector<8x128xf32>
    %757 = arith.mulf %748, %690 : vector<8x128xf32>
    %758 = arith.mulf %742, %750 : vector<8x128xf32>
    %759 = arith.addf %757, %758 : vector<8x128xf32>
    %760 = math.tanh %759 : vector<8x128xf32>
    %761 = arith.mulf %756, %760 : vector<8x128xf32>
    %762 = arith.truncf %692 : vector<8x128xf32> to vector<8x128xbf16>
    %c0_247 = arith.constant 0 : index
    %c0_248 = arith.constant 0 : index
    %763 = vector.load %arg4[%c0_247, %c0_248] : memref<128x512xbf16, #tpu.memory_space<vmem>>, vector<128x512xbf16>
    %cst_249 = arith.constant dense<0.000000e+00> : vector<8x512xf32>
    %764 = tpu.matmul %762, %763, %cst_249 {dimension_numbers = #tpu.dot_dimension_numbers<[1], [0], [0], [1], [0, 0, 1, 1], [], []>} : vector<8x128xbf16>, vector<128x512xbf16>, vector<8x512xf32> -> vector<8x512xf32>
    %765 = arith.truncf %727 : vector<8x128xf32> to vector<8x128xbf16>
    %c0_250 = arith.constant 0 : index
    %c0_251 = arith.constant 0 : index
    %766 = vector.load %arg5[%c0_250, %c0_251] : memref<128x512xbf16, #tpu.memory_space<vmem>>, vector<128x512xbf16>
    %cst_252 = arith.constant dense<0.000000e+00> : vector<8x512xf32>
    %767 = tpu.matmul %765, %766, %cst_252 {dimension_numbers = #tpu.dot_dimension_numbers<[1], [0], [0], [1], [0, 0, 1, 1], [], []>} : vector<8x128xbf16>, vector<128x512xbf16>, vector<8x512xf32> -> vector<8x512xf32>
    %768 = arith.addf %764, %767 : vector<8x512xf32>
    %c0_253 = arith.constant 0 : index
    %c0_254 = arith.constant 0 : index
    %769 = vector.load %arg6[%c0_253, %c0_254] : memref<1x512xf32, #tpu.memory_space<vmem>>, vector<1x512xf32>
    %770 = vector.broadcast %769 : vector<1x512xf32> to vector<8x512xf32>
    %771 = arith.addf %768, %770 : vector<8x512xf32>
    %772 = vector.extract_strided_slice %771 {offsets = [0, 0], sizes = [8, 128], strides = [1, 1]} : vector<8x512xf32> to vector<8x128xf32>
    %773 = arith.negf %772 : vector<8x128xf32>
    %774 = math.exp %773 : vector<8x128xf32>
    %cst_255 = arith.constant 1.000000e+00 : f32
    %775 = vector.broadcast %cst_255 : f32 to vector<8x128xf32>
    %776 = arith.addf %775, %774 : vector<8x128xf32>
    %777 = arith.divf %775, %776 : vector<8x128xf32>
    %778 = vector.extract_strided_slice %771 {offsets = [0, 128], sizes = [8, 128], strides = [1, 1]} : vector<8x512xf32> to vector<8x128xf32>
    %779 = arith.negf %778 : vector<8x128xf32>
    %780 = math.exp %779 : vector<8x128xf32>
    %cst_256 = arith.constant 1.000000e+00 : f32
    %781 = vector.broadcast %cst_256 : f32 to vector<8x128xf32>
    %782 = arith.addf %781, %780 : vector<8x128xf32>
    %783 = arith.divf %781, %782 : vector<8x128xf32>
    %784 = vector.extract_strided_slice %771 {offsets = [0, 256], sizes = [8, 128], strides = [1, 1]} : vector<8x512xf32> to vector<8x128xf32>
    %785 = math.tanh %784 : vector<8x128xf32>
    %786 = vector.extract_strided_slice %771 {offsets = [0, 384], sizes = [8, 128], strides = [1, 1]} : vector<8x512xf32> to vector<8x128xf32>
    %787 = arith.negf %786 : vector<8x128xf32>
    %788 = math.exp %787 : vector<8x128xf32>
    %cst_257 = arith.constant 1.000000e+00 : f32
    %789 = vector.broadcast %cst_257 : f32 to vector<8x128xf32>
    %790 = arith.addf %789, %788 : vector<8x128xf32>
    %791 = arith.divf %789, %790 : vector<8x128xf32>
    %792 = arith.mulf %783, %725 : vector<8x128xf32>
    %793 = arith.mulf %777, %785 : vector<8x128xf32>
    %794 = arith.addf %792, %793 : vector<8x128xf32>
    %795 = math.tanh %794 : vector<8x128xf32>
    %796 = arith.mulf %791, %795 : vector<8x128xf32>
    %c10_258 = arith.constant 10 : index
    %c0_259 = arith.constant 0 : index
    %c0_260 = arith.constant 0 : index
    %797 = vector.load %arg7[%c10_258, %c0_259, %c0_260] : memref<12x8x128xf32, #tpu.memory_space<vmem>>, vector<1x8x128xf32>
    %798 = vector.shape_cast %797 : vector<1x8x128xf32> to vector<8x128xf32>
    %799 = vector.shape_cast %796 : vector<8x128xf32> to vector<1x8x128xf32>
    tpu.vector_store %arg7[%c10_258, %c0_259, %c0_260], %799 {strides = array<i32>} : memref<12x8x128xf32, #tpu.memory_space<vmem>>, vector<1x8x128xf32>,
    %800 = arith.truncf %761 : vector<8x128xf32> to vector<8x128xbf16>
    %c0_261 = arith.constant 0 : index
    %c0_262 = arith.constant 0 : index
    %801 = vector.load %arg4[%c0_261, %c0_262] : memref<128x512xbf16, #tpu.memory_space<vmem>>, vector<128x512xbf16>
    %cst_263 = arith.constant dense<0.000000e+00> : vector<8x512xf32>
    %802 = tpu.matmul %800, %801, %cst_263 {dimension_numbers = #tpu.dot_dimension_numbers<[1], [0], [0], [1], [0, 0, 1, 1], [], []>} : vector<8x128xbf16>, vector<128x512xbf16>, vector<8x512xf32> -> vector<8x512xf32>
    %803 = arith.truncf %796 : vector<8x128xf32> to vector<8x128xbf16>
    %c0_264 = arith.constant 0 : index
    %c0_265 = arith.constant 0 : index
    %804 = vector.load %arg5[%c0_264, %c0_265] : memref<128x512xbf16, #tpu.memory_space<vmem>>, vector<128x512xbf16>
    %cst_266 = arith.constant dense<0.000000e+00> : vector<8x512xf32>
    %805 = tpu.matmul %803, %804, %cst_266 {dimension_numbers = #tpu.dot_dimension_numbers<[1], [0], [0], [1], [0, 0, 1, 1], [], []>} : vector<8x128xbf16>, vector<128x512xbf16>, vector<8x512xf32> -> vector<8x512xf32>
    %806 = arith.addf %802, %805 : vector<8x512xf32>
    %c0_267 = arith.constant 0 : index
    %c0_268 = arith.constant 0 : index
    %807 = vector.load %arg6[%c0_267, %c0_268] : memref<1x512xf32, #tpu.memory_space<vmem>>, vector<1x512xf32>
    %808 = vector.broadcast %807 : vector<1x512xf32> to vector<8x512xf32>
    %809 = arith.addf %806, %808 : vector<8x512xf32>
    %810 = vector.extract_strided_slice %809 {offsets = [0, 0], sizes = [8, 128], strides = [1, 1]} : vector<8x512xf32> to vector<8x128xf32>
    %811 = arith.negf %810 : vector<8x128xf32>
    %812 = math.exp %811 : vector<8x128xf32>
    %cst_269 = arith.constant 1.000000e+00 : f32
    %813 = vector.broadcast %cst_269 : f32 to vector<8x128xf32>
    %814 = arith.addf %813, %812 : vector<8x128xf32>
    %815 = arith.divf %813, %814 : vector<8x128xf32>
    %816 = vector.extract_strided_slice %809 {offsets = [0, 128], sizes = [8, 128], strides = [1, 1]} : vector<8x512xf32> to vector<8x128xf32>
    %817 = arith.negf %816 : vector<8x128xf32>
    %818 = math.exp %817 : vector<8x128xf32>
    %cst_270 = arith.constant 1.000000e+00 : f32
    %819 = vector.broadcast %cst_270 : f32 to vector<8x128xf32>
    %820 = arith.addf %819, %818 : vector<8x128xf32>
    %821 = arith.divf %819, %820 : vector<8x128xf32>
    %822 = vector.extract_strided_slice %809 {offsets = [0, 256], sizes = [8, 128], strides = [1, 1]} : vector<8x512xf32> to vector<8x128xf32>
    %823 = math.tanh %822 : vector<8x128xf32>
    %824 = vector.extract_strided_slice %809 {offsets = [0, 384], sizes = [8, 128], strides = [1, 1]} : vector<8x512xf32> to vector<8x128xf32>
    %825 = arith.negf %824 : vector<8x128xf32>
    %826 = math.exp %825 : vector<8x128xf32>
    %cst_271 = arith.constant 1.000000e+00 : f32
    %827 = vector.broadcast %cst_271 : f32 to vector<8x128xf32>
    %828 = arith.addf %827, %826 : vector<8x128xf32>
    %829 = arith.divf %827, %828 : vector<8x128xf32>
    %830 = arith.mulf %821, %794 : vector<8x128xf32>
    %831 = arith.mulf %815, %823 : vector<8x128xf32>
    %832 = arith.addf %830, %831 : vector<8x128xf32>
    %833 = math.tanh %832 : vector<8x128xf32>
    %834 = arith.mulf %829, %833 : vector<8x128xf32>
    %c11_272 = arith.constant 11 : index
    %c0_273 = arith.constant 0 : index
    %c0_274 = arith.constant 0 : index
    %835 = vector.load %arg7[%c11_272, %c0_273, %c0_274] : memref<12x8x128xf32, #tpu.memory_space<vmem>>, vector<1x8x128xf32>
    %836 = vector.shape_cast %835 : vector<1x8x128xf32> to vector<8x128xf32>
    %837 = vector.shape_cast %834 : vector<8x128xf32> to vector<1x8x128xf32>
    tpu.vector_store %arg7[%c11_272, %c0_273, %c0_274], %837 {strides = array<i32>} : memref<12x8x128xf32, #tpu.memory_space<vmem>>, vector<1x8x128xf32>,
    return
  }
}

</mosaic_0001>

<bundles_post_ra>
// kernel: reverse
= control target key start
LH: loop header
LB: loop body
LE: loop exit
PB: predicated region body
PF: predicated region fallthrough
CT: control target
= control target key end

     0   :  { %s104_s0 = inlined_call_operand.vmem [shape: bf16[4,12,4], index: 0, kind: input, shape index: {}]   ;;  %s105_s1 = inlined_call_operand.vmem [shape: bf16[4,12,4], index: 1, kind: output, shape index: {}]  }
   0x1   :  { %v56_v0 = vld [vmem:[%s104_s0 + $0x18] sm:$0xff]   ;;  %v57_v1 = vld [vmem:[%s104_s0 + $0x10] sm:$0xff]   ;;  %v59_v2 = vld [vmem:[%s104_s0 + $0x8] sm:$0xff]  }
   0x2   :  { %7 = vst [vmem:[%s105_s1] sm:$0xff] %v56_v0   ;;  %58 = vst [vmem:[%s105_s1 + $0x8] sm:$0xff] %v57_v1   ;;  %v22_v3 = vld [vmem:[%s104_s0] sm:$0xff]  }
   0x3   :  { %60 = vst [vmem:[%s105_s1 + $0x10] sm:$0xff] %v59_v2   ;;  %61 = vst [vmem:[%s105_s1 + $0x18] sm:$0xff] %v22_v3  }

// kernel: lstm_model_forward.1
= control target key start
LH: loop header
LB: loop body
LE: loop exit
PB: predicated region body
PF: predicated region fallthrough
CT: control target
= control target key end

     0   :  { %v18547_v1 = vmov 0   ;;  %s18539_s1 = inlined_call_operand.vmem [shape: bf16[128,512], index: 1, kind: input, shape index: {}]   ;;  %s18540_s0 = inlined_call_operand.vmem [shape: bf16[12,8,128], index: 0, kind: input, shape index: {}]   ;;  %s18541_s2 = inlined_call_operand.vmem [shape: bf16[128,512], index: 2, kind: input, shape index: {}]   ;;  %s18542_s5 = inlined_call_operand.vmem [shape: bf16[128,512], index: 5, kind: input, shape index: {}]   ;;  %s18543_s3 = inlined_call_operand.vmem [shape: f32[1,512], index: 3, kind: input, shape index: {}]   ;;  %s18544_s4 = inlined_call_operand.vmem [shape: bf16[128,512], index: 4, kind: input, shape index: {}]   ;;  %s18545_s6 = inlined_call_operand.vmem [shape: f32[1,512], index: 6, kind: input, shape index: {}]   ;;  %s18546_s7 = inlined_call_operand.vmem [shape: f32[12,8,128], index: 7, kind: output, shape index: {}]  }
   0x1   :  { %v12482_v0 = vld [vmem:[%s18539_s1 + $0xe4] ss:$16 sps:$4 sm:$0xff]   ;;  %321 = vmatprep.mubr.bf16.mxu0 %v18547_v1  ;;  %414 = vmatprep.mubr.bf16.mxu1 %v18547_v1  ;;  %v12484_v2 = vld [vmem:[%s18539_s1 + $0xec] ss:$16 sps:$4 sm:$0xff]   ;;  %v12486_v3 = vld [vmem:[%s18539_s1 + $0xe0] ss:$16 sps:$4 sm:$0xff]  }
   0x2   :  { %289 = vmatprep.subr.bf16.mxu0 %v12482_v0  ;;  %v12487_v4 = vld [vmem:[%s18539_s1 + $0xe8] ss:$16 sps:$4 sm:$0xff]   ;;  %382 = vmatprep.subr.bf16.mxu1 %v12484_v2  ;;  %v12488_v5 = vld [vmem:[%s18539_s1 + $0xc4] ss:$16 sps:$4 sm:$0xff]   ;;  %v12490_v6 = vld [vmem:[%s18539_s1 + $0xcc] ss:$16 sps:$4 sm:$0xff]  }
   0x3   :  { %290 = vmatpush1.bf16.msra.mxu0 %v12486_v3  ;;  %383 = vmatpush1.bf16.msra.mxu1 %v12487_v4  ;;  %v12492_v7 = vld [vmem:[%s18539_s1 + $0xc0] ss:$16 sps:$4 sm:$0xff]   ;;  %v12493_v8 = vld [vmem:[%s18539_s1 + $0xc8] ss:$16 sps:$4 sm:$0xff]   ;;  %v12494_v9 = vld [vmem:[%s18539_s1 + $0xa4] ss:$16 sps:$4 sm:$0xff]  }
   0x4   :  { %291 = vmatprep.subr.bf16.mxu0 %v12488_v5  ;;  %384 = vmatprep.subr.bf16.mxu1 %v12490_v6  ;;  %v12496_v10 = vld [vmem:[%s18539_s1 + $0xac] ss:$16 sps:$4 sm:$0xff]   ;;  %v12498_v11 = vld [vmem:[%s18539_s1 + $0xa0] ss:$16 sps:$4 sm:$0xff]   ;;  %v12499_v12 = vld [vmem:[%s18539_s1 + $0xa8] ss:$16 sps:$4 sm:$0xff]  }
   0x5   :  { %v12500_v13 = vld [vmem:[%s18539_s1 + $0x84] ss:$16 sps:$4 sm:$0xff]   ;;  %v12502_v14 = vld [vmem:[%s18539_s1 + $0x8c] ss:$16 sps:$4 sm:$0xff]   ;;  %v12504_v15 = vld [vmem:[%s18539_s1 + $0x80] ss:$16 sps:$4 sm:$0xff]  }
   0x6   :  { %v12505_v16 = vld [vmem:[%s18539_s1 + $0x88] ss:$16 sps:$4 sm:$0xff]   ;;  %v12506_v17 = vld [vmem:[%s18539_s1 + $0x64] ss:$16 sps:$4 sm:$0xff]   ;;  %v12508_v18 = vld [vmem:[%s18539_s1 + $0x6c] ss:$16 sps:$4 sm:$0xff]  }
   0x7   :  { %292 = vmatpush1.bf16.msra.mxu0 %v12492_v7  ;;  %385 = vmatpush1.bf16.msra.mxu1 %v12493_v8  ;;  %v12510_v19 = vld [vmem:[%s18539_s1 + $0x60] ss:$16 sps:$4 sm:$0xff]   ;;  %v12511_v20 = vld [vmem:[%s18539_s1 + $0x68] ss:$16 sps:$4 sm:$0xff]   ;;  %v12512_v21 = vld [vmem:[%s18539_s1 + $0x44] ss:$16 sps:$4 sm:$0xff]  }
   0x8   :  { %293 = vmatprep.subr.bf16.mxu0 %v12494_v9  ;;  %386 = vmatprep.subr.bf16.mxu1 %v12496_v10  ;;  %v12514_v22 = vld [vmem:[%s18539_s1 + $0x4c] ss:$16 sps:$4 sm:$0xff]   ;;  %v12516_v23 = vld [vmem:[%s18539_s1 + $0x40] ss:$16 sps:$4 sm:$0xff]   ;;  %v12517_v24 = vld [vmem:[%s18539_s1 + $0x48] ss:$16 sps:$4 sm:$0xff]   ;;  %v73_v10 = vlaneseq }
   0x9   :  { %v12518_v25 = vld [vmem:[%s18539_s1 + $0x24] ss:$16 sps:$4 sm:$0xff]   ;;  %v12520_v26 = vld [vmem:[%s18539_s1 + $0x2c] ss:$16 sps:$4 sm:$0xff]   ;;  %v12522_v27 = vld [vmem:[%s18539_s1 + $0x20] ss:$16 sps:$4 sm:$0xff]  }
   0xa   :  { %v12523_v28 = vld [vmem:[%s18539_s1 + $0x28] ss:$16 sps:$4 sm:$0xff]   ;;  %v12524_v29 = vld [vmem:[%s18539_s1 + $0x4] ss:$16 sps:$4 sm:$0xff]   ;;  %v12526_v30 = vld [vmem:[%s18539_s1 + $0xc] ss:$16 sps:$4 sm:$0xff]  }
   0xb   :  { %294 = vmatpush1.bf16.msra.mxu0 %v12498_v11  ;;  %387 = vmatpush1.bf16.msra.mxu1 %v12499_v12  ;;  %v12528_v31 = vld [vmem:[%s18539_s1] ss:$16 sps:$4 sm:$0xff]   ;;  %v12529_v32 = vld [vmem:[%s18539_s1 + $0x8] ss:$16 sps:$4 sm:$0xff]   ;;  %v13938_v33 = vld [vmem:[%s18541_s2 + $0xe4] ss:$16 sps:$4 sm:$0xff]  }
   0xc   :  { %295 = vmatprep.subr.bf16.mxu0 %v12500_v13  ;;  %388 = vmatprep.subr.bf16.mxu1 %v12502_v14  ;;  %v13943_v34 = vld [vmem:[%s18541_s2 + $0xec] ss:$16 sps:$4 sm:$0xff]   ;;  %v12530_v35 = vld [vmem:[%s18540_s0] sm:$0xff]   ;;  %v13963_v38 = vld [vmem:[%s18541_s2 + $0xe8] ss:$16 sps:$4 sm:$0xff]   ;;  %v74_v11 = vshrl.u32 %v73_v10, 7 }
   0xd   :  { %v13951_v36 = vld [vmem:[%s18541_s2 + $0xe0] ss:$16 sps:$4 sm:$0xff]   ;;  %v13957_v37 = vld [vmem:[%s18541_s2 + $0xc4] ss:$16 sps:$4 sm:$0xff]   ;;  %v13968_v39 = vld [vmem:[%s18541_s2 + $0xcc] ss:$16 sps:$4 sm:$0xff]  }
   0xe   :  { %v13974_v40 = vld [vmem:[%s18541_s2 + $0xc0] ss:$16 sps:$4 sm:$0xff]   ;;  %v13982_v41 = vld [vmem:[%s18541_s2 + $0xa4] ss:$16 sps:$4 sm:$0xff]   ;;  %v13988_v42 = vld [vmem:[%s18541_s2 + $0xc8] ss:$16 sps:$4 sm:$0xff]  }
   0xf   :  { %296 = vmatpush1.bf16.msra.mxu0 %v12504_v15  ;;  %389 = vmatpush1.bf16.msra.mxu1 %v12505_v16  ;;  %v12537_v43 = vld [vmem:[%s18540_s0 + $0x8] sm:$0xff]   ;;  %v13998_v44 = vld [vmem:[%s18541_s2 + $0xa0] ss:$16 sps:$4 sm:$0xff]   ;;  %v14004_v45 = vld [vmem:[%s18541_s2 + $0x84] ss:$16 sps:$4 sm:$0xff]   ;;  %v14171_v12 = vsub.s32 2, %v74_v11 }
  0x10   :  { %297 = vmatprep.subr.bf16.mxu0 %v12506_v17  ;;  %390 = vmatprep.subr.bf16.mxu1 %v12508_v18  ;;  %v14010_v46 = vld [vmem:[%s18541_s2 + $0xac] ss:$16 sps:$4 sm:$0xff]   ;;  %v14015_v47 = vld [vmem:[%s18541_s2 + $0x80] ss:$16 sps:$4 sm:$0xff]   ;;  %v14020_v48 = vld [vmem:[%s18541_s2 + $0xa8] ss:$16 sps:$4 sm:$0xff]  }
  0x11   :  { %v14027_v49 = vld [vmem:[%s18541_s2 + $0x8c] ss:$16 sps:$4 sm:$0xff]   ;;  %v14034_v50 = vld [vmem:[%s18541_s2 + $0x64] ss:$16 sps:$4 sm:$0xff]   ;;  %v14043_v52 = vld [vmem:[%s18541_s2 + $0x60] ss:$16 sps:$4 sm:$0xff]  }
  0x12   :  { %v12541_v51 = vld [vmem:[%s18540_s0 + $0x10] sm:$0xff]   ;;  %v14050_v53 = vld [vmem:[%s18541_s2 + $0x88] ss:$16 sps:$4 sm:$0xff]   ;;  %v14061_v55 = vld [vmem:[%s18541_s2 + $0x6c] ss:$16 sps:$4 sm:$0xff]   ;;  %v14173_v13 = vsub.s32 0, %v74_v11 }
  0x13   :  { %298 = vmatpush1.bf16.msra.mxu0 %v12510_v19  ;;  %391 = vmatpush1.bf16.msra.mxu1 %v12511_v20  ;;  %v14056_v54 = vld [vmem:[%s18541_s2 + $0x44] ss:$16 sps:$4 sm:$0xff]   ;;  %v14067_v56 = vld [vmem:[%s18541_s2 + $0x40] ss:$16 sps:$4 sm:$0xff]   ;;  %v14072_v57 = vld [vmem:[%s18541_s2 + $0x68] ss:$16 sps:$4 sm:$0xff]  }
  0x14   :  { %299 = vmatprep.subr.bf16.mxu0 %v12512_v21  ;;  %392 = vmatprep.subr.bf16.mxu1 %v12514_v22  ;;  %v14079_v58 = vld [vmem:[%s18541_s2 + $0x24] ss:$16 sps:$4 sm:$0xff]   ;;  %v14084_v59 = vld [vmem:[%s18541_s2 + $0x4c] ss:$16 sps:$4 sm:$0xff]   ;;  %v14096_v61 = vld [vmem:[%s18541_s2 + $0x20] ss:$16 sps:$4 sm:$0xff]  }
  0x15   :  { %v12551_v60 = vld [vmem:[%s18540_s0 + $0x18] sm:$0xff]   ;;  %v12580_v0 = vld [vmem:[%s18541_s2 + $0x4] ss:$16 sps:$4 sm:$0xff]   ;;  %v12578_v3 = vld [vmem:[%s18541_s2] ss:$16 sps:$4 sm:$0xff]   ;;  %18774 = vst [vmem:[#allocation3_spill] sm:$0xff] %v14173_v13 }
  0x16   :  { %v12571_v62 = vld [vmem:[%s18541_s2 + $0x48] ss:$16 sps:$4 sm:$0xff]   ;;  %v12577_v63 = vld [vmem:[%s18541_s2 + $0x2c] ss:$16 sps:$4 sm:$0xff]   ;;  %v12564_v5 = vld [vmem:[%s18540_s0 + $0x20] sm:$0xff]  }
  0x17   :  { %300 = vmatpush1.bf16.msra.mxu0 %v12516_v23  ;;  %393 = vmatpush1.bf16.msra.mxu1 %v12517_v24  ;;  %v12575_v2 = vld [vmem:[%s18541_s2 + $0x28] ss:$16 sps:$4 sm:$0xff]   ;;  %v12583_v4 = vld [vmem:[%s18541_s2 + $0xc] ss:$16 sps:$4 sm:$0xff]   ;;  %v12586_v8 = vld [vmem:[%s18542_s5 + $0xe4] ss:$16 sps:$4 sm:$0xff]  }
  0x18   :  { %301 = vmatprep.subr.bf16.mxu0 %v12518_v25  ;;  %394 = vmatprep.subr.bf16.mxu1 %v12520_v26  ;;  %v12581_v6 = vld [vmem:[%s18541_s2 + $0x8] ss:$16 sps:$4 sm:$0xff]   ;;  %v12589_v9 = vld [vmem:[%s18542_s5 + $0xec] ss:$16 sps:$4 sm:$0xff]   ;;  %v71_v14 = vld [vmem:[%s18543_s3] sm:$0xf] }
  0x19   :  { %v12574_v7 = vld [vmem:[%s18540_s0 + $0x28] sm:$0xff]   ;;  %v14183_v17 = vrot.slane %v71_v14, %v14171_v12  ;;  %v14190_v20 = vrot.slane %v71_v14, %v14173_v13  ;;  %v14192_v23 = vsub.s32 1, %v74_v11  ;;  %v14194_v24 = vsub.s32 3, %v74_v11 }
  0x1b   :  { %302 = vmatpush1.bf16.msra.mxu0 %v12522_v27  ;;  %395 = vmatpush1.bf16.msra.mxu1 %v12523_v28  ;;  %18775 = vst [vmem:[#allocation4_spill] sm:$0xff] %v14192_v23 }
  0x1c   :  { %303 = vmatprep.subr.bf16.mxu0 %v12524_v29  ;;  %396 = vmatprep.subr.bf16.mxu1 %v12526_v30 }
  0x1f   :  { %304 = vmatpush1.bf16.msra.mxu0 %v12528_v31  ;;  %397 = vmatpush1.bf16.msra.mxu1 %v12529_v32  ;;  %v14207_v31 = vrot.slane %v71_v14, %v14192_v23  ;;  %v14210_v32 = vrot.slane %v71_v14, %v14194_v24 }
  0x20   :  { %719 = vmatprep.subr.bf16.mxu0 %v13938_v33  ;;  %760 = vmatprep.subr.bf16.mxu1 %v13943_v34 }
  0x21   :  { %18776 = vst [vmem:[#allocation5_spill] sm:$0xff] %v14207_v31  ;;  %18777 = vst [vmem:[#allocation6_spill] sm:$0xff] %v14210_v32 }
  0x22   :  { %322 = vmatmul.mubr.bf16.vlgmr.msra.gmra.mxu0 %v12530_v35  ;;  %415 = vmatmul.mubr.bf16.vlgmr.msra.gmra.mxu1 %v12530_v35 }
  0x23   :  { %720 = vmatpush1.bf16.msra.mxu0 %v13951_v36  ;;  %331 = vmatprep.mubr.bf16.mxu0 %v18547_v1 }
  0x24   :  { %721 = vmatprep.subr.bf16.mxu0 %v13957_v37  ;;  %424 = vmatprep.mubr.bf16.mxu1 %v18547_v1 }
  0x25   :  { %761 = vmatpush1.bf16.msra.mxu1 %v13963_v38 }
  0x26   :  { %762 = vmatprep.subr.bf16.mxu1 %v13968_v39 }
  0x27   :  { %722 = vmatpush1.bf16.msra.mxu0 %v13974_v40 }
  0x28   :  { %723 = vmatprep.subr.bf16.mxu0 %v13982_v41 }
  0x29   :  { %763 = vmatpush1.bf16.msra.mxu1 %v13988_v42 }
  0x2a   :  { %332 = vmatmul.mubr.bf16.gmra.mxu0 %v12537_v43  ;;  %425 = vmatmul.mubr.bf16.gmra.mxu1 %v12537_v43 }
  0x2b   :  { %724 = vmatpush1.bf16.msra.mxu0 %v13998_v44  ;;  %341 = vmatprep.mubr.bf16.mxu0 %v18547_v1 }
  0x2c   :  { %434 = vmatprep.mubr.bf16.mxu1 %v18547_v1  ;;  %725 = vmatprep.subr.bf16.mxu0 %v14004_v45 }
  0x2d   :  { %764 = vmatprep.subr.bf16.mxu1 %v14010_v46 }
  0x2e   :  { %765 = vmatpush1.bf16.msra.mxu1 %v14020_v48 }
  0x2f   :  { %726 = vmatpush1.bf16.msra.mxu0 %v14015_v47  ;;  %766 = vmatprep.subr.bf16.mxu1 %v14027_v49 }
  0x30   :  { %727 = vmatprep.subr.bf16.mxu0 %v14034_v50 }
  0x32   :  { %342 = vmatmul.mubr.bf16.gmra.mxu0 %v12541_v51  ;;  %435 = vmatmul.mubr.bf16.gmra.mxu1 %v12541_v51 }
  0x33   :  { %351 = vmatprep.mubr.bf16.mxu0 %v18547_v1  ;;  %444 = vmatprep.mubr.bf16.mxu1 %v18547_v1 }
  0x34   :  { %728 = vmatpush1.bf16.msra.mxu0 %v14043_v52  ;;  %767 = vmatpush1.bf16.msra.mxu1 %v14050_v53 }
  0x35   :  { %729 = vmatprep.subr.bf16.mxu0 %v14056_v54  ;;  %768 = vmatprep.subr.bf16.mxu1 %v14061_v55 }
  0x38   :  { %730 = vmatpush1.bf16.msra.mxu0 %v14067_v56  ;;  %769 = vmatpush1.bf16.msra.mxu1 %v14072_v57 }
  0x39   :  { %731 = vmatprep.subr.bf16.mxu0 %v14079_v58  ;;  %770 = vmatprep.subr.bf16.mxu1 %v14084_v59 }
  0x3a   :  { %352 = vmatmul.mubr.bf16.gmra.mxu0 %v12551_v60  ;;  %445 = vmatmul.mubr.bf16.gmra.mxu1 %v12551_v60 }
  0x3b   :  { %361 = vmatprep.mubr.bf16.mxu0 %v18547_v1  ;;  %454 = vmatprep.mubr.bf16.mxu1 %v18547_v1 }
  0x3c   :  { %732 = vmatpush1.bf16.msra.mxu0 %v14096_v61  ;;  %771 = vmatpush1.bf16.msra.mxu1 %v12571_v62 }
  0x3d   :  { %772 = vmatprep.subr.bf16.mxu1 %v12577_v63  ;;  %733 = vmatprep.subr.bf16.mxu0 %v12580_v0 }
  0x40   :  { %773 = vmatpush1.bf16.msra.mxu1 %v12575_v2  ;;  %734 = vmatpush1.bf16.msra.mxu0 %v12578_v3 }
  0x41   :  { %774 = vmatprep.subr.bf16.mxu1 %v12583_v4  ;;  %835 = vmatprep.subr.bf16.mxu0 %v13938_v33 }
  0x42   :  { %362 = vmatmul.mubr.bf16.gmra.mxu0 %v12564_v5  ;;  %455 = vmatmul.mubr.bf16.gmra.mxu1 %v12564_v5 }
  0x43   :  { %371 = vmatprep.mubr.bf16.mxu0 %v18547_v1  ;;  %464 = vmatprep.mubr.bf16.mxu1 %v18547_v1 }
  0x44   :  { %775 = vmatpush1.bf16.msra.mxu1 %v12581_v6 }
  0x45   :  { %876 = vmatprep.subr.bf16.mxu1 %v13943_v34 }
  0x4a   :  { %372 = vmatmul.mubr.bf16.gmra.mxu0 %v12574_v7  ;;  %465 = vmatmul.mubr.bf16.gmra.mxu1 %v12574_v7 }
  0x4b   :  { %751 = vmatprep.mubr.bf16.mxu0 %v18547_v1  ;;  %792 = vmatprep.mubr.bf16.mxu1 %v18547_v1 }
  0x52   :  { %752 = vmatmul.mubr.bf16.vlgmr.msra.gmra.mxu0 %v18547_v1  ;;  %793 = vmatmul.mubr.bf16.vlgmr.msra.gmra.mxu1 %v18547_v1 }
  0x53   :  { %836 = vmatpush1.bf16.msra.mxu0 %v13951_v36  ;;  %877 = vmatpush1.bf16.msra.mxu1 %v13963_v38 }
  0x54   :  { %837 = vmatprep.subr.bf16.mxu0 %v13957_v37  ;;  %878 = vmatprep.subr.bf16.mxu1 %v13968_v39 }
  0x55   :  { %867 = vmatprep.mubr.bf16.mxu0 %v18547_v1  ;;  %908 = vmatprep.mubr.bf16.mxu1 %v18547_v1 }
  0x57   :  { %838 = vmatpush1.bf16.msra.mxu0 %v13974_v40  ;;  %879 = vmatpush1.bf16.msra.mxu1 %v13988_v42 }
  0x58   :  { %839 = vmatprep.subr.bf16.mxu0 %v13982_v41  ;;  %880 = vmatprep.subr.bf16.mxu1 %v14010_v46 }
  0x5b   :  { %840 = vmatpush1.bf16.msra.mxu0 %v13998_v44  ;;  %881 = vmatpush1.bf16.msra.mxu1 %v14020_v48 }
  0x5c   :  { %841 = vmatprep.subr.bf16.mxu0 %v14004_v45  ;;  %882 = vmatprep.subr.bf16.mxu1 %v14027_v49 }
  0x5f   :  { %842 = vmatpush1.bf16.msra.mxu0 %v14015_v47  ;;  %883 = vmatpush1.bf16.msra.mxu1 %v14050_v53 }
  0x60   :  { %843 = vmatprep.subr.bf16.mxu0 %v14034_v50  ;;  %884 = vmatprep.subr.bf16.mxu1 %v14061_v55 }
  0x63   :  { %844 = vmatpush1.bf16.msra.mxu0 %v14043_v52  ;;  %885 = vmatpush1.bf16.msra.mxu1 %v14072_v57 }
  0x64   :  { %845 = vmatprep.subr.bf16.mxu0 %v14056_v54  ;;  %886 = vmatprep.subr.bf16.mxu1 %v14084_v59 }
  0x67   :  { %846 = vmatpush1.bf16.msra.mxu0 %v14067_v56  ;;  %887 = vmatpush1.bf16.msra.mxu1 %v12571_v62 }
  0x68   :  { %847 = vmatprep.subr.bf16.mxu0 %v14079_v58  ;;  %888 = vmatprep.subr.bf16.mxu1 %v12577_v63 }
  0x6b   :  { %848 = vmatpush1.bf16.msra.mxu0 %v14096_v61  ;;  %889 = vmatpush1.bf16.msra.mxu1 %v12575_v2 }
  0x6c   :  { %849 = vmatprep.subr.bf16.mxu0 %v12580_v0  ;;  %890 = vmatprep.subr.bf16.mxu1 %v12583_v4 }
  0x6f   :  { %850 = vmatpush1.bf16.msra.mxu0 %v12578_v3  ;;  %891 = vmatpush1.bf16.msra.mxu1 %v12581_v6 }
  0x70   :  { %1169 = vmatprep.subr.bf16.mxu0 %v12586_v8  ;;  %1210 = vmatprep.subr.bf16.mxu1 %v12589_v9 }
  0xe2   :  { %v14178_v15 = vpop.f32.mrf.mxu0  ;;  %v14180_v16 = vpop.f32.mrf.mxu1 }
  0xe4   :  { %v14185_v18 = vpop.f32.mrf.mxu0  ;;  %v14187_v19 = vpop.f32.mrf.mxu1 }
  0xe6   :  { %v327_v21 = vpop.f32.mrf.mxu0  ;;  %v420_v22 = vpop.f32.mrf.mxu1 }
  0xe7   :  { %v14197_v25 = vadd.f32 %v327_v21, %v14190_v20  ;;  %v14200_v26 = vadd.f32 %v420_v22, %v14183_v17 }
  0xe8   :  { %v14202_v27 = vpop.f32.mrf.mxu0  ;;  %v14204_v28 = vpop.f32.mrf.mxu1 }
  0xea   :  { %v333_v29 = vpop.f32.mrf.mxu0  ;;  %v426_v30 = vpop.f32.mrf.mxu1 }
  0xeb   :  { %v14213_v33 = vadd.f32 %v333_v29, %v14190_v20  ;;  %v14216_v34 = vadd.f32 %v426_v30, %v14183_v17 }
  0xec   :  { %v335_v35 = vpop.f32.mrf.mxu0  ;;  %v428_v36 = vpop.f32.mrf.mxu1 }
  0xed   :  { %18778 = vst [vmem:[#allocation7_spill] sm:$0xff] %v14213_v33  ;;  %18779 = vst [vmem:[#allocation8_spill] sm:$0xff] %v14216_v34  ;;  %v14219_v37 = vadd.f32 %v335_v35, %v14207_v31  ;;  %v14222_v38 = vadd.f32 %v428_v36, %v14210_v32  ;;  %v14625_v34 = vld [vmem:[%s18544_s4 + $0x6c] ss:$16 sps:$4 sm:$0xff]   ;;  %v14644_v33 = vld [vmem:[%s18544_s4 + $0x44] ss:$16 sps:$4 sm:$0xff]  }
  0xee   :  { %v337_v39 = vpop.f32.mrf.mxu0  ;;  %v430_v40 = vpop.f32.mrf.mxu1  ;;  %18830 = vst [vmem:[#allocation58_spill] sm:$0xff] %v14625_v34  ;;  %18833 = vst [vmem:[#allocation61_spill] sm:$0xff] %v14644_v33 }
  0xef   :  { %18780 = vst [vmem:[#allocation9_spill] sm:$0xff] %v14219_v37  ;;  %18781 = vst [vmem:[#allocation10_spill] sm:$0xff] %v14222_v38  ;;  %v14225_v41 = vadd.f32 %v337_v39, %v14190_v20  ;;  %v14228_v42 = vadd.f32 %v430_v40, %v14183_v17  ;;  %v14632_v38 = vld [vmem:[%s18544_s4 + $0x60] ss:$16 sps:$4 sm:$0xff]   ;;  %v14637_v37 = vld [vmem:[%s18544_s4 + $0x68] ss:$16 sps:$4 sm:$0xff]  }
  0xf0   :  { %v14230_v43 = vpop.f32.mrf.mxu0  ;;  %v14232_v44 = vpop.f32.mrf.mxu1  ;;  %18831 = vst [vmem:[#allocation59_spill] sm:$0xff] %v14632_v38  ;;  %18832 = vst [vmem:[#allocation60_spill] sm:$0xff] %v14637_v37 }
  0xf1   :  { %18782 = vst [vmem:[#allocation11_spill] sm:$0xff] %v14225_v41  ;;  %18783 = vst [vmem:[#allocation12_spill] sm:$0xff] %v14228_v42  ;;  %v14601_v42 = vld [vmem:[%s18544_s4 + $0x8c] ss:$16 sps:$4 sm:$0xff]   ;;  %v14613_v41 = vld [vmem:[%s18544_s4 + $0x88] ss:$16 sps:$4 sm:$0xff]  }
  0xf2   :  { %18784 = vst [vmem:[#allocation13_spill] sm:$0xff] %v14230_v43  ;;  %18785 = vst [vmem:[#allocation14_spill] sm:$0xff] %v14232_v44  ;;  %v343_v45 = vpop.f32.mrf.mxu0  ;;  %v436_v46 = vpop.f32.mrf.mxu1  ;;  %v14608_v44 = vld [vmem:[%s18544_s4 + $0x80] ss:$16 sps:$4 sm:$0xff]   ;;  %v14620_v43 = vld [vmem:[%s18544_s4 + $0x64] ss:$16 sps:$4 sm:$0xff]  }
  0xf3   :  { %v14235_v47 = vadd.f32 %v343_v45, %v14190_v20  ;;  %v14238_v48 = vadd.f32 %v436_v46, %v14183_v17  ;;  %18826 = vst [vmem:[#allocation54_spill] sm:$0xff] %v14601_v42  ;;  %18827 = vst [vmem:[#allocation55_spill] sm:$0xff] %v14608_v44 }
  0xf4   :  { %v345_v49 = vpop.f32.mrf.mxu0  ;;  %v438_v50 = vpop.f32.mrf.mxu1  ;;  %18828 = vst [vmem:[#allocation56_spill] sm:$0xff] %v14613_v41  ;;  %18829 = vst [vmem:[#allocation57_spill] sm:$0xff] %v14620_v43 }
  0xf5   :  { %18786 = vst [vmem:[#allocation15_spill] sm:$0xff] %v14235_v47  ;;  %18787 = vst [vmem:[#allocation16_spill] sm:$0xff] %v14238_v48  ;;  %v14241_v51 = vadd.f32 %v345_v49, %v14207_v31  ;;  %v14244_v52 = vadd.f32 %v438_v50, %v14210_v32  ;;  %v14575_v48 = vld [vmem:[%s18544_s4 + $0xac] ss:$16 sps:$4 sm:$0xff]   ;;  %v14596_v47 = vld [vmem:[%s18544_s4 + $0x84] ss:$16 sps:$4 sm:$0xff]  }
  0xf6   :  { %v347_v53 = vpop.f32.mrf.mxu0  ;;  %v440_v54 = vpop.f32.mrf.mxu1  ;;  %18822 = vst [vmem:[#allocation50_spill] sm:$0xff] %v14575_v48  ;;  %18825 = vst [vmem:[#allocation53_spill] sm:$0xff] %v14596_v47 }
  0xf7   :  { %18788 = vst [vmem:[#allocation17_spill] sm:$0xff] %v14241_v51  ;;  %18789 = vst [vmem:[#allocation18_spill] sm:$0xff] %v14244_v52  ;;  %v14247_v55 = vadd.f32 %v347_v53, %v14190_v20  ;;  %v14250_v56 = vadd.f32 %v440_v54, %v14183_v17  ;;  %v14584_v52 = vld [vmem:[%s18544_s4 + $0xa0] ss:$16 sps:$4 sm:$0xff]   ;;  %v14589_v51 = vld [vmem:[%s18544_s4 + $0xa8] ss:$16 sps:$4 sm:$0xff]  }
  0xf8   :  { %v14252_v57 = vpop.f32.mrf.mxu0  ;;  %v14254_v58 = vpop.f32.mrf.mxu1  ;;  %18823 = vst [vmem:[#allocation51_spill] sm:$0xff] %v14584_v52  ;;  %18824 = vst [vmem:[#allocation52_spill] sm:$0xff] %v14589_v51 }
  0xf9   :  { %18790 = vst [vmem:[#allocation19_spill] sm:$0xff] %v14247_v55  ;;  %18791 = vst [vmem:[#allocation20_spill] sm:$0xff] %v14250_v56  ;;  %v14549_v56 = vld [vmem:[%s18544_s4 + $0xcc] ss:$16 sps:$4 sm:$0xff]   ;;  %v14563_v55 = vld [vmem:[%s18544_s4 + $0xc8] ss:$16 sps:$4 sm:$0xff]  }
  0xfa   :  { %18792 = vst [vmem:[#allocation21_spill] sm:$0xff] %v14252_v57  ;;  %18793 = vst [vmem:[#allocation22_spill] sm:$0xff] %v14254_v58  ;;  %v353_v59 = vpop.f32.mrf.mxu0  ;;  %v446_v60 = vpop.f32.mrf.mxu1  ;;  %v14558_v58 = vld [vmem:[%s18544_s4 + $0xc0] ss:$16 sps:$4 sm:$0xff]   ;;  %v14570_v57 = vld [vmem:[%s18544_s4 + $0xa4] ss:$16 sps:$4 sm:$0xff]  }
  0xfb   :  { %v14257_v61 = vadd.f32 %v353_v59, %v14190_v20  ;;  %v14260_v62 = vadd.f32 %v446_v60, %v14183_v17  ;;  %18819 = vst [vmem:[#allocation47_spill] sm:$0xff] %v14558_v58  ;;  %18820 = vst [vmem:[#allocation48_spill] sm:$0xff] %v14563_v55 }
  0xfc   :  { %v355_v63 = vpop.f32.mrf.mxu0  ;;  %v448_v0 = vpop.f32.mrf.mxu1  ;;  %18821 = vst [vmem:[#allocation49_spill] sm:$0xff] %v14570_v57 }
  0xfd   :  { %18794 = vst [vmem:[#allocation23_spill] sm:$0xff] %v14257_v61  ;;  %18795 = vst [vmem:[#allocation24_spill] sm:$0xff] %v14260_v62  ;;  %v14263_v2 = vadd.f32 %v355_v63, %v14207_v31  ;;  %v14266_v3 = vadd.f32 %v448_v0, %v14210_v32  ;;  %v14532_v62 = vld [vmem:[%s18544_s4 + $0xe0] ss:$16 sps:$4 sm:$0xff]   ;;  %v14544_v61 = vld [vmem:[%s18544_s4 + $0xc4] ss:$16 sps:$4 sm:$0xff]  }
  0xfe   :  { %v357_v4 = vpop.f32.mrf.mxu0  ;;  %v450_v5 = vpop.f32.mrf.mxu1 }
  0xff   :  { %18796 = vst [vmem:[#allocation25_spill] sm:$0xff] %v14263_v2  ;;  %18797 = vst [vmem:[#allocation26_spill] sm:$0xff] %v14266_v3  ;;  %v14269_v6 = vadd.f32 %v357_v4, %v14190_v20  ;;  %v14272_v7 = vadd.f32 %v450_v5, %v14183_v17  ;;  %v14525_v3 = vld [vmem:[%s18544_s4 + $0xec] ss:$16 sps:$4 sm:$0xff]   ;;  %v14537_v2 = vld [vmem:[%s18544_s4 + $0xe8] ss:$16 sps:$4 sm:$0xff]  }
 0x100   :  { %v14274_v8 = vpop.f32.mrf.mxu0  ;;  %v14276_v9 = vpop.f32.mrf.mxu1 }
 0x101   :  { %18798 = vst [vmem:[#allocation27_spill] sm:$0xff] %v14269_v6  ;;  %18799 = vst [vmem:[#allocation28_spill] sm:$0xff] %v14272_v7  ;;  %v14508_v7 = vld [vmem:[%s18542_s5] ss:$16 sps:$4 sm:$0xff]   ;;  %v14513_v6 = vld [vmem:[%s18542_s5 + $0x8] ss:$16 sps:$4 sm:$0xff]  }
 0x102   :  { %18800 = vst [vmem:[#allocation29_spill] sm:$0xff] %v14274_v8  ;;  %18801 = vst [vmem:[#allocation30_spill] sm:$0xff] %v14276_v9  ;;  %v363_v10 = vpop.f32.mrf.mxu0  ;;  %v456_v11 = vpop.f32.mrf.mxu1  ;;  %v14501_v9 = vld [vmem:[%s18542_s5 + $0xc] ss:$16 sps:$4 sm:$0xff]   ;;  %v14520_v8 = vld [vmem:[%s18544_s4 + $0xe4] ss:$16 sps:$4 sm:$0xff]  }
 0x103   :  { %v14279_v14 = vadd.f32 %v363_v10, %v14190_v20  ;;  %v14282_v21 = vadd.f32 %v456_v11, %v14183_v17 }
 0x104   :  { %v365_v22 = vpop.f32.mrf.mxu0  ;;  %v458_v29 = vpop.f32.mrf.mxu1 }
 0x105   :  { %18802 = vst [vmem:[#allocation31_spill] sm:$0xff] %v14279_v14  ;;  %18803 = vst [vmem:[#allocation32_spill] sm:$0xff] %v14282_v21  ;;  %v14285_v30 = vadd.f32 %v365_v22, %v14207_v31  ;;  %v14288_v35 = vadd.f32 %v458_v29, %v14210_v32  ;;  %v14484_v21 = vld [vmem:[%s18542_s5 + $0x20] ss:$16 sps:$4 sm:$0xff]   ;;  %v14496_v14 = vld [vmem:[%s18542_s5 + $0x4] ss:$16 sps:$4 sm:$0xff]  }
 0x106   :  { %v367_v36 = vpop.f32.mrf.mxu0  ;;  %v460_v39 = vpop.f32.mrf.mxu1 }
 0x107   :  { %18804 = vst [vmem:[#allocation33_spill] sm:$0xff] %v14285_v30  ;;  %18805 = vst [vmem:[#allocation34_spill] sm:$0xff] %v14288_v35  ;;  %v14291_v40 = vadd.f32 %v367_v36, %v14190_v20  ;;  %v14294_v45 = vadd.f32 %v460_v39, %v14183_v17  ;;  %v324_v39 = vadd.f32 %v14178_v15, %v14190_v20  ;;  %v14477_v35 = vld [vmem:[%s18542_s5 + $0x2c] ss:$16 sps:$4 sm:$0xff]   ;;  %v14489_v30 = vld [vmem:[%s18542_s5 + $0x28] ss:$16 sps:$4 sm:$0xff]  }
 0x108   :  { %v14296_v46 = vpop.f32.mrf.mxu0  ;;  %v14298_v49 = vpop.f32.mrf.mxu1  ;;  %v419_v15 = vadd.f32 %v14187_v19, %v14210_v32 }
 0x109   :  { %18806 = vst [vmem:[#allocation35_spill] sm:$0xff] %v14291_v40  ;;  %18807 = vst [vmem:[#allocation36_spill] sm:$0xff] %v14294_v45  ;;  %v14460_v45 = vld [vmem:[%s18542_s5 + $0x40] ss:$16 sps:$4 sm:$0xff]   ;;  %v14465_v40 = vld [vmem:[%s18542_s5 + $0x48] ss:$16 sps:$4 sm:$0xff]  }
 0x10a   :  { %18808 = vst [vmem:[#allocation37_spill] sm:$0xff] %v14296_v46  ;;  %18809 = vst [vmem:[#allocation38_spill] sm:$0xff] %v14298_v49  ;;  %v373_v50 = vpop.f32.mrf.mxu0  ;;  %v466_v53 = vpop.f32.mrf.mxu1  ;;  %v14453_v49 = vld [vmem:[%s18542_s5 + $0x4c] ss:$16 sps:$4 sm:$0xff]   ;;  %v14472_v46 = vld [vmem:[%s18542_s5 + $0x24] ss:$16 sps:$4 sm:$0xff]  }
 0x10b   :  { %v14301_v54 = vadd.f32 %v373_v50, %v14190_v20  ;;  %v14304_v59 = vadd.f32 %v466_v53, %v14183_v17 }
 0x10c   :  { %v375_v60 = vpop.f32.mrf.mxu0  ;;  %v468_v63 = vpop.f32.mrf.mxu1 }
 0x10d   :  { %18810 = vst [vmem:[#allocation39_spill] sm:$0xff] %v14301_v54  ;;  %18811 = vst [vmem:[#allocation40_spill] sm:$0xff] %v14304_v59  ;;  %v14307_v0 = vadd.f32 %v375_v60, %v14207_v31  ;;  %v14310_v4 = vadd.f32 %v468_v63, %v14210_v32  ;;  %v326_v60 = vadd.f32 %v14185_v18, %v14207_v31 }
 0x10e   :  { %v377_v5 = vpop.f32.mrf.mxu0  ;;  %v470_v10 = vpop.f32.mrf.mxu1 }
 0x10f   :  { %18812 = vst [vmem:[#allocation41_spill] sm:$0xff] %v14307_v0  ;;  %18813 = vst [vmem:[#allocation42_spill] sm:$0xff] %v14310_v4  ;;  %v14313_v11 = vadd.f32 %v377_v5, %v14190_v20  ;;  %v14316_v22 = vadd.f32 %v470_v10, %v14183_v17 }
 0x110   :  { %v14318_v29 = vpop.f32.mrf.mxu0  ;;  %v14320_v36 = vpop.f32.mrf.mxu1 }
 0x111   :  { %18814 = vst [vmem:[#allocation43_spill] sm:$0xff] %v14313_v11  ;;  %18815 = vst [vmem:[#allocation44_spill] sm:$0xff] %v14316_v22 }
 0x112   :  { %18816 = vst [vmem:[#allocation45_spill] sm:$0xff] %v14318_v29  ;;  %18817 = vst [vmem:[#allocation46_spill] sm:$0xff] %v14320_v36  ;;  %v753_v50 = vpop.f32.mrf.mxu0  ;;  %v794_v53 = vpop.f32.mrf.mxu1  ;;  %v417_v36 = vadd.f32 %v14180_v16, %v14183_v17 }
 0x113   :  { %v801_v63 = vadd.f32 %v753_v50, %v324_v39 }
 0x114   :  { %v755_v1 = vpop.f32.mrf.mxu0  ;;  %v796_v4 = vpop.f32.mrf.mxu1  ;;  %v803_v50 = vadd.f32 %v794_v53, %v417_v36  ;;  %v14341_v36 = vld [vmem:[%s18542_s5 + $0xe8] ss:$16 sps:$4 sm:$0xff]  }
 0x115   :  { %v11310_v5 = vmul.f32 -1.442695, %v801_v63  ;;  %v802_v11 = vadd.f32 %v755_v1, %v326_v60  ;;  %v804_v20 = vadd.f32 %v796_v4, %v419_v15 }
 0x116   :  { %v757_v59 = vpop.f32.mrf.mxu0  ;;  %v798_v10 = vpop.f32.mrf.mxu1 }
 0x117   :  { %13400 = vpow2.f32 %v11310_v5  ;;  %v11311_v22 = vmul.f32 -1.442695, %v802_v11  ;;  %v11312_v18 = vmul.f32 -1.442695, %v804_v20  ;;  %v14346_v5 = vld [vmem:[%s18542_s5 + $0xc4] ss:$16 sps:$4 sm:$0xff]  }
 0x118   :  { %v758_v29 = vpop.f32.mrf.mxu0  ;;  %v799_v0 = vpop.f32.mrf.mxu1  ;;  %v14351_v10 = vld [vmem:[%s18542_s5 + $0xcc] ss:$16 sps:$4 sm:$0xff]   ;;  %v14358_v20 = vld [vmem:[%s18542_s5 + $0xc0] ss:$16 sps:$4 sm:$0xff]  }
 0x119   :  { %13402 = vpow2.f32 %v11311_v22 }
 0x11a   :  { %13404 = vpow2.f32 %v11312_v18  ;;  %v14363_v18 = vld [vmem:[%s18542_s5 + $0xc8] ss:$16 sps:$4 sm:$0xff]  }
 0x124   :  { %v13401_v39 = vpop.eup %13400 }
 0x125   :  { %v808_v54 = vadd.f32 1.0, %v13401_v39  ;;  %v14370_v39 = vld [vmem:[%s18542_s5 + $0xa4] ss:$16 sps:$4 sm:$0xff]  }
 0x126   :  { %v13403_v63 = vpop.eup %13402 }
 0x127   :  { %13406 = vrcp.f32 %v808_v54  ;;  %v814_v1 = vadd.f32 1.0, %v13403_v63  ;;  %v13405_v59 = vpop.eup %13404  ;;  %v14336_v54 = vld [vmem:[%s18542_s5 + $0xe0] ss:$16 sps:$4 sm:$0xff]   ;;  %v18818_v63 = vmov 0  }
 0x128   :  { %13408 = vtanh.f32 %v803_v50  ;;  %v821_v29 = vadd.f32 1.0, %v13405_v59  ;;  %v14375_v50 = vld [vmem:[%s18542_s5 + $0xac] ss:$16 sps:$4 sm:$0xff]   ;;  %v14393_v59 = vld [vmem:[%s18542_s5 + $0xa8] ss:$16 sps:$4 sm:$0xff]  }
 0x129   :  { %13410 = vrcp.f32 %v814_v1  ;;  %v14388_v1 = vld [vmem:[%s18542_s5 + $0xa0] ss:$16 sps:$4 sm:$0xff]  }
 0x12a   :  { %13412 = vrcp.f32 %v821_v29  ;;  %v14417_v29 = vld [vmem:[%s18542_s5 + $0x88] ss:$16 sps:$4 sm:$0xff]  }
 0x134   :  { %v13407_v0 = vpop.eup %13406 }
 0x135   :  { %v13409_v11 = vpop.eup %13408 }
 0x136   :  { %v13411_v22 = vpop.eup %13410  ;;  %v825_v4 = vmul.f32 %v13409_v11, %v13407_v0  ;;  %v14400_v0 = vld [vmem:[%s18542_s5 + $0x84] ss:$16 sps:$4 sm:$0xff]   ;;  %v14405_v11 = vld [vmem:[%s18542_s5 + $0x8c] ss:$16 sps:$4 sm:$0xff]  }
 0x137   :  { %v824_v19 = vmul.f32 0.0, %v13411_v22  ;;  %v13413_v16 = vpop.eup %13412  ;;  %v14412_v22 = vld [vmem:[%s18542_s5 + $0x80] ss:$16 sps:$4 sm:$0xff]  }
 0x139   :  { %v14330_v60 = vadd.f32 %v825_v4, %v824_v19  ;;  %v14424_v19 = vld [vmem:[%s18542_s5 + $0x64] ss:$16 sps:$4 sm:$0xff]   ;;  %v14429_v4 = vld [vmem:[%s18542_s5 + $0x6c] ss:$16 sps:$4 sm:$0xff]  }
 0x13b   :  { %13414 = vtanh.f32 %v14330_v60 }
 0x148   :  { %v13415_v17 = vpop.eup %13414 }
 0x149   :  { %v828_v53 = vmul.f32 %v13415_v17, %v13413_v16  ;;  %v14436_v16 = vld [vmem:[%s18542_s5 + $0x60] ss:$16 sps:$4 sm:$0xff]   ;;  %v14441_v17 = vld [vmem:[%s18542_s5 + $0x68] ss:$16 sps:$4 sm:$0xff]  }
 0x14b   :  { %v14353_v15 = vpack.c.bf16 %v828_v53, %v828_v53  ;;  %v14448_v53 = vld [vmem:[%s18542_s5 + $0x44] ss:$16 sps:$4 sm:$0xff]  }
 0x14d   :  { %868 = vmatmul.mubr.bf16.vlgmr.msra.gmra.mxu0 %v14353_v15  ;;  %909 = vmatmul.mubr.bf16.vlgmr.msra.gmra.mxu1 %v14353_v15 }
 0x14e   :  { %1170 = vmatpush1.bf16.msra.mxu0 %v14336_v54  ;;  %1211 = vmatpush1.bf16.msra.mxu1 %v14341_v36 }
 0x14f   :  { %1171 = vmatprep.subr.bf16.mxu0 %v14346_v5  ;;  %1212 = vmatprep.subr.bf16.mxu1 %v14351_v10 }
 0x150   :  { %1201 = vmatprep.mubr.bf16.mxu0 %v18818_v63  ;;  %1242 = vmatprep.mubr.bf16.mxu1 %v18818_v63 }
 0x152   :  { %1172 = vmatpush1.bf16.msra.mxu0 %v14358_v20  ;;  %1213 = vmatpush1.bf16.msra.mxu1 %v14363_v18 }
 0x153   :  { %1173 = vmatprep.subr.bf16.mxu0 %v14370_v39  ;;  %1214 = vmatprep.subr.bf16.mxu1 %v14375_v50 }
 0x156   :  { %1174 = vmatpush1.bf16.msra.mxu0 %v14388_v1  ;;  %1215 = vmatpush1.bf16.msra.mxu1 %v14393_v59 }
 0x157   :  { %1175 = vmatprep.subr.bf16.mxu0 %v14400_v0  ;;  %1216 = vmatprep.subr.bf16.mxu1 %v14405_v11 }
 0x15a   :  { %1176 = vmatpush1.bf16.msra.mxu0 %v14412_v22  ;;  %1217 = vmatpush1.bf16.msra.mxu1 %v14417_v29 }
 0x15b   :  { %1177 = vmatprep.subr.bf16.mxu0 %v14424_v19  ;;  %1218 = vmatprep.subr.bf16.mxu1 %v14429_v4 }
 0x15e   :  { %1178 = vmatpush1.bf16.msra.mxu0 %v14436_v16  ;;  %1219 = vmatpush1.bf16.msra.mxu1 %v14441_v17 }
 0x15f   :  { %1179 = vmatprep.subr.bf16.mxu0 %v14448_v53  ;;  %1220 = vmatprep.subr.bf16.mxu1 %v14453_v49 }
 0x162   :  { %1180 = vmatpush1.bf16.msra.mxu0 %v14460_v45  ;;  %1221 = vmatpush1.bf16.msra.mxu1 %v14465_v40 }
 0x163   :  { %1181 = vmatprep.subr.bf16.mxu0 %v14472_v46  ;;  %1222 = vmatprep.subr.bf16.mxu1 %v14477_v35 }
 0x166   :  { %1182 = vmatpush1.bf16.msra.mxu0 %v14484_v21  ;;  %1223 = vmatpush1.bf16.msra.mxu1 %v14489_v30 }
 0x167   :  { %1183 = vmatprep.subr.bf16.mxu0 %v14496_v14  ;;  %1224 = vmatprep.subr.bf16.mxu1 %v14501_v9 }
 0x16a   :  { %1184 = vmatpush1.bf16.msra.mxu0 %v14508_v7  ;;  %1225 = vmatpush1.bf16.msra.mxu1 %v14513_v6 }
 0x16b   :  { %1411 = vmatprep.subr.bf16.mxu0 %v14520_v8  ;;  %1452 = vmatprep.subr.bf16.mxu1 %v14525_v3 }
 0x16d   :  { %1202 = vmatmul.mubr.bf16.vlgmr.msra.gmra.mxu0 %v18818_v63  ;;  %1243 = vmatmul.mubr.bf16.vlgmr.msra.gmra.mxu1 %v18818_v63 }
 0x16e   :  { %1412 = vmatpush1.bf16.msra.mxu0 %v14532_v62  ;;  %1453 = vmatpush1.bf16.msra.mxu1 %v14537_v2 }
 0x16f   :  { %1413 = vmatprep.subr.bf16.mxu0 %v14544_v61  ;;  %1454 = vmatprep.subr.bf16.mxu1 %v14549_v56 }
 0x170   :  { %1443 = vmatprep.mubr.bf16.mxu0 %v18818_v63  ;;  %1484 = vmatprep.mubr.bf16.mxu1 %v18818_v63 }
 0x172   :  { %1414 = vmatpush1.bf16.msra.mxu0 %v14558_v58  ;;  %1455 = vmatpush1.bf16.msra.mxu1 %v14563_v55 }
 0x173   :  { %1415 = vmatprep.subr.bf16.mxu0 %v14570_v57  ;;  %1456 = vmatprep.subr.bf16.mxu1 %v14575_v48 }
 0x176   :  { %1416 = vmatpush1.bf16.msra.mxu0 %v14584_v52  ;;  %1457 = vmatpush1.bf16.msra.mxu1 %v14589_v51 }
 0x177   :  { %1417 = vmatprep.subr.bf16.mxu0 %v14596_v47  ;;  %1458 = vmatprep.subr.bf16.mxu1 %v14601_v42 }
 0x17a   :  { %1418 = vmatpush1.bf16.msra.mxu0 %v14608_v44  ;;  %1459 = vmatpush1.bf16.msra.mxu1 %v14613_v41  ;;  %v14649_v41 = vld [vmem:[%s18544_s4 + $0x4c] ss:$16 sps:$4 sm:$0xff]  }
 0x17b   :  { %1419 = vmatprep.subr.bf16.mxu0 %v14620_v43  ;;  %1460 = vmatprep.subr.bf16.mxu1 %v14625_v34  ;;  %18834 = vst [vmem:[#allocation62_spill] sm:$0xff] %v14649_v41  ;;  %v14656_v43 = vld [vmem:[%s18544_s4 + $0x40] ss:$16 sps:$4 sm:$0xff]   ;;  %v14661_v34 = vld [vmem:[%s18544_s4 + $0x48] ss:$16 sps:$4 sm:$0xff]  }
 0x17c   :  { %18835 = vst [vmem:[#allocation63_spill] sm:$0xff] %v14656_v43  ;;  %18836 = vst [vmem:[#allocation64_spill] sm:$0xff] %v14661_v34 }
 0x17e   :  { %1420 = vmatpush1.bf16.msra.mxu0 %v14632_v38  ;;  %1461 = vmatpush1.bf16.msra.mxu1 %v14637_v37  ;;  %v14668_v38 = vld [vmem:[%s18544_s4 + $0x24] ss:$16 sps:$4 sm:$0xff]   ;;  %v14673_v37 = vld [vmem:[%s18544_s4 + $0x2c] ss:$16 sps:$4 sm:$0xff]  }
 0x17f   :  { %1421 = vmatprep.subr.bf16.mxu0 %v14644_v33  ;;  %1462 = vmatprep.subr.bf16.mxu1 %v14649_v41  ;;  %18837 = vst [vmem:[#allocation65_spill] sm:$0xff] %v14668_v38  ;;  %18838 = vst [vmem:[#allocation66_spill] sm:$0xff] %v14673_v37  ;;  %v14680_v33 = vld [vmem:[%s18544_s4 + $0x20] ss:$16 sps:$4 sm:$0xff]   ;;  %v14685_v41 = vld [vmem:[%s18544_s4 + $0x28] ss:$16 sps:$4 sm:$0xff]  }
 0x180   :  { %18839 = vst [vmem:[#allocation67_spill] sm:$0xff] %v14680_v33  ;;  %18840 = vst [vmem:[#allocation68_spill] sm:$0xff] %v14685_v41 }
 0x182   :  { %1422 = vmatpush1.bf16.msra.mxu0 %v14656_v43  ;;  %1463 = vmatpush1.bf16.msra.mxu1 %v14661_v34  ;;  %v14692_v43 = vld [vmem:[%s18544_s4 + $0x4] ss:$16 sps:$4 sm:$0xff]   ;;  %v14697_v34 = vld [vmem:[%s18544_s4 + $0xc] ss:$16 sps:$4 sm:$0xff]  }
 0x183   :  { %1423 = vmatprep.subr.bf16.mxu0 %v14668_v38  ;;  %1464 = vmatprep.subr.bf16.mxu1 %v14673_v37  ;;  %18841 = vst [vmem:[#allocation69_spill] sm:$0xff] %v14692_v43  ;;  %18842 = vst [vmem:[#allocation70_spill] sm:$0xff] %v14697_v34  ;;  %v14704_v38 = vld [vmem:[%s18544_s4] ss:$16 sps:$4 sm:$0xff]   ;;  %v14709_v37 = vld [vmem:[%s18544_s4 + $0x8] ss:$16 sps:$4 sm:$0xff]  }
 0x184   :  { %18843 = vst [vmem:[#allocation71_spill] sm:$0xff] %v14704_v38  ;;  %18844 = vst [vmem:[#allocation72_spill] sm:$0xff] %v14709_v37 }
 0x186   :  { %1424 = vmatpush1.bf16.msra.mxu0 %v14680_v33  ;;  %1465 = vmatpush1.bf16.msra.mxu1 %v14685_v41  ;;  %v14722_v41 = vld [vmem:[%s18541_s2 + $0xe4] ss:$16 sps:$4 sm:$0xff]  }
 0x187   :  { %1425 = vmatprep.subr.bf16.mxu0 %v14692_v43  ;;  %1466 = vmatprep.subr.bf16.mxu1 %v14697_v34  ;;  %18845 = vst [vmem:[#allocation73_spill] sm:$0xff] %v14722_v41  ;;  %v14727_v34 = vld [vmem:[%s18541_s2 + $0xec] ss:$16 sps:$4 sm:$0xff]  }
 0x188   :  { %18846 = vst [vmem:[#allocation74_spill] sm:$0xff] %v14727_v34  ;;  %v14751_v43 = vld [vmem:[%s18541_s2 + $0xcc] ss:$16 sps:$4 sm:$0xff]  }
 0x189   :  { %18850 = vst [vmem:[#allocation78_spill] sm:$0xff] %v14751_v43 }
 0x18a   :  { %1426 = vmatpush1.bf16.msra.mxu0 %v14704_v38  ;;  %1467 = vmatpush1.bf16.msra.mxu1 %v14709_v37  ;;  %v14732_v37 = vld [vmem:[%s18541_s2 + $0xe0] ss:$16 sps:$4 sm:$0xff]   ;;  %v14746_v38 = vld [vmem:[%s18541_s2 + $0xc4] ss:$16 sps:$4 sm:$0xff]  }
 0x18b   :  { %18847 = vst [vmem:[#allocation75_spill] sm:$0xff] %v14732_v37  ;;  %1742 = vmatprep.subr.bf16.mxu0 %v14722_v41  ;;  %1783 = vmatprep.subr.bf16.mxu1 %v14727_v34  ;;  %18849 = vst [vmem:[#allocation77_spill] sm:$0xff] %v14746_v38  ;;  %v14756_v41 = vld [vmem:[%s18541_s2 + $0xc0] ss:$16 sps:$4 sm:$0xff]   ;;  %v13784_v34 = vld [vmem:[%s18541_s2 + $0xac] ss:$16 sps:$4 sm:$0xff]  }
 0x18c   :  { %18851 = vst [vmem:[#allocation79_spill] sm:$0xff] %v14756_v41 }
 0x18d   :  { %1444 = vmatmul.mubr.bf16.vlgmr.msra.gmra.mxu0 %v14353_v15  ;;  %1485 = vmatmul.mubr.bf16.vlgmr.msra.gmra.mxu1 %v14353_v15  ;;  %v14737_v15 = vld [vmem:[%s18541_s2 + $0xe8] ss:$16 sps:$4 sm:$0xff]  }
 0x18e   :  { %1774 = vmatprep.mubr.bf16.mxu0 %v18818_v63  ;;  %1815 = vmatprep.mubr.bf16.mxu1 %v18818_v63  ;;  %18848 = vst [vmem:[#allocation76_spill] sm:$0xff] %v14737_v15 }
 0x18f   :  { %1743 = vmatpush1.bf16.msra.mxu0 %v14732_v37  ;;  %1784 = vmatpush1.bf16.msra.mxu1 %v14737_v15  ;;  %v14761_v37 = vld [vmem:[%s18541_s2 + $0xc8] ss:$16 sps:$4 sm:$0xff]   ;;  %v14770_v15 = vld [vmem:[%s18541_s2 + $0xa4] ss:$16 sps:$4 sm:$0xff]  }
 0x190   :  { %18852 = vst [vmem:[#allocation80_spill] sm:$0xff] %v14761_v37  ;;  %1744 = vmatprep.subr.bf16.mxu0 %v14746_v38  ;;  %1785 = vmatprep.subr.bf16.mxu1 %v14751_v43  ;;  %18853 = vst [vmem:[#allocation81_spill] sm:$0xff] %v14770_v15  ;;  %v14778_v38 = vld [vmem:[%s18541_s2 + $0xa0] ss:$16 sps:$4 sm:$0xff]  }
 0x191   :  { %18854 = vst [vmem:[#allocation82_spill] sm:$0xff] %v14778_v38  ;;  %v14817_v43 = vld [vmem:[%s18541_s2 + $0x60] ss:$16 sps:$4 sm:$0xff]  }
 0x192   :  { %18860 = vst [vmem:[#allocation88_spill] sm:$0xff] %v14817_v43 }
 0x193   :  { %1745 = vmatpush1.bf16.msra.mxu0 %v14756_v41  ;;  %1786 = vmatpush1.bf16.msra.mxu1 %v14761_v37  ;;  %v13785_v37 = vld [vmem:[%s18541_s2 + $0xa8] ss:$16 sps:$4 sm:$0xff]   ;;  %v14788_v41 = vld [vmem:[%s18541_s2 + $0x84] ss:$16 sps:$4 sm:$0xff]  }
 0x194   :  { %1787 = vmatprep.subr.bf16.mxu1 %v13784_v34  ;;  %1746 = vmatprep.subr.bf16.mxu0 %v14770_v15  ;;  %18855 = vst [vmem:[#allocation83_spill] sm:$0xff] %v14788_v41  ;;  %v14793_v34 = vld [vmem:[%s18541_s2 + $0x8c] ss:$16 sps:$4 sm:$0xff]   ;;  %v14798_v15 = vld [vmem:[%s18541_s2 + $0x80] ss:$16 sps:$4 sm:$0xff]  }
 0x195   :  { %18856 = vst [vmem:[#allocation84_spill] sm:$0xff] %v14793_v34  ;;  %18857 = vst [vmem:[#allocation85_spill] sm:$0xff] %v14798_v15 }
 0x197   :  { %1747 = vmatpush1.bf16.msra.mxu0 %v14778_v38  ;;  %1788 = vmatpush1.bf16.msra.mxu1 %v13785_v37  ;;  %v14803_v38 = vld [vmem:[%s18541_s2 + $0x88] ss:$16 sps:$4 sm:$0xff]   ;;  %v14810_v37 = vld [vmem:[%s18541_s2 + $0x64] ss:$16 sps:$4 sm:$0xff]  }
 0x198   :  { %18858 = vst [vmem:[#allocation86_spill] sm:$0xff] %v14803_v38  ;;  %1748 = vmatprep.subr.bf16.mxu0 %v14788_v41  ;;  %1789 = vmatprep.subr.bf16.mxu1 %v14793_v34  ;;  %18859 = vst [vmem:[#allocation87_spill] sm:$0xff] %v14810_v37  ;;  %v13786_v34 = vld [vmem:[%s18541_s2 + $0x6c] ss:$16 sps:$4 sm:$0xff]   ;;  %v14826_v41 = vld [vmem:[%s18541_s2 + $0x44] ss:$16 sps:$4 sm:$0xff]  }
 0x199   :  { %18861 = vst [vmem:[#allocation89_spill] sm:$0xff] %v14826_v41 }
 0x19b   :  { %1749 = vmatpush1.bf16.msra.mxu0 %v14798_v15  ;;  %1790 = vmatpush1.bf16.msra.mxu1 %v14803_v38  ;;  %v13787_v38 = vld [vmem:[%s18541_s2 + $0x68] ss:$16 sps:$4 sm:$0xff]  }
 0x19c   :  { %1750 = vmatprep.subr.bf16.mxu0 %v14810_v37  ;;  %1791 = vmatprep.subr.bf16.mxu1 %v13786_v34  ;;  %v14835_v37 = vld [vmem:[%s18541_s2 + $0x40] ss:$16 sps:$4 sm:$0xff]   ;;  %v13788_v34 = vld [vmem:[%s18541_s2 + $0x4c] ss:$16 sps:$4 sm:$0xff]  }
 0x19d   :  { %18862 = vst [vmem:[#allocation90_spill] sm:$0xff] %v14835_v37 }
 0x19f   :  { %1751 = vmatpush1.bf16.msra.mxu0 %v14817_v43  ;;  %1792 = vmatpush1.bf16.msra.mxu1 %v13787_v38  ;;  %v14844_v43 = vld [vmem:[%s18541_s2 + $0x24] ss:$16 sps:$4 sm:$0xff]   ;;  %v13789_v38 = vld [vmem:[%s18541_s2 + $0x48] ss:$16 sps:$4 sm:$0xff]  }
 0x1a0   :  { %1752 = vmatprep.subr.bf16.mxu0 %v14826_v41  ;;  %1793 = vmatprep.subr.bf16.mxu1 %v13788_v34  ;;  %18863 = vst [vmem:[#allocation91_spill] sm:$0xff] %v14844_v43  ;;  %v14853_v41 = vld [vmem:[%s18541_s2 + $0x20] ss:$16 sps:$4 sm:$0xff]   ;;  %v13790_v34 = vld [vmem:[%s18541_s2 + $0x2c] ss:$16 sps:$4 sm:$0xff]  }
 0x1a1   :  { %18864 = vst [vmem:[#allocation92_spill] sm:$0xff] %v14853_v41 }
 0x1a3   :  { %1753 = vmatpush1.bf16.msra.mxu0 %v14835_v37  ;;  %1794 = vmatpush1.bf16.msra.mxu1 %v13789_v38  ;;  %v14862_v37 = vld [vmem:[%s18541_s2 + $0x4] ss:$16 sps:$4 sm:$0xff]   ;;  %v13791_v38 = vld [vmem:[%s18541_s2 + $0x28] ss:$16 sps:$4 sm:$0xff]  }
 0x1a4   :  { %1754 = vmatprep.subr.bf16.mxu0 %v14844_v43  ;;  %1795 = vmatprep.subr.bf16.mxu1 %v13790_v34  ;;  %18865 = vst [vmem:[#allocation93_spill] sm:$0xff] %v14862_v37  ;;  %v14871_v43 = vld [vmem:[%s18541_s2] ss:$16 sps:$4 sm:$0xff]   ;;  %v13792_v34 = vld [vmem:[%s18541_s2 + $0xc] ss:$16 sps:$4 sm:$0xff]  }
 0x1a5   :  { %18866 = vst [vmem:[#allocation94_spill] sm:$0xff] %v14871_v43 }
 0x1a7   :  { %1755 = vmatpush1.bf16.msra.mxu0 %v14853_v41  ;;  %1796 = vmatpush1.bf16.msra.mxu1 %v13791_v38  ;;  %v13793_v41 = vld [vmem:[%s18541_s2 + $0x8] ss:$16 sps:$4 sm:$0xff]   ;;  %v13794_v38 = vld [vmem:[%s18542_s5 + $0xe4] ss:$16 sps:$4 sm:$0xff]  }
 0x1a8   :  { %1756 = vmatprep.subr.bf16.mxu0 %v14862_v37  ;;  %1797 = vmatprep.subr.bf16.mxu1 %v13792_v34  ;;  %v13795_v37 = vld [vmem:[%s18542_s5 + $0xec] ss:$16 sps:$4 sm:$0xff]   ;;  %v330_v34 = vadd.f32 %v14202_v27, %v14207_v31 }
 0x1ab   :  { %1757 = vmatpush1.bf16.msra.mxu0 %v14871_v43  ;;  %1798 = vmatpush1.bf16.msra.mxu1 %v13793_v41 }
 0x1ac   :  { %2077 = vmatprep.subr.bf16.mxu0 %v13794_v38  ;;  %2118 = vmatprep.subr.bf16.mxu1 %v13795_v37  ;;  %v423_v37 = vadd.f32 %v14204_v28, %v14210_v32 }
 0x20d   :  { %v869_v15 = vpop.f32.mrf.mxu0  ;;  %v910_v33 = vpop.f32.mrf.mxu1 }
 0x20e   :  { %v917_v43 = vadd.f32 %v869_v15, %v14197_v25  ;;  %v919_v58 = vadd.f32 %v910_v33, %v14200_v26 }
 0x20f   :  { %v871_v44 = vpop.f32.mrf.mxu0  ;;  %v912_v42 = vpop.f32.mrf.mxu1 }
 0x210   :  { %v11313_v41 = vmul.f32 -1.442695, %v917_v43  ;;  %v918_v47 = vadd.f32 %v871_v44, %v330_v34  ;;  %v920_v55 = vadd.f32 %v912_v42, %v423_v37 }
 0x211   :  { %v873_v51 = vpop.f32.mrf.mxu0  ;;  %v914_v52 = vpop.f32.mrf.mxu1 }
 0x212   :  { %13416 = vpow2.f32 %v11313_v41  ;;  %v11314_v38 = vmul.f32 -1.442695, %v918_v47  ;;  %v11315_v27 = vmul.f32 -1.442695, %v920_v55 }
 0x213   :  { %v874_v48 = vpop.f32.mrf.mxu0  ;;  %v915_v57 = vpop.f32.mrf.mxu1 }
 0x214   :  { %13418 = vpow2.f32 %v11314_v38 }
 0x215   :  { %13420 = vtanh.f32 %v919_v58 }
 0x216   :  { %13422 = vpow2.f32 %v11315_v27 }
 0x21f   :  { %v13417_v31 = vpop.eup %13416 }
 0x220   :  { %v924_v25 = vadd.f32 1.0, %v13417_v31 }
 0x221   :  { %v13419_v15 = vpop.eup %13418 }
 0x222   :  { %13424 = vrcp.f32 %v924_v25  ;;  %v930_v43 = vadd.f32 1.0, %v13419_v15  ;;  %v13421_v44 = vpop.eup %13420 }
 0x223   :  { %v13423_v51 = vpop.eup %13422 }
 0x224   :  { %13426 = vrcp.f32 %v930_v43  ;;  %v937_v26 = vadd.f32 1.0, %v13423_v51 }
 0x226   :  { %13428 = vrcp.f32 %v937_v26 }
 0x22d   :  { %v1203_v47 = vpop.f32.mrf.mxu0  ;;  %v14893_v48 = vpop.f32.mrf.mxu1 }
 0x22f   :  { %v13425_v52 = vpop.eup %13424  ;;  %v1205_v57 = vpop.f32.mrf.mxu0 }
 0x230   :  { %v1246_v28 = vpop.f32.mrf.mxu1  ;;  %v941_v42 = vmul.f32 %v13425_v52, %v13421_v44 }
 0x231   :  { %v13427_v34 = vpop.eup %13426  ;;  %v1207_v33 = vpop.f32.mrf.mxu0 }
 0x232   :  { %v1248_v55 = vpop.f32.mrf.mxu1  ;;  %v940_v31 = vmul.f32 %v13427_v34, %v14330_v60  ;;  %v1493_v60 = vld [vmem:[%s18545_s6] sm:$0xf] }
 0x233   :  { %v1208_v58 = vpop.f32.mrf.mxu0  ;;  %v13429_v37 = vpop.eup %13428  ;;  %v1498_v43 = vrot.slane %v1493_v60, %v14173_v13  ;;  %v18876_v55 = vld [vmem:[#allocation56_spill] sm:$0xff] }
 0x234   :  { %v1249_v41 = vpop.f32.mrf.mxu1  ;;  %v14896_v38 = vadd.f32 %v941_v42, %v940_v31  ;;  %v18877_v31 = vld [vmem:[#allocation57_spill] sm:$0xff]  ;;  %v18878_v58 = vld [vmem:[#allocation58_spill] sm:$0xff] }
 0x235   :  { %v18879_v41 = vld [vmem:[#allocation59_spill] sm:$0xff] }
 0x236   :  { %13430 = vtanh.f32 %v14896_v38 }
 0x243   :  { %v13431_v27 = vpop.eup %13430 }
 0x244   :  { %v944_v25 = vmul.f32 %v13431_v27, %v13429_v37  ;;  %v18880_v37 = vld [vmem:[#allocation60_spill] sm:$0xff]  ;;  %v18881_v27 = vld [vmem:[#allocation61_spill] sm:$0xff] }
 0x246   :  { %v14899_v15 = vpack.c.bf16 %v944_v25, %v944_v25  ;;  %v18882_v25 = vld [vmem:[#allocation62_spill] sm:$0xff] }
 0x248   :  { %1775 = vmatmul.mubr.bf16.vlgmr.msra.gmra.mxu0 %v14899_v15  ;;  %1816 = vmatmul.mubr.bf16.vlgmr.msra.gmra.mxu1 %v14899_v15 }
 0x249   :  { %2078 = vmatpush1.bf16.msra.mxu0 %v14336_v54  ;;  %2119 = vmatpush1.bf16.msra.mxu1 %v14341_v36  ;;  %v1502_v54 = vrot.slane %v1493_v60, %v14192_v23 }
 0x24a   :  { %2079 = vmatprep.subr.bf16.mxu0 %v14346_v5  ;;  %2120 = vmatprep.subr.bf16.mxu1 %v14351_v10 }
 0x24b   :  { %2109 = vmatprep.mubr.bf16.mxu0 %v18818_v63  ;;  %2150 = vmatprep.mubr.bf16.mxu1 %v18818_v63 }
 0x24d   :  { %v1445_v44 = vpop.f32.mrf.mxu0  ;;  %v1486_v51 = vpop.f32.mrf.mxu1  ;;  %2080 = vmatpush1.bf16.msra.mxu0 %v14358_v20  ;;  %2121 = vmatpush1.bf16.msra.mxu1 %v14363_v18 }
 0x24e   :  { %v1446_v52 = vadd.f32 %v1445_v44, %v1203_v47  ;;  %2081 = vmatprep.subr.bf16.mxu0 %v14370_v39  ;;  %2122 = vmatprep.subr.bf16.mxu1 %v14375_v50  ;;  %v18868_v47 = vld [vmem:[#allocation48_spill] sm:$0xff]  ;;  %v18885_v44 = vld [vmem:[#allocation65_spill] sm:$0xff] }
 0x24f   :  { %v1447_v36 = vpop.f32.mrf.mxu0  ;;  %v1488_v5 = vpop.f32.mrf.mxu1 }
 0x250   :  { %v1515_v10 = vadd.f32 %v1498_v43, %v1446_v52  ;;  %v1448_v42 = vadd.f32 %v1447_v36, %v1205_v57  ;;  %v18870_v57 = vld [vmem:[#allocation50_spill] sm:$0xff]  ;;  %v18884_v43 = vld [vmem:[#allocation64_spill] sm:$0xff]  ;;  %v18887_v52 = vld [vmem:[#allocation67_spill] sm:$0xff] }
 0x251   :  { %v1449_v34 = vpop.f32.mrf.mxu0  ;;  %v1490_v26 = vpop.f32.mrf.mxu1  ;;  %2082 = vmatpush1.bf16.msra.mxu0 %v14388_v1  ;;  %2123 = vmatpush1.bf16.msra.mxu1 %v14393_v59  ;;  %v1489_v1 = vadd.f32 %v1488_v5, %v1246_v28  ;;  %v1510_v59 = vrot.slane %v1493_v60, %v14194_v24  ;;  %v18871_v28 = vld [vmem:[#allocation51_spill] sm:$0xff]  ;;  %v18889_v36 = vld [vmem:[#allocation69_spill] sm:$0xff]  ;;  %v18890_v5 = vld [vmem:[#allocation70_spill] sm:$0xff] }
 0x252   :  { %v11380_v20 = vmul.f32 -1.442695, %v1515_v10  ;;  %v1516_v33 = vadd.f32 %v1502_v54, %v1448_v42  ;;  %2083 = vmatprep.subr.bf16.mxu0 %v14400_v0  ;;  %2124 = vmatprep.subr.bf16.mxu1 %v14405_v11  ;;  %v1487_v11 = vadd.f32 %v1486_v51, %v14893_v48  ;;  %v18869_v48 = vld [vmem:[#allocation49_spill] sm:$0xff]  ;;  %v18886_v51 = vld [vmem:[#allocation66_spill] sm:$0xff]  ;;  %v18888_v54 = vld [vmem:[#allocation68_spill] sm:$0xff] }
 0x253   :  { %v1450_v18 = vpop.f32.mrf.mxu0  ;;  %v1491_v39 = vpop.f32.mrf.mxu1  ;;  %v1518_v0 = vadd.f32 %v1510_v59, %v1489_v1  ;;  %v18891_v10 = vld [vmem:[#allocation71_spill] sm:$0xff]  ;;  %v18892_v42 = vld [vmem:[#allocation72_spill] sm:$0xff]  ;;  %v18893_v34 = vld [vmem:[#allocation73_spill] sm:$0xff] }
 0x254   :  { %13432 = vpow2.f32 %v11380_v20  ;;  %v11381_v50 = vmul.f32 -1.442695, %v1516_v33  ;;  %v18894_v26 = vld [vmem:[#allocation74_spill] sm:$0xff]  ;;  %v18895_v20 = vld [vmem:[#allocation75_spill] sm:$0xff]  ;;  %v18896_v33 = vld [vmem:[#allocation76_spill] sm:$0xff] }
 0x255   :  { %2084 = vmatpush1.bf16.msra.mxu0 %v14412_v22  ;;  %2125 = vmatpush1.bf16.msra.mxu1 %v14417_v29  ;;  %v1506_v22 = vrot.slane %v1493_v60, %v14171_v12  ;;  %v11382_v29 = vmul.f32 -1.442695, %v1518_v0  ;;  %v18883_v60 = vld [vmem:[#allocation63_spill] sm:$0xff]  ;;  %v18897_v18 = vld [vmem:[#allocation77_spill] sm:$0xff]  ;;  %v18898_v39 = vld [vmem:[#allocation78_spill] sm:$0xff] }
 0x256   :  { %13434 = vpow2.f32 %v11381_v50  ;;  %2085 = vmatprep.subr.bf16.mxu0 %v14424_v19  ;;  %2126 = vmatprep.subr.bf16.mxu1 %v14429_v4  ;;  %v14994_v50 = vld [vmem:[%s18541_s2 + $0xac] ss:$16 sps:$4 sm:$0xff]   ;;  %v18899_v1 = vld [vmem:[#allocation79_spill] sm:$0xff]  ;;  %v15003_v59 = vld [vmem:[%s18541_s2 + $0xa8] ss:$16 sps:$4 sm:$0xff]  }
 0x257   :  { %v1517_v4 = vadd.f32 %v1506_v22, %v1487_v11  ;;  %13436 = vpow2.f32 %v11382_v29  ;;  %v18901_v0 = vld [vmem:[#allocation81_spill] sm:$0xff]  ;;  %v18902_v11 = vld [vmem:[#allocation82_spill] sm:$0xff]  ;;  %v18903_v22 = vld [vmem:[#allocation83_spill] sm:$0xff] }
 0x258   :  { %v18904_v29 = vld [vmem:[#allocation84_spill] sm:$0xff] }
 0x259   :  { %2086 = vmatpush1.bf16.msra.mxu0 %v14436_v16  ;;  %2127 = vmatpush1.bf16.msra.mxu1 %v14441_v17 }
 0x25a   :  { %2087 = vmatprep.subr.bf16.mxu0 %v14448_v53  ;;  %2128 = vmatprep.subr.bf16.mxu1 %v14453_v49 }
 0x25d   :  { %2088 = vmatpush1.bf16.msra.mxu0 %v14460_v45  ;;  %2129 = vmatpush1.bf16.msra.mxu1 %v14465_v40 }
 0x25e   :  { %2089 = vmatprep.subr.bf16.mxu0 %v14472_v46  ;;  %2130 = vmatprep.subr.bf16.mxu1 %v14477_v35 }
 0x261   :  { %v13433_v19 = vpop.eup %13432  ;;  %2090 = vmatpush1.bf16.msra.mxu0 %v14484_v21  ;;  %2131 = vmatpush1.bf16.msra.mxu1 %v14489_v30 }
 0x262   :  { %v1522_v49 = vadd.f32 1.0, %v13433_v19  ;;  %2091 = vmatprep.subr.bf16.mxu0 %v14496_v14  ;;  %2132 = vmatprep.subr.bf16.mxu1 %v14501_v9  ;;  %v15014_v19 = vld [vmem:[%s18541_s2 + $0x6c] ss:$16 sps:$4 sm:$0xff]  }
 0x263   :  { %v13435_v16 = vpop.eup %13434 }
 0x264   :  { %13438 = vrcp.f32 %v1522_v49  ;;  %v1528_v40 = vadd.f32 1.0, %v13435_v16  ;;  %v13437_v21 = vpop.eup %13436  ;;  %v18906_v49 = vld [vmem:[#allocation86_spill] sm:$0xff] }
 0x265   :  { %13440 = vtanh.f32 %v1517_v4  ;;  %2092 = vmatpush1.bf16.msra.mxu0 %v14508_v7  ;;  %2133 = vmatpush1.bf16.msra.mxu1 %v14513_v6  ;;  %v1535_v45 = vadd.f32 1.0, %v13437_v21  ;;  %v18905_v4 = vld [vmem:[#allocation85_spill] sm:$0xff]  ;;  %v15021_v16 = vld [vmem:[%s18541_s2 + $0x68] ss:$16 sps:$4 sm:$0xff]   ;;  %v15028_v21 = vld [vmem:[%s18541_s2 + $0x4c] ss:$16 sps:$4 sm:$0xff]  }
 0x266   :  { %13442 = vrcp.f32 %v1528_v40  ;;  %2319 = vmatprep.subr.bf16.mxu0 %v14520_v8  ;;  %2360 = vmatprep.subr.bf16.mxu1 %v14525_v3  ;;  %v18867_v8 = vld [vmem:[#allocation47_spill] sm:$0xff] }
 0x267   :  { %13444 = vrcp.f32 %v1535_v45  ;;  %v18907_v40 = vld [vmem:[#allocation87_spill] sm:$0xff]  ;;  %v15042_v45 = vld [vmem:[%s18541_s2 + $0x2c] ss:$16 sps:$4 sm:$0xff]  }
 0x271   :  { %v13439_v30 = vpop.eup %13438 }
 0x272   :  { %v13441_v35 = vpop.eup %13440 }
 0x273   :  { %v13443_v14 = vpop.eup %13442  ;;  %v1539_v46 = vmul.f32 %v13441_v35, %v13439_v30  ;;  %v18908_v30 = vld [vmem:[#allocation88_spill] sm:$0xff] }
 0x274   :  { %v1538_v9 = vmul.f32 0.0, %v13443_v14  ;;  %v13445_v7 = vpop.eup %13444  ;;  %v15035_v35 = vld [vmem:[%s18541_s2 + $0x48] ss:$16 sps:$4 sm:$0xff]   ;;  %v18909_v14 = vld [vmem:[#allocation89_spill] sm:$0xff] }
 0x276   :  { %v14945_v17 = vadd.f32 %v1539_v46, %v1538_v9  ;;  %v18910_v9 = vld [vmem:[#allocation90_spill] sm:$0xff] }
 0x277   :  { %v15049_v46 = vld [vmem:[%s18541_s2 + $0x28] ss:$16 sps:$4 sm:$0xff]  }
 0x278   :  { %13446 = vtanh.f32 %v14945_v17 }
 0x285   :  { %v13447_v53 = vpop.eup %13446 }
 0x286   :  { %v1542_v6 = vmul.f32 %v13447_v53, %v13445_v7  ;;  %v18911_v7 = vld [vmem:[#allocation91_spill] sm:$0xff]  ;;  %v15056_v53 = vld [vmem:[%s18541_s2 + $0xc] ss:$16 sps:$4 sm:$0xff]  }
 0x288   :  { %1543 = vst [vmem:[%s18546_s7] sm:$0xff] %v1542_v6  ;;  %v1884_v3 = vpack.c.bf16 %v1542_v6, %v1542_v6  ;;  %v18912_v6 = vld [vmem:[#allocation92_spill] sm:$0xff] }
 0x28a   :  { %2110 = vmatmul.mubr.bf16.vlgmr.msra.gmra.mxu0 %v1884_v3  ;;  %2151 = vmatmul.mubr.bf16.vlgmr.msra.gmra.mxu1 %v1884_v3  ;;  %v15063_v3 = vld [vmem:[%s18541_s2 + $0x8] ss:$16 sps:$4 sm:$0xff]  }
 0x28b   :  { %2320 = vmatpush1.bf16.msra.mxu0 %v14532_v62  ;;  %2361 = vmatpush1.bf16.msra.mxu1 %v14537_v2  ;;  %v18872_v62 = vld [vmem:[#allocation52_spill] sm:$0xff]  ;;  %v18873_v2 = vld [vmem:[#allocation53_spill] sm:$0xff] }
 0x28c   :  { %2321 = vmatprep.subr.bf16.mxu0 %v14544_v61  ;;  %2362 = vmatprep.subr.bf16.mxu1 %v14549_v56  ;;  %v18874_v61 = vld [vmem:[#allocation54_spill] sm:$0xff]  ;;  %v18875_v56 = vld [vmem:[#allocation55_spill] sm:$0xff] }
 0x28d   :  { %2351 = vmatprep.mubr.bf16.mxu0 %v18818_v63  ;;  %2392 = vmatprep.mubr.bf16.mxu1 %v18818_v63 }
 0x28f   :  { %2322 = vmatpush1.bf16.msra.mxu0 %v18867_v8  ;;  %2363 = vmatpush1.bf16.msra.mxu1 %v18868_v47  ;;  %v18913_v8 = vld [vmem:[#allocation93_spill] sm:$0xff]  ;;  %v18914_v47 = vld [vmem:[#allocation94_spill] sm:$0xff] }
 0x290   :  { %2323 = vmatprep.subr.bf16.mxu0 %v18869_v48  ;;  %2364 = vmatprep.subr.bf16.mxu1 %v18870_v57  ;;  %v15072_v48 = vld [vmem:[%s18542_s5 + $0xe4] ss:$16 sps:$4 sm:$0xff]   ;;  %v15077_v57 = vld [vmem:[%s18542_s5 + $0xec] ss:$16 sps:$4 sm:$0xff]  }
 0x293   :  { %2324 = vmatpush1.bf16.msra.mxu0 %v18871_v28  ;;  %2365 = vmatpush1.bf16.msra.mxu1 %v18872_v62 }
 0x294   :  { %2325 = vmatprep.subr.bf16.mxu0 %v18873_v2  ;;  %2366 = vmatprep.subr.bf16.mxu1 %v18874_v61  ;;  %v18915_v2 = vld [vmem:[#allocation7_spill] sm:$0xff] }
 0x297   :  { %2326 = vmatpush1.bf16.msra.mxu0 %v18875_v56  ;;  %2367 = vmatpush1.bf16.msra.mxu1 %v18876_v55 }
 0x298   :  { %2327 = vmatprep.subr.bf16.mxu0 %v18877_v31  ;;  %2368 = vmatprep.subr.bf16.mxu1 %v18878_v58  ;;  %v18916_v58 = vld [vmem:[#allocation9_spill] sm:$0xff] }
 0x29b   :  { %2328 = vmatpush1.bf16.msra.mxu0 %v18879_v41  ;;  %2369 = vmatpush1.bf16.msra.mxu1 %v18880_v37 }
 0x29c   :  { %2329 = vmatprep.subr.bf16.mxu0 %v18881_v27  ;;  %2370 = vmatprep.subr.bf16.mxu1 %v18882_v25 }
 0x29f   :  { %2330 = vmatpush1.bf16.msra.mxu0 %v18883_v60  ;;  %2371 = vmatpush1.bf16.msra.mxu1 %v18884_v43 }
 0x2a0   :  { %2331 = vmatprep.subr.bf16.mxu0 %v18885_v44  ;;  %2372 = vmatprep.subr.bf16.mxu1 %v18886_v51  ;;  %v18917_v44 = vld [vmem:[#allocation10_spill] sm:$0xff] }
 0x2a3   :  { %2332 = vmatpush1.bf16.msra.mxu0 %v18887_v52  ;;  %2373 = vmatpush1.bf16.msra.mxu1 %v18888_v54  ;;  %v18918_v52 = vld [vmem:[#allocation8_spill] sm:$0xff] }
 0x2a4   :  { %2333 = vmatprep.subr.bf16.mxu0 %v18889_v36  ;;  %2374 = vmatprep.subr.bf16.mxu1 %v18890_v5 }
 0x2a7   :  { %2334 = vmatpush1.bf16.msra.mxu0 %v18891_v10  ;;  %2375 = vmatpush1.bf16.msra.mxu1 %v18892_v42 }
 0x2a8   :  { %2651 = vmatprep.subr.bf16.mxu0 %v18893_v34  ;;  %2692 = vmatprep.subr.bf16.mxu1 %v18894_v26 }
 0x2aa   :  { %2352 = vmatmul.mubr.bf16.vlgmr.msra.gmra.mxu0 %v14899_v15  ;;  %2393 = vmatmul.mubr.bf16.vlgmr.msra.gmra.mxu1 %v14899_v15  ;;  %v18900_v15 = vld [vmem:[#allocation80_spill] sm:$0xff] }
 0x2ab   :  { %2652 = vmatpush1.bf16.msra.mxu0 %v18895_v20  ;;  %2693 = vmatpush1.bf16.msra.mxu1 %v18896_v33 }
 0x2ac   :  { %2653 = vmatprep.subr.bf16.mxu0 %v18897_v18  ;;  %2694 = vmatprep.subr.bf16.mxu1 %v18898_v39 }
 0x2ad   :  { %2683 = vmatprep.mubr.bf16.mxu0 %v18818_v63  ;;  %2724 = vmatprep.mubr.bf16.mxu1 %v18818_v63 }
 0x2af   :  { %2654 = vmatpush1.bf16.msra.mxu0 %v18899_v1  ;;  %2695 = vmatpush1.bf16.msra.mxu1 %v18900_v15 }
 0x2b0   :  { %2655 = vmatprep.subr.bf16.mxu0 %v18901_v0  ;;  %2696 = vmatprep.subr.bf16.mxu1 %v14994_v50 }
 0x2b3   :  { %2656 = vmatpush1.bf16.msra.mxu0 %v18902_v11  ;;  %2697 = vmatpush1.bf16.msra.mxu1 %v15003_v59 }
 0x2b4   :  { %2657 = vmatprep.subr.bf16.mxu0 %v18903_v22  ;;  %2698 = vmatprep.subr.bf16.mxu1 %v18904_v29 }
 0x2b7   :  { %2658 = vmatpush1.bf16.msra.mxu0 %v18905_v4  ;;  %2699 = vmatpush1.bf16.msra.mxu1 %v18906_v49  ;;  %v15092_v4 = vld [vmem:[%s18542_s5 + $0xe0] ss:$16 sps:$4 sm:$0xff]   ;;  %v15097_v49 = vld [vmem:[%s18542_s5 + $0xe8] ss:$16 sps:$4 sm:$0xff]  }
 0x2b8   :  { %2659 = vmatprep.subr.bf16.mxu0 %v18907_v40  ;;  %2700 = vmatprep.subr.bf16.mxu1 %v15014_v19 }
 0x2bb   :  { %2660 = vmatpush1.bf16.msra.mxu0 %v18908_v30  ;;  %2701 = vmatpush1.bf16.msra.mxu1 %v15021_v16  ;;  %v15109_v30 = vld [vmem:[%s18542_s5 + $0xcc] ss:$16 sps:$4 sm:$0xff]  }
 0x2bc   :  { %2661 = vmatprep.subr.bf16.mxu0 %v18909_v14  ;;  %2702 = vmatprep.subr.bf16.mxu1 %v15028_v21  ;;  %v15118_v14 = vld [vmem:[%s18542_s5 + $0xc0] ss:$16 sps:$4 sm:$0xff]  }
 0x2bf   :  { %2662 = vmatpush1.bf16.msra.mxu0 %v18910_v9  ;;  %2703 = vmatpush1.bf16.msra.mxu1 %v15035_v35  ;;  %v15123_v9 = vld [vmem:[%s18542_s5 + $0xc8] ss:$16 sps:$4 sm:$0xff]  }
 0x2c0   :  { %2663 = vmatprep.subr.bf16.mxu0 %v18911_v7  ;;  %2704 = vmatprep.subr.bf16.mxu1 %v15042_v45  ;;  %v15130_v7 = vld [vmem:[%s18542_s5 + $0xa4] ss:$16 sps:$4 sm:$0xff]  }
 0x2c3   :  { %2664 = vmatpush1.bf16.msra.mxu0 %v18912_v6  ;;  %2705 = vmatpush1.bf16.msra.mxu1 %v15049_v46  ;;  %v15135_v6 = vld [vmem:[%s18542_s5 + $0xac] ss:$16 sps:$4 sm:$0xff]  }
 0x2c4   :  { %2665 = vmatprep.subr.bf16.mxu0 %v18913_v8  ;;  %2706 = vmatprep.subr.bf16.mxu1 %v15056_v53  ;;  %v15144_v8 = vld [vmem:[%s18542_s5 + $0xa0] ss:$16 sps:$4 sm:$0xff]  }
 0x2c7   :  { %2666 = vmatpush1.bf16.msra.mxu0 %v18914_v47  ;;  %2707 = vmatpush1.bf16.msra.mxu1 %v15063_v3  ;;  %v15149_v47 = vld [vmem:[%s18542_s5 + $0xa8] ss:$16 sps:$4 sm:$0xff]  }
 0x2c8   :  { %2986 = vmatprep.subr.bf16.mxu0 %v15072_v48  ;;  %3027 = vmatprep.subr.bf16.mxu1 %v15077_v57 }
 0x308   :  { %v1776_v28 = vpop.f32.mrf.mxu0  ;;  %v1817_v62 = vpop.f32.mrf.mxu1 }
 0x309   :  { %v1824_v61 = vadd.f32 %v1776_v28, %v18915_v2  ;;  %v1826_v54 = vadd.f32 %v1817_v62, %v18918_v52  ;;  %v15156_v28 = vld [vmem:[%s18542_s5 + $0x84] ss:$16 sps:$4 sm:$0xff]   ;;  %v15161_v62 = vld [vmem:[%s18542_s5 + $0x8c] ss:$16 sps:$4 sm:$0xff]  }
 0x30a   :  { %v1778_v56 = vpop.f32.mrf.mxu0  ;;  %v1819_v55 = vpop.f32.mrf.mxu1  ;;  %v15208_v52 = vld [vmem:[%s18542_s5 + $0x44] ss:$16 sps:$4 sm:$0xff]  }
 0x30b   :  { %v11415_v31 = vmul.f32 -1.442695, %v1824_v61  ;;  %v1825_v41 = vadd.f32 %v1778_v56, %v18916_v58  ;;  %v1827_v51 = vadd.f32 %v1819_v55, %v18917_v44  ;;  %v15177_v58 = vld [vmem:[%s18542_s5 + $0x88] ss:$16 sps:$4 sm:$0xff]   ;;  %v15196_v44 = vld [vmem:[%s18542_s5 + $0x60] ss:$16 sps:$4 sm:$0xff]  }
 0x30c   :  { %v1780_v37 = vpop.f32.mrf.mxu0  ;;  %v1821_v27 = vpop.f32.mrf.mxu1 }
 0x30d   :  { %13448 = vpow2.f32 %v11415_v31  ;;  %v11416_v25 = vmul.f32 -1.442695, %v1825_v41  ;;  %v11417_v36 = vmul.f32 -1.442695, %v1827_v51  ;;  %v15172_v31 = vld [vmem:[%s18542_s5 + $0x80] ss:$16 sps:$4 sm:$0xff]  }
 0x30e   :  { %v1781_v60 = vpop.f32.mrf.mxu0  ;;  %v1822_v43 = vpop.f32.mrf.mxu1  ;;  %v15184_v41 = vld [vmem:[%s18542_s5 + $0x64] ss:$16 sps:$4 sm:$0xff]   ;;  %v15189_v37 = vld [vmem:[%s18542_s5 + $0x6c] ss:$16 sps:$4 sm:$0xff]   ;;  %v15201_v51 = vld [vmem:[%s18542_s5 + $0x68] ss:$16 sps:$4 sm:$0xff]  }
 0x30f   :  { %13450 = vpow2.f32 %v11416_v25 }
 0x310   :  { %13452 = vtanh.f32 %v1826_v54  ;;  %v15213_v54 = vld [vmem:[%s18542_s5 + $0x4c] ss:$16 sps:$4 sm:$0xff]  }
 0x311   :  { %13454 = vpow2.f32 %v11417_v36  ;;  %v15220_v36 = vld [vmem:[%s18542_s5 + $0x40] ss:$16 sps:$4 sm:$0xff]  }
 0x31a   :  { %v13449_v5 = vpop.eup %13448 }
 0x31b   :  { %v1831_v10 = vadd.f32 1.0, %v13449_v5  ;;  %v15225_v5 = vld [vmem:[%s18542_s5 + $0x48] ss:$16 sps:$4 sm:$0xff]  }
 0x31c   :  { %v13451_v42 = vpop.eup %13450  ;;  %18919 = vst [vmem:[#allocation47_spill] sm:$0xff] %v15225_v5 }
 0x31d   :  { %13456 = vrcp.f32 %v1831_v10  ;;  %v1837_v34 = vadd.f32 1.0, %v13451_v42  ;;  %v13453_v26 = vpop.eup %13452  ;;  %v15232_v10 = vld [vmem:[%s18542_s5 + $0x24] ss:$16 sps:$4 sm:$0xff]   ;;  %v15237_v42 = vld [vmem:[%s18542_s5 + $0x2c] ss:$16 sps:$4 sm:$0xff]  }
 0x31e   :  { %v13455_v20 = vpop.eup %13454  ;;  %18920 = vst [vmem:[#allocation48_spill] sm:$0xff] %v15232_v10  ;;  %18921 = vst [vmem:[#allocation49_spill] sm:$0xff] %v15237_v42 }
 0x31f   :  { %13458 = vrcp.f32 %v1837_v34  ;;  %v1844_v1 = vadd.f32 1.0, %v13455_v20  ;;  %v15244_v34 = vld [vmem:[%s18542_s5 + $0x20] ss:$16 sps:$4 sm:$0xff]   ;;  %v15256_v20 = vld [vmem:[%s18542_s5 + $0x4] ss:$16 sps:$4 sm:$0xff]  }
 0x320   :  { %18922 = vst [vmem:[#allocation50_spill] sm:$0xff] %v15244_v34  ;;  %18924 = vst [vmem:[#allocation52_spill] sm:$0xff] %v15256_v20 }
 0x321   :  { %13460 = vrcp.f32 %v1844_v1  ;;  %v15280_v1 = vld [vmem:[%s18544_s4 + $0xe4] ss:$16 sps:$4 sm:$0xff]  }
 0x322   :  { %18928 = vst [vmem:[#allocation56_spill] sm:$0xff] %v15280_v1 }
 0x32a   :  { %v13457_v33 = vpop.eup %13456 }
 0x32b   :  { %v1848_v18 = vmul.f32 %v13457_v33, %v13453_v26  ;;  %v15249_v26 = vld [vmem:[%s18542_s5 + $0x28] ss:$16 sps:$4 sm:$0xff]   ;;  %v15261_v33 = vld [vmem:[%s18542_s5 + $0xc] ss:$16 sps:$4 sm:$0xff]  }
 0x32c   :  { %v13459_v39 = vpop.eup %13458  ;;  %18923 = vst [vmem:[#allocation51_spill] sm:$0xff] %v15249_v26  ;;  %18925 = vst [vmem:[#allocation53_spill] sm:$0xff] %v15261_v33 }
 0x32d   :  { %v1847_v15 = vmul.f32 %v13459_v39, %v14896_v38  ;;  %v15104_v38 = vld [vmem:[%s18542_s5 + $0xc4] ss:$16 sps:$4 sm:$0xff]   ;;  %v15273_v39 = vld [vmem:[%s18542_s5 + $0x8] ss:$16 sps:$4 sm:$0xff]  }
 0x32e   :  { %v13461_v11 = vpop.eup %13460  ;;  %18927 = vst [vmem:[#allocation55_spill] sm:$0xff] %v15273_v39 }
 0x32f   :  { %v15086_v0 = vadd.f32 %v1848_v18, %v1847_v15  ;;  %v15268_v18 = vld [vmem:[%s18542_s5] ss:$16 sps:$4 sm:$0xff]   ;;  %v15285_v15 = vld [vmem:[%s18544_s4 + $0xec] ss:$16 sps:$4 sm:$0xff]  }
 0x330   :  { %18926 = vst [vmem:[#allocation54_spill] sm:$0xff] %v15268_v18  ;;  %18929 = vst [vmem:[#allocation57_spill] sm:$0xff] %v15285_v15 }
 0x331   :  { %13462 = vtanh.f32 %v15086_v0 }
 0x33e   :  { %v13463_v22 = vpop.eup %13462 }
 0x33f   :  { %v1851_v29 = vmul.f32 %v13463_v22, %v13461_v11  ;;  %v2401_v11 = vld [vmem:[%s18545_s6] sm:$0xf] }
 0x340   :  { %v2406_v22 = vrot.slane %v2401_v11, %v14173_v13 }
 0x341   :  { %v15099_v40 = vpack.c.bf16 %v1851_v29, %v1851_v29 }
 0x343   :  { %2684 = vmatmul.mubr.bf16.vlgmr.msra.gmra.mxu0 %v15099_v40  ;;  %2725 = vmatmul.mubr.bf16.vlgmr.msra.gmra.mxu1 %v15099_v40 }
 0x344   :  { %2987 = vmatpush1.bf16.msra.mxu0 %v15092_v4  ;;  %3028 = vmatpush1.bf16.msra.mxu1 %v15097_v49 }
 0x345   :  { %2988 = vmatprep.subr.bf16.mxu0 %v15104_v38  ;;  %3029 = vmatprep.subr.bf16.mxu1 %v15109_v30 }
 0x346   :  { %3018 = vmatprep.mubr.bf16.mxu0 %v18818_v63  ;;  %3059 = vmatprep.mubr.bf16.mxu1 %v18818_v63 }
 0x348   :  { %2989 = vmatpush1.bf16.msra.mxu0 %v15118_v14  ;;  %3030 = vmatpush1.bf16.msra.mxu1 %v15123_v9 }
 0x349   :  { %2990 = vmatprep.subr.bf16.mxu0 %v15130_v7  ;;  %3031 = vmatprep.subr.bf16.mxu1 %v15135_v6 }
 0x34a   :  { %v2111_v2 = vpop.f32.mrf.mxu0  ;;  %v15163_v61 = vpop.f32.mrf.mxu1 }
 0x34c   :  { %v2113_v56 = vpop.f32.mrf.mxu0  ;;  %v15165_v55 = vpop.f32.mrf.mxu1  ;;  %2991 = vmatpush1.bf16.msra.mxu0 %v15144_v8  ;;  %3032 = vmatpush1.bf16.msra.mxu1 %v15149_v47 }
 0x34d   :  { %2992 = vmatprep.subr.bf16.mxu0 %v15156_v28  ;;  %3033 = vmatprep.subr.bf16.mxu1 %v15161_v62 }
 0x34e   :  { %v2115_v27 = vpop.f32.mrf.mxu0  ;;  %v2156_v25 = vpop.f32.mrf.mxu1 }
 0x350   :  { %v2116_v60 = vpop.f32.mrf.mxu0  ;;  %v2157_v43 = vpop.f32.mrf.mxu1  ;;  %2993 = vmatpush1.bf16.msra.mxu0 %v15172_v31  ;;  %3034 = vmatpush1.bf16.msra.mxu1 %v15177_v58 }
 0x351   :  { %2994 = vmatprep.subr.bf16.mxu0 %v15184_v41  ;;  %3035 = vmatprep.subr.bf16.mxu1 %v15189_v37  ;;  %v2410_v60 = vrot.slane %v2401_v11, %v14192_v23  ;;  %v2414_v23 = vrot.slane %v2401_v11, %v14171_v12 }
 0x354   :  { %2995 = vmatpush1.bf16.msra.mxu0 %v15196_v44  ;;  %3036 = vmatpush1.bf16.msra.mxu1 %v15201_v51 }
 0x355   :  { %2996 = vmatprep.subr.bf16.mxu0 %v15208_v52  ;;  %3037 = vmatprep.subr.bf16.mxu1 %v15213_v54 }
 0x358   :  { %2997 = vmatpush1.bf16.msra.mxu0 %v15220_v36  ;;  %3038 = vmatpush1.bf16.msra.mxu1 %v15225_v5  ;;  %v2418_v5 = vrot.slane %v2401_v11, %v14194_v24  ;;  %v15307_v11 = vld [vmem:[%s18544_s4 + $0xe0] ss:$16 sps:$4 sm:$0xff]  }
 0x359   :  { %2998 = vmatprep.subr.bf16.mxu0 %v15232_v10  ;;  %3039 = vmatprep.subr.bf16.mxu1 %v15237_v42 }
 0x35c   :  { %2999 = vmatpush1.bf16.msra.mxu0 %v15244_v34  ;;  %3040 = vmatpush1.bf16.msra.mxu1 %v15249_v26 }
 0x35d   :  { %3000 = vmatprep.subr.bf16.mxu0 %v15256_v20  ;;  %3041 = vmatprep.subr.bf16.mxu1 %v15261_v33 }
 0x360   :  { %3001 = vmatpush1.bf16.msra.mxu0 %v15268_v18  ;;  %3042 = vmatpush1.bf16.msra.mxu1 %v15273_v39 }
 0x361   :  { %3228 = vmatprep.subr.bf16.mxu0 %v15280_v1  ;;  %3269 = vmatprep.subr.bf16.mxu1 %v15285_v15 }
 0x36a   :  { %v2353_v29 = vpop.f32.mrf.mxu0  ;;  %v2394_v27 = vpop.f32.mrf.mxu1 }
 0x36b   :  { %v2354_v25 = vadd.f32 %v2353_v29, %v2111_v2  ;;  %v2395_v29 = vadd.f32 %v2394_v27, %v15163_v61  ;;  %v15312_v27 = vld [vmem:[%s18544_s4 + $0xe8] ss:$16 sps:$4 sm:$0xff]  }
 0x36c   :  { %v2355_v43 = vpop.f32.mrf.mxu0  ;;  %v2396_v33 = vpop.f32.mrf.mxu1 }
 0x36d   :  { %v2423_v18 = vadd.f32 %v2406_v22, %v2354_v25  ;;  %v2356_v20 = vadd.f32 %v2355_v43, %v2113_v56  ;;  %v2397_v13 = vadd.f32 %v2396_v33, %v15165_v55  ;;  %v15320_v25 = vld [vmem:[%s18544_s4 + $0xc4] ss:$16 sps:$4 sm:$0xff]   ;;  %v15332_v43 = vld [vmem:[%s18544_s4 + $0xc0] ss:$16 sps:$4 sm:$0xff]  }
 0x36e   :  { %v2357_v39 = vpop.f32.mrf.mxu0  ;;  %v2398_v26 = vpop.f32.mrf.mxu1 }
 0x36f   :  { %v11482_v1 = vmul.f32 -1.442695, %v2423_v18  ;;  %v2424_v34 = vadd.f32 %v2410_v60, %v2356_v20  ;;  %v2426_v2 = vadd.f32 %v2418_v5, %v2397_v13  ;;  %v2425_v39 = vadd.f32 %v2414_v23, %v2395_v29  ;;  %v15325_v60 = vld [vmem:[%s18544_s4 + $0xcc] ss:$16 sps:$4 sm:$0xff]   ;;  %v15344_v29 = vld [vmem:[%s18544_s4 + $0xa4] ss:$16 sps:$4 sm:$0xff]  }
 0x370   :  { %v2358_v15 = vpop.f32.mrf.mxu0  ;;  %v2399_v42 = vpop.f32.mrf.mxu1 }
 0x371   :  { %13464 = vpow2.f32 %v11482_v1  ;;  %v11483_v10 = vmul.f32 -1.442695, %v2424_v34  ;;  %v11484_v22 = vmul.f32 -1.442695, %v2426_v2  ;;  %v15337_v2 = vld [vmem:[%s18544_s4 + $0xc8] ss:$16 sps:$4 sm:$0xff]  }
 0x373   :  { %13466 = vpow2.f32 %v11483_v10 }
 0x374   :  { %13468 = vpow2.f32 %v11484_v22  ;;  %v15349_v22 = vld [vmem:[%s18544_s4 + $0xac] ss:$16 sps:$4 sm:$0xff]  }
 0x37e   :  { %v13465_v56 = vpop.eup %13464 }
 0x37f   :  { %v2430_v26 = vadd.f32 1.0, %v13465_v56  ;;  %v15358_v56 = vld [vmem:[%s18544_s4 + $0xa0] ss:$16 sps:$4 sm:$0xff]  }
 0x380   :  { %v13467_v18 = vpop.eup %13466 }
 0x381   :  { %13470 = vrcp.f32 %v2430_v26  ;;  %v2436_v42 = vadd.f32 1.0, %v13467_v18  ;;  %v13469_v10 = vpop.eup %13468  ;;  %v15370_v26 = vld [vmem:[%s18544_s4 + $0x84] ss:$16 sps:$4 sm:$0xff]   ;;  %v15375_v18 = vld [vmem:[%s18544_s4 + $0x8c] ss:$16 sps:$4 sm:$0xff]  }
 0x382   :  { %13472 = vtanh.f32 %v2425_v39  ;;  %v2443_v33 = vadd.f32 1.0, %v13469_v10  ;;  %v15363_v39 = vld [vmem:[%s18544_s4 + $0xa8] ss:$16 sps:$4 sm:$0xff]  }
 0x383   :  { %13474 = vrcp.f32 %v2436_v42  ;;  %v15382_v42 = vld [vmem:[%s18544_s4 + $0x80] ss:$16 sps:$4 sm:$0xff]   ;;  %v15387_v10 = vld [vmem:[%s18544_s4 + $0x88] ss:$16 sps:$4 sm:$0xff]  }
 0x384   :  { %13476 = vrcp.f32 %v2443_v33  ;;  %v15411_v33 = vld [vmem:[%s18544_s4 + $0x68] ss:$16 sps:$4 sm:$0xff]  }
 0x385   :  { %18931 = vst [vmem:[#allocation59_spill] sm:$0xff] %v15411_v33 }
 0x38e   :  { %v13471_v34 = vpop.eup %13470 }
 0x38f   :  { %v13473_v55 = vpop.eup %13472 }
 0x390   :  { %v13475_v20 = vpop.eup %13474  ;;  %v2447_v13 = vmul.f32 %v13473_v55, %v13471_v34  ;;  %v15394_v34 = vld [vmem:[%s18544_s4 + $0x64] ss:$16 sps:$4 sm:$0xff]   ;;  %v15399_v55 = vld [vmem:[%s18544_s4 + $0x6c] ss:$16 sps:$4 sm:$0xff]  }
 0x391   :  { %v2446_v61 = vmul.f32 %v13475_v20, %v14945_v17  ;;  %v13477_v23 = vpop.eup %13476  ;;  %v15406_v20 = vld [vmem:[%s18544_s4 + $0x60] ss:$16 sps:$4 sm:$0xff]  }
 0x392   :  { %18930 = vst [vmem:[#allocation58_spill] sm:$0xff] %v15406_v20 }
 0x393   :  { %v15301_v5 = vadd.f32 %v2447_v13, %v2446_v61  ;;  %v15418_v13 = vld [vmem:[%s18544_s4 + $0x44] ss:$16 sps:$4 sm:$0xff]   ;;  %v15423_v61 = vld [vmem:[%s18544_s4 + $0x4c] ss:$16 sps:$4 sm:$0xff]  }
 0x394   :  { %18932 = vst [vmem:[#allocation60_spill] sm:$0xff] %v15418_v13  ;;  %18933 = vst [vmem:[#allocation61_spill] sm:$0xff] %v15423_v61 }
 0x395   :  { %13478 = vtanh.f32 %v15301_v5 }
 0x3a2   :  { %v13479_v1 = vpop.eup %13478 }
 0x3a3   :  { %v2450_v15 = vmul.f32 %v13479_v1, %v13477_v23  ;;  %v15430_v23 = vld [vmem:[%s18544_s4 + $0x40] ss:$16 sps:$4 sm:$0xff]   ;;  %v15435_v1 = vld [vmem:[%s18544_s4 + $0x48] ss:$16 sps:$4 sm:$0xff]  }
 0x3a4   :  { %18934 = vst [vmem:[#allocation62_spill] sm:$0xff] %v15430_v23  ;;  %18935 = vst [vmem:[#allocation63_spill] sm:$0xff] %v15435_v1 }
 0x3a5   :  { %11485 = vst [vmem:[%s18546_s7 + $0x8] sm:$0xff] %v2450_v15  ;;  %v2793_v17 = vpack.c.bf16 %v2450_v15, %v2450_v15  ;;  %v15442_v15 = vld [vmem:[%s18544_s4 + $0x24] ss:$16 sps:$4 sm:$0xff]  }
 0x3a6   :  { %18936 = vst [vmem:[#allocation64_spill] sm:$0xff] %v15442_v15 }
 0x3a7   :  { %3019 = vmatmul.mubr.bf16.vlgmr.msra.gmra.mxu0 %v2793_v17  ;;  %3060 = vmatmul.mubr.bf16.vlgmr.msra.gmra.mxu1 %v2793_v17  ;;  %v15447_v17 = vld [vmem:[%s18544_s4 + $0x2c] ss:$16 sps:$4 sm:$0xff]  }
 0x3a8   :  { %3229 = vmatpush1.bf16.msra.mxu0 %v15307_v11  ;;  %3270 = vmatpush1.bf16.msra.mxu1 %v15312_v27  ;;  %18937 = vst [vmem:[#allocation65_spill] sm:$0xff] %v15447_v17 }
 0x3a9   :  { %3230 = vmatprep.subr.bf16.mxu0 %v15320_v25  ;;  %3271 = vmatprep.subr.bf16.mxu1 %v15325_v60 }
 0x3aa   :  { %3260 = vmatprep.mubr.bf16.mxu0 %v18818_v63  ;;  %3301 = vmatprep.mubr.bf16.mxu1 %v18818_v63 }
 0x3ac   :  { %3231 = vmatpush1.bf16.msra.mxu0 %v15332_v43  ;;  %3272 = vmatpush1.bf16.msra.mxu1 %v15337_v2 }
 0x3ad   :  { %3232 = vmatprep.subr.bf16.mxu0 %v15344_v29  ;;  %3273 = vmatprep.subr.bf16.mxu1 %v15349_v22 }
 0x3b0   :  { %3233 = vmatpush1.bf16.msra.mxu0 %v15358_v56  ;;  %3274 = vmatpush1.bf16.msra.mxu1 %v15363_v39 }
 0x3b1   :  { %3234 = vmatprep.subr.bf16.mxu0 %v15370_v26  ;;  %3275 = vmatprep.subr.bf16.mxu1 %v15375_v18 }
 0x3b4   :  { %3235 = vmatpush1.bf16.msra.mxu0 %v15382_v42  ;;  %3276 = vmatpush1.bf16.msra.mxu1 %v15387_v10 }
 0x3b5   :  { %3236 = vmatprep.subr.bf16.mxu0 %v15394_v34  ;;  %3277 = vmatprep.subr.bf16.mxu1 %v15399_v55 }
 0x3b8   :  { %3237 = vmatpush1.bf16.msra.mxu0 %v15406_v20  ;;  %3278 = vmatpush1.bf16.msra.mxu1 %v15411_v33  ;;  %v18970_v33 = vld [vmem:[#allocation12_spill] sm:$0xff] }
 0x3b9   :  { %3238 = vmatprep.subr.bf16.mxu0 %v15418_v13  ;;  %3279 = vmatprep.subr.bf16.mxu1 %v15423_v61  ;;  %v15454_v13 = vld [vmem:[%s18544_s4 + $0x20] ss:$16 sps:$4 sm:$0xff]   ;;  %v15459_v61 = vld [vmem:[%s18544_s4 + $0x28] ss:$16 sps:$4 sm:$0xff]  }
 0x3ba   :  { %18938 = vst [vmem:[#allocation66_spill] sm:$0xff] %v15454_v13  ;;  %18939 = vst [vmem:[#allocation67_spill] sm:$0xff] %v15459_v61 }
 0x3bc   :  { %3239 = vmatpush1.bf16.msra.mxu0 %v15430_v23  ;;  %3280 = vmatpush1.bf16.msra.mxu1 %v15435_v1  ;;  %v15466_v23 = vld [vmem:[%s18544_s4 + $0x4] ss:$16 sps:$4 sm:$0xff]   ;;  %v15471_v1 = vld [vmem:[%s18544_s4 + $0xc] ss:$16 sps:$4 sm:$0xff]  }
 0x3bd   :  { %3240 = vmatprep.subr.bf16.mxu0 %v15442_v15  ;;  %3281 = vmatprep.subr.bf16.mxu1 %v15447_v17  ;;  %18940 = vst [vmem:[#allocation68_spill] sm:$0xff] %v15466_v23  ;;  %18941 = vst [vmem:[#allocation69_spill] sm:$0xff] %v15471_v1  ;;  %v15478_v15 = vld [vmem:[%s18544_s4] ss:$16 sps:$4 sm:$0xff]   ;;  %v15483_v17 = vld [vmem:[%s18544_s4 + $0x8] ss:$16 sps:$4 sm:$0xff]  }
 0x3be   :  { %18942 = vst [vmem:[#allocation70_spill] sm:$0xff] %v15478_v15  ;;  %18943 = vst [vmem:[#allocation71_spill] sm:$0xff] %v15483_v17 }
 0x3c0   :  { %3241 = vmatpush1.bf16.msra.mxu0 %v15454_v13  ;;  %3282 = vmatpush1.bf16.msra.mxu1 %v15459_v61  ;;  %v15490_v13 = vld [vmem:[%s18541_s2 + $0xe4] ss:$16 sps:$4 sm:$0xff]   ;;  %v15495_v61 = vld [vmem:[%s18541_s2 + $0xec] ss:$16 sps:$4 sm:$0xff]  }
 0x3c1   :  { %3242 = vmatprep.subr.bf16.mxu0 %v15466_v23  ;;  %3283 = vmatprep.subr.bf16.mxu1 %v15471_v1  ;;  %18944 = vst [vmem:[#allocation72_spill] sm:$0xff] %v15490_v13  ;;  %18945 = vst [vmem:[#allocation73_spill] sm:$0xff] %v15495_v61  ;;  %v15502_v23 = vld [vmem:[%s18541_s2 + $0xe0] ss:$16 sps:$4 sm:$0xff]   ;;  %v15507_v1 = vld [vmem:[%s18541_s2 + $0xe8] ss:$16 sps:$4 sm:$0xff]  }
 0x3c2   :  { %18946 = vst [vmem:[#allocation74_spill] sm:$0xff] %v15502_v23  ;;  %18947 = vst [vmem:[#allocation75_spill] sm:$0xff] %v15507_v1 }
 0x3c4   :  { %3243 = vmatpush1.bf16.msra.mxu0 %v15478_v15  ;;  %3284 = vmatpush1.bf16.msra.mxu1 %v15483_v17  ;;  %v15514_v15 = vld [vmem:[%s18541_s2 + $0xc4] ss:$16 sps:$4 sm:$0xff]   ;;  %v15519_v17 = vld [vmem:[%s18541_s2 + $0xcc] ss:$16 sps:$4 sm:$0xff]  }
 0x3c5   :  { %3560 = vmatprep.subr.bf16.mxu0 %v15490_v13  ;;  %3601 = vmatprep.subr.bf16.mxu1 %v15495_v61  ;;  %18948 = vst [vmem:[#allocation76_spill] sm:$0xff] %v15514_v15  ;;  %18949 = vst [vmem:[#allocation77_spill] sm:$0xff] %v15519_v17  ;;  %v15528_v61 = vld [vmem:[%s18541_s2 + $0xc0] ss:$16 sps:$4 sm:$0xff]   ;;  %v15533_v13 = vld [vmem:[%s18541_s2 + $0xc8] ss:$16 sps:$4 sm:$0xff]  }
 0x3c6   :  { %18950 = vst [vmem:[#allocation78_spill] sm:$0xff] %v15528_v61  ;;  %18951 = vst [vmem:[#allocation79_spill] sm:$0xff] %v15533_v13 }
 0x3c7   :  { %3261 = vmatmul.mubr.bf16.vlgmr.msra.gmra.mxu0 %v15099_v40  ;;  %3302 = vmatmul.mubr.bf16.vlgmr.msra.gmra.mxu1 %v15099_v40  ;;  %v15540_v40 = vld [vmem:[%s18541_s2 + $0xa4] ss:$16 sps:$4 sm:$0xff]  }
 0x3c8   :  { %3561 = vmatpush1.bf16.msra.mxu0 %v15502_v23  ;;  %3602 = vmatpush1.bf16.msra.mxu1 %v15507_v1  ;;  %18952 = vst [vmem:[#allocation80_spill] sm:$0xff] %v15540_v40  ;;  %v15549_v1 = vld [vmem:[%s18541_s2 + $0xa0] ss:$16 sps:$4 sm:$0xff]  }
 0x3c9   :  { %3562 = vmatprep.subr.bf16.mxu0 %v15514_v15  ;;  %3603 = vmatprep.subr.bf16.mxu1 %v15519_v17  ;;  %18953 = vst [vmem:[#allocation81_spill] sm:$0xff] %v15549_v1  ;;  %v15556_v17 = vld [vmem:[%s18541_s2 + $0x84] ss:$16 sps:$4 sm:$0xff]  }
 0x3ca   :  { %3592 = vmatprep.mubr.bf16.mxu0 %v18818_v63  ;;  %3633 = vmatprep.mubr.bf16.mxu1 %v18818_v63  ;;  %18954 = vst [vmem:[#allocation82_spill] sm:$0xff] %v15556_v17 }
 0x3cc   :  { %3563 = vmatpush1.bf16.msra.mxu0 %v15528_v61  ;;  %3604 = vmatpush1.bf16.msra.mxu1 %v15533_v13  ;;  %v15561_v61 = vld [vmem:[%s18541_s2 + $0x8c] ss:$16 sps:$4 sm:$0xff]  }
 0x3cd   :  { %3564 = vmatprep.subr.bf16.mxu0 %v15540_v40  ;;  %3605 = vmatprep.subr.bf16.mxu1 %v14994_v50  ;;  %18955 = vst [vmem:[#allocation83_spill] sm:$0xff] %v15561_v61  ;;  %v15568_v40 = vld [vmem:[%s18541_s2 + $0x80] ss:$16 sps:$4 sm:$0xff]   ;;  %v15573_v50 = vld [vmem:[%s18541_s2 + $0x88] ss:$16 sps:$4 sm:$0xff]  }
 0x3ce   :  { %18956 = vst [vmem:[#allocation84_spill] sm:$0xff] %v15568_v40  ;;  %18957 = vst [vmem:[#allocation85_spill] sm:$0xff] %v15573_v50 }
 0x3d0   :  { %3565 = vmatpush1.bf16.msra.mxu0 %v15549_v1  ;;  %3606 = vmatpush1.bf16.msra.mxu1 %v15003_v59  ;;  %v15580_v1 = vld [vmem:[%s18541_s2 + $0x64] ss:$16 sps:$4 sm:$0xff]   ;;  %v15587_v59 = vld [vmem:[%s18541_s2 + $0x60] ss:$16 sps:$4 sm:$0xff]  }
 0x3d1   :  { %3566 = vmatprep.subr.bf16.mxu0 %v15556_v17  ;;  %3607 = vmatprep.subr.bf16.mxu1 %v15561_v61  ;;  %18958 = vst [vmem:[#allocation86_spill] sm:$0xff] %v15580_v1  ;;  %18959 = vst [vmem:[#allocation87_spill] sm:$0xff] %v15587_v59  ;;  %v15594_v61 = vld [vmem:[%s18541_s2 + $0x44] ss:$16 sps:$4 sm:$0xff]  }
 0x3d2   :  { %18960 = vst [vmem:[#allocation88_spill] sm:$0xff] %v15594_v61 }
 0x3d4   :  { %3567 = vmatpush1.bf16.msra.mxu0 %v15568_v40  ;;  %3608 = vmatpush1.bf16.msra.mxu1 %v15573_v50  ;;  %v15601_v50 = vld [vmem:[%s18541_s2 + $0x40] ss:$16 sps:$4 sm:$0xff]  }
 0x3d5   :  { %3568 = vmatprep.subr.bf16.mxu0 %v15580_v1  ;;  %3609 = vmatprep.subr.bf16.mxu1 %v15014_v19  ;;  %18961 = vst [vmem:[#allocation89_spill] sm:$0xff] %v15601_v50  ;;  %v15608_v19 = vld [vmem:[%s18541_s2 + $0x24] ss:$16 sps:$4 sm:$0xff]  }
 0x3d6   :  { %18962 = vst [vmem:[#allocation90_spill] sm:$0xff] %v15608_v19 }
 0x3d8   :  { %3569 = vmatpush1.bf16.msra.mxu0 %v15587_v59  ;;  %3610 = vmatpush1.bf16.msra.mxu1 %v15021_v16  ;;  %v15615_v16 = vld [vmem:[%s18541_s2 + $0x20] ss:$16 sps:$4 sm:$0xff]  }
 0x3d9   :  { %3570 = vmatprep.subr.bf16.mxu0 %v15594_v61  ;;  %3611 = vmatprep.subr.bf16.mxu1 %v15028_v21  ;;  %18963 = vst [vmem:[#allocation91_spill] sm:$0xff] %v15615_v16  ;;  %v15622_v21 = vld [vmem:[%s18541_s2 + $0x4] ss:$16 sps:$4 sm:$0xff]  }
 0x3da   :  { %18964 = vst [vmem:[#allocation92_spill] sm:$0xff] %v15622_v21  ;;  %v18968_v61 = vld [vmem:[#allocation11_spill] sm:$0xff] }
 0x3dc   :  { %3571 = vmatpush1.bf16.msra.mxu0 %v15601_v50  ;;  %3612 = vmatpush1.bf16.msra.mxu1 %v15035_v35  ;;  %v15629_v35 = vld [vmem:[%s18541_s2] ss:$16 sps:$4 sm:$0xff]  }
 0x3dd   :  { %3572 = vmatprep.subr.bf16.mxu0 %v15608_v19  ;;  %3613 = vmatprep.subr.bf16.mxu1 %v15042_v45  ;;  %18965 = vst [vmem:[#allocation93_spill] sm:$0xff] %v15629_v35  ;;  %v18967_v19 = vld [vmem:[#allocation13_spill] sm:$0xff] }
 0x3e0   :  { %3573 = vmatpush1.bf16.msra.mxu0 %v15615_v16  ;;  %3614 = vmatpush1.bf16.msra.mxu1 %v15049_v46  ;;  %v18966_v46 = vld [vmem:[#allocation5_spill] sm:$0xff] }
 0x3e1   :  { %3574 = vmatprep.subr.bf16.mxu0 %v15622_v21  ;;  %3615 = vmatprep.subr.bf16.mxu1 %v15056_v53  ;;  %v340_v50 = vadd.f32 %v18967_v19, %v18966_v46 }
 0x3e4   :  { %3575 = vmatpush1.bf16.msra.mxu0 %v15629_v35  ;;  %3616 = vmatpush1.bf16.msra.mxu1 %v15063_v3 }
 0x3e5   :  { %3895 = vmatprep.subr.bf16.mxu0 %v15072_v48  ;;  %3936 = vmatprep.subr.bf16.mxu1 %v15077_v57  ;;  %v18969_v48 = vld [vmem:[#allocation14_spill] sm:$0xff] }
 0x3e6   :  { %v433_v57 = vadd.f32 %v18969_v48, %v14210_v32  ;;  %v18983_v48 = vld [vmem:[#allocation4_spill] sm:$0xff] }
 0x403   :  { %v2685_v45 = vpop.f32.mrf.mxu0  ;;  %v2726_v16 = vpop.f32.mrf.mxu1 }
 0x404   :  { %v2733_v59 = vadd.f32 %v2685_v45, %v18968_v61  ;;  %v2735_v20 = vadd.f32 %v2726_v16, %v18970_v33 }
 0x405   :  { %v2687_v1 = vpop.f32.mrf.mxu0  ;;  %v2728_v40 = vpop.f32.mrf.mxu1 }
 0x406   :  { %v11518_v21 = vmul.f32 -1.442695, %v2733_v59  ;;  %v2734_v17 = vadd.f32 %v2687_v1, %v340_v50  ;;  %v2736_v23 = vadd.f32 %v2728_v40, %v433_v57 }
 0x407   :  { %v2689_v53 = vpop.f32.mrf.mxu0  ;;  %v2730_v13 = vpop.f32.mrf.mxu1 }
 0x408   :  { %13480 = vpow2.f32 %v11518_v21  ;;  %v11519_v35 = vmul.f32 -1.442695, %v2734_v17  ;;  %v11520_v19 = vmul.f32 -1.442695, %v2736_v23 }
 0x409   :  { %v2690_v3 = vpop.f32.mrf.mxu0  ;;  %v2731_v15 = vpop.f32.mrf.mxu1 }
 0x40a   :  { %13482 = vpow2.f32 %v11519_v35 }
 0x40b   :  { %13484 = vtanh.f32 %v2735_v20 }
 0x40c   :  { %13486 = vpow2.f32 %v11520_v19 }
 0x415   :  { %v13481_v46 = vpop.eup %13480 }
 0x416   :  { %v2740_v61 = vadd.f32 1.0, %v13481_v46 }
 0x417   :  { %v13483_v45 = vpop.eup %13482 }
 0x418   :  { %13488 = vrcp.f32 %v2740_v61  ;;  %v2746_v1 = vadd.f32 1.0, %v13483_v45  ;;  %v13485_v13 = vpop.eup %13484 }
 0x419   :  { %v13487_v17 = vpop.eup %13486 }
 0x41a   :  { %13490 = vrcp.f32 %v2746_v1  ;;  %v2753_v21 = vadd.f32 1.0, %v13487_v17 }
 0x41c   :  { %13492 = vrcp.f32 %v2753_v21 }
 0x425   :  { %v13489_v50 = vpop.eup %13488 }
 0x426   :  { %v2757_v15 = vmul.f32 %v13489_v50, %v13485_v13 }
 0x427   :  { %v13491_v59 = vpop.eup %13490 }
 0x428   :  { %v2756_v35 = vmul.f32 %v13491_v59, %v15086_v0  ;;  %v18971_v0 = vld [vmem:[#allocation47_spill] sm:$0xff] }
 0x429   :  { %v13493_v33 = vpop.eup %13492 }
 0x42a   :  { %v15644_v40 = vadd.f32 %v2757_v15, %v2756_v35 }
 0x42c   :  { %13494 = vtanh.f32 %v15644_v40 }
 0x439   :  { %v13495_v20 = vpop.eup %13494 }
 0x43a   :  { %v2760_v23 = vmul.f32 %v13495_v20, %v13493_v33 }
 0x43c   :  { %v15647_v16 = vpack.c.bf16 %v2760_v23, %v2760_v23 }
 0x43e   :  { %3593 = vmatmul.mubr.bf16.vlgmr.msra.gmra.mxu0 %v15647_v16  ;;  %3634 = vmatmul.mubr.bf16.vlgmr.msra.gmra.mxu1 %v15647_v16 }
 0x43f   :  { %3896 = vmatpush1.bf16.msra.mxu0 %v15092_v4  ;;  %3937 = vmatpush1.bf16.msra.mxu1 %v15097_v49  ;;  %v18972_v4 = vld [vmem:[#allocation48_spill] sm:$0xff]  ;;  %v18973_v49 = vld [vmem:[#allocation49_spill] sm:$0xff] }
 0x440   :  { %3897 = vmatprep.subr.bf16.mxu0 %v15104_v38  ;;  %3938 = vmatprep.subr.bf16.mxu1 %v15109_v30  ;;  %v18974_v38 = vld [vmem:[#allocation50_spill] sm:$0xff]  ;;  %v18975_v30 = vld [vmem:[#allocation51_spill] sm:$0xff] }
 0x441   :  { %3927 = vmatprep.mubr.bf16.mxu0 %v18818_v63  ;;  %3968 = vmatprep.mubr.bf16.mxu1 %v18818_v63 }
 0x443   :  { %3898 = vmatpush1.bf16.msra.mxu0 %v15118_v14  ;;  %3939 = vmatpush1.bf16.msra.mxu1 %v15123_v9  ;;  %v18976_v14 = vld [vmem:[#allocation52_spill] sm:$0xff]  ;;  %v18977_v9 = vld [vmem:[#allocation53_spill] sm:$0xff] }
 0x444   :  { %3899 = vmatprep.subr.bf16.mxu0 %v15130_v7  ;;  %3940 = vmatprep.subr.bf16.mxu1 %v15135_v6  ;;  %v18978_v7 = vld [vmem:[#allocation54_spill] sm:$0xff]  ;;  %v18979_v6 = vld [vmem:[#allocation55_spill] sm:$0xff] }
 0x447   :  { %3900 = vmatpush1.bf16.msra.mxu0 %v15144_v8  ;;  %3941 = vmatpush1.bf16.msra.mxu1 %v15149_v47  ;;  %v18980_v8 = vld [vmem:[#allocation56_spill] sm:$0xff]  ;;  %v18981_v47 = vld [vmem:[#allocation57_spill] sm:$0xff] }
 0x448   :  { %3901 = vmatprep.subr.bf16.mxu0 %v15156_v28  ;;  %3942 = vmatprep.subr.bf16.mxu1 %v15161_v62 }
 0x44b   :  { %3902 = vmatpush1.bf16.msra.mxu0 %v15172_v31  ;;  %3943 = vmatpush1.bf16.msra.mxu1 %v15177_v58 }
 0x44c   :  { %3903 = vmatprep.subr.bf16.mxu0 %v15184_v41  ;;  %3944 = vmatprep.subr.bf16.mxu1 %v15189_v37 }
 0x44f   :  { %3904 = vmatpush1.bf16.msra.mxu0 %v15196_v44  ;;  %3945 = vmatpush1.bf16.msra.mxu1 %v15201_v51 }
 0x450   :  { %3905 = vmatprep.subr.bf16.mxu0 %v15208_v52  ;;  %3946 = vmatprep.subr.bf16.mxu1 %v15213_v54  ;;  %v3310_v52 = vld [vmem:[%s18545_s6] sm:$0xf] }
 0x451   :  { %v18982_v54 = vld [vmem:[#allocation3_spill] sm:$0xff]  ;;  %v3319_v57 = vrot.slane %v3310_v52, %v18983_v48  ;;  %v3327_v20 = vrot.slane %v3310_v52, %v14194_v24 }
 0x453   :  { %3906 = vmatpush1.bf16.msra.mxu0 %v15220_v36  ;;  %3947 = vmatpush1.bf16.msra.mxu1 %v18971_v0  ;;  %v3315_v36 = vrot.slane %v3310_v52, %v18982_v54 }
 0x454   :  { %3907 = vmatprep.subr.bf16.mxu0 %v18972_v4  ;;  %3948 = vmatprep.subr.bf16.mxu1 %v18973_v49  ;;  %v3323_v4 = vrot.slane %v3310_v52, %v14171_v12 }
 0x457   :  { %3908 = vmatpush1.bf16.msra.mxu0 %v18974_v38  ;;  %3949 = vmatpush1.bf16.msra.mxu1 %v18975_v30 }
 0x458   :  { %3909 = vmatprep.subr.bf16.mxu0 %v18976_v14  ;;  %3950 = vmatprep.subr.bf16.mxu1 %v18977_v9 }
 0x45b   :  { %3910 = vmatpush1.bf16.msra.mxu0 %v18978_v7  ;;  %3951 = vmatpush1.bf16.msra.mxu1 %v18979_v6 }
 0x45c   :  { %4137 = vmatprep.subr.bf16.mxu0 %v18980_v8  ;;  %4178 = vmatprep.subr.bf16.mxu1 %v18981_v47 }
 0x467   :  { %v3020_v28 = vpop.f32.mrf.mxu0  ;;  %v3061_v62 = vpop.f32.mrf.mxu1 }
 0x469   :  { %v3022_v31 = vpop.f32.mrf.mxu0  ;;  %v3063_v58 = vpop.f32.mrf.mxu1 }
 0x46b   :  { %v3024_v41 = vpop.f32.mrf.mxu0  ;;  %v3065_v37 = vpop.f32.mrf.mxu1 }
 0x46d   :  { %v3025_v44 = vpop.f32.mrf.mxu0  ;;  %v3066_v51 = vpop.f32.mrf.mxu1 }
 0x487   :  { %v3262_v46 = vpop.f32.mrf.mxu0  ;;  %v3303_v53 = vpop.f32.mrf.mxu1 }
 0x488   :  { %v3263_v3 = vadd.f32 %v3262_v46, %v3020_v28  ;;  %v3304_v0 = vadd.f32 %v3303_v53, %v3061_v62  ;;  %v19002_v46 = vld [vmem:[#allocation76_spill] sm:$0xff]  ;;  %v19003_v53 = vld [vmem:[#allocation77_spill] sm:$0xff] }
 0x489   :  { %v3264_v19 = vpop.f32.mrf.mxu0  ;;  %v3305_v61 = vpop.f32.mrf.mxu1 }
 0x48a   :  { %v3332_v45 = vadd.f32 %v3315_v36, %v3263_v3  ;;  %v3265_v1 = vadd.f32 %v3264_v19, %v3022_v31  ;;  %v3306_v33 = vadd.f32 %v3305_v61, %v3063_v58  ;;  %v3334_v30 = vadd.f32 %v3323_v4, %v3304_v0  ;;  %v19001_v36 = vld [vmem:[#allocation75_spill] sm:$0xff]  ;;  %v15742_v3 = vld [vmem:[%s18541_s2 + $0xac] ss:$16 sps:$4 sm:$0xff]   ;;  %v15751_v19 = vld [vmem:[%s18541_s2 + $0xa8] ss:$16 sps:$4 sm:$0xff]  }
 0x48b   :  { %v3266_v13 = vpop.f32.mrf.mxu0  ;;  %v3307_v17 = vpop.f32.mrf.mxu1  ;;  %v19006_v61 = vld [vmem:[#allocation80_spill] sm:$0xff]  ;;  %v19015_v4 = vld [vmem:[#allocation89_spill] sm:$0xff] }
 0x48c   :  { %v11585_v50 = vmul.f32 -1.442695, %v3332_v45  ;;  %v3333_v15 = vadd.f32 %v3319_v57, %v3265_v1  ;;  %v3335_v23 = vadd.f32 %v3327_v20, %v3306_v33  ;;  %v19004_v57 = vld [vmem:[#allocation78_spill] sm:$0xff]  ;;  %v19007_v45 = vld [vmem:[#allocation81_spill] sm:$0xff]  ;;  %v19009_v13 = vld [vmem:[#allocation83_spill] sm:$0xff] }
 0x48d   :  { %v3267_v59 = vpop.f32.mrf.mxu0  ;;  %v3308_v21 = vpop.f32.mrf.mxu1  ;;  %v19008_v1 = vld [vmem:[#allocation82_spill] sm:$0xff]  ;;  %v19013_v33 = vld [vmem:[#allocation87_spill] sm:$0xff] }
 0x48e   :  { %13496 = vpow2.f32 %v11585_v50  ;;  %v11586_v35 = vmul.f32 -1.442695, %v3333_v15  ;;  %v11587_v49 = vmul.f32 -1.442695, %v3335_v23  ;;  %v15762_v17 = vld [vmem:[%s18541_s2 + $0x6c] ss:$16 sps:$4 sm:$0xff]  }
 0x48f   :  { %v19010_v50 = vld [vmem:[#allocation84_spill] sm:$0xff]  ;;  %v19011_v15 = vld [vmem:[#allocation85_spill] sm:$0xff]  ;;  %v19012_v21 = vld [vmem:[#allocation86_spill] sm:$0xff] }
 0x490   :  { %13498 = vpow2.f32 %v11586_v35  ;;  %v15769_v59 = vld [vmem:[%s18541_s2 + $0x68] ss:$16 sps:$4 sm:$0xff]   ;;  %v15776_v35 = vld [vmem:[%s18541_s2 + $0x4c] ss:$16 sps:$4 sm:$0xff]  }
 0x491   :  { %13500 = vpow2.f32 %v11587_v49  ;;  %v15783_v20 = vld [vmem:[%s18541_s2 + $0x48] ss:$16 sps:$4 sm:$0xff]   ;;  %v15790_v0 = vld [vmem:[%s18541_s2 + $0x2c] ss:$16 sps:$4 sm:$0xff]  }
 0x492   :  { %v19014_v23 = vld [vmem:[#allocation88_spill] sm:$0xff] }
 0x493   :  { %v15797_v49 = vld [vmem:[%s18541_s2 + $0x28] ss:$16 sps:$4 sm:$0xff]  }
 0x49b   :  { %v13497_v38 = vpop.eup %13496 }
 0x49c   :  { %v3339_v14 = vadd.f32 1.0, %v13497_v38  ;;  %v19016_v38 = vld [vmem:[#allocation90_spill] sm:$0xff] }
 0x49d   :  { %v13499_v9 = vpop.eup %13498 }
 0x49e   :  { %13502 = vrcp.f32 %v3339_v14  ;;  %v3345_v7 = vadd.f32 1.0, %v13499_v9  ;;  %v13501_v6 = vpop.eup %13500  ;;  %v19017_v14 = vld [vmem:[#allocation91_spill] sm:$0xff]  ;;  %v15811_v9 = vld [vmem:[%s18541_s2 + $0x8] ss:$16 sps:$4 sm:$0xff]  }
 0x49f   :  { %13504 = vtanh.f32 %v3334_v30  ;;  %v3352_v31 = vadd.f32 1.0, %v13501_v6  ;;  %v15804_v30 = vld [vmem:[%s18541_s2 + $0xc] ss:$16 sps:$4 sm:$0xff]  }
 0x4a0   :  { %13506 = vrcp.f32 %v3345_v7 }
 0x4a1   :  { %13508 = vrcp.f32 %v3352_v31 }
 0x4ab   :  { %v13503_v8 = vpop.eup %13502 }
 0x4ac   :  { %v13505_v47 = vpop.eup %13504 }
 0x4ad   :  { %v13507_v28 = vpop.eup %13506  ;;  %v3356_v58 = vmul.f32 %v13505_v47, %v13503_v8  ;;  %v19018_v8 = vld [vmem:[#allocation92_spill] sm:$0xff]  ;;  %v19019_v47 = vld [vmem:[#allocation15_spill] sm:$0xff] }
 0x4ae   :  { %v3355_v62 = vmul.f32 %v13507_v28, %v15301_v5  ;;  %v13509_v37 = vpop.eup %13508  ;;  %v18984_v5 = vld [vmem:[#allocation58_spill] sm:$0xff] }
 0x4b0   :  { %v15693_v41 = vadd.f32 %v3356_v58, %v3355_v62 }
 0x4b2   :  { %13510 = vtanh.f32 %v15693_v41 }
 0x4bf   :  { %v13511_v44 = vpop.eup %13510 }
 0x4c0   :  { %v3359_v51 = vmul.f32 %v13511_v44, %v13509_v37  ;;  %v19020_v37 = vld [vmem:[#allocation17_spill] sm:$0xff] }
 0x4c2   :  { %11588 = vst [vmem:[%s18546_s7 + $0x10] sm:$0xff] %v3359_v51  ;;  %v3702_v52 = vpack.c.bf16 %v3359_v51, %v3359_v51  ;;  %v19021_v51 = vld [vmem:[#allocation93_spill] sm:$0xff] }
 0x4c4   :  { %3928 = vmatmul.mubr.bf16.vlgmr.msra.gmra.mxu0 %v3702_v52  ;;  %3969 = vmatmul.mubr.bf16.vlgmr.msra.gmra.mxu1 %v3702_v52 }
 0x4c5   :  { %4138 = vmatpush1.bf16.msra.mxu0 %v15307_v11  ;;  %4179 = vmatpush1.bf16.msra.mxu1 %v15312_v27  ;;  %v18985_v11 = vld [vmem:[#allocation59_spill] sm:$0xff]  ;;  %v18986_v27 = vld [vmem:[#allocation60_spill] sm:$0xff] }
 0x4c6   :  { %4139 = vmatprep.subr.bf16.mxu0 %v15320_v25  ;;  %4180 = vmatprep.subr.bf16.mxu1 %v15325_v60  ;;  %v18987_v25 = vld [vmem:[#allocation61_spill] sm:$0xff]  ;;  %v18988_v60 = vld [vmem:[#allocation62_spill] sm:$0xff] }
 0x4c7   :  { %4169 = vmatprep.mubr.bf16.mxu0 %v18818_v63  ;;  %4210 = vmatprep.mubr.bf16.mxu1 %v18818_v63 }
 0x4c9   :  { %4140 = vmatpush1.bf16.msra.mxu0 %v15332_v43  ;;  %4181 = vmatpush1.bf16.msra.mxu1 %v15337_v2  ;;  %v18989_v43 = vld [vmem:[#allocation63_spill] sm:$0xff]  ;;  %v18990_v2 = vld [vmem:[#allocation64_spill] sm:$0xff] }
 0x4ca   :  { %4141 = vmatprep.subr.bf16.mxu0 %v15344_v29  ;;  %4182 = vmatprep.subr.bf16.mxu1 %v15349_v22  ;;  %v18991_v29 = vld [vmem:[#allocation65_spill] sm:$0xff]  ;;  %v18992_v22 = vld [vmem:[#allocation66_spill] sm:$0xff] }
 0x4cd   :  { %4142 = vmatpush1.bf16.msra.mxu0 %v15358_v56  ;;  %4183 = vmatpush1.bf16.msra.mxu1 %v15363_v39  ;;  %v18993_v56 = vld [vmem:[#allocation67_spill] sm:$0xff]  ;;  %v18994_v39 = vld [vmem:[#allocation68_spill] sm:$0xff] }
 0x4ce   :  { %4143 = vmatprep.subr.bf16.mxu0 %v15370_v26  ;;  %4184 = vmatprep.subr.bf16.mxu1 %v15375_v18  ;;  %v18995_v26 = vld [vmem:[#allocation69_spill] sm:$0xff]  ;;  %v18996_v18 = vld [vmem:[#allocation70_spill] sm:$0xff] }
 0x4d1   :  { %4144 = vmatpush1.bf16.msra.mxu0 %v15382_v42  ;;  %4185 = vmatpush1.bf16.msra.mxu1 %v15387_v10  ;;  %v18997_v42 = vld [vmem:[#allocation71_spill] sm:$0xff]  ;;  %v18998_v10 = vld [vmem:[#allocation72_spill] sm:$0xff] }
 0x4d2   :  { %4145 = vmatprep.subr.bf16.mxu0 %v15394_v34  ;;  %4186 = vmatprep.subr.bf16.mxu1 %v15399_v55  ;;  %v18999_v34 = vld [vmem:[#allocation73_spill] sm:$0xff]  ;;  %v19000_v55 = vld [vmem:[#allocation74_spill] sm:$0xff] }
 0x4d5   :  { %4146 = vmatpush1.bf16.msra.mxu0 %v18984_v5  ;;  %4187 = vmatpush1.bf16.msra.mxu1 %v18985_v11 }
 0x4d6   :  { %4147 = vmatprep.subr.bf16.mxu0 %v18986_v27  ;;  %4188 = vmatprep.subr.bf16.mxu1 %v18987_v25 }
 0x4d9   :  { %4148 = vmatpush1.bf16.msra.mxu0 %v18988_v60  ;;  %4189 = vmatpush1.bf16.msra.mxu1 %v18989_v43  ;;  %v19022_v60 = vld [vmem:[#allocation18_spill] sm:$0xff] }
 0x4da   :  { %4149 = vmatprep.subr.bf16.mxu0 %v18990_v2  ;;  %4190 = vmatprep.subr.bf16.mxu1 %v18991_v29  ;;  %v19023_v2 = vld [vmem:[#allocation16_spill] sm:$0xff] }
 0x4dd   :  { %4150 = vmatpush1.bf16.msra.mxu0 %v18992_v22  ;;  %4191 = vmatpush1.bf16.msra.mxu1 %v18993_v56 }
 0x4de   :  { %4151 = vmatprep.subr.bf16.mxu0 %v18994_v39  ;;  %4192 = vmatprep.subr.bf16.mxu1 %v18995_v26 }
 0x4e1   :  { %4152 = vmatpush1.bf16.msra.mxu0 %v18996_v18  ;;  %4193 = vmatpush1.bf16.msra.mxu1 %v18997_v42 }
 0x4e2   :  { %4469 = vmatprep.subr.bf16.mxu0 %v18998_v10  ;;  %4510 = vmatprep.subr.bf16.mxu1 %v18999_v34 }
 0x4e4   :  { %4170 = vmatmul.mubr.bf16.vlgmr.msra.gmra.mxu0 %v15647_v16  ;;  %4211 = vmatmul.mubr.bf16.vlgmr.msra.gmra.mxu1 %v15647_v16  ;;  %v19005_v16 = vld [vmem:[#allocation79_spill] sm:$0xff] }
 0x4e5   :  { %4470 = vmatpush1.bf16.msra.mxu0 %v19000_v55  ;;  %4511 = vmatpush1.bf16.msra.mxu1 %v19001_v36 }
 0x4e6   :  { %4471 = vmatprep.subr.bf16.mxu0 %v19002_v46  ;;  %4512 = vmatprep.subr.bf16.mxu1 %v19003_v53 }
 0x4e7   :  { %4501 = vmatprep.mubr.bf16.mxu0 %v18818_v63  ;;  %4542 = vmatprep.mubr.bf16.mxu1 %v18818_v63 }
 0x4e9   :  { %4472 = vmatpush1.bf16.msra.mxu0 %v19004_v57  ;;  %4513 = vmatpush1.bf16.msra.mxu1 %v19005_v16 }
 0x4ea   :  { %4473 = vmatprep.subr.bf16.mxu0 %v19006_v61  ;;  %4514 = vmatprep.subr.bf16.mxu1 %v15742_v3 }
 0x4ed   :  { %4474 = vmatpush1.bf16.msra.mxu0 %v19007_v45  ;;  %4515 = vmatpush1.bf16.msra.mxu1 %v15751_v19 }
 0x4ee   :  { %4475 = vmatprep.subr.bf16.mxu0 %v19008_v1  ;;  %4516 = vmatprep.subr.bf16.mxu1 %v19009_v13  ;;  %v15839_v13 = vld [vmem:[%s18542_s5 + $0xec] ss:$16 sps:$4 sm:$0xff]  }
 0x4f1   :  { %4476 = vmatpush1.bf16.msra.mxu0 %v19010_v50  ;;  %4517 = vmatpush1.bf16.msra.mxu1 %v19011_v15  ;;  %v15844_v50 = vld [vmem:[%s18542_s5 + $0xe0] ss:$16 sps:$4 sm:$0xff]   ;;  %v15849_v15 = vld [vmem:[%s18542_s5 + $0xe8] ss:$16 sps:$4 sm:$0xff]  }
 0x4f2   :  { %4477 = vmatprep.subr.bf16.mxu0 %v19012_v21  ;;  %4518 = vmatprep.subr.bf16.mxu1 %v15762_v17  ;;  %v15858_v21 = vld [vmem:[%s18542_s5 + $0xc4] ss:$16 sps:$4 sm:$0xff]  }
 0x4f5   :  { %4478 = vmatpush1.bf16.msra.mxu0 %v19013_v33  ;;  %4519 = vmatpush1.bf16.msra.mxu1 %v15769_v59  ;;  %v15863_v33 = vld [vmem:[%s18542_s5 + $0xcc] ss:$16 sps:$4 sm:$0xff]  }
 0x4f6   :  { %4479 = vmatprep.subr.bf16.mxu0 %v19014_v23  ;;  %4520 = vmatprep.subr.bf16.mxu1 %v15776_v35  ;;  %v15868_v23 = vld [vmem:[%s18542_s5 + $0xc0] ss:$16 sps:$4 sm:$0xff]  }
 0x4f9   :  { %4480 = vmatpush1.bf16.msra.mxu0 %v19015_v4  ;;  %4521 = vmatpush1.bf16.msra.mxu1 %v15783_v20  ;;  %v15873_v4 = vld [vmem:[%s18542_s5 + $0xc8] ss:$16 sps:$4 sm:$0xff]  }
 0x4fa   :  { %4481 = vmatprep.subr.bf16.mxu0 %v19016_v38  ;;  %4522 = vmatprep.subr.bf16.mxu1 %v15790_v0  ;;  %v15882_v38 = vld [vmem:[%s18542_s5 + $0xa4] ss:$16 sps:$4 sm:$0xff]  }
 0x4fd   :  { %4482 = vmatpush1.bf16.msra.mxu0 %v19017_v14  ;;  %4523 = vmatpush1.bf16.msra.mxu1 %v15797_v49  ;;  %v15887_v14 = vld [vmem:[%s18542_s5 + $0xac] ss:$16 sps:$4 sm:$0xff]  }
 0x4fe   :  { %v3594_v7 = vpop.f32.mrf.mxu0  ;;  %v3635_v6 = vpop.f32.mrf.mxu1  ;;  %4483 = vmatprep.subr.bf16.mxu0 %v19018_v8  ;;  %4524 = vmatprep.subr.bf16.mxu1 %v15804_v30  ;;  %v15906_v8 = vld [vmem:[%s18542_s5 + $0x84] ss:$16 sps:$4 sm:$0xff]  }
 0x4ff   :  { %v3642_v28 = vadd.f32 %v3594_v7, %v19019_v47  ;;  %v3644_v29 = vadd.f32 %v3635_v6, %v19023_v2  ;;  %v15892_v7 = vld [vmem:[%s18542_s5 + $0xa0] ss:$16 sps:$4 sm:$0xff]   ;;  %v15897_v6 = vld [vmem:[%s18542_s5 + $0xa8] ss:$16 sps:$4 sm:$0xff]   ;;  %v15911_v47 = vld [vmem:[%s18542_s5 + $0x8c] ss:$16 sps:$4 sm:$0xff]  }
 0x500   :  { %v3596_v31 = vpop.f32.mrf.mxu0  ;;  %v3637_v58 = vpop.f32.mrf.mxu1  ;;  %v16000_v2 = vld [vmem:[%s18542_s5 + $0x4] ss:$16 sps:$4 sm:$0xff]  }
 0x501   :  { %v11621_v62 = vmul.f32 -1.442695, %v3642_v28  ;;  %v3643_v44 = vadd.f32 %v3596_v31, %v19020_v37  ;;  %4484 = vmatpush1.bf16.msra.mxu0 %v19021_v51  ;;  %4525 = vmatpush1.bf16.msra.mxu1 %v15811_v9  ;;  %v3645_v43 = vadd.f32 %v3637_v58, %v19022_v60  ;;  %v15916_v28 = vld [vmem:[%s18542_s5 + $0x80] ss:$16 sps:$4 sm:$0xff]   ;;  %v15921_v31 = vld [vmem:[%s18542_s5 + $0x88] ss:$16 sps:$4 sm:$0xff]  }
 0x502   :  { %v3598_v52 = vpop.f32.mrf.mxu0  ;;  %v3639_v5 = vpop.f32.mrf.mxu1  ;;  %4845 = vmatprep.subr.bf16.mxu1 %v15839_v13  ;;  %v15928_v58 = vld [vmem:[%s18542_s5 + $0x64] ss:$16 sps:$4 sm:$0xff]   ;;  %v15940_v37 = vld [vmem:[%s18542_s5 + $0x68] ss:$16 sps:$4 sm:$0xff]   ;;  %v15988_v60 = vld [vmem:[%s18542_s5 + $0x20] ss:$16 sps:$4 sm:$0xff]  }
 0x503   :  { %13512 = vpow2.f32 %v11621_v62  ;;  %v11622_v11 = vmul.f32 -1.442695, %v3643_v44  ;;  %v11623_v22 = vmul.f32 -1.442695, %v3645_v43  ;;  %v15935_v62 = vld [vmem:[%s18542_s5 + $0x60] ss:$16 sps:$4 sm:$0xff]  }
 0x504   :  { %v3599_v27 = vpop.f32.mrf.mxu0  ;;  %v3640_v25 = vpop.f32.mrf.mxu1  ;;  %v15945_v44 = vld [vmem:[%s18542_s5 + $0x6c] ss:$16 sps:$4 sm:$0xff]   ;;  %v15951_v51 = vld [vmem:[%s18542_s5 + $0x44] ss:$16 sps:$4 sm:$0xff]   ;;  %v15964_v5 = vld [vmem:[%s18542_s5 + $0x40] ss:$16 sps:$4 sm:$0xff]  }
 0x505   :  { %13514 = vpow2.f32 %v11622_v11  ;;  %v15956_v52 = vld [vmem:[%s18542_s5 + $0x4c] ss:$16 sps:$4 sm:$0xff]   ;;  %19025 = vst [vmem:[#allocation7_spill] sm:$0xff] %v15964_v5  ;;  %v15969_v11 = vld [vmem:[%s18542_s5 + $0x48] ss:$16 sps:$4 sm:$0xff]   ;;  %19029 = vst [vmem:[#allocation13_spill] sm:$0xff] %v15988_v60 }
 0x506   :  { %13516 = vtanh.f32 %v3644_v29  ;;  %19024 = vst [vmem:[#allocation94_spill] sm:$0xff] %v15956_v52  ;;  %19026 = vst [vmem:[#allocation9_spill] sm:$0xff] %v15969_v11  ;;  %v15976_v27 = vld [vmem:[%s18542_s5 + $0x24] ss:$16 sps:$4 sm:$0xff]   ;;  %v15981_v25 = vld [vmem:[%s18542_s5 + $0x2c] ss:$16 sps:$4 sm:$0xff]  }
 0x507   :  { %13518 = vpow2.f32 %v11623_v22  ;;  %19027 = vst [vmem:[#allocation10_spill] sm:$0xff] %v15976_v27  ;;  %19028 = vst [vmem:[#allocation8_spill] sm:$0xff] %v15981_v25  ;;  %v15993_v43 = vld [vmem:[%s18542_s5 + $0x28] ss:$16 sps:$4 sm:$0xff]   ;;  %v16005_v29 = vld [vmem:[%s18542_s5 + $0xc] ss:$16 sps:$4 sm:$0xff]  }
 0x508   :  { %19030 = vst [vmem:[#allocation11_spill] sm:$0xff] %v15993_v43  ;;  %19031 = vst [vmem:[#allocation14_spill] sm:$0xff] %v16000_v2  ;;  %v16012_v22 = vld [vmem:[%s18542_s5] ss:$16 sps:$4 sm:$0xff]  }
 0x509   :  { %19032 = vst [vmem:[#allocation12_spill] sm:$0xff] %v16005_v29  ;;  %19033 = vst [vmem:[#allocation47_spill] sm:$0xff] %v16012_v22 }
 0x510   :  { %v13513_v56 = vpop.eup %13512 }
 0x511   :  { %v3649_v39 = vadd.f32 1.0, %v13513_v56  ;;  %v16017_v56 = vld [vmem:[%s18542_s5 + $0x8] ss:$16 sps:$4 sm:$0xff]  }
 0x512   :  { %v13515_v26 = vpop.eup %13514  ;;  %19034 = vst [vmem:[#allocation48_spill] sm:$0xff] %v16017_v56 }
 0x513   :  { %13520 = vrcp.f32 %v3649_v39  ;;  %v3655_v18 = vadd.f32 1.0, %v13515_v26  ;;  %v13517_v42 = vpop.eup %13516  ;;  %v16024_v39 = vld [vmem:[%s18544_s4 + $0xe4] ss:$16 sps:$4 sm:$0xff]   ;;  %v16029_v26 = vld [vmem:[%s18544_s4 + $0xec] ss:$16 sps:$4 sm:$0xff]  }
 0x514   :  { %v13519_v10 = vpop.eup %13518  ;;  %19035 = vst [vmem:[#allocation49_spill] sm:$0xff] %v16024_v39  ;;  %19036 = vst [vmem:[#allocation50_spill] sm:$0xff] %v16029_v26 }
 0x515   :  { %13522 = vrcp.f32 %v3655_v18  ;;  %v3662_v46 = vadd.f32 1.0, %v13519_v10 }
 0x517   :  { %13524 = vrcp.f32 %v3662_v46 }
 0x520   :  { %v13521_v34 = vpop.eup %13520 }
 0x521   :  { %v3666_v55 = vmul.f32 %v13521_v34, %v13517_v42 }
 0x522   :  { %v13523_v36 = vpop.eup %13522 }
 0x523   :  { %v3665_v53 = vmul.f32 %v13523_v36, %v15644_v40  ;;  %v15834_v40 = vld [vmem:[%s18542_s5 + $0xe4] ss:$16 sps:$4 sm:$0xff]  }
 0x524   :  { %v13525_v16 = vpop.eup %13524  ;;  %4804 = vmatprep.subr.bf16.mxu0 %v15834_v40 }
 0x525   :  { %v15822_v57 = vadd.f32 %v3666_v55, %v3665_v53 }
 0x527   :  { %13526 = vtanh.f32 %v15822_v57 }
 0x534   :  { %v13527_v61 = vpop.eup %13526 }
 0x535   :  { %v3669_v45 = vmul.f32 %v13527_v61, %v13525_v16  ;;  %v4219_v16 = vld [vmem:[%s18545_s6] sm:$0xf] }
 0x536   :  { %v4224_v61 = vrot.slane %v4219_v16, %v18982_v54  ;;  %v4236_v54 = vrot.slane %v4219_v16, %v14194_v24 }
 0x537   :  { %v15825_v1 = vpack.c.bf16 %v3669_v45, %v3669_v45 }
 0x539   :  { %4502 = vmatmul.mubr.bf16.vlgmr.msra.gmra.mxu0 %v15825_v1  ;;  %4543 = vmatmul.mubr.bf16.vlgmr.msra.gmra.mxu1 %v15825_v1 }
 0x53a   :  { %4836 = vmatprep.mubr.bf16.mxu0 %v18818_v63  ;;  %4877 = vmatprep.mubr.bf16.mxu1 %v18818_v63 }
 0x53b   :  { %4805 = vmatpush1.bf16.msra.mxu0 %v15844_v50  ;;  %4846 = vmatpush1.bf16.msra.mxu1 %v15849_v15 }
 0x53c   :  { %4806 = vmatprep.subr.bf16.mxu0 %v15858_v21  ;;  %4847 = vmatprep.subr.bf16.mxu1 %v15863_v33 }
 0x53f   :  { %4807 = vmatpush1.bf16.msra.mxu0 %v15868_v23  ;;  %4848 = vmatpush1.bf16.msra.mxu1 %v15873_v4 }
 0x540   :  { %4808 = vmatprep.subr.bf16.mxu0 %v15882_v38  ;;  %4849 = vmatprep.subr.bf16.mxu1 %v15887_v14 }
 0x543   :  { %4809 = vmatpush1.bf16.msra.mxu0 %v15892_v7  ;;  %4850 = vmatpush1.bf16.msra.mxu1 %v15897_v6 }
 0x544   :  { %4810 = vmatprep.subr.bf16.mxu0 %v15906_v8  ;;  %4851 = vmatprep.subr.bf16.mxu1 %v15911_v47 }
 0x547   :  { %4811 = vmatpush1.bf16.msra.mxu0 %v15916_v28  ;;  %4852 = vmatpush1.bf16.msra.mxu1 %v15921_v31 }
 0x548   :  { %4812 = vmatprep.subr.bf16.mxu0 %v15928_v58  ;;  %4853 = vmatprep.subr.bf16.mxu1 %v15945_v44 }
 0x54b   :  { %4813 = vmatpush1.bf16.msra.mxu0 %v15935_v62  ;;  %4854 = vmatpush1.bf16.msra.mxu1 %v15940_v37 }
 0x54c   :  { %4814 = vmatprep.subr.bf16.mxu0 %v15951_v51  ;;  %4855 = vmatprep.subr.bf16.mxu1 %v15956_v52 }
 0x54f   :  { %4815 = vmatpush1.bf16.msra.mxu0 %v15964_v5  ;;  %4856 = vmatpush1.bf16.msra.mxu1 %v15969_v11 }
 0x550   :  { %4816 = vmatprep.subr.bf16.mxu0 %v15976_v27  ;;  %4857 = vmatprep.subr.bf16.mxu1 %v15981_v25 }
 0x553   :  { %4817 = vmatpush1.bf16.msra.mxu0 %v15988_v60  ;;  %4858 = vmatpush1.bf16.msra.mxu1 %v15993_v43 }
 0x554   :  { %4818 = vmatprep.subr.bf16.mxu0 %v16000_v2  ;;  %4859 = vmatprep.subr.bf16.mxu1 %v16005_v29 }
 0x557   :  { %4819 = vmatpush1.bf16.msra.mxu0 %v16012_v22  ;;  %4860 = vmatpush1.bf16.msra.mxu1 %v16017_v56 }
 0x558   :  { %5046 = vmatprep.subr.bf16.mxu0 %v16024_v39  ;;  %5087 = vmatprep.subr.bf16.mxu1 %v16029_v26  ;;  %v4228_v39 = vrot.slane %v4219_v16, %v18983_v48 }
 0x584   :  { %v3929_v18 = vpop.f32.mrf.mxu0  ;;  %v3970_v42 = vpop.f32.mrf.mxu1 }
 0x586   :  { %v3931_v10 = vpop.f32.mrf.mxu0  ;;  %v3972_v34 = vpop.f32.mrf.mxu1 }
 0x588   :  { %v3933_v55 = vpop.f32.mrf.mxu0  ;;  %v3974_v36 = vpop.f32.mrf.mxu1 }
 0x58a   :  { %v3934_v46 = vpop.f32.mrf.mxu0  ;;  %v3975_v53 = vpop.f32.mrf.mxu1 }
 0x5a4   :  { %v4171_v45 = vpop.f32.mrf.mxu0  ;;  %v4212_v56 = vpop.f32.mrf.mxu1 }
 0x5a5   :  { %v4172_v22 = vadd.f32 %v4171_v45, %v3929_v18  ;;  %v4213_v18 = vadd.f32 %v4212_v56, %v3970_v42  ;;  %v4232_v45 = vrot.slane %v4219_v16, %v14171_v12  ;;  %v16049_v56 = vld [vmem:[%s18544_s4 + $0xe0] ss:$16 sps:$4 sm:$0xff]   ;;  %v16054_v42 = vld [vmem:[%s18544_s4 + $0xe8] ss:$16 sps:$4 sm:$0xff]   ;;  %v16067_v16 = vld [vmem:[%s18544_s4 + $0xcc] ss:$16 sps:$4 sm:$0xff]  }
 0x5a6   :  { %v4173_v26 = vpop.f32.mrf.mxu0  ;;  %v4214_v29 = vpop.f32.mrf.mxu1 }
 0x5a7   :  { %v4241_v2 = vadd.f32 %v4224_v61, %v4172_v22  ;;  %v4174_v43 = vadd.f32 %v4173_v26, %v3931_v10  ;;  %v4215_v11 = vadd.f32 %v4214_v29, %v3972_v34  ;;  %v4243_v22 = vadd.f32 %v4232_v45, %v4213_v18  ;;  %v16062_v34 = vld [vmem:[%s18544_s4 + $0xc4] ss:$16 sps:$4 sm:$0xff]   ;;  %v16074_v61 = vld [vmem:[%s18544_s4 + $0xc0] ss:$16 sps:$4 sm:$0xff]   ;;  %v16105_v18 = vld [vmem:[%s18544_s4 + $0xa8] ss:$16 sps:$4 sm:$0xff]  }
 0x5a8   :  { %v4175_v60 = vpop.f32.mrf.mxu0  ;;  %v4216_v55 = vpop.f32.mrf.mxu1  ;;  %v16112_v45 = vld [vmem:[%s18544_s4 + $0x84] ss:$16 sps:$4 sm:$0xff]  }
 0x5a9   :  { %v11688_v36 = vmul.f32 -1.442695, %v4241_v2  ;;  %v4242_v46 = vadd.f32 %v4228_v39, %v4174_v43  ;;  %v4244_v5 = vadd.f32 %v4236_v54, %v4215_v11  ;;  %v16079_v55 = vld [vmem:[%s18544_s4 + $0xc8] ss:$16 sps:$4 sm:$0xff]   ;;  %19037 = vst [vmem:[#allocation51_spill] sm:$0xff] %v16112_v45 }
 0x5aa   :  { %v4176_v53 = vpop.f32.mrf.mxu0  ;;  %v4217_v25 = vpop.f32.mrf.mxu1 }
 0x5ab   :  { %13528 = vpow2.f32 %v11688_v36  ;;  %v11689_v27 = vmul.f32 -1.442695, %v4242_v46  ;;  %v11690_v48 = vmul.f32 -1.442695, %v4244_v5  ;;  %v16086_v36 = vld [vmem:[%s18544_s4 + $0xa4] ss:$16 sps:$4 sm:$0xff]  }
 0x5ac   :  { %v16091_v46 = vld [vmem:[%s18544_s4 + $0xac] ss:$16 sps:$4 sm:$0xff]   ;;  %v16100_v53 = vld [vmem:[%s18544_s4 + $0xa0] ss:$16 sps:$4 sm:$0xff]  }
 0x5ad   :  { %13530 = vpow2.f32 %v11689_v27 }
 0x5ae   :  { %13532 = vpow2.f32 %v11690_v48 }
 0x5b8   :  { %v13529_v52 = vpop.eup %13528 }
 0x5b9   :  { %v4248_v26 = vadd.f32 1.0, %v13529_v52 }
 0x5ba   :  { %v13531_v60 = vpop.eup %13530 }
 0x5bb   :  { %13534 = vrcp.f32 %v4248_v26  ;;  %v4254_v43 = vadd.f32 1.0, %v13531_v60  ;;  %v13533_v25 = vpop.eup %13532  ;;  %v16124_v26 = vld [vmem:[%s18544_s4 + $0x80] ss:$16 sps:$4 sm:$0xff]   ;;  %v16129_v60 = vld [vmem:[%s18544_s4 + $0x88] ss:$16 sps:$4 sm:$0xff]  }
 0x5bc   :  { %13536 = vtanh.f32 %v4243_v22  ;;  %v4261_v39 = vadd.f32 1.0, %v13533_v25  ;;  %v16117_v22 = vld [vmem:[%s18544_s4 + $0x8c] ss:$16 sps:$4 sm:$0xff]   ;;  %19039 = vst [vmem:[#allocation53_spill] sm:$0xff] %v16124_v26  ;;  %19040 = vst [vmem:[#allocation54_spill] sm:$0xff] %v16129_v60 }
 0x5bd   :  { %13538 = vrcp.f32 %v4254_v43  ;;  %19038 = vst [vmem:[#allocation52_spill] sm:$0xff] %v16117_v22  ;;  %v16136_v43 = vld [vmem:[%s18544_s4 + $0x64] ss:$16 sps:$4 sm:$0xff]   ;;  %v16141_v25 = vld [vmem:[%s18544_s4 + $0x6c] ss:$16 sps:$4 sm:$0xff]  }
 0x5be   :  { %13540 = vrcp.f32 %v4261_v39  ;;  %19041 = vst [vmem:[#allocation55_spill] sm:$0xff] %v16136_v43  ;;  %19042 = vst [vmem:[#allocation56_spill] sm:$0xff] %v16141_v25  ;;  %v16165_v39 = vld [vmem:[%s18544_s4 + $0x4c] ss:$16 sps:$4 sm:$0xff]  }
 0x5bf   :  { %19046 = vst [vmem:[#allocation60_spill] sm:$0xff] %v16165_v39 }
 0x5c8   :  { %v13535_v2 = vpop.eup %13534 }
 0x5c9   :  { %v13537_v27 = vpop.eup %13536 }
 0x5ca   :  { %v13539_v29 = vpop.eup %13538  ;;  %v4265_v10 = vmul.f32 %v13537_v27, %v13535_v2  ;;  %v16148_v2 = vld [vmem:[%s18544_s4 + $0x60] ss:$16 sps:$4 sm:$0xff]   ;;  %v16153_v27 = vld [vmem:[%s18544_s4 + $0x68] ss:$16 sps:$4 sm:$0xff]  }
 0x5cb   :  { %v4264_v54 = vmul.f32 %v13539_v29, %v15693_v41  ;;  %v13541_v52 = vpop.eup %13540  ;;  %19043 = vst [vmem:[#allocation57_spill] sm:$0xff] %v16148_v2  ;;  %19044 = vst [vmem:[#allocation58_spill] sm:$0xff] %v16153_v27  ;;  %v16160_v29 = vld [vmem:[%s18544_s4 + $0x44] ss:$16 sps:$4 sm:$0xff]  }
 0x5cc   :  { %19045 = vst [vmem:[#allocation59_spill] sm:$0xff] %v16160_v29 }
 0x5cd   :  { %v16043_v11 = vadd.f32 %v4265_v10, %v4264_v54  ;;  %v16172_v10 = vld [vmem:[%s18544_s4 + $0x40] ss:$16 sps:$4 sm:$0xff]   ;;  %v16177_v54 = vld [vmem:[%s18544_s4 + $0x48] ss:$16 sps:$4 sm:$0xff]  }
 0x5ce   :  { %19047 = vst [vmem:[#allocation61_spill] sm:$0xff] %v16172_v10  ;;  %19048 = vst [vmem:[#allocation62_spill] sm:$0xff] %v16177_v54 }
 0x5cf   :  { %13542 = vtanh.f32 %v16043_v11 }
 0x5dc   :  { %v13543_v5 = vpop.eup %13542 }
 0x5dd   :  { %v4268_v48 = vmul.f32 %v13543_v5, %v13541_v52  ;;  %v16184_v52 = vld [vmem:[%s18544_s4 + $0x24] ss:$16 sps:$4 sm:$0xff]   ;;  %v16189_v5 = vld [vmem:[%s18544_s4 + $0x2c] ss:$16 sps:$4 sm:$0xff]  }
 0x5de   :  { %19049 = vst [vmem:[#allocation63_spill] sm:$0xff] %v16184_v52  ;;  %19050 = vst [vmem:[#allocation64_spill] sm:$0xff] %v16189_v5 }
 0x5df   :  { %11691 = vst [vmem:[%s18546_s7 + $0x18] sm:$0xff] %v4268_v48  ;;  %v4611_v41 = vpack.c.bf16 %v4268_v48, %v4268_v48  ;;  %v16196_v48 = vld [vmem:[%s18544_s4 + $0x20] ss:$16 sps:$4 sm:$0xff]  }
 0x5e0   :  { %19051 = vst [vmem:[#allocation65_spill] sm:$0xff] %v16196_v48 }
 0x5e1   :  { %4837 = vmatmul.mubr.bf16.vlgmr.msra.gmra.mxu0 %v4611_v41  ;;  %4878 = vmatmul.mubr.bf16.vlgmr.msra.gmra.mxu1 %v4611_v41  ;;  %v16201_v41 = vld [vmem:[%s18544_s4 + $0x28] ss:$16 sps:$4 sm:$0xff]  }
 0x5e2   :  { %5047 = vmatpush1.bf16.msra.mxu0 %v16049_v56  ;;  %5088 = vmatpush1.bf16.msra.mxu1 %v16054_v42  ;;  %19052 = vst [vmem:[#allocation66_spill] sm:$0xff] %v16201_v41 }
 0x5e3   :  { %5048 = vmatprep.subr.bf16.mxu0 %v16062_v34  ;;  %5089 = vmatprep.subr.bf16.mxu1 %v16067_v16 }
 0x5e4   :  { %5078 = vmatprep.mubr.bf16.mxu0 %v18818_v63  ;;  %5119 = vmatprep.mubr.bf16.mxu1 %v18818_v63 }
 0x5e6   :  { %5049 = vmatpush1.bf16.msra.mxu0 %v16074_v61  ;;  %5090 = vmatpush1.bf16.msra.mxu1 %v16079_v55 }
 0x5e7   :  { %5050 = vmatprep.subr.bf16.mxu0 %v16086_v36  ;;  %5091 = vmatprep.subr.bf16.mxu1 %v16091_v46 }
 0x5ea   :  { %5051 = vmatpush1.bf16.msra.mxu0 %v16100_v53  ;;  %5092 = vmatpush1.bf16.msra.mxu1 %v16105_v18 }
 0x5eb   :  { %5052 = vmatprep.subr.bf16.mxu0 %v16112_v45  ;;  %5093 = vmatprep.subr.bf16.mxu1 %v16117_v22 }
 0x5ee   :  { %5053 = vmatpush1.bf16.msra.mxu0 %v16124_v26  ;;  %5094 = vmatpush1.bf16.msra.mxu1 %v16129_v60 }
 0x5ef   :  { %5054 = vmatprep.subr.bf16.mxu0 %v16136_v43  ;;  %5095 = vmatprep.subr.bf16.mxu1 %v16141_v25  ;;  %v19057_v43 = vld [vmem:[#allocation19_spill] sm:$0xff] }
 0x5f2   :  { %5055 = vmatpush1.bf16.msra.mxu0 %v16148_v2  ;;  %5096 = vmatpush1.bf16.msra.mxu1 %v16153_v27  ;;  %v19055_v27 = vld [vmem:[#allocation5_spill] sm:$0xff] }
 0x5f3   :  { %5056 = vmatprep.subr.bf16.mxu0 %v16160_v29  ;;  %5097 = vmatprep.subr.bf16.mxu1 %v16165_v39  ;;  %v19056_v2 = vld [vmem:[#allocation21_spill] sm:$0xff] }
 0x5f4   :  { %v350_v25 = vadd.f32 %v19056_v2, %v19055_v27 }
 0x5f6   :  { %5057 = vmatpush1.bf16.msra.mxu0 %v16172_v10  ;;  %5098 = vmatpush1.bf16.msra.mxu1 %v16177_v54  ;;  %v16208_v10 = vld [vmem:[%s18544_s4 + $0x4] ss:$16 sps:$4 sm:$0xff]   ;;  %v16213_v54 = vld [vmem:[%s18544_s4 + $0xc] ss:$16 sps:$4 sm:$0xff]  }
 0x5f7   :  { %5058 = vmatprep.subr.bf16.mxu0 %v16184_v52  ;;  %5099 = vmatprep.subr.bf16.mxu1 %v16189_v5  ;;  %19053 = vst [vmem:[#allocation67_spill] sm:$0xff] %v16208_v10  ;;  %19054 = vst [vmem:[#allocation68_spill] sm:$0xff] %v16213_v54  ;;  %v16222_v5 = vld [vmem:[%s18544_s4] ss:$16 sps:$4 sm:$0xff]   ;;  %v16227_v52 = vld [vmem:[%s18544_s4 + $0x8] ss:$16 sps:$4 sm:$0xff]  }
 0x5f9   :  { %v4503_v39 = vpop.f32.mrf.mxu0  ;;  %v4544_v29 = vpop.f32.mrf.mxu1 }
 0x5fa   :  { %5059 = vmatpush1.bf16.msra.mxu0 %v16196_v48  ;;  %5100 = vmatpush1.bf16.msra.mxu1 %v16201_v41  ;;  %v4551_v60 = vadd.f32 %v4503_v39, %v19057_v43  ;;  %v16235_v41 = vld [vmem:[%s18541_s2 + $0xe4] ss:$16 sps:$4 sm:$0xff]   ;;  %v16240_v48 = vld [vmem:[%s18541_s2 + $0xec] ss:$16 sps:$4 sm:$0xff]  }
 0x5fb   :  { %5060 = vmatprep.subr.bf16.mxu0 %v16208_v10  ;;  %5101 = vmatprep.subr.bf16.mxu1 %v16213_v54  ;;  %v4505_v2 = vpop.f32.mrf.mxu0  ;;  %v4546_v27 = vpop.f32.mrf.mxu1  ;;  %v16247_v54 = vld [vmem:[%s18541_s2 + $0xe0] ss:$16 sps:$4 sm:$0xff]   ;;  %v16252_v10 = vld [vmem:[%s18541_s2 + $0xe8] ss:$16 sps:$4 sm:$0xff]  }
 0x5fc   :  { %v11724_v26 = vmul.f32 -1.442695, %v4551_v60  ;;  %v4552_v22 = vadd.f32 %v4505_v2, %v350_v25  ;;  %v16278_v2 = vld [vmem:[%s18541_s2 + $0xc8] ss:$16 sps:$4 sm:$0xff]  }
 0x5fd   :  { %v4507_v45 = vpop.f32.mrf.mxu0  ;;  %v4548_v43 = vpop.f32.mrf.mxu1  ;;  %19059 = vst [vmem:[#allocation70_spill] sm:$0xff] %v16278_v2 }
 0x5fe   :  { %13544 = vpow2.f32 %v11724_v26  ;;  %5061 = vmatpush1.bf16.msra.mxu0 %v16222_v5  ;;  %5102 = vmatpush1.bf16.msra.mxu1 %v16227_v52  ;;  %v11725_v39 = vmul.f32 -1.442695, %v4552_v22  ;;  %v16259_v45 = vld [vmem:[%s18541_s2 + $0xc4] ss:$16 sps:$4 sm:$0xff]   ;;  %v16264_v22 = vld [vmem:[%s18541_s2 + $0xcc] ss:$16 sps:$4 sm:$0xff]  }
 0x5ff   :  { %v4508_v60 = vpop.f32.mrf.mxu0  ;;  %v4549_v25 = vpop.f32.mrf.mxu1  ;;  %5378 = vmatprep.subr.bf16.mxu0 %v16235_v41  ;;  %5419 = vmatprep.subr.bf16.mxu1 %v16240_v48  ;;  %v16273_v26 = vld [vmem:[%s18541_s2 + $0xc0] ss:$16 sps:$4 sm:$0xff]   ;;  %v19060_v43 = vld [vmem:[#allocation22_spill] sm:$0xff] }
 0x600   :  { %13546 = vpow2.f32 %v11725_v39  ;;  %19058 = vst [vmem:[#allocation69_spill] sm:$0xff] %v16273_v26  ;;  %v443_v39 = vadd.f32 %v19060_v43, %v14210_v32  ;;  %v16296_v25 = vld [vmem:[%s18541_s2 + $0xa0] ss:$16 sps:$4 sm:$0xff]   ;;  %v16303_v43 = vld [vmem:[%s18541_s2 + $0x84] ss:$16 sps:$4 sm:$0xff]  }
 0x601   :  { %5079 = vmatmul.mubr.bf16.vlgmr.msra.gmra.mxu0 %v15825_v1  ;;  %5120 = vmatmul.mubr.bf16.vlgmr.msra.gmra.mxu1 %v15825_v1  ;;  %v16287_v1 = vld [vmem:[%s18541_s2 + $0xa4] ss:$16 sps:$4 sm:$0xff]   ;;  %19062 = vst [vmem:[#allocation72_spill] sm:$0xff] %v16303_v43 }
 0x602   :  { %5379 = vmatpush1.bf16.msra.mxu0 %v16247_v54  ;;  %5420 = vmatpush1.bf16.msra.mxu1 %v16252_v10  ;;  %19061 = vst [vmem:[#allocation71_spill] sm:$0xff] %v16287_v1  ;;  %v4554_v60 = vadd.f32 %v4546_v27, %v443_v39  ;;  %v16308_v27 = vld [vmem:[%s18541_s2 + $0x8c] ss:$16 sps:$4 sm:$0xff]  }
 0x603   :  { %5380 = vmatprep.subr.bf16.mxu0 %v16259_v45  ;;  %5421 = vmatprep.subr.bf16.mxu1 %v16264_v22  ;;  %v19063_v39 = vld [vmem:[#allocation20_spill] sm:$0xff] }
 0x604   :  { %5410 = vmatprep.mubr.bf16.mxu0 %v18818_v63  ;;  %5451 = vmatprep.mubr.bf16.mxu1 %v18818_v63  ;;  %v4553_v32 = vadd.f32 %v4544_v29, %v19063_v39  ;;  %v16328_v29 = vld [vmem:[%s18541_s2 + $0x64] ss:$16 sps:$4 sm:$0xff]  }
 0x606   :  { %5381 = vmatpush1.bf16.msra.mxu0 %v16273_v26  ;;  %5422 = vmatpush1.bf16.msra.mxu1 %v16278_v2  ;;  %v11726_v2 = vmul.f32 -1.442695, %v4554_v60  ;;  %13548 = vtanh.f32 %v4553_v32  ;;  %v16342_v32 = vld [vmem:[%s18541_s2 + $0x44] ss:$16 sps:$4 sm:$0xff]  }
 0x607   :  { %5382 = vmatprep.subr.bf16.mxu0 %v16287_v1  ;;  %5423 = vmatprep.subr.bf16.mxu1 %v15742_v3  ;;  %v16316_v3 = vld [vmem:[%s18541_s2 + $0x80] ss:$16 sps:$4 sm:$0xff]   ;;  %v16321_v1 = vld [vmem:[%s18541_s2 + $0x88] ss:$16 sps:$4 sm:$0xff]  }
 0x608   :  { %13550 = vpow2.f32 %v11726_v2 }
 0x60a   :  { %5383 = vmatpush1.bf16.msra.mxu0 %v16296_v25  ;;  %5424 = vmatpush1.bf16.msra.mxu1 %v15751_v19 }
 0x60b   :  { %v13545_v26 = vpop.eup %13544  ;;  %5384 = vmatprep.subr.bf16.mxu0 %v16303_v43  ;;  %5425 = vmatprep.subr.bf16.mxu1 %v16308_v27  ;;  %v16335_v43 = vld [vmem:[%s18541_s2 + $0x60] ss:$16 sps:$4 sm:$0xff]  }
 0x60c   :  { %v4558_v19 = vadd.f32 1.0, %v13545_v26  ;;  %v16349_v26 = vld [vmem:[%s18541_s2 + $0x40] ss:$16 sps:$4 sm:$0xff]  }
 0x60d   :  { %v13547_v60 = vpop.eup %13546  ;;  %19064 = vst [vmem:[#allocation73_spill] sm:$0xff] %v16349_v26 }
 0x60e   :  { %13552 = vrcp.f32 %v4558_v19  ;;  %v4564_v39 = vadd.f32 1.0, %v13547_v60  ;;  %5385 = vmatpush1.bf16.msra.mxu0 %v16316_v3  ;;  %5426 = vmatpush1.bf16.msra.mxu1 %v16321_v1 }
 0x60f   :  { %5386 = vmatprep.subr.bf16.mxu0 %v16328_v29  ;;  %5427 = vmatprep.subr.bf16.mxu1 %v15762_v17  ;;  %v16356_v17 = vld [vmem:[%s18541_s2 + $0x24] ss:$16 sps:$4 sm:$0xff]  }
 0x610   :  { %13554 = vrcp.f32 %v4564_v39  ;;  %19065 = vst [vmem:[#allocation74_spill] sm:$0xff] %v16356_v17 }
 0x612   :  { %5387 = vmatpush1.bf16.msra.mxu0 %v16335_v43  ;;  %5428 = vmatpush1.bf16.msra.mxu1 %v15769_v59  ;;  %v16363_v59 = vld [vmem:[%s18541_s2 + $0x20] ss:$16 sps:$4 sm:$0xff]  }
 0x613   :  { %5388 = vmatprep.subr.bf16.mxu0 %v16342_v32  ;;  %5429 = vmatprep.subr.bf16.mxu1 %v15776_v35  ;;  %v16370_v35 = vld [vmem:[%s18541_s2 + $0x4] ss:$16 sps:$4 sm:$0xff]   ;;  %v13549_v2 = vpop.eup %13548 }
 0x614   :  { %19066 = vst [vmem:[#allocation75_spill] sm:$0xff] %v16370_v35 }
 0x615   :  { %v13551_v19 = vpop.eup %13550 }
 0x616   :  { %5389 = vmatpush1.bf16.msra.mxu0 %v16349_v26  ;;  %5430 = vmatpush1.bf16.msra.mxu1 %v15783_v20  ;;  %v16377_v20 = vld [vmem:[%s18541_s2] ss:$16 sps:$4 sm:$0xff]  }
 0x617   :  { %5390 = vmatprep.subr.bf16.mxu0 %v16356_v17  ;;  %5431 = vmatprep.subr.bf16.mxu1 %v15790_v0  ;;  %v4571_v17 = vadd.f32 1.0, %v13551_v19 }
 0x619   :  { %13556 = vrcp.f32 %v4571_v17 }
 0x61a   :  { %5391 = vmatpush1.bf16.msra.mxu0 %v16363_v59  ;;  %5432 = vmatpush1.bf16.msra.mxu1 %v15797_v49 }
 0x61b   :  { %v13553_v60 = vpop.eup %13552  ;;  %5392 = vmatprep.subr.bf16.mxu0 %v16370_v35  ;;  %5433 = vmatprep.subr.bf16.mxu1 %v15804_v30 }
 0x61c   :  { %v4575_v0 = vmul.f32 %v13553_v60, %v13549_v2 }
 0x61d   :  { %v13555_v39 = vpop.eup %13554 }
 0x61e   :  { %v4574_v26 = vmul.f32 %v13555_v39, %v15822_v57  ;;  %5393 = vmatpush1.bf16.msra.mxu0 %v16377_v20  ;;  %5434 = vmatpush1.bf16.msra.mxu1 %v15811_v9  ;;  %v19067_v9 = vld [vmem:[#allocation94_spill] sm:$0xff]  ;;  %v19068_v57 = vld [vmem:[#allocation7_spill] sm:$0xff] }
 0x61f   :  { %5713 = vmatprep.subr.bf16.mxu0 %v15834_v40  ;;  %5754 = vmatprep.subr.bf16.mxu1 %v15839_v13  ;;  %v19069_v40 = vld [vmem:[#allocation9_spill] sm:$0xff]  ;;  %v19070_v13 = vld [vmem:[#allocation10_spill] sm:$0xff] }
 0x620   :  { %v16386_v49 = vadd.f32 %v4575_v0, %v4574_v26  ;;  %v19081_v0 = vld [vmem:[#allocation4_spill] sm:$0xff] }
 0x622   :  { %13558 = vtanh.f32 %v16386_v49 }
 0x626   :  { %v13557_v35 = vpop.eup %13556 }
 0x62f   :  { %v13559_v30 = vpop.eup %13558 }
 0x630   :  { %v4578_v2 = vmul.f32 %v13559_v30, %v13557_v35 }
 0x632   :  { %v16389_v60 = vpack.c.bf16 %v4578_v2, %v4578_v2 }
 0x634   :  { %5411 = vmatmul.mubr.bf16.vlgmr.msra.gmra.mxu0 %v16389_v60  ;;  %5452 = vmatmul.mubr.bf16.vlgmr.msra.gmra.mxu1 %v16389_v60 }
 0x635   :  { %5714 = vmatpush1.bf16.msra.mxu0 %v15844_v50  ;;  %5755 = vmatpush1.bf16.msra.mxu1 %v15849_v15  ;;  %v19071_v50 = vld [vmem:[#allocation8_spill] sm:$0xff]  ;;  %v19072_v15 = vld [vmem:[#allocation13_spill] sm:$0xff] }
 0x636   :  { %5715 = vmatprep.subr.bf16.mxu0 %v15858_v21  ;;  %5756 = vmatprep.subr.bf16.mxu1 %v15863_v33  ;;  %v19073_v21 = vld [vmem:[#allocation11_spill] sm:$0xff]  ;;  %v19074_v33 = vld [vmem:[#allocation14_spill] sm:$0xff] }
 0x637   :  { %5745 = vmatprep.mubr.bf16.mxu0 %v18818_v63  ;;  %5786 = vmatprep.mubr.bf16.mxu1 %v18818_v63 }
 0x639   :  { %5716 = vmatpush1.bf16.msra.mxu0 %v15868_v23  ;;  %5757 = vmatpush1.bf16.msra.mxu1 %v15873_v4  ;;  %v19075_v23 = vld [vmem:[#allocation12_spill] sm:$0xff]  ;;  %v19076_v4 = vld [vmem:[#allocation47_spill] sm:$0xff] }
 0x63a   :  { %5717 = vmatprep.subr.bf16.mxu0 %v15882_v38  ;;  %5758 = vmatprep.subr.bf16.mxu1 %v15887_v14  ;;  %v19077_v38 = vld [vmem:[#allocation48_spill] sm:$0xff]  ;;  %v19078_v14 = vld [vmem:[#allocation49_spill] sm:$0xff] }
 0x63d   :  { %5718 = vmatpush1.bf16.msra.mxu0 %v15892_v7  ;;  %5759 = vmatpush1.bf16.msra.mxu1 %v15897_v6  ;;  %v19079_v7 = vld [vmem:[#allocation50_spill] sm:$0xff] }
 0x63e   :  { %5719 = vmatprep.subr.bf16.mxu0 %v15906_v8  ;;  %5760 = vmatprep.subr.bf16.mxu1 %v15911_v47 }
 0x641   :  { %5720 = vmatpush1.bf16.msra.mxu0 %v15916_v28  ;;  %5761 = vmatpush1.bf16.msra.mxu1 %v15921_v31 }
 0x642   :  { %5721 = vmatprep.subr.bf16.mxu0 %v15928_v58  ;;  %5762 = vmatprep.subr.bf16.mxu1 %v15945_v44  ;;  %v5128_v44 = vld [vmem:[%s18545_s6] sm:$0xf] }
 0x643   :  { %v5137_v39 = vrot.slane %v5128_v44, %v19081_v0 }
 0x645   :  { %5722 = vmatpush1.bf16.msra.mxu0 %v15935_v62  ;;  %5763 = vmatpush1.bf16.msra.mxu1 %v15940_v37 }
 0x646   :  { %5723 = vmatprep.subr.bf16.mxu0 %v15951_v51  ;;  %5764 = vmatprep.subr.bf16.mxu1 %v19067_v9  ;;  %v19080_v51 = vld [vmem:[#allocation3_spill] sm:$0xff] }
 0x647   :  { %v5133_v26 = vrot.slane %v5128_v44, %v19080_v51 }
 0x649   :  { %5724 = vmatpush1.bf16.msra.mxu0 %v19068_v57  ;;  %5765 = vmatpush1.bf16.msra.mxu1 %v19069_v40 }
 0x64a   :  { %5725 = vmatprep.subr.bf16.mxu0 %v19070_v13  ;;  %5766 = vmatprep.subr.bf16.mxu1 %v19071_v50 }
 0x64d   :  { %5726 = vmatpush1.bf16.msra.mxu0 %v19072_v15  ;;  %5767 = vmatpush1.bf16.msra.mxu1 %v19073_v21 }
 0x64e   :  { %5727 = vmatprep.subr.bf16.mxu0 %v19074_v33  ;;  %5768 = vmatprep.subr.bf16.mxu1 %v19075_v23 }
 0x651   :  { %5728 = vmatpush1.bf16.msra.mxu0 %v19076_v4  ;;  %5769 = vmatpush1.bf16.msra.mxu1 %v19077_v38  ;;  %v5145_v38 = vrot.slane %v5128_v44, %v14194_v24 }
 0x652   :  { %5955 = vmatprep.subr.bf16.mxu0 %v19078_v14  ;;  %5996 = vmatprep.subr.bf16.mxu1 %v19079_v7 }
 0x6a1   :  { %v4838_v6 = vpop.f32.mrf.mxu0  ;;  %v4879_v8 = vpop.f32.mrf.mxu1 }
 0x6a3   :  { %v4840_v47 = vpop.f32.mrf.mxu0  ;;  %v4881_v28 = vpop.f32.mrf.mxu1 }
 0x6a5   :  { %v4842_v31 = vpop.f32.mrf.mxu0  ;;  %v4883_v58 = vpop.f32.mrf.mxu1 }
 0x6a7   :  { %v4843_v62 = vpop.f32.mrf.mxu0  ;;  %v4884_v37 = vpop.f32.mrf.mxu1 }
 0x6c1   :  { %v5080_v17 = vpop.f32.mrf.mxu0  ;;  %v5121_v35 = vpop.f32.mrf.mxu1 }
 0x6c2   :  { %v5081_v19 = vadd.f32 %v5080_v17, %v4838_v6  ;;  %v5122_v7 = vadd.f32 %v5121_v35, %v4879_v8  ;;  %v5141_v6 = vrot.slane %v5128_v44, %v14171_v12 }
 0x6c3   :  { %v5082_v30 = vpop.f32.mrf.mxu0  ;;  %v5123_v2 = vpop.f32.mrf.mxu1 }
 0x6c4   :  { %v5150_v9 = vadd.f32 %v5133_v26, %v5081_v19  ;;  %v5083_v57 = vadd.f32 %v5082_v30, %v4840_v47  ;;  %v5124_v4 = vadd.f32 %v5123_v2, %v4881_v28  ;;  %v5152_v62 = vadd.f32 %v5141_v6, %v5122_v7 }
 0x6c5   :  { %v5084_v40 = vpop.f32.mrf.mxu0  ;;  %v5125_v13 = vpop.f32.mrf.mxu1 }
 0x6c6   :  { %v11791_v50 = vmul.f32 -1.442695, %v5150_v9  ;;  %v5151_v15 = vadd.f32 %v5137_v39, %v5083_v57  ;;  %v5153_v14 = vadd.f32 %v5145_v38, %v5124_v4  ;;  %v19082_v57 = vld [vmem:[#allocation23_spill] sm:$0xff] }
 0x6c7   :  { %v5085_v21 = vpop.f32.mrf.mxu0  ;;  %v5126_v33 = vpop.f32.mrf.mxu1 }
 0x6c8   :  { %13560 = vpow2.f32 %v11791_v50  ;;  %v11792_v23 = vmul.f32 -1.442695, %v5151_v15  ;;  %v11793_v31 = vmul.f32 -1.442695, %v5153_v14  ;;  %v19083_v21 = vld [vmem:[#allocation25_spill] sm:$0xff] }
 0x6ca   :  { %13562 = vpow2.f32 %v11792_v23 }
 0x6cb   :  { %13564 = vpow2.f32 %v11793_v31 }
 0x6d5   :  { %v13561_v58 = vpop.eup %13560 }
 0x6d6   :  { %v5157_v47 = vadd.f32 1.0, %v13561_v58 }
 0x6d7   :  { %v13563_v37 = vpop.eup %13562 }
 0x6d8   :  { %13566 = vrcp.f32 %v5157_v47  ;;  %v5163_v26 = vadd.f32 1.0, %v13563_v37  ;;  %v13565_v17 = vpop.eup %13564  ;;  %v19086_v37 = vld [vmem:[#allocation52_spill] sm:$0xff] }
 0x6d9   :  { %13568 = vtanh.f32 %v5152_v62  ;;  %v5170_v30 = vadd.f32 1.0, %v13565_v17  ;;  %v19084_v62 = vld [vmem:[#allocation24_spill] sm:$0xff] }
 0x6da   :  { %13570 = vrcp.f32 %v5163_v26  ;;  %v19090_v26 = vld [vmem:[#allocation56_spill] sm:$0xff] }
 0x6db   :  { %13572 = vrcp.f32 %v5170_v30 }
 0x6e5   :  { %v13567_v19 = vpop.eup %13566 }
 0x6e6   :  { %v13569_v39 = vpop.eup %13568 }
 0x6e7   :  { %v13571_v28 = vpop.eup %13570  ;;  %v5174_v2 = vmul.f32 %v13569_v39, %v13567_v19  ;;  %v19093_v19 = vld [vmem:[#allocation58_spill] sm:$0xff]  ;;  %v19094_v39 = vld [vmem:[#allocation59_spill] sm:$0xff] }
 0x6e8   :  { %v5173_v8 = vmul.f32 %v13571_v28, %v16043_v11  ;;  %v13573_v23 = vpop.eup %13572  ;;  %v19095_v28 = vld [vmem:[#allocation60_spill] sm:$0xff] }
 0x6ea   :  { %v16435_v35 = vadd.f32 %v5174_v2, %v5173_v8  ;;  %v19096_v2 = vld [vmem:[#allocation61_spill] sm:$0xff]  ;;  %v19097_v8 = vld [vmem:[#allocation62_spill] sm:$0xff] }
 0x6ec   :  { %13574 = vtanh.f32 %v16435_v35 }
 0x6f4   :  { %v5412_v44 = vpop.f32.mrf.mxu0  ;;  %v5453_v9 = vpop.f32.mrf.mxu1 }
 0x6f5   :  { %v5460_v40 = vadd.f32 %v5412_v44, %v19082_v57  ;;  %v5462_v47 = vadd.f32 %v5453_v9, %v19084_v62  ;;  %v19098_v44 = vld [vmem:[#allocation63_spill] sm:$0xff]  ;;  %v19099_v9 = vld [vmem:[#allocation64_spill] sm:$0xff] }
 0x6f6   :  { %v5414_v13 = vpop.f32.mrf.mxu0  ;;  %v5455_v50 = vpop.f32.mrf.mxu1  ;;  %v16586_v62 = vld [vmem:[%s18542_s5 + $0xe0] ss:$16 sps:$4 sm:$0xff]  }
 0x6f7   :  { %v11827_v15 = vmul.f32 -1.442695, %v5460_v40  ;;  %v5461_v33 = vadd.f32 %v5414_v13, %v19083_v21 }
 0x6f8   :  { %v5416_v4 = vpop.f32.mrf.mxu0  ;;  %v5457_v38 = vpop.f32.mrf.mxu1 }
 0x6f9   :  { %v13575_v14 = vpop.eup %13574  ;;  %13576 = vpow2.f32 %v11827_v15  ;;  %v11828_v11 = vmul.f32 -1.442695, %v5461_v33  ;;  %v19101_v15 = vld [vmem:[#allocation66_spill] sm:$0xff]  ;;  %v19102_v33 = vld [vmem:[#allocation67_spill] sm:$0xff] }
 0x6fa   :  { %v5177_v7 = vmul.f32 %v13575_v14, %v13573_v23  ;;  %v5417_v6 = vpop.f32.mrf.mxu0  ;;  %v5458_v31 = vpop.f32.mrf.mxu1  ;;  %v19103_v23 = vld [vmem:[#allocation68_spill] sm:$0xff] }
 0x6fb   :  { %13578 = vpow2.f32 %v11828_v11  ;;  %v19110_v6 = vld [vmem:[#allocation75_spill] sm:$0xff] }
 0x6fc   :  { %11794 = vst [vmem:[%s18546_s7 + $0x20] sm:$0xff] %v5177_v7  ;;  %v5520_v58 = vpack.c.bf16 %v5177_v7, %v5177_v7  ;;  %13580 = vtanh.f32 %v5462_v47  ;;  %v16561_v7 = vld [vmem:[%s18541_s2 + $0x8] ss:$16 sps:$4 sm:$0xff]  }
 0x6fd   :  { %v16591_v47 = vld [vmem:[%s18542_s5 + $0xe8] ss:$16 sps:$4 sm:$0xff]  }
 0x6fe   :  { %5746 = vmatmul.mubr.bf16.vlgmr.msra.gmra.mxu0 %v5520_v58  ;;  %5787 = vmatmul.mubr.bf16.vlgmr.msra.gmra.mxu1 %v5520_v58 }
 0x6ff   :  { %5956 = vmatpush1.bf16.msra.mxu0 %v16049_v56  ;;  %5997 = vmatpush1.bf16.msra.mxu1 %v16054_v42 }
 0x700   :  { %5957 = vmatprep.subr.bf16.mxu0 %v16062_v34  ;;  %5998 = vmatprep.subr.bf16.mxu1 %v16067_v16  ;;  %v19085_v16 = vld [vmem:[#allocation51_spill] sm:$0xff] }
 0x701   :  { %5987 = vmatprep.mubr.bf16.mxu0 %v18818_v63  ;;  %6028 = vmatprep.mubr.bf16.mxu1 %v18818_v63 }
 0x703   :  { %5958 = vmatpush1.bf16.msra.mxu0 %v16074_v61  ;;  %5999 = vmatpush1.bf16.msra.mxu1 %v16079_v55  ;;  %v19087_v55 = vld [vmem:[#allocation53_spill] sm:$0xff] }
 0x704   :  { %5959 = vmatprep.subr.bf16.mxu0 %v16086_v36  ;;  %6000 = vmatprep.subr.bf16.mxu1 %v16091_v46  ;;  %v19088_v36 = vld [vmem:[#allocation54_spill] sm:$0xff]  ;;  %v19089_v46 = vld [vmem:[#allocation55_spill] sm:$0xff] }
 0x706   :  { %v13577_v56 = vpop.eup %13576 }
 0x707   :  { %v5467_v42 = vadd.f32 1.0, %v13577_v56  ;;  %5960 = vmatpush1.bf16.msra.mxu0 %v16100_v53  ;;  %6001 = vmatpush1.bf16.msra.mxu1 %v16105_v18  ;;  %v19091_v53 = vld [vmem:[#allocation26_spill] sm:$0xff]  ;;  %v19092_v18 = vld [vmem:[#allocation57_spill] sm:$0xff] }
 0x708   :  { %v13579_v34 = vpop.eup %13578  ;;  %5961 = vmatprep.subr.bf16.mxu0 %v19085_v16  ;;  %6002 = vmatprep.subr.bf16.mxu1 %v19086_v37  ;;  %v5463_v17 = vadd.f32 %v5455_v50, %v19091_v53  ;;  %v19100_v50 = vld [vmem:[#allocation65_spill] sm:$0xff]  ;;  %v16615_v16 = vld [vmem:[%s18542_s5 + $0xc8] ss:$16 sps:$4 sm:$0xff]  }
 0x709   :  { %13582 = vrcp.f32 %v5467_v42  ;;  %v5473_v61 = vadd.f32 1.0, %v13579_v34  ;;  %v13581_v57 = vpop.eup %13580  ;;  %v16600_v56 = vld [vmem:[%s18542_s5 + $0xc4] ss:$16 sps:$4 sm:$0xff]   ;;  %v16605_v42 = vld [vmem:[%s18542_s5 + $0xcc] ss:$16 sps:$4 sm:$0xff]  }
 0x70a   :  { %v11829_v30 = vmul.f32 -1.442695, %v5463_v17  ;;  %v16610_v34 = vld [vmem:[%s18542_s5 + $0xc0] ss:$16 sps:$4 sm:$0xff]   ;;  %v16624_v37 = vld [vmem:[%s18542_s5 + $0xa4] ss:$16 sps:$4 sm:$0xff]  }
 0x70b   :  { %13584 = vrcp.f32 %v5473_v61  ;;  %5962 = vmatpush1.bf16.msra.mxu0 %v19087_v55  ;;  %6003 = vmatpush1.bf16.msra.mxu1 %v19088_v36  ;;  %v16629_v61 = vld [vmem:[%s18542_s5 + $0xac] ss:$16 sps:$4 sm:$0xff]   ;;  %v16634_v55 = vld [vmem:[%s18542_s5 + $0xa0] ss:$16 sps:$4 sm:$0xff]   ;;  %v16639_v36 = vld [vmem:[%s18542_s5 + $0xa8] ss:$16 sps:$4 sm:$0xff]  }
 0x70c   :  { %5963 = vmatprep.subr.bf16.mxu0 %v19089_v46  ;;  %6004 = vmatprep.subr.bf16.mxu1 %v19090_v26  ;;  %13586 = vpow2.f32 %v11829_v30  ;;  %v16648_v46 = vld [vmem:[%s18542_s5 + $0x84] ss:$16 sps:$4 sm:$0xff]   ;;  %v16653_v26 = vld [vmem:[%s18542_s5 + $0x8c] ss:$16 sps:$4 sm:$0xff]   ;;  %v16658_v53 = vld [vmem:[%s18542_s5 + $0x80] ss:$16 sps:$4 sm:$0xff]  }
 0x70d   :  { %v16663_v17 = vld [vmem:[%s18542_s5 + $0x88] ss:$16 sps:$4 sm:$0xff]   ;;  %v16696_v30 = vld [vmem:[%s18542_s5 + $0x44] ss:$16 sps:$4 sm:$0xff]  }
 0x70f   :  { %5964 = vmatpush1.bf16.msra.mxu0 %v19092_v18  ;;  %6005 = vmatpush1.bf16.msra.mxu1 %v19093_v19  ;;  %v16672_v18 = vld [vmem:[%s18542_s5 + $0x64] ss:$16 sps:$4 sm:$0xff]   ;;  %v16677_v19 = vld [vmem:[%s18542_s5 + $0x6c] ss:$16 sps:$4 sm:$0xff]  }
 0x710   :  { %5965 = vmatprep.subr.bf16.mxu0 %v19094_v39  ;;  %6006 = vmatprep.subr.bf16.mxu1 %v19095_v28  ;;  %v16682_v39 = vld [vmem:[%s18542_s5 + $0x60] ss:$16 sps:$4 sm:$0xff]   ;;  %v16687_v28 = vld [vmem:[%s18542_s5 + $0x68] ss:$16 sps:$4 sm:$0xff]  }
 0x713   :  { %5966 = vmatpush1.bf16.msra.mxu0 %v19096_v2  ;;  %6007 = vmatpush1.bf16.msra.mxu1 %v19097_v8  ;;  %v16701_v2 = vld [vmem:[%s18542_s5 + $0x4c] ss:$16 sps:$4 sm:$0xff]   ;;  %v16706_v8 = vld [vmem:[%s18542_s5 + $0x40] ss:$16 sps:$4 sm:$0xff]  }
 0x714   :  { %5967 = vmatprep.subr.bf16.mxu0 %v19098_v44  ;;  %6008 = vmatprep.subr.bf16.mxu1 %v19099_v9  ;;  %19111 = vst [vmem:[#allocation76_spill] sm:$0xff] %v16706_v8  ;;  %v16711_v44 = vld [vmem:[%s18542_s5 + $0x48] ss:$16 sps:$4 sm:$0xff]   ;;  %v16720_v9 = vld [vmem:[%s18542_s5 + $0x24] ss:$16 sps:$4 sm:$0xff]  }
 0x715   :  { %19112 = vst [vmem:[#allocation77_spill] sm:$0xff] %v16711_v44  ;;  %19113 = vst [vmem:[#allocation78_spill] sm:$0xff] %v16720_v9 }
 0x716   :  { %v13583_v40 = vpop.eup %13582 }
 0x717   :  { %v5484_v13 = vmul.f32 %v13583_v40, %v13581_v57  ;;  %5968 = vmatpush1.bf16.msra.mxu0 %v19100_v50  ;;  %6009 = vmatpush1.bf16.msra.mxu1 %v19101_v15  ;;  %v16725_v57 = vld [vmem:[%s18542_s5 + $0x2c] ss:$16 sps:$4 sm:$0xff]   ;;  %v16730_v40 = vld [vmem:[%s18542_s5 + $0x20] ss:$16 sps:$4 sm:$0xff]   ;;  %v16744_v50 = vld [vmem:[%s18542_s5 + $0x4] ss:$16 sps:$4 sm:$0xff]  }
 0x718   :  { %v13585_v21 = vpop.eup %13584  ;;  %5969 = vmatprep.subr.bf16.mxu0 %v19102_v33  ;;  %6010 = vmatprep.subr.bf16.mxu1 %v19103_v23  ;;  %19114 = vst [vmem:[#allocation79_spill] sm:$0xff] %v16725_v57  ;;  %19115 = vst [vmem:[#allocation80_spill] sm:$0xff] %v16730_v40  ;;  %v16749_v15 = vld [vmem:[%s18542_s5 + $0xc] ss:$16 sps:$4 sm:$0xff]   ;;  %v16759_v33 = vld [vmem:[%s18542_s5 + $0x8] ss:$16 sps:$4 sm:$0xff]  }
 0x719   :  { %v5483_v4 = vmul.f32 %v13585_v21, %v16386_v49  ;;  %v16511_v49 = vld [vmem:[%s18541_s2 + $0x6c] ss:$16 sps:$4 sm:$0xff]   ;;  %19117 = vst [vmem:[#allocation82_spill] sm:$0xff] %v16744_v50  ;;  %19118 = vst [vmem:[#allocation83_spill] sm:$0xff] %v16749_v15  ;;  %v16754_v21 = vld [vmem:[%s18542_s5] ss:$16 sps:$4 sm:$0xff]  }
 0x71a   :  { %19119 = vst [vmem:[#allocation84_spill] sm:$0xff] %v16754_v21  ;;  %19120 = vst [vmem:[#allocation85_spill] sm:$0xff] %v16759_v33  ;;  %v16768_v23 = vld [vmem:[%s18544_s4 + $0xe4] ss:$16 sps:$4 sm:$0xff]  }
 0x71b   :  { %v16476_v38 = vadd.f32 %v5484_v13, %v5483_v4  ;;  %5970 = vmatpush1.bf16.msra.mxu0 %v16222_v5  ;;  %6011 = vmatpush1.bf16.msra.mxu1 %v16227_v52  ;;  %v16491_v52 = vld [vmem:[%s18541_s2 + $0xac] ss:$16 sps:$4 sm:$0xff]   ;;  %v13587_v5 = vpop.eup %13586  ;;  %v16735_v13 = vld [vmem:[%s18542_s5 + $0x28] ss:$16 sps:$4 sm:$0xff]   ;;  %19121 = vst [vmem:[#allocation86_spill] sm:$0xff] %v16768_v23 }
 0x71c   :  { %6287 = vmatprep.subr.bf16.mxu0 %v16235_v41  ;;  %6328 = vmatprep.subr.bf16.mxu1 %v16240_v48  ;;  %v19104_v48 = vld [vmem:[#allocation69_spill] sm:$0xff]  ;;  %v19105_v41 = vld [vmem:[#allocation70_spill] sm:$0xff]  ;;  %19116 = vst [vmem:[#allocation81_spill] sm:$0xff] %v16735_v13 }
 0x71d   :  { %13588 = vtanh.f32 %v16476_v38  ;;  %v16773_v4 = vld [vmem:[%s18544_s4 + $0xec] ss:$16 sps:$4 sm:$0xff]  }
 0x71e   :  { %5988 = vmatmul.mubr.bf16.vlgmr.msra.gmra.mxu0 %v16389_v60  ;;  %6029 = vmatmul.mubr.bf16.vlgmr.msra.gmra.mxu1 %v16389_v60  ;;  %v19109_v60 = vld [vmem:[#allocation74_spill] sm:$0xff]  ;;  %19122 = vst [vmem:[#allocation87_spill] sm:$0xff] %v16773_v4 }
 0x71f   :  { %6288 = vmatpush1.bf16.msra.mxu0 %v16247_v54  ;;  %6329 = vmatpush1.bf16.msra.mxu1 %v16252_v10  ;;  %v16500_v10 = vld [vmem:[%s18541_s2 + $0xa8] ss:$16 sps:$4 sm:$0xff]   ;;  %v19106_v54 = vld [vmem:[#allocation71_spill] sm:$0xff] }
 0x720   :  { %6289 = vmatprep.subr.bf16.mxu0 %v16259_v45  ;;  %6330 = vmatprep.subr.bf16.mxu1 %v16264_v22  ;;  %v5480_v45 = vadd.f32 1.0, %v13587_v5  ;;  %v19107_v22 = vld [vmem:[#allocation72_spill] sm:$0xff] }
 0x721   :  { %6319 = vmatprep.mubr.bf16.mxu0 %v18818_v63  ;;  %6360 = vmatprep.mubr.bf16.mxu1 %v18818_v63 }
 0x722   :  { %13590 = vrcp.f32 %v5480_v45 }
 0x723   :  { %6290 = vmatpush1.bf16.msra.mxu0 %v19104_v48  ;;  %6331 = vmatpush1.bf16.msra.mxu1 %v19105_v41 }
 0x724   :  { %6291 = vmatprep.subr.bf16.mxu0 %v19106_v54  ;;  %6332 = vmatprep.subr.bf16.mxu1 %v16491_v52 }
 0x727   :  { %6292 = vmatpush1.bf16.msra.mxu0 %v16296_v25  ;;  %6333 = vmatpush1.bf16.msra.mxu1 %v16500_v10  ;;  %v16519_v25 = vld [vmem:[%s18541_s2 + $0x68] ss:$16 sps:$4 sm:$0xff]  }
 0x728   :  { %6293 = vmatprep.subr.bf16.mxu0 %v19107_v22  ;;  %6334 = vmatprep.subr.bf16.mxu1 %v16308_v27  ;;  %v16526_v27 = vld [vmem:[%s18541_s2 + $0x4c] ss:$16 sps:$4 sm:$0xff]  }
 0x72a   :  { %v13589_v14 = vpop.eup %13588 }
 0x72b   :  { %6294 = vmatpush1.bf16.msra.mxu0 %v16316_v3  ;;  %6335 = vmatpush1.bf16.msra.mxu1 %v16321_v1  ;;  %v16533_v1 = vld [vmem:[%s18541_s2 + $0x48] ss:$16 sps:$4 sm:$0xff]   ;;  %v16540_v3 = vld [vmem:[%s18541_s2 + $0x2c] ss:$16 sps:$4 sm:$0xff]  }
 0x72c   :  { %6295 = vmatprep.subr.bf16.mxu0 %v16328_v29  ;;  %6336 = vmatprep.subr.bf16.mxu1 %v16511_v49  ;;  %v19108_v29 = vld [vmem:[#allocation73_spill] sm:$0xff] }
 0x72f   :  { %6296 = vmatpush1.bf16.msra.mxu0 %v16335_v43  ;;  %6337 = vmatpush1.bf16.msra.mxu1 %v16519_v25  ;;  %v16547_v43 = vld [vmem:[%s18541_s2 + $0x28] ss:$16 sps:$4 sm:$0xff]   ;;  %v13591_v11 = vpop.eup %13590 }
 0x730   :  { %6297 = vmatprep.subr.bf16.mxu0 %v16342_v32  ;;  %6338 = vmatprep.subr.bf16.mxu1 %v16526_v27  ;;  %v16554_v32 = vld [vmem:[%s18541_s2 + $0xc] ss:$16 sps:$4 sm:$0xff]   ;;  %v5487_v31 = vmul.f32 %v13591_v11, %v13589_v14  ;;  %v6037_v14 = vld [vmem:[%s18545_s6] sm:$0xf] }
 0x731   :  { %v6042_v11 = vrot.slane %v6037_v14, %v19080_v51  ;;  %v6054_v51 = vrot.slane %v6037_v14, %v14194_v24 }
 0x732   :  { %v16567_v58 = vpack.c.bf16 %v5487_v31, %v5487_v31 }
 0x733   :  { %6298 = vmatpush1.bf16.msra.mxu0 %v19108_v29  ;;  %6339 = vmatpush1.bf16.msra.mxu1 %v16533_v1 }
 0x734   :  { %6299 = vmatprep.subr.bf16.mxu0 %v19109_v60  ;;  %6340 = vmatprep.subr.bf16.mxu1 %v16540_v3 }
 0x737   :  { %6300 = vmatpush1.bf16.msra.mxu0 %v16363_v59  ;;  %6341 = vmatpush1.bf16.msra.mxu1 %v16547_v43  ;;  %v16576_v59 = vld [vmem:[%s18542_s5 + $0xe4] ss:$16 sps:$4 sm:$0xff]  }
 0x738   :  { %6301 = vmatprep.subr.bf16.mxu0 %v19110_v6  ;;  %6342 = vmatprep.subr.bf16.mxu1 %v16554_v32 }
 0x73b   :  { %6302 = vmatpush1.bf16.msra.mxu0 %v16377_v20  ;;  %6343 = vmatpush1.bf16.msra.mxu1 %v16561_v7  ;;  %v16581_v20 = vld [vmem:[%s18542_s5 + $0xec] ss:$16 sps:$4 sm:$0xff]  }
 0x73c   :  { %6622 = vmatprep.subr.bf16.mxu0 %v16576_v59  ;;  %6663 = vmatprep.subr.bf16.mxu1 %v16581_v20 }
 0x73e   :  { %6320 = vmatmul.mubr.bf16.vlgmr.msra.gmra.mxu0 %v16567_v58  ;;  %6361 = vmatmul.mubr.bf16.vlgmr.msra.gmra.mxu1 %v16567_v58 }
 0x73f   :  { %6654 = vmatprep.mubr.bf16.mxu0 %v18818_v63  ;;  %6695 = vmatprep.mubr.bf16.mxu1 %v18818_v63 }
 0x740   :  { %6623 = vmatpush1.bf16.msra.mxu0 %v16586_v62  ;;  %6664 = vmatpush1.bf16.msra.mxu1 %v16591_v47 }
 0x741   :  { %6624 = vmatprep.subr.bf16.mxu0 %v16600_v56  ;;  %6665 = vmatprep.subr.bf16.mxu1 %v16605_v42 }
 0x744   :  { %6625 = vmatpush1.bf16.msra.mxu0 %v16610_v34  ;;  %6666 = vmatpush1.bf16.msra.mxu1 %v16615_v16 }
 0x745   :  { %6626 = vmatprep.subr.bf16.mxu0 %v16624_v37  ;;  %6667 = vmatprep.subr.bf16.mxu1 %v16629_v61 }
 0x748   :  { %6627 = vmatpush1.bf16.msra.mxu0 %v16634_v55  ;;  %6668 = vmatpush1.bf16.msra.mxu1 %v16639_v36 }
 0x749   :  { %6628 = vmatprep.subr.bf16.mxu0 %v16648_v46  ;;  %6669 = vmatprep.subr.bf16.mxu1 %v16653_v26 }
 0x74c   :  { %6629 = vmatpush1.bf16.msra.mxu0 %v16658_v53  ;;  %6670 = vmatpush1.bf16.msra.mxu1 %v16663_v17 }
 0x74d   :  { %6630 = vmatprep.subr.bf16.mxu0 %v16672_v18  ;;  %6671 = vmatprep.subr.bf16.mxu1 %v16677_v19 }
 0x750   :  { %6631 = vmatpush1.bf16.msra.mxu0 %v16682_v39  ;;  %6672 = vmatpush1.bf16.msra.mxu1 %v16687_v28 }
 0x751   :  { %6632 = vmatprep.subr.bf16.mxu0 %v16696_v30  ;;  %6673 = vmatprep.subr.bf16.mxu1 %v16701_v2 }
 0x754   :  { %6633 = vmatpush1.bf16.msra.mxu0 %v16706_v8  ;;  %6674 = vmatpush1.bf16.msra.mxu1 %v16711_v44 }
 0x755   :  { %6634 = vmatprep.subr.bf16.mxu0 %v16720_v9  ;;  %6675 = vmatprep.subr.bf16.mxu1 %v16725_v57 }
 0x758   :  { %6635 = vmatpush1.bf16.msra.mxu0 %v16730_v40  ;;  %6676 = vmatpush1.bf16.msra.mxu1 %v16735_v13 }
 0x759   :  { %6636 = vmatprep.subr.bf16.mxu0 %v16744_v50  ;;  %6677 = vmatprep.subr.bf16.mxu1 %v16749_v15 }
 0x75c   :  { %6637 = vmatpush1.bf16.msra.mxu0 %v16754_v21  ;;  %6678 = vmatpush1.bf16.msra.mxu1 %v16759_v33 }
 0x75d   :  { %6864 = vmatprep.subr.bf16.mxu0 %v16768_v23  ;;  %6905 = vmatprep.subr.bf16.mxu1 %v16773_v4  ;;  %v6046_v23 = vrot.slane %v6037_v14, %v19081_v0 }
 0x7be   :  { %v5747_v5 = vpop.f32.mrf.mxu0  ;;  %v5788_v48 = vpop.f32.mrf.mxu1 }
 0x7c0   :  { %v5749_v41 = vpop.f32.mrf.mxu0  ;;  %v5790_v54 = vpop.f32.mrf.mxu1 }
 0x7c2   :  { %v5751_v45 = vpop.f32.mrf.mxu0  ;;  %v5792_v22 = vpop.f32.mrf.mxu1 }
 0x7c4   :  { %v5752_v29 = vpop.f32.mrf.mxu0  ;;  %v5793_v60 = vpop.f32.mrf.mxu1 }
 0x7de   :  { %v5989_v6 = vpop.f32.mrf.mxu0  ;;  %v6030_v31 = vpop.f32.mrf.mxu1 }
 0x7df   :  { %v5990_v33 = vadd.f32 %v5989_v6, %v5747_v5  ;;  %v6031_v5 = vadd.f32 %v6030_v31, %v5788_v48  ;;  %v6050_v6 = vrot.slane %v6037_v14, %v14171_v12 }
 0x7e0   :  { %v5991_v4 = vpop.f32.mrf.mxu0  ;;  %v6032_v21 = vpop.f32.mrf.mxu1 }
 0x7e1   :  { %v6059_v15 = vadd.f32 %v6042_v11, %v5990_v33  ;;  %v5992_v50 = vadd.f32 %v5991_v4, %v5749_v41  ;;  %v6033_v9 = vadd.f32 %v6032_v21, %v5790_v54  ;;  %v6061_v33 = vadd.f32 %v6050_v6, %v6031_v5  ;;  %v19124_v21 = vld [vmem:[#allocation29_spill] sm:$0xff]  ;;  %v19125_v41 = vld [vmem:[#allocation27_spill] sm:$0xff] }
 0x7e2   :  { %v5993_v13 = vpop.f32.mrf.mxu0  ;;  %v6034_v45 = vpop.f32.mrf.mxu1 }
 0x7e3   :  { %v11894_v22 = vmul.f32 -1.442695, %v6059_v15  ;;  %v6060_v29 = vadd.f32 %v6046_v23, %v5992_v50  ;;  %v6062_v44 = vadd.f32 %v6054_v51, %v6033_v9 }
 0x7e4   :  { %v5994_v60 = vpop.f32.mrf.mxu0  ;;  %v6035_v40 = vpop.f32.mrf.mxu1 }
 0x7e5   :  { %13592 = vpow2.f32 %v11894_v22  ;;  %v11895_v57 = vmul.f32 -1.442695, %v6060_v29  ;;  %v11896_v0 = vmul.f32 -1.442695, %v6062_v44 }
 0x7e7   :  { %13594 = vpow2.f32 %v11895_v57  ;;  %v19123_v57 = vld [vmem:[#allocation5_spill] sm:$0xff] }
 0x7e8   :  { %13596 = vpow2.f32 %v11896_v0  ;;  %v360_v23 = vadd.f32 %v19124_v21, %v19123_v57 }
 0x7f2   :  { %v13593_v8 = vpop.eup %13592 }
 0x7f3   :  { %v6066_v4 = vadd.f32 1.0, %v13593_v8 }
 0x7f4   :  { %v13595_v13 = vpop.eup %13594 }
 0x7f5   :  { %13598 = vrcp.f32 %v6066_v4  ;;  %v6072_v50 = vadd.f32 1.0, %v13595_v13  ;;  %v13597_v44 = vpop.eup %13596  ;;  %v19126_v13 = vld [vmem:[#allocation28_spill] sm:$0xff] }
 0x7f6   :  { %13600 = vtanh.f32 %v6061_v33  ;;  %v6079_v29 = vadd.f32 1.0, %v13597_v44 }
 0x7f7   :  { %13602 = vrcp.f32 %v6072_v50 }
 0x7fe   :  { %v6321_v40 = vpop.f32.mrf.mxu0  ;;  %v6362_v15 = vpop.f32.mrf.mxu1 }
 0x7ff   :  { %v6369_v51 = vadd.f32 %v6321_v40, %v19125_v41  ;;  %v6371_v50 = vadd.f32 %v6362_v15, %v19126_v13  ;;  %v16865_v13 = vld [vmem:[%s18544_s4 + $0x8c] ss:$16 sps:$4 sm:$0xff]  }
 0x800   :  { %v6323_v9 = vpop.f32.mrf.mxu0  ;;  %v16787_v48 = vpop.f32.mrf.mxu1 }
 0x801   :  { %v11930_v54 = vmul.f32 -1.442695, %v6369_v51  ;;  %v6370_v14 = vadd.f32 %v6323_v9, %v360_v23 }
 0x802   :  { %v13599_v8 = vpop.eup %13598  ;;  %v6325_v11 = vpop.f32.mrf.mxu0 }
 0x803   :  { %v6366_v0 = vpop.f32.mrf.mxu1  ;;  %v13601_v31 = vpop.eup %13600  ;;  %13604 = vpow2.f32 %v11930_v54  ;;  %v11931_v45 = vmul.f32 -1.442695, %v6370_v14  ;;  %v16802_v54 = vld [vmem:[%s18544_s4 + $0xe8] ss:$16 sps:$4 sm:$0xff]   ;;  %v16810_v14 = vld [vmem:[%s18544_s4 + $0xc4] ss:$16 sps:$4 sm:$0xff]  }
 0x804   :  { %v13603_v22 = vpop.eup %13602  ;;  %v6326_v60 = vpop.f32.mrf.mxu0  ;;  %v6083_v6 = vmul.f32 %v13601_v31, %v13599_v8  ;;  %v16815_v8 = vld [vmem:[%s18544_s4 + $0xcc] ss:$16 sps:$4 sm:$0xff]   ;;  %v16822_v11 = vld [vmem:[%s18544_s4 + $0xc0] ss:$16 sps:$4 sm:$0xff]   ;;  %v16827_v0 = vld [vmem:[%s18544_s4 + $0xc8] ss:$16 sps:$4 sm:$0xff]  }
 0x805   :  { %v6367_v5 = vpop.f32.mrf.mxu1  ;;  %v6082_v33 = vmul.f32 %v13603_v22, %v16435_v35  ;;  %13606 = vpow2.f32 %v11931_v45  ;;  %v16797_v35 = vld [vmem:[%s18544_s4 + $0xe0] ss:$16 sps:$4 sm:$0xff]   ;;  %v16834_v31 = vld [vmem:[%s18544_s4 + $0xa4] ss:$16 sps:$4 sm:$0xff]   ;;  %v16839_v45 = vld [vmem:[%s18544_s4 + $0xac] ss:$16 sps:$4 sm:$0xff]  }
 0x806   :  { %13608 = vrcp.f32 %v6079_v29  ;;  %v16848_v60 = vld [vmem:[%s18544_s4 + $0xa0] ss:$16 sps:$4 sm:$0xff]   ;;  %v16853_v5 = vld [vmem:[%s18544_s4 + $0xa8] ss:$16 sps:$4 sm:$0xff]  }
 0x807   :  { %v16790_v4 = vadd.f32 %v6083_v6, %v6082_v33  ;;  %v16860_v33 = vld [vmem:[%s18544_s4 + $0x84] ss:$16 sps:$4 sm:$0xff]  }
 0x809   :  { %13610 = vtanh.f32 %v16790_v4 }
 0x80a   :  { %13612 = vtanh.f32 %v6371_v50 }
 0x810   :  { %v13605_v40 = vpop.eup %13604 }
 0x811   :  { %v6376_v21 = vadd.f32 1.0, %v13605_v40 }
 0x812   :  { %v13607_v23 = vpop.eup %13606 }
 0x813   :  { %13614 = vrcp.f32 %v6376_v21  ;;  %v6382_v41 = vadd.f32 1.0, %v13607_v23  ;;  %v13609_v51 = vpop.eup %13608  ;;  %v16873_v21 = vld [vmem:[%s18544_s4 + $0x80] ss:$16 sps:$4 sm:$0xff]   ;;  %v16878_v23 = vld [vmem:[%s18544_s4 + $0x88] ss:$16 sps:$4 sm:$0xff]  }
 0x815   :  { %13616 = vrcp.f32 %v6382_v41 }
 0x816   :  { %v13611_v9 = vpop.eup %13610 }
 0x817   :  { %v6086_v44 = vmul.f32 %v13611_v9, %v13609_v51  ;;  %v13613_v22 = vpop.eup %13612  ;;  %v16892_v51 = vld [vmem:[%s18544_s4 + $0x6c] ss:$16 sps:$4 sm:$0xff]   ;;  %v16899_v9 = vld [vmem:[%s18544_s4 + $0x60] ss:$16 sps:$4 sm:$0xff]  }
 0x819   :  { %11897 = vst [vmem:[%s18546_s7 + $0x28] sm:$0xff] %v6086_v44  ;;  %v6429_v15 = vpack.c.bf16 %v6086_v44, %v6086_v44  ;;  %v16904_v44 = vld [vmem:[%s18544_s4 + $0x68] ss:$16 sps:$4 sm:$0xff]  }
 0x81b   :  { %6655 = vmatmul.mubr.bf16.vlgmr.msra.gmra.mxu0 %v6429_v15  ;;  %6696 = vmatmul.mubr.bf16.vlgmr.msra.gmra.mxu1 %v6429_v15  ;;  %v19127_v15 = vld [vmem:[#allocation6_spill] sm:$0xff] }
 0x81c   :  { %6865 = vmatpush1.bf16.msra.mxu0 %v16797_v35  ;;  %6906 = vmatpush1.bf16.msra.mxu1 %v16802_v54 }
 0x81d   :  { %6866 = vmatprep.subr.bf16.mxu0 %v16810_v14  ;;  %6907 = vmatprep.subr.bf16.mxu1 %v16815_v8 }
 0x81e   :  { %6896 = vmatprep.mubr.bf16.mxu0 %v18818_v63  ;;  %6937 = vmatprep.mubr.bf16.mxu1 %v18818_v63 }
 0x820   :  { %v13615_v29 = vpop.eup %13614  ;;  %6867 = vmatpush1.bf16.msra.mxu0 %v16822_v11  ;;  %6908 = vmatpush1.bf16.msra.mxu1 %v16827_v0 }
 0x821   :  { %v6393_v6 = vmul.f32 %v13615_v29, %v13613_v22  ;;  %6868 = vmatprep.subr.bf16.mxu0 %v16834_v31  ;;  %6909 = vmatprep.subr.bf16.mxu1 %v16839_v45  ;;  %v19128_v22 = vld [vmem:[#allocation30_spill] sm:$0xff] }
 0x822   :  { %v13617_v50 = vpop.eup %13616  ;;  %v453_v29 = vadd.f32 %v19128_v22, %v19127_v15  ;;  %v16926_v22 = vld [vmem:[%s18544_s4 + $0x40] ss:$16 sps:$4 sm:$0xff]   ;;  %v16931_v15 = vld [vmem:[%s18544_s4 + $0x48] ss:$16 sps:$4 sm:$0xff]  }
 0x823   :  { %v6392_v40 = vmul.f32 %v13617_v50, %v16476_v38  ;;  %v16887_v38 = vld [vmem:[%s18544_s4 + $0x64] ss:$16 sps:$4 sm:$0xff]   ;;  %v16918_v50 = vld [vmem:[%s18544_s4 + $0x4c] ss:$16 sps:$4 sm:$0xff]   ;;  %19131 = vst [vmem:[#allocation90_spill] sm:$0xff] %v16931_v15 }
 0x824   :  { %6869 = vmatpush1.bf16.msra.mxu0 %v16848_v60  ;;  %6910 = vmatpush1.bf16.msra.mxu1 %v16853_v5  ;;  %19130 = vst [vmem:[#allocation89_spill] sm:$0xff] %v16918_v50 }
 0x825   :  { %v16880_v41 = vadd.f32 %v6393_v6, %v6392_v40  ;;  %6870 = vmatprep.subr.bf16.mxu0 %v16860_v33  ;;  %6911 = vmatprep.subr.bf16.mxu1 %v16865_v13  ;;  %v16913_v6 = vld [vmem:[%s18544_s4 + $0x44] ss:$16 sps:$4 sm:$0xff]   ;;  %v6372_v40 = vadd.f32 %v16787_v48, %v453_v29  ;;  %v16943_v29 = vld [vmem:[%s18544_s4 + $0x2c] ss:$16 sps:$4 sm:$0xff]  }
 0x826   :  { %19129 = vst [vmem:[#allocation88_spill] sm:$0xff] %v16913_v6  ;;  %v16938_v48 = vld [vmem:[%s18544_s4 + $0x24] ss:$16 sps:$4 sm:$0xff]   ;;  %19133 = vst [vmem:[#allocation92_spill] sm:$0xff] %v16943_v29 }
 0x827   :  { %19132 = vst [vmem:[#allocation91_spill] sm:$0xff] %v16938_v48  ;;  %v11932_v57 = vmul.f32 -1.442695, %v6372_v40  ;;  %v16962_v40 = vld [vmem:[%s18544_s4 + $0x4] ss:$16 sps:$4 sm:$0xff]  }
 0x828   :  { %6871 = vmatpush1.bf16.msra.mxu0 %v16873_v21  ;;  %6912 = vmatpush1.bf16.msra.mxu1 %v16878_v23  ;;  %19135 = vst [vmem:[#allocation17_spill] sm:$0xff] %v16962_v40 }
 0x829   :  { %6872 = vmatprep.subr.bf16.mxu0 %v16887_v38  ;;  %6913 = vmatprep.subr.bf16.mxu1 %v16892_v51  ;;  %13618 = vpow2.f32 %v11932_v57  ;;  %v16986_v57 = vld [vmem:[%s18541_s2 + $0xe4] ss:$16 sps:$4 sm:$0xff]  }
 0x82a   :  { %19139 = vst [vmem:[#allocation21_spill] sm:$0xff] %v16986_v57  ;;  %13620 = vtanh.f32 %v16880_v41 }
 0x82c   :  { %6873 = vmatpush1.bf16.msra.mxu0 %v16899_v9  ;;  %6914 = vmatpush1.bf16.msra.mxu1 %v16904_v44 }
 0x82d   :  { %6874 = vmatprep.subr.bf16.mxu0 %v16913_v6  ;;  %6915 = vmatprep.subr.bf16.mxu1 %v16918_v50  ;;  %v16950_v6 = vld [vmem:[%s18544_s4 + $0x20] ss:$16 sps:$4 sm:$0xff]   ;;  %v16955_v50 = vld [vmem:[%s18544_s4 + $0x28] ss:$16 sps:$4 sm:$0xff]  }
 0x82e   :  { %19134 = vst [vmem:[#allocation15_spill] sm:$0xff] %v16955_v50 }
 0x830   :  { %6875 = vmatpush1.bf16.msra.mxu0 %v16926_v22  ;;  %6916 = vmatpush1.bf16.msra.mxu1 %v16931_v15  ;;  %v16967_v15 = vld [vmem:[%s18544_s4 + $0xc] ss:$16 sps:$4 sm:$0xff]  }
 0x831   :  { %6876 = vmatprep.subr.bf16.mxu0 %v16938_v48  ;;  %6917 = vmatprep.subr.bf16.mxu1 %v16943_v29  ;;  %19136 = vst [vmem:[#allocation93_spill] sm:$0xff] %v16967_v15  ;;  %v16974_v48 = vld [vmem:[%s18544_s4] ss:$16 sps:$4 sm:$0xff]   ;;  %v16979_v29 = vld [vmem:[%s18544_s4 + $0x8] ss:$16 sps:$4 sm:$0xff]  }
 0x832   :  { %19137 = vst [vmem:[#allocation18_spill] sm:$0xff] %v16974_v48  ;;  %19138 = vst [vmem:[#allocation16_spill] sm:$0xff] %v16979_v29 }
 0x834   :  { %6877 = vmatpush1.bf16.msra.mxu0 %v16950_v6  ;;  %6918 = vmatpush1.bf16.msra.mxu1 %v16955_v50  ;;  %v16991_v50 = vld [vmem:[%s18541_s2 + $0xec] ss:$16 sps:$4 sm:$0xff]  }
 0x835   :  { %6878 = vmatprep.subr.bf16.mxu0 %v16962_v40  ;;  %6919 = vmatprep.subr.bf16.mxu1 %v16967_v15  ;;  %19140 = vst [vmem:[#allocation19_spill] sm:$0xff] %v16991_v50  ;;  %v16998_v40 = vld [vmem:[%s18541_s2 + $0xe0] ss:$16 sps:$4 sm:$0xff]   ;;  %v17003_v15 = vld [vmem:[%s18541_s2 + $0xe8] ss:$16 sps:$4 sm:$0xff]  }
 0x836   :  { %19141 = vst [vmem:[#allocation22_spill] sm:$0xff] %v17003_v15 }
 0x838   :  { %6879 = vmatpush1.bf16.msra.mxu0 %v16974_v48  ;;  %6920 = vmatpush1.bf16.msra.mxu1 %v16979_v29  ;;  %v17010_v48 = vld [vmem:[%s18541_s2 + $0xc4] ss:$16 sps:$4 sm:$0xff]   ;;  %v17015_v29 = vld [vmem:[%s18541_s2 + $0xcc] ss:$16 sps:$4 sm:$0xff]  }
 0x839   :  { %7196 = vmatprep.subr.bf16.mxu0 %v16986_v57  ;;  %7237 = vmatprep.subr.bf16.mxu1 %v16991_v50  ;;  %19142 = vst [vmem:[#allocation20_spill] sm:$0xff] %v17010_v48  ;;  %19143 = vst [vmem:[#allocation94_spill] sm:$0xff] %v17015_v29  ;;  %v17024_v50 = vld [vmem:[%s18541_s2 + $0xc0] ss:$16 sps:$4 sm:$0xff]   ;;  %v17029_v57 = vld [vmem:[%s18541_s2 + $0xc8] ss:$16 sps:$4 sm:$0xff]  }
 0x83a   :  { %19144 = vst [vmem:[#allocation7_spill] sm:$0xff] %v17024_v50  ;;  %19145 = vst [vmem:[#allocation9_spill] sm:$0xff] %v17029_v57 }
 0x83b   :  { %6897 = vmatmul.mubr.bf16.vlgmr.msra.gmra.mxu0 %v16567_v58  ;;  %6938 = vmatmul.mubr.bf16.vlgmr.msra.gmra.mxu1 %v16567_v58  ;;  %v17036_v58 = vld [vmem:[%s18541_s2 + $0xa4] ss:$16 sps:$4 sm:$0xff]  }
 0x83c   :  { %7197 = vmatpush1.bf16.msra.mxu0 %v16998_v40  ;;  %7238 = vmatpush1.bf16.msra.mxu1 %v17003_v15  ;;  %19146 = vst [vmem:[#allocation10_spill] sm:$0xff] %v17036_v58  ;;  %v13619_v15 = vpop.eup %13618 }
 0x83d   :  { %7198 = vmatprep.subr.bf16.mxu0 %v17010_v48  ;;  %7239 = vmatprep.subr.bf16.mxu1 %v17015_v29  ;;  %v17045_v48 = vld [vmem:[%s18541_s2 + $0xa0] ss:$16 sps:$4 sm:$0xff]   ;;  %v17052_v29 = vld [vmem:[%s18541_s2 + $0x84] ss:$16 sps:$4 sm:$0xff]  }
 0x83e   :  { %7228 = vmatprep.mubr.bf16.mxu0 %v18818_v63  ;;  %7269 = vmatprep.mubr.bf16.mxu1 %v18818_v63 }
 0x840   :  { %7199 = vmatpush1.bf16.msra.mxu0 %v17024_v50  ;;  %7240 = vmatpush1.bf16.msra.mxu1 %v17029_v57  ;;  %v17057_v50 = vld [vmem:[%s18541_s2 + $0x8c] ss:$16 sps:$4 sm:$0xff]   ;;  %v6389_v57 = vadd.f32 1.0, %v13619_v15  ;;  %v17084_v15 = vld [vmem:[%s18541_s2 + $0x60] ss:$16 sps:$4 sm:$0xff]  }
 0x841   :  { %7200 = vmatprep.subr.bf16.mxu0 %v17036_v58  ;;  %7241 = vmatprep.subr.bf16.mxu1 %v16491_v52  ;;  %19147 = vst [vmem:[#allocation8_spill] sm:$0xff] %v17057_v50  ;;  %v17064_v58 = vld [vmem:[%s18541_s2 + $0x80] ss:$16 sps:$4 sm:$0xff]   ;;  %v17069_v52 = vld [vmem:[%s18541_s2 + $0x88] ss:$16 sps:$4 sm:$0xff]   ;;  %19148 = vst [vmem:[#allocation13_spill] sm:$0xff] %v17084_v15 }
 0x842   :  { %13622 = vrcp.f32 %v6389_v57  ;;  %v17098_v57 = vld [vmem:[%s18541_s2 + $0x40] ss:$16 sps:$4 sm:$0xff]  }
 0x844   :  { %7201 = vmatpush1.bf16.msra.mxu0 %v17045_v48  ;;  %7242 = vmatpush1.bf16.msra.mxu1 %v16500_v10  ;;  %v17077_v10 = vld [vmem:[%s18541_s2 + $0x64] ss:$16 sps:$4 sm:$0xff]  }
 0x845   :  { %7202 = vmatprep.subr.bf16.mxu0 %v17052_v29  ;;  %7243 = vmatprep.subr.bf16.mxu1 %v17057_v50  ;;  %v17091_v50 = vld [vmem:[%s18541_s2 + $0x44] ss:$16 sps:$4 sm:$0xff]  }
 0x846   :  { %19149 = vst [vmem:[#allocation11_spill] sm:$0xff] %v17091_v50 }
 0x848   :  { %7203 = vmatpush1.bf16.msra.mxu0 %v17064_v58  ;;  %7244 = vmatpush1.bf16.msra.mxu1 %v17069_v52 }
 0x849   :  { %7204 = vmatprep.subr.bf16.mxu0 %v17077_v10  ;;  %7245 = vmatprep.subr.bf16.mxu1 %v16511_v49  ;;  %v17105_v49 = vld [vmem:[%s18541_s2 + $0x24] ss:$16 sps:$4 sm:$0xff]  }
 0x84a   :  { %19150 = vst [vmem:[#allocation14_spill] sm:$0xff] %v17105_v49 }
 0x84c   :  { %7205 = vmatpush1.bf16.msra.mxu0 %v17084_v15  ;;  %7246 = vmatpush1.bf16.msra.mxu1 %v16519_v25  ;;  %v17112_v25 = vld [vmem:[%s18541_s2 + $0x20] ss:$16 sps:$4 sm:$0xff]  }
 0x84d   :  { %7206 = vmatprep.subr.bf16.mxu0 %v17091_v50  ;;  %7247 = vmatprep.subr.bf16.mxu1 %v16526_v27  ;;  %v17119_v27 = vld [vmem:[%s18541_s2 + $0x4] ss:$16 sps:$4 sm:$0xff]   ;;  %v13621_v50 = vpop.eup %13620 }
 0x84f   :  { %v13623_v15 = vpop.eup %13622 }
 0x850   :  { %7207 = vmatpush1.bf16.msra.mxu0 %v17098_v57  ;;  %7248 = vmatpush1.bf16.msra.mxu1 %v16533_v1  ;;  %v17126_v1 = vld [vmem:[%s18541_s2] ss:$16 sps:$4 sm:$0xff]  }
 0x851   :  { %7208 = vmatprep.subr.bf16.mxu0 %v17105_v49  ;;  %7249 = vmatprep.subr.bf16.mxu1 %v16540_v3  ;;  %v6396_v3 = vmul.f32 %v13623_v15, %v13621_v50  ;;  %v19164_v15 = vld [vmem:[#allocation4_spill] sm:$0xff] }
 0x853   :  { %v17132_v49 = vpack.c.bf16 %v6396_v3, %v6396_v3 }
 0x854   :  { %7209 = vmatpush1.bf16.msra.mxu0 %v17112_v25  ;;  %7250 = vmatpush1.bf16.msra.mxu1 %v16547_v43  ;;  %v19151_v43 = vld [vmem:[#allocation76_spill] sm:$0xff] }
 0x855   :  { %7210 = vmatprep.subr.bf16.mxu0 %v17119_v27  ;;  %7251 = vmatprep.subr.bf16.mxu1 %v16554_v32  ;;  %v19152_v32 = vld [vmem:[#allocation77_spill] sm:$0xff] }
 0x858   :  { %7211 = vmatpush1.bf16.msra.mxu0 %v17126_v1  ;;  %7252 = vmatpush1.bf16.msra.mxu1 %v16561_v7  ;;  %v19153_v7 = vld [vmem:[#allocation78_spill] sm:$0xff] }
 0x859   :  { %7531 = vmatprep.subr.bf16.mxu0 %v16576_v59  ;;  %7572 = vmatprep.subr.bf16.mxu1 %v16581_v20  ;;  %v19154_v59 = vld [vmem:[#allocation79_spill] sm:$0xff]  ;;  %v19155_v20 = vld [vmem:[#allocation80_spill] sm:$0xff] }
 0x85b   :  { %7229 = vmatmul.mubr.bf16.vlgmr.msra.gmra.mxu0 %v17132_v49  ;;  %7270 = vmatmul.mubr.bf16.vlgmr.msra.gmra.mxu1 %v17132_v49 }
 0x85c   :  { %7532 = vmatpush1.bf16.msra.mxu0 %v16586_v62  ;;  %7573 = vmatpush1.bf16.msra.mxu1 %v16591_v47  ;;  %v19156_v62 = vld [vmem:[#allocation81_spill] sm:$0xff]  ;;  %v19157_v47 = vld [vmem:[#allocation82_spill] sm:$0xff] }
 0x85d   :  { %7533 = vmatprep.subr.bf16.mxu0 %v16600_v56  ;;  %7574 = vmatprep.subr.bf16.mxu1 %v16605_v42  ;;  %v19158_v56 = vld [vmem:[#allocation83_spill] sm:$0xff]  ;;  %v19159_v42 = vld [vmem:[#allocation84_spill] sm:$0xff] }
 0x85e   :  { %7563 = vmatprep.mubr.bf16.mxu0 %v18818_v63  ;;  %7604 = vmatprep.mubr.bf16.mxu1 %v18818_v63 }
 0x860   :  { %7534 = vmatpush1.bf16.msra.mxu0 %v16610_v34  ;;  %7575 = vmatpush1.bf16.msra.mxu1 %v16615_v16  ;;  %v19160_v34 = vld [vmem:[#allocation85_spill] sm:$0xff]  ;;  %v19161_v16 = vld [vmem:[#allocation86_spill] sm:$0xff] }
 0x861   :  { %7535 = vmatprep.subr.bf16.mxu0 %v16624_v37  ;;  %7576 = vmatprep.subr.bf16.mxu1 %v16629_v61  ;;  %v19162_v37 = vld [vmem:[#allocation87_spill] sm:$0xff] }
 0x864   :  { %7536 = vmatpush1.bf16.msra.mxu0 %v16634_v55  ;;  %7577 = vmatpush1.bf16.msra.mxu1 %v16639_v36 }
 0x865   :  { %7537 = vmatprep.subr.bf16.mxu0 %v16648_v46  ;;  %7578 = vmatprep.subr.bf16.mxu1 %v16653_v26 }
 0x868   :  { %7538 = vmatpush1.bf16.msra.mxu0 %v16658_v53  ;;  %7579 = vmatpush1.bf16.msra.mxu1 %v16663_v17 }
 0x869   :  { %7539 = vmatprep.subr.bf16.mxu0 %v16672_v18  ;;  %7580 = vmatprep.subr.bf16.mxu1 %v16677_v19  ;;  %v6946_v19 = vld [vmem:[%s18545_s6] sm:$0xf] }
 0x86a   :  { %v6955_v3 = vrot.slane %v6946_v19, %v19164_v15 }
 0x86c   :  { %7540 = vmatpush1.bf16.msra.mxu0 %v16682_v39  ;;  %7581 = vmatpush1.bf16.msra.mxu1 %v16687_v28  ;;  %v19163_v39 = vld [vmem:[#allocation3_spill] sm:$0xff] }
 0x86d   :  { %7541 = vmatprep.subr.bf16.mxu0 %v16696_v30  ;;  %7582 = vmatprep.subr.bf16.mxu1 %v16701_v2  ;;  %v6951_v28 = vrot.slane %v6946_v19, %v19163_v39 }
 0x870   :  { %7542 = vmatpush1.bf16.msra.mxu0 %v19151_v43  ;;  %7583 = vmatpush1.bf16.msra.mxu1 %v19152_v32 }
 0x871   :  { %7543 = vmatprep.subr.bf16.mxu0 %v19153_v7  ;;  %7584 = vmatprep.subr.bf16.mxu1 %v19154_v59 }
 0x874   :  { %7544 = vmatpush1.bf16.msra.mxu0 %v19155_v20  ;;  %7585 = vmatpush1.bf16.msra.mxu1 %v19156_v62 }
 0x875   :  { %7545 = vmatprep.subr.bf16.mxu0 %v19157_v47  ;;  %7586 = vmatprep.subr.bf16.mxu1 %v19158_v56 }
 0x878   :  { %7546 = vmatpush1.bf16.msra.mxu0 %v19159_v42  ;;  %7587 = vmatpush1.bf16.msra.mxu1 %v19160_v34 }
 0x879   :  { %7773 = vmatprep.subr.bf16.mxu0 %v19161_v16  ;;  %7814 = vmatprep.subr.bf16.mxu1 %v19162_v37 }
 0x8db   :  { %v6656_v61 = vpop.f32.mrf.mxu0  ;;  %v6697_v55 = vpop.f32.mrf.mxu1 }
 0x8dd   :  { %v6658_v36 = vpop.f32.mrf.mxu0  ;;  %v6699_v46 = vpop.f32.mrf.mxu1 }
 0x8df   :  { %v6660_v26 = vpop.f32.mrf.mxu0  ;;  %v6701_v53 = vpop.f32.mrf.mxu1 }
 0x8e0   :  { %v6963_v26 = vrot.slane %v6946_v19, %v14194_v24 }
 0x8e1   :  { %v6661_v17 = vpop.f32.mrf.mxu0  ;;  %v6702_v18 = vpop.f32.mrf.mxu1 }
 0x8e2   :  { %v6959_v17 = vrot.slane %v6946_v19, %v14171_v12 }
 0x8fb   :  { %v6898_v30 = vpop.f32.mrf.mxu0  ;;  %v6939_v2 = vpop.f32.mrf.mxu1 }
 0x8fc   :  { %v6899_v50 = vadd.f32 %v6898_v30, %v6656_v61  ;;  %v6940_v61 = vadd.f32 %v6939_v2, %v6697_v55  ;;  %v19166_v2 = vld [vmem:[#allocation33_spill] sm:$0xff] }
 0x8fd   :  { %v6900_v43 = vpop.f32.mrf.mxu0  ;;  %v6941_v32 = vpop.f32.mrf.mxu1 }
 0x8fe   :  { %v6968_v7 = vadd.f32 %v6951_v28, %v6899_v50  ;;  %v6901_v59 = vadd.f32 %v6900_v43, %v6658_v36  ;;  %v6942_v37 = vadd.f32 %v6941_v32, %v6699_v46  ;;  %v6970_v28 = vadd.f32 %v6959_v17, %v6940_v61 }
 0x8ff   :  { %v6902_v20 = vpop.f32.mrf.mxu0  ;;  %v6943_v62 = vpop.f32.mrf.mxu1 }
 0x900   :  { %v11997_v47 = vmul.f32 -1.442695, %v6968_v7  ;;  %v6969_v56 = vadd.f32 %v6955_v3, %v6901_v59  ;;  %v6971_v53 = vadd.f32 %v6963_v26, %v6942_v37  ;;  %v19165_v59 = vld [vmem:[#allocation31_spill] sm:$0xff] }
 0x901   :  { %v6903_v42 = vpop.f32.mrf.mxu0  ;;  %v6944_v34 = vpop.f32.mrf.mxu1 }
 0x902   :  { %13624 = vpow2.f32 %v11997_v47  ;;  %v11998_v16 = vmul.f32 -1.442695, %v6969_v56  ;;  %v11999_v18 = vmul.f32 -1.442695, %v6971_v53 }
 0x904   :  { %13626 = vpow2.f32 %v11998_v16 }
 0x905   :  { %13628 = vpow2.f32 %v11999_v18 }
 0x90f   :  { %v13625_v30 = vpop.eup %13624 }
 0x910   :  { %v6975_v36 = vadd.f32 1.0, %v13625_v30 }
 0x911   :  { %v13627_v50 = vpop.eup %13626 }
 0x912   :  { %13630 = vrcp.f32 %v6975_v36  ;;  %v6981_v3 = vadd.f32 1.0, %v13627_v50  ;;  %v13629_v62 = vpop.eup %13628 }
 0x913   :  { %13632 = vtanh.f32 %v6970_v28  ;;  %v6988_v26 = vadd.f32 1.0, %v13629_v62  ;;  %v19167_v28 = vld [vmem:[#allocation32_spill] sm:$0xff] }
 0x914   :  { %13634 = vrcp.f32 %v6981_v3 }
 0x91b   :  { %v7230_v43 = vpop.f32.mrf.mxu0  ;;  %v7271_v7 = vpop.f32.mrf.mxu1 }
 0x91c   :  { %v7278_v46 = vadd.f32 %v7230_v43, %v19165_v59  ;;  %v7280_v36 = vadd.f32 %v7271_v7, %v19167_v28 }
 0x91d   :  { %v7232_v32 = vpop.f32.mrf.mxu0  ;;  %v7273_v20 = vpop.f32.mrf.mxu1 }
 0x91e   :  { %v12033_v55 = vmul.f32 -1.442695, %v7278_v46  ;;  %v7279_v19 = vadd.f32 %v7232_v32, %v19166_v2 }
 0x91f   :  { %v13631_v47 = vpop.eup %13630  ;;  %v7234_v56 = vpop.f32.mrf.mxu0 }
 0x920   :  { %v7275_v42 = vpop.f32.mrf.mxu1  ;;  %v13633_v34 = vpop.eup %13632  ;;  %13636 = vpow2.f32 %v12033_v55  ;;  %v12034_v16 = vmul.f32 -1.442695, %v7279_v19  ;;  %v19186_v56 = vld [vmem:[#allocation10_spill] sm:$0xff] }
 0x921   :  { %v13635_v37 = vpop.eup %13634  ;;  %v7235_v53 = vpop.f32.mrf.mxu0  ;;  %v6992_v17 = vmul.f32 %v13633_v34, %v13631_v47  ;;  %v19184_v47 = vld [vmem:[#allocation7_spill] sm:$0xff]  ;;  %v19187_v34 = vld [vmem:[#allocation8_spill] sm:$0xff] }
 0x922   :  { %v7276_v61 = vpop.f32.mrf.mxu1  ;;  %v6991_v18 = vmul.f32 %v13635_v37, %v16790_v4  ;;  %13638 = vpow2.f32 %v12034_v16  ;;  %v17257_v16 = vld [vmem:[%s18541_s2 + $0x6c] ss:$16 sps:$4 sm:$0xff]   ;;  %v19188_v37 = vld [vmem:[#allocation13_spill] sm:$0xff] }
 0x923   :  { %13640 = vrcp.f32 %v6988_v26  ;;  %v17292_v26 = vld [vmem:[%s18541_s2 + $0x28] ss:$16 sps:$4 sm:$0xff]   ;;  %v17299_v61 = vld [vmem:[%s18541_s2 + $0xc] ss:$16 sps:$4 sm:$0xff]  }
 0x924   :  { %v17182_v30 = vadd.f32 %v6992_v17, %v6991_v18  ;;  %v19190_v53 = vld [vmem:[#allocation14_spill] sm:$0xff] }
 0x926   :  { %13642 = vtanh.f32 %v17182_v30 }
 0x927   :  { %13644 = vtanh.f32 %v7280_v36 }
 0x92d   :  { %v13637_v50 = vpop.eup %13636 }
 0x92e   :  { %v7285_v3 = vadd.f32 1.0, %v13637_v50  ;;  %v17336_v50 = vld [vmem:[%s18542_s5 + $0xe8] ss:$16 sps:$4 sm:$0xff]  }
 0x92f   :  { %v13639_v43 = vpop.eup %13638 }
 0x930   :  { %13646 = vrcp.f32 %v7285_v3  ;;  %v7291_v59 = vadd.f32 1.0, %v13639_v43  ;;  %v13641_v46 = vpop.eup %13640  ;;  %v17345_v3 = vld [vmem:[%s18542_s5 + $0xc4] ss:$16 sps:$4 sm:$0xff]   ;;  %v17350_v43 = vld [vmem:[%s18542_s5 + $0xcc] ss:$16 sps:$4 sm:$0xff]  }
 0x932   :  { %13648 = vrcp.f32 %v7291_v59  ;;  %v17355_v59 = vld [vmem:[%s18542_s5 + $0xc0] ss:$16 sps:$4 sm:$0xff]  }
 0x933   :  { %v13643_v32 = vpop.eup %13642 }
 0x934   :  { %v6995_v62 = vmul.f32 %v13643_v32, %v13641_v46  ;;  %v13645_v7 = vpop.eup %13644  ;;  %v17360_v46 = vld [vmem:[%s18542_s5 + $0xc8] ss:$16 sps:$4 sm:$0xff]   ;;  %v17369_v32 = vld [vmem:[%s18542_s5 + $0xa4] ss:$16 sps:$4 sm:$0xff]  }
 0x936   :  { %12000 = vst [vmem:[%s18546_s7 + $0x30] sm:$0xff] %v6995_v62  ;;  %v7338_v4 = vpack.c.bf16 %v6995_v62, %v6995_v62  ;;  %v17374_v62 = vld [vmem:[%s18542_s5 + $0xac] ss:$16 sps:$4 sm:$0xff]  }
 0x938   :  { %7564 = vmatmul.mubr.bf16.vlgmr.msra.gmra.mxu0 %v7338_v4  ;;  %7605 = vmatmul.mubr.bf16.vlgmr.msra.gmra.mxu1 %v7338_v4  ;;  %v17379_v4 = vld [vmem:[%s18542_s5 + $0xa0] ss:$16 sps:$4 sm:$0xff]  }
 0x939   :  { %7774 = vmatpush1.bf16.msra.mxu0 %v16797_v35  ;;  %7815 = vmatpush1.bf16.msra.mxu1 %v16802_v54 }
 0x93a   :  { %7775 = vmatprep.subr.bf16.mxu0 %v16810_v14  ;;  %7816 = vmatprep.subr.bf16.mxu1 %v16815_v8  ;;  %v19168_v8 = vld [vmem:[#allocation34_spill] sm:$0xff] }
 0x93b   :  { %7805 = vmatprep.mubr.bf16.mxu0 %v18818_v63  ;;  %7846 = vmatprep.mubr.bf16.mxu1 %v18818_v63 }
 0x93d   :  { %v13647_v55 = vpop.eup %13646  ;;  %7776 = vmatpush1.bf16.msra.mxu0 %v16822_v11  ;;  %7817 = vmatpush1.bf16.msra.mxu1 %v16827_v0  ;;  %v7281_v11 = vadd.f32 %v7273_v20, %v19168_v8  ;;  %v19169_v0 = vld [vmem:[#allocation88_spill] sm:$0xff]  ;;  %v17417_v8 = vld [vmem:[%s18542_s5 + $0x64] ss:$16 sps:$4 sm:$0xff]  }
 0x93e   :  { %v7302_v2 = vmul.f32 %v13647_v55, %v13645_v7  ;;  %7777 = vmatprep.subr.bf16.mxu0 %v16834_v31  ;;  %7818 = vmatprep.subr.bf16.mxu1 %v16839_v45  ;;  %v19170_v31 = vld [vmem:[#allocation89_spill] sm:$0xff]  ;;  %v17236_v20 = vld [vmem:[%s18541_s2 + $0xac] ss:$16 sps:$4 sm:$0xff]   ;;  %v17384_v7 = vld [vmem:[%s18542_s5 + $0xa8] ss:$16 sps:$4 sm:$0xff]  }
 0x93f   :  { %v13649_v35 = vpop.eup %13648  ;;  %v12035_v45 = vmul.f32 -1.442695, %v7281_v11  ;;  %v17393_v55 = vld [vmem:[%s18542_s5 + $0x84] ss:$16 sps:$4 sm:$0xff]   ;;  %v17422_v11 = vld [vmem:[%s18542_s5 + $0x6c] ss:$16 sps:$4 sm:$0xff]  }
 0x940   :  { %v7301_v54 = vmul.f32 %v13649_v35, %v16880_v41  ;;  %v19177_v41 = vld [vmem:[#allocation18_spill] sm:$0xff]  ;;  %v17403_v35 = vld [vmem:[%s18542_s5 + $0x80] ss:$16 sps:$4 sm:$0xff]  }
 0x941   :  { %7778 = vmatpush1.bf16.msra.mxu0 %v16848_v60  ;;  %7819 = vmatpush1.bf16.msra.mxu1 %v16853_v5  ;;  %v19171_v60 = vld [vmem:[#allocation90_spill] sm:$0xff]  ;;  %v19172_v5 = vld [vmem:[#allocation91_spill] sm:$0xff]  ;;  %13650 = vpow2.f32 %v12035_v45 }
 0x942   :  { %v17202_v14 = vadd.f32 %v7302_v2, %v7301_v54  ;;  %7779 = vmatprep.subr.bf16.mxu0 %v16860_v33  ;;  %7820 = vmatprep.subr.bf16.mxu1 %v16865_v13  ;;  %v19173_v33 = vld [vmem:[#allocation92_spill] sm:$0xff]  ;;  %v19174_v13 = vld [vmem:[#allocation15_spill] sm:$0xff] }
 0x943   :  { %v17398_v2 = vld [vmem:[%s18542_s5 + $0x8c] ss:$16 sps:$4 sm:$0xff]   ;;  %v17408_v54 = vld [vmem:[%s18542_s5 + $0x88] ss:$16 sps:$4 sm:$0xff]   ;;  %v17441_v45 = vld [vmem:[%s18542_s5 + $0x44] ss:$16 sps:$4 sm:$0xff]  }
 0x944   :  { %13652 = vtanh.f32 %v17202_v14 }
 0x945   :  { %7780 = vmatpush1.bf16.msra.mxu0 %v16873_v21  ;;  %7821 = vmatpush1.bf16.msra.mxu1 %v16878_v23  ;;  %v19175_v21 = vld [vmem:[#allocation17_spill] sm:$0xff] }
 0x946   :  { %7781 = vmatprep.subr.bf16.mxu0 %v16887_v38  ;;  %7822 = vmatprep.subr.bf16.mxu1 %v16892_v51  ;;  %v19176_v23 = vld [vmem:[#allocation93_spill] sm:$0xff]  ;;  %v19178_v38 = vld [vmem:[#allocation16_spill] sm:$0xff] }
 0x947   :  { %v19179_v51 = vld [vmem:[#allocation21_spill] sm:$0xff] }
 0x949   :  { %7782 = vmatpush1.bf16.msra.mxu0 %v16899_v9  ;;  %7823 = vmatpush1.bf16.msra.mxu1 %v16904_v44  ;;  %v19180_v9 = vld [vmem:[#allocation19_spill] sm:$0xff]  ;;  %v19181_v44 = vld [vmem:[#allocation22_spill] sm:$0xff] }
 0x94a   :  { %7783 = vmatprep.subr.bf16.mxu0 %v19169_v0  ;;  %7824 = vmatprep.subr.bf16.mxu1 %v19170_v31  ;;  %v17427_v0 = vld [vmem:[%s18542_s5 + $0x60] ss:$16 sps:$4 sm:$0xff]   ;;  %v17432_v31 = vld [vmem:[%s18542_s5 + $0x68] ss:$16 sps:$4 sm:$0xff]  }
 0x94d   :  { %7784 = vmatpush1.bf16.msra.mxu0 %v16926_v22  ;;  %7825 = vmatpush1.bf16.msra.mxu1 %v19171_v60  ;;  %v19183_v22 = vld [vmem:[#allocation94_spill] sm:$0xff] }
 0x94e   :  { %7785 = vmatprep.subr.bf16.mxu0 %v19172_v5  ;;  %7826 = vmatprep.subr.bf16.mxu1 %v19173_v33  ;;  %v13651_v19 = vpop.eup %13650  ;;  %v17446_v60 = vld [vmem:[%s18542_s5 + $0x4c] ss:$16 sps:$4 sm:$0xff]   ;;  %v17451_v5 = vld [vmem:[%s18542_s5 + $0x40] ss:$16 sps:$4 sm:$0xff]   ;;  %v17456_v33 = vld [vmem:[%s18542_s5 + $0x48] ss:$16 sps:$4 sm:$0xff]  }
 0x94f   :  { %v7298_v42 = vadd.f32 1.0, %v13651_v19  ;;  %19191 = vst [vmem:[#allocation12_spill] sm:$0xff] %v17451_v5  ;;  %19192 = vst [vmem:[#allocation47_spill] sm:$0xff] %v17456_v33 }
 0x951   :  { %7786 = vmatpush1.bf16.msra.mxu0 %v16950_v6  ;;  %7827 = vmatpush1.bf16.msra.mxu1 %v19174_v13  ;;  %v19182_v6 = vld [vmem:[#allocation20_spill] sm:$0xff]  ;;  %13654 = vrcp.f32 %v7298_v42  ;;  %v13653_v17 = vpop.eup %13652  ;;  %v17465_v13 = vld [vmem:[%s18542_s5 + $0x24] ss:$16 sps:$4 sm:$0xff]  }
 0x952   :  { %7787 = vmatprep.subr.bf16.mxu0 %v19175_v21  ;;  %7828 = vmatprep.subr.bf16.mxu1 %v19176_v23  ;;  %19193 = vst [vmem:[#allocation48_spill] sm:$0xff] %v17465_v13  ;;  %v17470_v21 = vld [vmem:[%s18542_s5 + $0x2c] ss:$16 sps:$4 sm:$0xff]   ;;  %v17475_v23 = vld [vmem:[%s18542_s5 + $0x20] ss:$16 sps:$4 sm:$0xff]  }
 0x953   :  { %19194 = vst [vmem:[#allocation49_spill] sm:$0xff] %v17470_v21  ;;  %19195 = vst [vmem:[#allocation50_spill] sm:$0xff] %v17475_v23 }
 0x955   :  { %7788 = vmatpush1.bf16.msra.mxu0 %v19177_v41  ;;  %7829 = vmatpush1.bf16.msra.mxu1 %v19178_v38  ;;  %v17480_v41 = vld [vmem:[%s18542_s5 + $0x28] ss:$16 sps:$4 sm:$0xff]   ;;  %v17489_v38 = vld [vmem:[%s18542_s5 + $0x4] ss:$16 sps:$4 sm:$0xff]  }
 0x956   :  { %8105 = vmatprep.subr.bf16.mxu0 %v19179_v51  ;;  %8146 = vmatprep.subr.bf16.mxu1 %v19180_v9  ;;  %19196 = vst [vmem:[#allocation23_spill] sm:$0xff] %v17480_v41  ;;  %19197 = vst [vmem:[#allocation25_spill] sm:$0xff] %v17489_v38  ;;  %v17494_v51 = vld [vmem:[%s18542_s5 + $0xc] ss:$16 sps:$4 sm:$0xff]   ;;  %v17499_v9 = vld [vmem:[%s18542_s5] ss:$16 sps:$4 sm:$0xff]  }
 0x957   :  { %19198 = vst [vmem:[#allocation24_spill] sm:$0xff] %v17494_v51  ;;  %19199 = vst [vmem:[#allocation51_spill] sm:$0xff] %v17499_v9 }
 0x958   :  { %7806 = vmatmul.mubr.bf16.vlgmr.msra.gmra.mxu0 %v17132_v49  ;;  %7847 = vmatmul.mubr.bf16.vlgmr.msra.gmra.mxu1 %v17132_v49  ;;  %v19185_v49 = vld [vmem:[#allocation9_spill] sm:$0xff] }
 0x959   :  { %8106 = vmatpush1.bf16.msra.mxu0 %v16998_v40  ;;  %8147 = vmatpush1.bf16.msra.mxu1 %v19181_v44  ;;  %v17245_v40 = vld [vmem:[%s18541_s2 + $0xa8] ss:$16 sps:$4 sm:$0xff]  }
 0x95a   :  { %8107 = vmatprep.subr.bf16.mxu0 %v19182_v6  ;;  %8148 = vmatprep.subr.bf16.mxu1 %v19183_v22  ;;  %v17504_v44 = vld [vmem:[%s18542_s5 + $0x8] ss:$16 sps:$4 sm:$0xff]   ;;  %v17513_v6 = vld [vmem:[%s18544_s4 + $0xe4] ss:$16 sps:$4 sm:$0xff]   ;;  %v17518_v22 = vld [vmem:[%s18544_s4 + $0xec] ss:$16 sps:$4 sm:$0xff]  }
 0x95b   :  { %8137 = vmatprep.mubr.bf16.mxu0 %v18818_v63  ;;  %8178 = vmatprep.mubr.bf16.mxu1 %v18818_v63  ;;  %19200 = vst [vmem:[#allocation52_spill] sm:$0xff] %v17504_v44  ;;  %19201 = vst [vmem:[#allocation53_spill] sm:$0xff] %v17513_v6 }
 0x95c   :  { %19202 = vst [vmem:[#allocation54_spill] sm:$0xff] %v17518_v22 }
 0x95d   :  { %8108 = vmatpush1.bf16.msra.mxu0 %v19184_v47  ;;  %8149 = vmatpush1.bf16.msra.mxu1 %v19185_v49 }
 0x95e   :  { %8109 = vmatprep.subr.bf16.mxu0 %v19186_v56  ;;  %8150 = vmatprep.subr.bf16.mxu1 %v17236_v20  ;;  %v13655_v18 = vpop.eup %13654 }
 0x95f   :  { %v7305_v28 = vmul.f32 %v13655_v18, %v13653_v17 }
 0x961   :  { %8110 = vmatpush1.bf16.msra.mxu0 %v17045_v48  ;;  %8151 = vmatpush1.bf16.msra.mxu1 %v17245_v40  ;;  %v17264_v48 = vld [vmem:[%s18541_s2 + $0x68] ss:$16 sps:$4 sm:$0xff]   ;;  %v17312_v36 = vpack.c.bf16 %v7305_v28, %v7305_v28 }
 0x962   :  { %8111 = vmatprep.subr.bf16.mxu0 %v17052_v29  ;;  %8152 = vmatprep.subr.bf16.mxu1 %v19187_v34  ;;  %v17271_v29 = vld [vmem:[%s18541_s2 + $0x4c] ss:$16 sps:$4 sm:$0xff]  }
 0x965   :  { %8112 = vmatpush1.bf16.msra.mxu0 %v17064_v58  ;;  %8153 = vmatpush1.bf16.msra.mxu1 %v17069_v52  ;;  %v17278_v58 = vld [vmem:[%s18541_s2 + $0x48] ss:$16 sps:$4 sm:$0xff]   ;;  %v19189_v52 = vld [vmem:[#allocation11_spill] sm:$0xff] }
 0x966   :  { %8113 = vmatprep.subr.bf16.mxu0 %v17077_v10  ;;  %8154 = vmatprep.subr.bf16.mxu1 %v17257_v16  ;;  %v17285_v10 = vld [vmem:[%s18541_s2 + $0x2c] ss:$16 sps:$4 sm:$0xff]  }
 0x969   :  { %8114 = vmatpush1.bf16.msra.mxu0 %v19188_v37  ;;  %8155 = vmatpush1.bf16.msra.mxu1 %v17264_v48 }
 0x96a   :  { %8115 = vmatprep.subr.bf16.mxu0 %v19189_v52  ;;  %8156 = vmatprep.subr.bf16.mxu1 %v17271_v29 }
 0x96d   :  { %8116 = vmatpush1.bf16.msra.mxu0 %v17098_v57  ;;  %8157 = vmatpush1.bf16.msra.mxu1 %v17278_v58  ;;  %v17306_v57 = vld [vmem:[%s18541_s2 + $0x8] ss:$16 sps:$4 sm:$0xff]  }
 0x96e   :  { %8117 = vmatprep.subr.bf16.mxu0 %v19190_v53  ;;  %8158 = vmatprep.subr.bf16.mxu1 %v17285_v10  ;;  %v7855_v53 = vld [vmem:[%s18545_s6] sm:$0xf] }
 0x96f   :  { %v7860_v17 = vrot.slane %v7855_v53, %v19163_v39  ;;  %v7872_v39 = vrot.slane %v7855_v53, %v14194_v24 }
 0x971   :  { %8118 = vmatpush1.bf16.msra.mxu0 %v17112_v25  ;;  %8159 = vmatpush1.bf16.msra.mxu1 %v17292_v26  ;;  %v17321_v25 = vld [vmem:[%s18542_s5 + $0xe4] ss:$16 sps:$4 sm:$0xff]  }
 0x972   :  { %8119 = vmatprep.subr.bf16.mxu0 %v17119_v27  ;;  %8160 = vmatprep.subr.bf16.mxu1 %v17299_v61  ;;  %v17326_v27 = vld [vmem:[%s18542_s5 + $0xec] ss:$16 sps:$4 sm:$0xff]  }
 0x975   :  { %8120 = vmatpush1.bf16.msra.mxu0 %v17126_v1  ;;  %8161 = vmatpush1.bf16.msra.mxu1 %v17306_v57  ;;  %v17331_v1 = vld [vmem:[%s18542_s5 + $0xe0] ss:$16 sps:$4 sm:$0xff]  }
 0x976   :  { %8440 = vmatprep.subr.bf16.mxu0 %v17321_v25  ;;  %8481 = vmatprep.subr.bf16.mxu1 %v17326_v27 }
 0x978   :  { %8138 = vmatmul.mubr.bf16.vlgmr.msra.gmra.mxu0 %v17312_v36  ;;  %8179 = vmatmul.mubr.bf16.vlgmr.msra.gmra.mxu1 %v17312_v36 }
 0x979   :  { %8472 = vmatprep.mubr.bf16.mxu0 %v18818_v63  ;;  %8513 = vmatprep.mubr.bf16.mxu1 %v18818_v63 }
 0x97a   :  { %8441 = vmatpush1.bf16.msra.mxu0 %v17331_v1  ;;  %8482 = vmatpush1.bf16.msra.mxu1 %v17336_v50 }
 0x97b   :  { %8442 = vmatprep.subr.bf16.mxu0 %v17345_v3  ;;  %8483 = vmatprep.subr.bf16.mxu1 %v17350_v43 }
 0x97e   :  { %8443 = vmatpush1.bf16.msra.mxu0 %v17355_v59  ;;  %8484 = vmatpush1.bf16.msra.mxu1 %v17360_v46 }
 0x97f   :  { %8444 = vmatprep.subr.bf16.mxu0 %v17369_v32  ;;  %8485 = vmatprep.subr.bf16.mxu1 %v17374_v62 }
 0x982   :  { %8445 = vmatpush1.bf16.msra.mxu0 %v17379_v4  ;;  %8486 = vmatpush1.bf16.msra.mxu1 %v17384_v7 }
 0x983   :  { %8446 = vmatprep.subr.bf16.mxu0 %v17393_v55  ;;  %8487 = vmatprep.subr.bf16.mxu1 %v17398_v2 }
 0x986   :  { %8447 = vmatpush1.bf16.msra.mxu0 %v17403_v35  ;;  %8488 = vmatpush1.bf16.msra.mxu1 %v17408_v54 }
 0x987   :  { %8448 = vmatprep.subr.bf16.mxu0 %v17417_v8  ;;  %8489 = vmatprep.subr.bf16.mxu1 %v17422_v11 }
 0x98a   :  { %8449 = vmatpush1.bf16.msra.mxu0 %v17427_v0  ;;  %8490 = vmatpush1.bf16.msra.mxu1 %v17432_v31 }
 0x98b   :  { %8450 = vmatprep.subr.bf16.mxu0 %v17441_v45  ;;  %8491 = vmatprep.subr.bf16.mxu1 %v17446_v60 }
 0x98e   :  { %8451 = vmatpush1.bf16.msra.mxu0 %v17451_v5  ;;  %8492 = vmatpush1.bf16.msra.mxu1 %v17456_v33 }
 0x98f   :  { %8452 = vmatprep.subr.bf16.mxu0 %v17465_v13  ;;  %8493 = vmatprep.subr.bf16.mxu1 %v17470_v21 }
 0x992   :  { %8453 = vmatpush1.bf16.msra.mxu0 %v17475_v23  ;;  %8494 = vmatpush1.bf16.msra.mxu1 %v17480_v41 }
 0x993   :  { %8454 = vmatprep.subr.bf16.mxu0 %v17489_v38  ;;  %8495 = vmatprep.subr.bf16.mxu1 %v17494_v51 }
 0x996   :  { %8455 = vmatpush1.bf16.msra.mxu0 %v17499_v9  ;;  %8496 = vmatpush1.bf16.msra.mxu1 %v17504_v44 }
 0x997   :  { %8682 = vmatprep.subr.bf16.mxu0 %v17513_v6  ;;  %8723 = vmatprep.subr.bf16.mxu1 %v17518_v22  ;;  %v7864_v6 = vrot.slane %v7855_v53, %v19164_v15 }
 0x9f8   :  { %v7565_v19 = vpop.f32.mrf.mxu0  ;;  %v7606_v47 = vpop.f32.mrf.mxu1 }
 0x9fa   :  { %v7567_v49 = vpop.f32.mrf.mxu0  ;;  %v7608_v56 = vpop.f32.mrf.mxu1 }
 0x9fc   :  { %v7569_v42 = vpop.f32.mrf.mxu0  ;;  %v7610_v34 = vpop.f32.mrf.mxu1 }
 0x9fe   :  { %v7570_v37 = vpop.f32.mrf.mxu0  ;;  %v7611_v52 = vpop.f32.mrf.mxu1 }
 0xa18   :  { %v7807_v18 = vpop.f32.mrf.mxu0  ;;  %v7848_v28 = vpop.f32.mrf.mxu1 }
 0xa19   :  { %v7808_v44 = vadd.f32 %v7807_v18, %v7565_v19  ;;  %v7849_v19 = vadd.f32 %v7848_v28, %v7606_v47  ;;  %v7868_v18 = vrot.slane %v7855_v53, %v14171_v12 }
 0xa1a   :  { %v7809_v22 = vpop.f32.mrf.mxu0  ;;  %v7850_v9 = vpop.f32.mrf.mxu1 }
 0xa1b   :  { %v7877_v51 = vadd.f32 %v7860_v17, %v7808_v44  ;;  %v7810_v38 = vadd.f32 %v7809_v22, %v7567_v49  ;;  %v7851_v13 = vadd.f32 %v7850_v9, %v7608_v56  ;;  %v7879_v44 = vadd.f32 %v7868_v18, %v7849_v19  ;;  %v19204_v9 = vld [vmem:[#allocation37_spill] sm:$0xff]  ;;  %v19205_v49 = vld [vmem:[#allocation35_spill] sm:$0xff] }
 0xa1c   :  { %v7811_v41 = vpop.f32.mrf.mxu0  ;;  %v7852_v42 = vpop.f32.mrf.mxu1 }
 0xa1d   :  { %v12100_v34 = vmul.f32 -1.442695, %v7877_v51  ;;  %v7878_v37 = vadd.f32 %v7864_v6, %v7810_v38  ;;  %v7880_v33 = vadd.f32 %v7872_v39, %v7851_v13 }
 0xa1e   :  { %v7812_v52 = vpop.f32.mrf.mxu0  ;;  %v7853_v23 = vpop.f32.mrf.mxu1 }
 0xa1f   :  { %13656 = vpow2.f32 %v12100_v34  ;;  %v12101_v21 = vmul.f32 -1.442695, %v7878_v37  ;;  %v12102_v15 = vmul.f32 -1.442695, %v7880_v33 }
 0xa21   :  { %13658 = vpow2.f32 %v12101_v21  ;;  %v19203_v21 = vld [vmem:[#allocation5_spill] sm:$0xff] }
 0xa22   :  { %13660 = vpow2.f32 %v12102_v15  ;;  %v370_v6 = vadd.f32 %v19204_v9, %v19203_v21 }
 0xa2c   :  { %v13657_v5 = vpop.eup %13656 }
 0xa2d   :  { %v7884_v22 = vadd.f32 1.0, %v13657_v5 }
 0xa2e   :  { %v13659_v41 = vpop.eup %13658 }
 0xa2f   :  { %13662 = vrcp.f32 %v7884_v22  ;;  %v7890_v38 = vadd.f32 1.0, %v13659_v41  ;;  %v13661_v33 = vpop.eup %13660  ;;  %v19206_v41 = vld [vmem:[#allocation36_spill] sm:$0xff] }
 0xa30   :  { %13664 = vtanh.f32 %v7879_v44  ;;  %v7897_v37 = vadd.f32 1.0, %v13661_v33 }
 0xa31   :  { %13666 = vrcp.f32 %v7890_v38 }
 0xa38   :  { %v8139_v23 = vpop.f32.mrf.mxu0  ;;  %v8180_v51 = vpop.f32.mrf.mxu1 }
 0xa39   :  { %v8187_v39 = vadd.f32 %v8139_v23, %v19205_v49  ;;  %v8189_v38 = vadd.f32 %v8180_v51, %v19206_v41  ;;  %v17610_v41 = vld [vmem:[%s18544_s4 + $0x8c] ss:$16 sps:$4 sm:$0xff]  }
 0xa3a   :  { %v8141_v13 = vpop.f32.mrf.mxu0  ;;  %v17532_v47 = vpop.f32.mrf.mxu1 }
 0xa3b   :  { %v12136_v56 = vmul.f32 -1.442695, %v8187_v39  ;;  %v8188_v53 = vadd.f32 %v8141_v13, %v370_v6 }
 0xa3c   :  { %v13663_v5 = vpop.eup %13662  ;;  %v8143_v17 = vpop.f32.mrf.mxu0 }
 0xa3d   :  { %v8184_v15 = vpop.f32.mrf.mxu1  ;;  %v13665_v28 = vpop.eup %13664  ;;  %13668 = vpow2.f32 %v12136_v56  ;;  %v12137_v42 = vmul.f32 -1.442695, %v8188_v53  ;;  %v17547_v56 = vld [vmem:[%s18544_s4 + $0xe8] ss:$16 sps:$4 sm:$0xff]   ;;  %v17555_v53 = vld [vmem:[%s18544_s4 + $0xc4] ss:$16 sps:$4 sm:$0xff]  }
 0xa3e   :  { %v13667_v34 = vpop.eup %13666  ;;  %v8144_v52 = vpop.f32.mrf.mxu0  ;;  %v7901_v18 = vmul.f32 %v13665_v28, %v13663_v5  ;;  %v17560_v5 = vld [vmem:[%s18544_s4 + $0xcc] ss:$16 sps:$4 sm:$0xff]   ;;  %v17567_v17 = vld [vmem:[%s18544_s4 + $0xc0] ss:$16 sps:$4 sm:$0xff]   ;;  %v17572_v15 = vld [vmem:[%s18544_s4 + $0xc8] ss:$16 sps:$4 sm:$0xff]  }
 0xa3f   :  { %v8185_v19 = vpop.f32.mrf.mxu1  ;;  %v7900_v44 = vmul.f32 %v13667_v34, %v17182_v30  ;;  %13670 = vpow2.f32 %v12137_v42  ;;  %v17542_v30 = vld [vmem:[%s18544_s4 + $0xe0] ss:$16 sps:$4 sm:$0xff]   ;;  %v17579_v28 = vld [vmem:[%s18544_s4 + $0xa4] ss:$16 sps:$4 sm:$0xff]   ;;  %v17584_v42 = vld [vmem:[%s18544_s4 + $0xac] ss:$16 sps:$4 sm:$0xff]  }
 0xa40   :  { %13672 = vrcp.f32 %v7897_v37  ;;  %v17593_v52 = vld [vmem:[%s18544_s4 + $0xa0] ss:$16 sps:$4 sm:$0xff]   ;;  %v17598_v19 = vld [vmem:[%s18544_s4 + $0xa8] ss:$16 sps:$4 sm:$0xff]  }
 0xa41   :  { %v17535_v22 = vadd.f32 %v7901_v18, %v7900_v44  ;;  %v17605_v44 = vld [vmem:[%s18544_s4 + $0x84] ss:$16 sps:$4 sm:$0xff]  }
 0xa43   :  { %13674 = vtanh.f32 %v17535_v22 }
 0xa44   :  { %13676 = vtanh.f32 %v8189_v38 }
 0xa4a   :  { %v13669_v23 = vpop.eup %13668 }
 0xa4b   :  { %v8194_v9 = vadd.f32 1.0, %v13669_v23 }
 0xa4c   :  { %v13671_v6 = vpop.eup %13670 }
 0xa4d   :  { %13678 = vrcp.f32 %v8194_v9  ;;  %v8200_v49 = vadd.f32 1.0, %v13671_v6  ;;  %v13673_v39 = vpop.eup %13672  ;;  %v17618_v9 = vld [vmem:[%s18544_s4 + $0x80] ss:$16 sps:$4 sm:$0xff]   ;;  %v17623_v6 = vld [vmem:[%s18544_s4 + $0x88] ss:$16 sps:$4 sm:$0xff]  }
 0xa4f   :  { %13680 = vrcp.f32 %v8200_v49 }
 0xa50   :  { %v13675_v13 = vpop.eup %13674 }
 0xa51   :  { %v7904_v33 = vmul.f32 %v13675_v13, %v13673_v39  ;;  %v13677_v34 = vpop.eup %13676  ;;  %v17637_v39 = vld [vmem:[%s18544_s4 + $0x6c] ss:$16 sps:$4 sm:$0xff]   ;;  %v17644_v13 = vld [vmem:[%s18544_s4 + $0x60] ss:$16 sps:$4 sm:$0xff]  }
 0xa53   :  { %12103 = vst [vmem:[%s18546_s7 + $0x38] sm:$0xff] %v7904_v33  ;;  %v8247_v51 = vpack.c.bf16 %v7904_v33, %v7904_v33  ;;  %v17649_v33 = vld [vmem:[%s18544_s4 + $0x68] ss:$16 sps:$4 sm:$0xff]  }
 0xa55   :  { %8473 = vmatmul.mubr.bf16.vlgmr.msra.gmra.mxu0 %v8247_v51  ;;  %8514 = vmatmul.mubr.bf16.vlgmr.msra.gmra.mxu1 %v8247_v51  ;;  %v19207_v51 = vld [vmem:[#allocation6_spill] sm:$0xff] }
 0xa56   :  { %8683 = vmatpush1.bf16.msra.mxu0 %v17542_v30  ;;  %8724 = vmatpush1.bf16.msra.mxu1 %v17547_v56 }
 0xa57   :  { %8684 = vmatprep.subr.bf16.mxu0 %v17555_v53  ;;  %8725 = vmatprep.subr.bf16.mxu1 %v17560_v5 }
 0xa58   :  { %8714 = vmatprep.mubr.bf16.mxu0 %v18818_v63  ;;  %8755 = vmatprep.mubr.bf16.mxu1 %v18818_v63 }
 0xa5a   :  { %v13679_v37 = vpop.eup %13678  ;;  %8685 = vmatpush1.bf16.msra.mxu0 %v17567_v17  ;;  %8726 = vmatpush1.bf16.msra.mxu1 %v17572_v15 }
 0xa5b   :  { %v8211_v18 = vmul.f32 %v13679_v37, %v13677_v34  ;;  %8686 = vmatprep.subr.bf16.mxu0 %v17579_v28  ;;  %8727 = vmatprep.subr.bf16.mxu1 %v17584_v42  ;;  %v19208_v34 = vld [vmem:[#allocation38_spill] sm:$0xff] }
 0xa5c   :  { %v13681_v38 = vpop.eup %13680  ;;  %v463_v37 = vadd.f32 %v19208_v34, %v19207_v51  ;;  %v17671_v34 = vld [vmem:[%s18544_s4 + $0x40] ss:$16 sps:$4 sm:$0xff]   ;;  %v17676_v51 = vld [vmem:[%s18544_s4 + $0x48] ss:$16 sps:$4 sm:$0xff]  }
 0xa5d   :  { %v8210_v23 = vmul.f32 %v13681_v38, %v17202_v14  ;;  %v17632_v14 = vld [vmem:[%s18544_s4 + $0x64] ss:$16 sps:$4 sm:$0xff]   ;;  %v17663_v38 = vld [vmem:[%s18544_s4 + $0x4c] ss:$16 sps:$4 sm:$0xff]   ;;  %19211 = vst [vmem:[#allocation26_spill] sm:$0xff] %v17676_v51 }
 0xa5e   :  { %8687 = vmatpush1.bf16.msra.mxu0 %v17593_v52  ;;  %8728 = vmatpush1.bf16.msra.mxu1 %v17598_v19  ;;  %19210 = vst [vmem:[#allocation56_spill] sm:$0xff] %v17663_v38 }
 0xa5f   :  { %v17625_v49 = vadd.f32 %v8211_v18, %v8210_v23  ;;  %8688 = vmatprep.subr.bf16.mxu0 %v17605_v44  ;;  %8729 = vmatprep.subr.bf16.mxu1 %v17610_v41  ;;  %v17658_v18 = vld [vmem:[%s18544_s4 + $0x44] ss:$16 sps:$4 sm:$0xff]   ;;  %v8190_v23 = vadd.f32 %v17532_v47, %v463_v37  ;;  %v17688_v37 = vld [vmem:[%s18544_s4 + $0x2c] ss:$16 sps:$4 sm:$0xff]  }
 0xa60   :  { %19209 = vst [vmem:[#allocation55_spill] sm:$0xff] %v17658_v18  ;;  %v17683_v47 = vld [vmem:[%s18544_s4 + $0x24] ss:$16 sps:$4 sm:$0xff]   ;;  %19213 = vst [vmem:[#allocation58_spill] sm:$0xff] %v17688_v37 }
 0xa61   :  { %19212 = vst [vmem:[#allocation57_spill] sm:$0xff] %v17683_v47  ;;  %v12138_v21 = vmul.f32 -1.442695, %v8190_v23  ;;  %v17707_v23 = vld [vmem:[%s18544_s4 + $0x4] ss:$16 sps:$4 sm:$0xff]  }
 0xa62   :  { %8689 = vmatpush1.bf16.msra.mxu0 %v17618_v9  ;;  %8730 = vmatpush1.bf16.msra.mxu1 %v17623_v6  ;;  %19215 = vst [vmem:[#allocation60_spill] sm:$0xff] %v17707_v23 }
 0xa63   :  { %8690 = vmatprep.subr.bf16.mxu0 %v17632_v14  ;;  %8731 = vmatprep.subr.bf16.mxu1 %v17637_v39  ;;  %13682 = vpow2.f32 %v12138_v21  ;;  %v17731_v21 = vld [vmem:[%s18541_s2 + $0xe4] ss:$16 sps:$4 sm:$0xff]  }
 0xa64   :  { %19219 = vst [vmem:[#allocation64_spill] sm:$0xff] %v17731_v21  ;;  %13684 = vtanh.f32 %v17625_v49 }
 0xa66   :  { %8691 = vmatpush1.bf16.msra.mxu0 %v17644_v13  ;;  %8732 = vmatpush1.bf16.msra.mxu1 %v17649_v33 }
 0xa67   :  { %8692 = vmatprep.subr.bf16.mxu0 %v17658_v18  ;;  %8733 = vmatprep.subr.bf16.mxu1 %v17663_v38  ;;  %v17695_v18 = vld [vmem:[%s18544_s4 + $0x20] ss:$16 sps:$4 sm:$0xff]   ;;  %v17700_v38 = vld [vmem:[%s18544_s4 + $0x28] ss:$16 sps:$4 sm:$0xff]  }
 0xa68   :  { %19214 = vst [vmem:[#allocation59_spill] sm:$0xff] %v17700_v38 }
 0xa6a   :  { %8693 = vmatpush1.bf16.msra.mxu0 %v17671_v34  ;;  %8734 = vmatpush1.bf16.msra.mxu1 %v17676_v51  ;;  %v17712_v51 = vld [vmem:[%s18544_s4 + $0xc] ss:$16 sps:$4 sm:$0xff]  }
 0xa6b   :  { %8694 = vmatprep.subr.bf16.mxu0 %v17683_v47  ;;  %8735 = vmatprep.subr.bf16.mxu1 %v17688_v37  ;;  %19216 = vst [vmem:[#allocation61_spill] sm:$0xff] %v17712_v51  ;;  %v17719_v47 = vld [vmem:[%s18544_s4] ss:$16 sps:$4 sm:$0xff]   ;;  %v17724_v37 = vld [vmem:[%s18544_s4 + $0x8] ss:$16 sps:$4 sm:$0xff]  }
 0xa6c   :  { %19217 = vst [vmem:[#allocation62_spill] sm:$0xff] %v17719_v47  ;;  %19218 = vst [vmem:[#allocation63_spill] sm:$0xff] %v17724_v37 }
 0xa6e   :  { %8695 = vmatpush1.bf16.msra.mxu0 %v17695_v18  ;;  %8736 = vmatpush1.bf16.msra.mxu1 %v17700_v38  ;;  %v17736_v38 = vld [vmem:[%s18541_s2 + $0xec] ss:$16 sps:$4 sm:$0xff]  }
 0xa6f   :  { %8696 = vmatprep.subr.bf16.mxu0 %v17707_v23  ;;  %8737 = vmatprep.subr.bf16.mxu1 %v17712_v51  ;;  %19220 = vst [vmem:[#allocation65_spill] sm:$0xff] %v17736_v38  ;;  %v17743_v23 = vld [vmem:[%s18541_s2 + $0xe0] ss:$16 sps:$4 sm:$0xff]   ;;  %v17748_v51 = vld [vmem:[%s18541_s2 + $0xe8] ss:$16 sps:$4 sm:$0xff]  }
 0xa70   :  { %19221 = vst [vmem:[#allocation66_spill] sm:$0xff] %v17748_v51 }
 0xa72   :  { %8697 = vmatpush1.bf16.msra.mxu0 %v17719_v47  ;;  %8738 = vmatpush1.bf16.msra.mxu1 %v17724_v37  ;;  %v17755_v47 = vld [vmem:[%s18541_s2 + $0xc4] ss:$16 sps:$4 sm:$0xff]   ;;  %v17760_v37 = vld [vmem:[%s18541_s2 + $0xcc] ss:$16 sps:$4 sm:$0xff]  }
 0xa73   :  { %9014 = vmatprep.subr.bf16.mxu0 %v17731_v21  ;;  %9055 = vmatprep.subr.bf16.mxu1 %v17736_v38  ;;  %19222 = vst [vmem:[#allocation67_spill] sm:$0xff] %v17755_v47  ;;  %19223 = vst [vmem:[#allocation68_spill] sm:$0xff] %v17760_v37  ;;  %v17769_v38 = vld [vmem:[%s18541_s2 + $0xc0] ss:$16 sps:$4 sm:$0xff]   ;;  %v17774_v21 = vld [vmem:[%s18541_s2 + $0xc8] ss:$16 sps:$4 sm:$0xff]  }
 0xa74   :  { %19224 = vst [vmem:[#allocation69_spill] sm:$0xff] %v17769_v38  ;;  %19225 = vst [vmem:[#allocation70_spill] sm:$0xff] %v17774_v21 }
 0xa75   :  { %8715 = vmatmul.mubr.bf16.vlgmr.msra.gmra.mxu0 %v17312_v36  ;;  %8756 = vmatmul.mubr.bf16.vlgmr.msra.gmra.mxu1 %v17312_v36  ;;  %v17781_v36 = vld [vmem:[%s18541_s2 + $0xa4] ss:$16 sps:$4 sm:$0xff]  }
 0xa76   :  { %9015 = vmatpush1.bf16.msra.mxu0 %v17743_v23  ;;  %9056 = vmatpush1.bf16.msra.mxu1 %v17748_v51  ;;  %19226 = vst [vmem:[#allocation71_spill] sm:$0xff] %v17781_v36  ;;  %v13683_v51 = vpop.eup %13682 }
 0xa77   :  { %9016 = vmatprep.subr.bf16.mxu0 %v17755_v47  ;;  %9057 = vmatprep.subr.bf16.mxu1 %v17760_v37  ;;  %v17790_v47 = vld [vmem:[%s18541_s2 + $0xa0] ss:$16 sps:$4 sm:$0xff]   ;;  %v17797_v37 = vld [vmem:[%s18541_s2 + $0x84] ss:$16 sps:$4 sm:$0xff]  }
 0xa78   :  { %9046 = vmatprep.mubr.bf16.mxu0 %v18818_v63  ;;  %9087 = vmatprep.mubr.bf16.mxu1 %v18818_v63 }
 0xa7a   :  { %9017 = vmatpush1.bf16.msra.mxu0 %v17769_v38  ;;  %9058 = vmatpush1.bf16.msra.mxu1 %v17774_v21  ;;  %v17802_v38 = vld [vmem:[%s18541_s2 + $0x8c] ss:$16 sps:$4 sm:$0xff]   ;;  %v8207_v21 = vadd.f32 1.0, %v13683_v51  ;;  %v17829_v51 = vld [vmem:[%s18541_s2 + $0x60] ss:$16 sps:$4 sm:$0xff]  }
 0xa7b   :  { %9018 = vmatprep.subr.bf16.mxu0 %v17781_v36  ;;  %9059 = vmatprep.subr.bf16.mxu1 %v17236_v20  ;;  %19227 = vst [vmem:[#allocation72_spill] sm:$0xff] %v17802_v38  ;;  %v17809_v36 = vld [vmem:[%s18541_s2 + $0x80] ss:$16 sps:$4 sm:$0xff]   ;;  %v17814_v20 = vld [vmem:[%s18541_s2 + $0x88] ss:$16 sps:$4 sm:$0xff]   ;;  %19228 = vst [vmem:[#allocation73_spill] sm:$0xff] %v17829_v51 }
 0xa7c   :  { %13686 = vrcp.f32 %v8207_v21  ;;  %v17843_v21 = vld [vmem:[%s18541_s2 + $0x40] ss:$16 sps:$4 sm:$0xff]  }
 0xa7e   :  { %9019 = vmatpush1.bf16.msra.mxu0 %v17790_v47  ;;  %9060 = vmatpush1.bf16.msra.mxu1 %v17245_v40  ;;  %v17822_v40 = vld [vmem:[%s18541_s2 + $0x64] ss:$16 sps:$4 sm:$0xff]  }
 0xa7f   :  { %9020 = vmatprep.subr.bf16.mxu0 %v17797_v37  ;;  %9061 = vmatprep.subr.bf16.mxu1 %v17802_v38  ;;  %v17836_v38 = vld [vmem:[%s18541_s2 + $0x44] ss:$16 sps:$4 sm:$0xff]  }
 0xa80   :  { %19229 = vst [vmem:[#allocation74_spill] sm:$0xff] %v17836_v38 }
 0xa82   :  { %9021 = vmatpush1.bf16.msra.mxu0 %v17809_v36  ;;  %9062 = vmatpush1.bf16.msra.mxu1 %v17814_v20 }
 0xa83   :  { %9022 = vmatprep.subr.bf16.mxu0 %v17822_v40  ;;  %9063 = vmatprep.subr.bf16.mxu1 %v17257_v16  ;;  %v17850_v16 = vld [vmem:[%s18541_s2 + $0x24] ss:$16 sps:$4 sm:$0xff]  }
 0xa84   :  { %19230 = vst [vmem:[#allocation75_spill] sm:$0xff] %v17850_v16 }
 0xa86   :  { %9023 = vmatpush1.bf16.msra.mxu0 %v17829_v51  ;;  %9064 = vmatpush1.bf16.msra.mxu1 %v17264_v48  ;;  %v17857_v48 = vld [vmem:[%s18541_s2 + $0x20] ss:$16 sps:$4 sm:$0xff]  }
 0xa87   :  { %9024 = vmatprep.subr.bf16.mxu0 %v17836_v38  ;;  %9065 = vmatprep.subr.bf16.mxu1 %v17271_v29  ;;  %v17864_v29 = vld [vmem:[%s18541_s2 + $0x4] ss:$16 sps:$4 sm:$0xff]   ;;  %v13685_v38 = vpop.eup %13684 }
 0xa89   :  { %v13687_v51 = vpop.eup %13686 }
 0xa8a   :  { %9025 = vmatpush1.bf16.msra.mxu0 %v17843_v21  ;;  %9066 = vmatpush1.bf16.msra.mxu1 %v17278_v58  ;;  %v17871_v58 = vld [vmem:[%s18541_s2] ss:$16 sps:$4 sm:$0xff]  }
 0xa8b   :  { %9026 = vmatprep.subr.bf16.mxu0 %v17850_v16  ;;  %9067 = vmatprep.subr.bf16.mxu1 %v17285_v10  ;;  %v8214_v10 = vmul.f32 %v13687_v51, %v13685_v38  ;;  %v19244_v51 = vld [vmem:[#allocation4_spill] sm:$0xff] }
 0xa8d   :  { %v17877_v16 = vpack.c.bf16 %v8214_v10, %v8214_v10 }
 0xa8e   :  { %9027 = vmatpush1.bf16.msra.mxu0 %v17857_v48  ;;  %9068 = vmatpush1.bf16.msra.mxu1 %v17292_v26  ;;  %v19231_v26 = vld [vmem:[#allocation12_spill] sm:$0xff] }
 0xa8f   :  { %9028 = vmatprep.subr.bf16.mxu0 %v17864_v29  ;;  %9069 = vmatprep.subr.bf16.mxu1 %v17299_v61  ;;  %v19232_v61 = vld [vmem:[#allocation47_spill] sm:$0xff] }
 0xa92   :  { %9029 = vmatpush1.bf16.msra.mxu0 %v17871_v58  ;;  %9070 = vmatpush1.bf16.msra.mxu1 %v17306_v57  ;;  %v19233_v57 = vld [vmem:[#allocation48_spill] sm:$0xff] }
 0xa93   :  { %9349 = vmatprep.subr.bf16.mxu0 %v17321_v25  ;;  %9390 = vmatprep.subr.bf16.mxu1 %v17326_v27  ;;  %v19234_v25 = vld [vmem:[#allocation49_spill] sm:$0xff]  ;;  %v19235_v27 = vld [vmem:[#allocation50_spill] sm:$0xff] }
 0xa95   :  { %9047 = vmatmul.mubr.bf16.vlgmr.msra.gmra.mxu0 %v17877_v16  ;;  %9088 = vmatmul.mubr.bf16.vlgmr.msra.gmra.mxu1 %v17877_v16 }
 0xa96   :  { %9350 = vmatpush1.bf16.msra.mxu0 %v17331_v1  ;;  %9391 = vmatpush1.bf16.msra.mxu1 %v17336_v50  ;;  %v19236_v1 = vld [vmem:[#allocation23_spill] sm:$0xff]  ;;  %v19237_v50 = vld [vmem:[#allocation25_spill] sm:$0xff] }
 0xa97   :  { %9351 = vmatprep.subr.bf16.mxu0 %v17345_v3  ;;  %9392 = vmatprep.subr.bf16.mxu1 %v17350_v43  ;;  %v19238_v3 = vld [vmem:[#allocation24_spill] sm:$0xff]  ;;  %v19239_v43 = vld [vmem:[#allocation51_spill] sm:$0xff] }
 0xa98   :  { %9381 = vmatprep.mubr.bf16.mxu0 %v18818_v63  ;;  %9422 = vmatprep.mubr.bf16.mxu1 %v18818_v63 }
 0xa9a   :  { %9352 = vmatpush1.bf16.msra.mxu0 %v17355_v59  ;;  %9393 = vmatpush1.bf16.msra.mxu1 %v17360_v46  ;;  %v19240_v59 = vld [vmem:[#allocation52_spill] sm:$0xff]  ;;  %v19241_v46 = vld [vmem:[#allocation53_spill] sm:$0xff] }
 0xa9b   :  { %9353 = vmatprep.subr.bf16.mxu0 %v17369_v32  ;;  %9394 = vmatprep.subr.bf16.mxu1 %v17374_v62  ;;  %v19242_v32 = vld [vmem:[#allocation54_spill] sm:$0xff] }
 0xa9e   :  { %9354 = vmatpush1.bf16.msra.mxu0 %v17379_v4  ;;  %9395 = vmatpush1.bf16.msra.mxu1 %v17384_v7 }
 0xa9f   :  { %9355 = vmatprep.subr.bf16.mxu0 %v17393_v55  ;;  %9396 = vmatprep.subr.bf16.mxu1 %v17398_v2 }
 0xaa2   :  { %9356 = vmatpush1.bf16.msra.mxu0 %v17403_v35  ;;  %9397 = vmatpush1.bf16.msra.mxu1 %v17408_v54 }
 0xaa3   :  { %9357 = vmatprep.subr.bf16.mxu0 %v17417_v8  ;;  %9398 = vmatprep.subr.bf16.mxu1 %v17422_v11  ;;  %v8764_v11 = vld [vmem:[%s18545_s6] sm:$0xf] }
 0xaa4   :  { %v8773_v10 = vrot.slane %v8764_v11, %v19244_v51 }
 0xaa6   :  { %9358 = vmatpush1.bf16.msra.mxu0 %v17427_v0  ;;  %9399 = vmatpush1.bf16.msra.mxu1 %v17432_v31  ;;  %v19243_v0 = vld [vmem:[#allocation3_spill] sm:$0xff] }
 0xaa7   :  { %9359 = vmatprep.subr.bf16.mxu0 %v17441_v45  ;;  %9400 = vmatprep.subr.bf16.mxu1 %v17446_v60  ;;  %v8769_v31 = vrot.slane %v8764_v11, %v19243_v0 }
 0xaaa   :  { %9360 = vmatpush1.bf16.msra.mxu0 %v19231_v26  ;;  %9401 = vmatpush1.bf16.msra.mxu1 %v19232_v61 }
 0xaab   :  { %9361 = vmatprep.subr.bf16.mxu0 %v19233_v57  ;;  %9402 = vmatprep.subr.bf16.mxu1 %v19234_v25 }
 0xaae   :  { %9362 = vmatpush1.bf16.msra.mxu0 %v19235_v27  ;;  %9403 = vmatpush1.bf16.msra.mxu1 %v19236_v1 }
 0xaaf   :  { %9363 = vmatprep.subr.bf16.mxu0 %v19237_v50  ;;  %9404 = vmatprep.subr.bf16.mxu1 %v19238_v3 }
 0xab2   :  { %9364 = vmatpush1.bf16.msra.mxu0 %v19239_v43  ;;  %9405 = vmatpush1.bf16.msra.mxu1 %v19240_v59 }
 0xab3   :  { %9591 = vmatprep.subr.bf16.mxu0 %v19241_v46  ;;  %9632 = vmatprep.subr.bf16.mxu1 %v19242_v32 }
 0xb15   :  { %v8474_v62 = vpop.f32.mrf.mxu0  ;;  %v8515_v4 = vpop.f32.mrf.mxu1 }
 0xb17   :  { %v8476_v7 = vpop.f32.mrf.mxu0  ;;  %v8517_v55 = vpop.f32.mrf.mxu1 }
 0xb19   :  { %v8478_v2 = vpop.f32.mrf.mxu0  ;;  %v8519_v35 = vpop.f32.mrf.mxu1 }
 0xb1a   :  { %v8781_v2 = vrot.slane %v8764_v11, %v14194_v24 }
 0xb1b   :  { %v8479_v54 = vpop.f32.mrf.mxu0  ;;  %v8520_v8 = vpop.f32.mrf.mxu1 }
 0xb1c   :  { %v8777_v54 = vrot.slane %v8764_v11, %v14171_v12 }
 0xb35   :  { %v8716_v45 = vpop.f32.mrf.mxu0  ;;  %v8757_v60 = vpop.f32.mrf.mxu1 }
 0xb36   :  { %v8717_v38 = vadd.f32 %v8716_v45, %v8474_v62  ;;  %v8758_v62 = vadd.f32 %v8757_v60, %v8515_v4  ;;  %v19246_v60 = vld [vmem:[#allocation41_spill] sm:$0xff] }
 0xb37   :  { %v8718_v26 = vpop.f32.mrf.mxu0  ;;  %v8759_v61 = vpop.f32.mrf.mxu1 }
 0xb38   :  { %v8786_v57 = vadd.f32 %v8769_v31, %v8717_v38  ;;  %v8719_v25 = vadd.f32 %v8718_v26, %v8476_v7  ;;  %v8760_v32 = vadd.f32 %v8759_v61, %v8517_v55  ;;  %v8788_v31 = vadd.f32 %v8777_v54, %v8758_v62 }
 0xb39   :  { %v8720_v27 = vpop.f32.mrf.mxu0  ;;  %v8761_v1 = vpop.f32.mrf.mxu1 }
 0xb3a   :  { %v12203_v50 = vmul.f32 -1.442695, %v8786_v57  ;;  %v8787_v3 = vadd.f32 %v8773_v10, %v8719_v25  ;;  %v8789_v35 = vadd.f32 %v8781_v2, %v8760_v32  ;;  %v19245_v25 = vld [vmem:[#allocation39_spill] sm:$0xff] }
 0xb3b   :  { %v8721_v43 = vpop.f32.mrf.mxu0  ;;  %v8762_v59 = vpop.f32.mrf.mxu1 }
 0xb3c   :  { %13688 = vpow2.f32 %v12203_v50  ;;  %v12204_v46 = vmul.f32 -1.442695, %v8787_v3  ;;  %v12205_v8 = vmul.f32 -1.442695, %v8789_v35 }
 0xb3e   :  { %13690 = vpow2.f32 %v12204_v46 }
 0xb3f   :  { %13692 = vpow2.f32 %v12205_v8 }
 0xb49   :  { %v13689_v45 = vpop.eup %13688 }
 0xb4a   :  { %v8793_v7 = vadd.f32 1.0, %v13689_v45 }
 0xb4b   :  { %v13691_v38 = vpop.eup %13690 }
 0xb4c   :  { %13694 = vrcp.f32 %v8793_v7  ;;  %v8799_v10 = vadd.f32 1.0, %v13691_v38  ;;  %v13693_v1 = vpop.eup %13692 }
 0xb4d   :  { %13696 = vtanh.f32 %v8788_v31  ;;  %v8806_v2 = vadd.f32 1.0, %v13693_v1  ;;  %v19247_v31 = vld [vmem:[#allocation40_spill] sm:$0xff] }
 0xb4e   :  { %13698 = vrcp.f32 %v8799_v10 }
 0xb55   :  { %v9048_v26 = vpop.f32.mrf.mxu0  ;;  %v9089_v57 = vpop.f32.mrf.mxu1 }
 0xb56   :  { %v9096_v55 = vadd.f32 %v9048_v26, %v19245_v25  ;;  %v9098_v7 = vadd.f32 %v9089_v57, %v19247_v31 }
 0xb57   :  { %v9050_v61 = vpop.f32.mrf.mxu0  ;;  %v9091_v27 = vpop.f32.mrf.mxu1 }
 0xb58   :  { %v12239_v4 = vmul.f32 -1.442695, %v9096_v55  ;;  %v9097_v11 = vadd.f32 %v9050_v61, %v19246_v60 }
 0xb59   :  { %v13695_v50 = vpop.eup %13694  ;;  %v9052_v3 = vpop.f32.mrf.mxu0 }
 0xb5a   :  { %v9093_v43 = vpop.f32.mrf.mxu1  ;;  %v13697_v59 = vpop.eup %13696  ;;  %13700 = vpow2.f32 %v12239_v4  ;;  %v12240_v46 = vmul.f32 -1.442695, %v9097_v11  ;;  %v19266_v3 = vld [vmem:[#allocation71_spill] sm:$0xff] }
 0xb5b   :  { %v13699_v32 = vpop.eup %13698  ;;  %v9053_v35 = vpop.f32.mrf.mxu0  ;;  %v8810_v54 = vmul.f32 %v13697_v59, %v13695_v50  ;;  %v19264_v50 = vld [vmem:[#allocation69_spill] sm:$0xff]  ;;  %v19267_v59 = vld [vmem:[#allocation72_spill] sm:$0xff] }
 0xb5c   :  { %v9094_v62 = vpop.f32.mrf.mxu1  ;;  %v8809_v8 = vmul.f32 %v13699_v32, %v17535_v22  ;;  %13702 = vpow2.f32 %v12240_v46  ;;  %v13294_v46 = vld [vmem:[%s18541_s2 + $0x6c] ss:$16 sps:$4 sm:$0xff]   ;;  %v19268_v32 = vld [vmem:[#allocation73_spill] sm:$0xff]  ;;  %v19270_v35 = vld [vmem:[#allocation75_spill] sm:$0xff] }
 0xb5d   :  { %13704 = vrcp.f32 %v8806_v2  ;;  %v19269_v2 = vld [vmem:[#allocation74_spill] sm:$0xff] }
 0xb5e   :  { %v17927_v45 = vadd.f32 %v8810_v54, %v8809_v8  ;;  %v13303_v62 = vld [vmem:[%s18541_s2 + $0xc] ss:$16 sps:$4 sm:$0xff]  }
 0xb60   :  { %13706 = vtanh.f32 %v17927_v45 }
 0xb61   :  { %13708 = vtanh.f32 %v9098_v7 }
 0xb67   :  { %v13701_v38 = vpop.eup %13700 }
 0xb68   :  { %v9103_v10 = vadd.f32 1.0, %v13701_v38  ;;  %v18051_v38 = vld [vmem:[%s18542_s5 + $0xe8] ss:$16 sps:$4 sm:$0xff]  }
 0xb69   :  { %v13703_v26 = vpop.eup %13702 }
 0xb6a   :  { %13710 = vrcp.f32 %v9103_v10  ;;  %v9109_v25 = vadd.f32 1.0, %v13703_v26  ;;  %v13705_v55 = vpop.eup %13704  ;;  %v18060_v10 = vld [vmem:[%s18542_s5 + $0xc4] ss:$16 sps:$4 sm:$0xff]   ;;  %v18065_v26 = vld [vmem:[%s18542_s5 + $0xcc] ss:$16 sps:$4 sm:$0xff]  }
 0xb6c   :  { %13712 = vrcp.f32 %v9109_v25  ;;  %v18070_v25 = vld [vmem:[%s18542_s5 + $0xc0] ss:$16 sps:$4 sm:$0xff]  }
 0xb6d   :  { %v13707_v61 = vpop.eup %13706 }
 0xb6e   :  { %v8813_v1 = vmul.f32 %v13707_v61, %v13705_v55  ;;  %v13709_v57 = vpop.eup %13708  ;;  %v18075_v55 = vld [vmem:[%s18542_s5 + $0xc8] ss:$16 sps:$4 sm:$0xff]   ;;  %v18084_v61 = vld [vmem:[%s18542_s5 + $0xa4] ss:$16 sps:$4 sm:$0xff]  }
 0xb70   :  { %12206 = vst [vmem:[%s18546_s7 + $0x40] sm:$0xff] %v8813_v1  ;;  %v9156_v22 = vpack.c.bf16 %v8813_v1, %v8813_v1  ;;  %v18089_v1 = vld [vmem:[%s18542_s5 + $0xac] ss:$16 sps:$4 sm:$0xff]  }
 0xb72   :  { %9382 = vmatmul.mubr.bf16.vlgmr.msra.gmra.mxu0 %v9156_v22  ;;  %9423 = vmatmul.mubr.bf16.vlgmr.msra.gmra.mxu1 %v9156_v22  ;;  %v18094_v22 = vld [vmem:[%s18542_s5 + $0xa0] ss:$16 sps:$4 sm:$0xff]  }
 0xb73   :  { %9592 = vmatpush1.bf16.msra.mxu0 %v17542_v30  ;;  %9633 = vmatpush1.bf16.msra.mxu1 %v17547_v56 }
 0xb74   :  { %9593 = vmatprep.subr.bf16.mxu0 %v17555_v53  ;;  %9634 = vmatprep.subr.bf16.mxu1 %v17560_v5  ;;  %v19248_v5 = vld [vmem:[#allocation42_spill] sm:$0xff] }
 0xb75   :  { %9623 = vmatprep.mubr.bf16.mxu0 %v18818_v63  ;;  %9664 = vmatprep.mubr.bf16.mxu1 %v18818_v63 }
 0xb77   :  { %v13711_v4 = vpop.eup %13710  ;;  %9594 = vmatpush1.bf16.msra.mxu0 %v17567_v17  ;;  %9635 = vmatpush1.bf16.msra.mxu1 %v17572_v15  ;;  %v9099_v17 = vadd.f32 %v9091_v27, %v19248_v5  ;;  %v19249_v15 = vld [vmem:[#allocation55_spill] sm:$0xff]  ;;  %v13291_v27 = vld [vmem:[%s18541_s2 + $0xac] ss:$16 sps:$4 sm:$0xff]  }
 0xb78   :  { %v9120_v60 = vmul.f32 %v13711_v4, %v13709_v57  ;;  %9595 = vmatprep.subr.bf16.mxu0 %v17579_v28  ;;  %9636 = vmatprep.subr.bf16.mxu1 %v17584_v42  ;;  %v19250_v28 = vld [vmem:[#allocation56_spill] sm:$0xff]  ;;  %v18108_v4 = vld [vmem:[%s18542_s5 + $0x84] ss:$16 sps:$4 sm:$0xff]  }
 0xb79   :  { %v13713_v30 = vpop.eup %13712  ;;  %v12241_v42 = vmul.f32 -1.442695, %v9099_v17  ;;  %v18099_v57 = vld [vmem:[%s18542_s5 + $0xa8] ss:$16 sps:$4 sm:$0xff]   ;;  %v18132_v5 = vld [vmem:[%s18542_s5 + $0x64] ss:$16 sps:$4 sm:$0xff]  }
 0xb7a   :  { %v9119_v56 = vmul.f32 %v13713_v30, %v17625_v49  ;;  %v19257_v49 = vld [vmem:[#allocation62_spill] sm:$0xff]  ;;  %v18118_v30 = vld [vmem:[%s18542_s5 + $0x80] ss:$16 sps:$4 sm:$0xff]  }
 0xb7b   :  { %9596 = vmatpush1.bf16.msra.mxu0 %v17593_v52  ;;  %9637 = vmatpush1.bf16.msra.mxu1 %v17598_v19  ;;  %v19251_v52 = vld [vmem:[#allocation26_spill] sm:$0xff]  ;;  %v19252_v19 = vld [vmem:[#allocation57_spill] sm:$0xff]  ;;  %13714 = vpow2.f32 %v12241_v42 }
 0xb7c   :  { %v17947_v53 = vadd.f32 %v9120_v60, %v9119_v56  ;;  %9597 = vmatprep.subr.bf16.mxu0 %v17605_v44  ;;  %9638 = vmatprep.subr.bf16.mxu1 %v17610_v41  ;;  %v19253_v44 = vld [vmem:[#allocation58_spill] sm:$0xff]  ;;  %v19254_v41 = vld [vmem:[#allocation59_spill] sm:$0xff] }
 0xb7d   :  { %v18113_v60 = vld [vmem:[%s18542_s5 + $0x8c] ss:$16 sps:$4 sm:$0xff]   ;;  %v18123_v56 = vld [vmem:[%s18542_s5 + $0x88] ss:$16 sps:$4 sm:$0xff]   ;;  %v18156_v42 = vld [vmem:[%s18542_s5 + $0x44] ss:$16 sps:$4 sm:$0xff]  }
 0xb7e   :  { %13716 = vtanh.f32 %v17947_v53  ;;  %v18137_v17 = vld [vmem:[%s18542_s5 + $0x6c] ss:$16 sps:$4 sm:$0xff]  }
 0xb7f   :  { %9598 = vmatpush1.bf16.msra.mxu0 %v17618_v9  ;;  %9639 = vmatpush1.bf16.msra.mxu1 %v17623_v6  ;;  %v19255_v9 = vld [vmem:[#allocation60_spill] sm:$0xff]  ;;  %v19256_v6 = vld [vmem:[#allocation61_spill] sm:$0xff] }
 0xb80   :  { %9599 = vmatprep.subr.bf16.mxu0 %v17632_v14  ;;  %9640 = vmatprep.subr.bf16.mxu1 %v17637_v39  ;;  %v19258_v14 = vld [vmem:[#allocation63_spill] sm:$0xff]  ;;  %v19259_v39 = vld [vmem:[#allocation64_spill] sm:$0xff] }
 0xb83   :  { %9600 = vmatpush1.bf16.msra.mxu0 %v17644_v13  ;;  %9641 = vmatpush1.bf16.msra.mxu1 %v17649_v33  ;;  %v19260_v13 = vld [vmem:[#allocation65_spill] sm:$0xff]  ;;  %v19261_v33 = vld [vmem:[#allocation66_spill] sm:$0xff] }
 0xb84   :  { %9601 = vmatprep.subr.bf16.mxu0 %v19249_v15  ;;  %9642 = vmatprep.subr.bf16.mxu1 %v19250_v28  ;;  %v18142_v15 = vld [vmem:[%s18542_s5 + $0x60] ss:$16 sps:$4 sm:$0xff]   ;;  %v18147_v28 = vld [vmem:[%s18542_s5 + $0x68] ss:$16 sps:$4 sm:$0xff]  }
 0xb87   :  { %9602 = vmatpush1.bf16.msra.mxu0 %v17671_v34  ;;  %9643 = vmatpush1.bf16.msra.mxu1 %v19251_v52  ;;  %v19263_v34 = vld [vmem:[#allocation68_spill] sm:$0xff] }
 0xb88   :  { %9603 = vmatprep.subr.bf16.mxu0 %v19252_v19  ;;  %9644 = vmatprep.subr.bf16.mxu1 %v19253_v44  ;;  %v13715_v11 = vpop.eup %13714  ;;  %v18161_v52 = vld [vmem:[%s18542_s5 + $0x4c] ss:$16 sps:$4 sm:$0xff]   ;;  %v18166_v19 = vld [vmem:[%s18542_s5 + $0x40] ss:$16 sps:$4 sm:$0xff]   ;;  %v18171_v44 = vld [vmem:[%s18542_s5 + $0x48] ss:$16 sps:$4 sm:$0xff]  }
 0xb89   :  { %v9116_v43 = vadd.f32 1.0, %v13715_v11 }
 0xb8b   :  { %9604 = vmatpush1.bf16.msra.mxu0 %v17695_v18  ;;  %9645 = vmatpush1.bf16.msra.mxu1 %v19254_v41  ;;  %v19262_v18 = vld [vmem:[#allocation67_spill] sm:$0xff]  ;;  %13718 = vrcp.f32 %v9116_v43  ;;  %v13717_v54 = vpop.eup %13716 }
 0xb8c   :  { %9605 = vmatprep.subr.bf16.mxu0 %v19255_v9  ;;  %9646 = vmatprep.subr.bf16.mxu1 %v19256_v6  ;;  %v18180_v41 = vld [vmem:[%s18542_s5 + $0x24] ss:$16 sps:$4 sm:$0xff]   ;;  %v18185_v9 = vld [vmem:[%s18542_s5 + $0x2c] ss:$16 sps:$4 sm:$0xff]   ;;  %v18190_v6 = vld [vmem:[%s18542_s5 + $0x20] ss:$16 sps:$4 sm:$0xff]  }
 0xb8f   :  { %9606 = vmatpush1.bf16.msra.mxu0 %v19257_v49  ;;  %9647 = vmatpush1.bf16.msra.mxu1 %v19258_v14  ;;  %v18195_v49 = vld [vmem:[%s18542_s5 + $0x28] ss:$16 sps:$4 sm:$0xff]   ;;  %v18204_v14 = vld [vmem:[%s18542_s5 + $0x4] ss:$16 sps:$4 sm:$0xff]  }
 0xb90   :  { %9923 = vmatprep.subr.bf16.mxu0 %v19259_v39  ;;  %9964 = vmatprep.subr.bf16.mxu1 %v19260_v13  ;;  %v18209_v39 = vld [vmem:[%s18542_s5 + $0xc] ss:$16 sps:$4 sm:$0xff]   ;;  %v18214_v13 = vld [vmem:[%s18542_s5] ss:$16 sps:$4 sm:$0xff]  }
 0xb92   :  { %9624 = vmatmul.mubr.bf16.vlgmr.msra.gmra.mxu0 %v17877_v16  ;;  %9665 = vmatmul.mubr.bf16.vlgmr.msra.gmra.mxu1 %v17877_v16  ;;  %v19265_v16 = vld [vmem:[#allocation70_spill] sm:$0xff] }
 0xb93   :  { %9924 = vmatpush1.bf16.msra.mxu0 %v17743_v23  ;;  %9965 = vmatpush1.bf16.msra.mxu1 %v19261_v33  ;;  %v13289_v23 = vld [vmem:[%s18541_s2 + $0xa8] ss:$16 sps:$4 sm:$0xff]  }
 0xb94   :  { %9925 = vmatprep.subr.bf16.mxu0 %v19262_v18  ;;  %9966 = vmatprep.subr.bf16.mxu1 %v19263_v34  ;;  %v18219_v33 = vld [vmem:[%s18542_s5 + $0x8] ss:$16 sps:$4 sm:$0xff]   ;;  %v18228_v18 = vld [vmem:[%s18544_s4 + $0xe4] ss:$16 sps:$4 sm:$0xff]   ;;  %v18233_v34 = vld [vmem:[%s18544_s4 + $0xec] ss:$16 sps:$4 sm:$0xff]  }
 0xb95   :  { %9955 = vmatprep.mubr.bf16.mxu0 %v18818_v63  ;;  %9996 = vmatprep.mubr.bf16.mxu1 %v18818_v63  ;;  %19271 = vst [vmem:[#allocation29_spill] sm:$0xff] %v18228_v18  ;;  %19272 = vst [vmem:[#allocation27_spill] sm:$0xff] %v18233_v34 }
 0xb97   :  { %9926 = vmatpush1.bf16.msra.mxu0 %v19264_v50  ;;  %9967 = vmatpush1.bf16.msra.mxu1 %v19265_v16 }
 0xb98   :  { %9927 = vmatprep.subr.bf16.mxu0 %v19266_v3  ;;  %9968 = vmatprep.subr.bf16.mxu1 %v13291_v27  ;;  %v13719_v8 = vpop.eup %13718 }
 0xb99   :  { %v9123_v31 = vmul.f32 %v13719_v8, %v13717_v54 }
 0xb9b   :  { %9928 = vmatpush1.bf16.msra.mxu0 %v17790_v47  ;;  %9969 = vmatpush1.bf16.msra.mxu1 %v13289_v23  ;;  %v13292_v47 = vld [vmem:[%s18541_s2 + $0x68] ss:$16 sps:$4 sm:$0xff]   ;;  %v18027_v7 = vpack.c.bf16 %v9123_v31, %v9123_v31 }
 0xb9c   :  { %9929 = vmatprep.subr.bf16.mxu0 %v17797_v37  ;;  %9970 = vmatprep.subr.bf16.mxu1 %v19267_v59  ;;  %v13297_v37 = vld [vmem:[%s18541_s2 + $0x4c] ss:$16 sps:$4 sm:$0xff]  }
 0xb9f   :  { %9930 = vmatpush1.bf16.msra.mxu0 %v17809_v36  ;;  %9971 = vmatpush1.bf16.msra.mxu1 %v17814_v20  ;;  %v13295_v36 = vld [vmem:[%s18541_s2 + $0x48] ss:$16 sps:$4 sm:$0xff]   ;;  %v13300_v20 = vld [vmem:[%s18541_s2 + $0x2c] ss:$16 sps:$4 sm:$0xff]  }
 0xba0   :  { %9931 = vmatprep.subr.bf16.mxu0 %v17822_v40  ;;  %9972 = vmatprep.subr.bf16.mxu1 %v13294_v46  ;;  %v13298_v40 = vld [vmem:[%s18541_s2 + $0x28] ss:$16 sps:$4 sm:$0xff]   ;;  %v9673_v46 = vld [vmem:[%s18545_s6] sm:$0xf] }
 0xba3   :  { %9932 = vmatpush1.bf16.msra.mxu0 %v19268_v32  ;;  %9973 = vmatpush1.bf16.msra.mxu1 %v13292_v47  ;;  %v9678_v47 = vrot.slane %v9673_v46, %v19243_v0  ;;  %v9690_v0 = vrot.slane %v9673_v46, %v14194_v24 }
 0xba4   :  { %9933 = vmatprep.subr.bf16.mxu0 %v19269_v2  ;;  %9974 = vmatprep.subr.bf16.mxu1 %v13297_v37  ;;  %v9682_v2 = vrot.slane %v9673_v46, %v19244_v51 }
 0xba7   :  { %9934 = vmatpush1.bf16.msra.mxu0 %v17843_v21  ;;  %9975 = vmatpush1.bf16.msra.mxu1 %v13295_v36  ;;  %v13301_v21 = vld [vmem:[%s18541_s2 + $0x8] ss:$16 sps:$4 sm:$0xff]  }
 0xba8   :  { %9935 = vmatprep.subr.bf16.mxu0 %v19270_v35  ;;  %9976 = vmatprep.subr.bf16.mxu1 %v13300_v20 }
 0xbab   :  { %9936 = vmatpush1.bf16.msra.mxu0 %v17857_v48  ;;  %9977 = vmatpush1.bf16.msra.mxu1 %v13298_v40  ;;  %v18036_v48 = vld [vmem:[%s18542_s5 + $0xe4] ss:$16 sps:$4 sm:$0xff]  }
 0xbac   :  { %9937 = vmatprep.subr.bf16.mxu0 %v17864_v29  ;;  %9978 = vmatprep.subr.bf16.mxu1 %v13303_v62  ;;  %v18041_v29 = vld [vmem:[%s18542_s5 + $0xec] ss:$16 sps:$4 sm:$0xff]  }
 0xbaf   :  { %9938 = vmatpush1.bf16.msra.mxu0 %v17871_v58  ;;  %9979 = vmatpush1.bf16.msra.mxu1 %v13301_v21  ;;  %v18046_v58 = vld [vmem:[%s18542_s5 + $0xe0] ss:$16 sps:$4 sm:$0xff]  }
 0xbb0   :  { %10258 = vmatprep.subr.bf16.mxu0 %v18036_v48  ;;  %10299 = vmatprep.subr.bf16.mxu1 %v18041_v29 }
 0xbb2   :  { %9956 = vmatmul.mubr.bf16.vlgmr.msra.gmra.mxu0 %v18027_v7  ;;  %9997 = vmatmul.mubr.bf16.vlgmr.msra.gmra.mxu1 %v18027_v7 }
 0xbb3   :  { %10290 = vmatprep.mubr.bf16.mxu0 %v18818_v63  ;;  %10331 = vmatprep.mubr.bf16.mxu1 %v18818_v63 }
 0xbb4   :  { %10259 = vmatpush1.bf16.msra.mxu0 %v18046_v58  ;;  %10300 = vmatpush1.bf16.msra.mxu1 %v18051_v38 }
 0xbb5   :  { %10260 = vmatprep.subr.bf16.mxu0 %v18060_v10  ;;  %10301 = vmatprep.subr.bf16.mxu1 %v18065_v26 }
 0xbb8   :  { %10261 = vmatpush1.bf16.msra.mxu0 %v18070_v25  ;;  %10302 = vmatpush1.bf16.msra.mxu1 %v18075_v55 }
 0xbb9   :  { %10262 = vmatprep.subr.bf16.mxu0 %v18084_v61  ;;  %10303 = vmatprep.subr.bf16.mxu1 %v18089_v1 }
 0xbbc   :  { %10263 = vmatpush1.bf16.msra.mxu0 %v18094_v22  ;;  %10304 = vmatpush1.bf16.msra.mxu1 %v18099_v57 }
 0xbbd   :  { %10264 = vmatprep.subr.bf16.mxu0 %v18108_v4  ;;  %10305 = vmatprep.subr.bf16.mxu1 %v18113_v60 }
 0xbc0   :  { %10265 = vmatpush1.bf16.msra.mxu0 %v18118_v30  ;;  %10306 = vmatpush1.bf16.msra.mxu1 %v18123_v56 }
 0xbc1   :  { %10266 = vmatprep.subr.bf16.mxu0 %v18132_v5  ;;  %10307 = vmatprep.subr.bf16.mxu1 %v18137_v17 }
 0xbc4   :  { %10267 = vmatpush1.bf16.msra.mxu0 %v18142_v15  ;;  %10308 = vmatpush1.bf16.msra.mxu1 %v18147_v28 }
 0xbc5   :  { %10268 = vmatprep.subr.bf16.mxu0 %v18156_v42  ;;  %10309 = vmatprep.subr.bf16.mxu1 %v18161_v52 }
 0xbc8   :  { %10269 = vmatpush1.bf16.msra.mxu0 %v18166_v19  ;;  %10310 = vmatpush1.bf16.msra.mxu1 %v18171_v44 }
 0xbc9   :  { %10270 = vmatprep.subr.bf16.mxu0 %v18180_v41  ;;  %10311 = vmatprep.subr.bf16.mxu1 %v18185_v9 }
 0xbcc   :  { %10271 = vmatpush1.bf16.msra.mxu0 %v18190_v6  ;;  %10312 = vmatpush1.bf16.msra.mxu1 %v18195_v49 }
 0xbcd   :  { %10272 = vmatprep.subr.bf16.mxu0 %v18204_v14  ;;  %10313 = vmatprep.subr.bf16.mxu1 %v18209_v39 }
 0xbd0   :  { %10273 = vmatpush1.bf16.msra.mxu0 %v18214_v13  ;;  %10314 = vmatpush1.bf16.msra.mxu1 %v18219_v33 }
 0xbd1   :  { %10500 = vmatprep.subr.bf16.mxu0 %v18228_v18  ;;  %10541 = vmatprep.subr.bf16.mxu1 %v18233_v34 }
 0xc32   :  { %v9383_v27 = vpop.f32.mrf.mxu0  ;;  %v9424_v11 = vpop.f32.mrf.mxu1 }
 0xc34   :  { %v9385_v50 = vpop.f32.mrf.mxu0  ;;  %v9426_v16 = vpop.f32.mrf.mxu1 }
 0xc36   :  { %v9387_v23 = vpop.f32.mrf.mxu0  ;;  %v9428_v3 = vpop.f32.mrf.mxu1 }
 0xc38   :  { %v9388_v43 = vpop.f32.mrf.mxu0  ;;  %v9429_v59 = vpop.f32.mrf.mxu1 }
 0xc52   :  { %v9625_v37 = vpop.f32.mrf.mxu0  ;;  %v9666_v32 = vpop.f32.mrf.mxu1 }
 0xc53   :  { %v9626_v36 = vadd.f32 %v9625_v37, %v9383_v27  ;;  %v9667_v27 = vadd.f32 %v9666_v32, %v9424_v11  ;;  %v9686_v37 = vrot.slane %v9673_v46, %v14171_v12  ;;  %v19277_v32 = vld [vmem:[#allocation43_spill] sm:$0xff] }
 0xc54   :  { %v9627_v20 = vpop.f32.mrf.mxu0  ;;  %v9668_v40 = vpop.f32.mrf.mxu1 }
 0xc55   :  { %v9695_v35 = vadd.f32 %v9678_v47, %v9626_v36  ;;  %v9628_v62 = vadd.f32 %v9627_v20, %v9385_v50  ;;  %v9669_v59 = vadd.f32 %v9668_v40, %v9426_v16  ;;  %v9697_v47 = vadd.f32 %v9686_v37, %v9667_v27  ;;  %v19274_v16 = vld [vmem:[#allocation45_spill] sm:$0xff] }
 0xc56   :  { %v9629_v54 = vpop.f32.mrf.mxu0  ;;  %v9670_v8 = vpop.f32.mrf.mxu1 }
 0xc57   :  { %v12306_v21 = vmul.f32 -1.442695, %v9695_v35  ;;  %v9696_v31 = vadd.f32 %v9682_v2, %v9628_v62  ;;  %v9698_v34 = vadd.f32 %v9690_v0, %v9669_v59  ;;  %v19273_v62 = vld [vmem:[#allocation5_spill] sm:$0xff]  ;;  %v19275_v54 = vld [vmem:[#allocation6_spill] sm:$0xff] }
 0xc58   :  { %v9630_v23 = vpop.f32.mrf.mxu0  ;;  %v9671_v3 = vpop.f32.mrf.mxu1  ;;  %v380_v40 = vadd.f32 %v19274_v16, %v19273_v62  ;;  %v19276_v0 = vld [vmem:[#allocation46_spill] sm:$0xff] }
 0xc59   :  { %13720 = vpow2.f32 %v12306_v21  ;;  %v12307_v43 = vmul.f32 -1.442695, %v9696_v31  ;;  %v12308_v51 = vmul.f32 -1.442695, %v9698_v34  ;;  %v473_v11 = vadd.f32 %v19276_v0, %v19275_v54  ;;  %v19278_v34 = vld [vmem:[#allocation44_spill] sm:$0xff] }
 0xc5b   :  { %13722 = vpow2.f32 %v12307_v43 }
 0xc5c   :  { %13724 = vpow2.f32 %v12308_v51 }
 0xc66   :  { %v13721_v18 = vpop.eup %13720 }
 0xc67   :  { %v9702_v50 = vadd.f32 1.0, %v13721_v18 }
 0xc68   :  { %v13723_v36 = vpop.eup %13722 }
 0xc69   :  { %13726 = vrcp.f32 %v9702_v50  ;;  %v9708_v2 = vadd.f32 1.0, %v13723_v36  ;;  %v13725_v31 = vpop.eup %13724 }
 0xc6a   :  { %13728 = vtanh.f32 %v9697_v47  ;;  %v9715_v36 = vadd.f32 1.0, %v13725_v31  ;;  %v18270_v31 = vld [vmem:[%s18544_s4 + $0xc4] ss:$16 sps:$4 sm:$0xff]  }
 0xc6b   :  { %13730 = vrcp.f32 %v9708_v2 }
 0xc72   :  { %v9957_v20 = vpop.f32.mrf.mxu0  ;;  %v9998_v35 = vpop.f32.mrf.mxu1 }
 0xc73   :  { %v10005_v46 = vadd.f32 %v9957_v20, %v19277_v32  ;;  %v10007_v8 = vadd.f32 %v9998_v35, %v19278_v34 }
 0xc74   :  { %v9959_v21 = vpop.f32.mrf.mxu0  ;;  %v10000_v18 = vpop.f32.mrf.mxu1 }
 0xc75   :  { %v12342_v51 = vmul.f32 -1.442695, %v10005_v46  ;;  %v10006_v23 = vadd.f32 %v9959_v21, %v380_v40  ;;  %v10008_v3 = vadd.f32 %v10000_v18, %v473_v11  ;;  %v18262_v18 = vld [vmem:[%s18544_s4 + $0xe8] ss:$16 sps:$4 sm:$0xff]  }
 0xc76   :  { %v13727_v43 = vpop.eup %13726  ;;  %v9961_v59 = vpop.f32.mrf.mxu0 }
 0xc77   :  { %v10002_v27 = vpop.f32.mrf.mxu1  ;;  %v13729_v37 = vpop.eup %13728  ;;  %13732 = vpow2.f32 %v12342_v51  ;;  %v12343_v47 = vmul.f32 -1.442695, %v10006_v23  ;;  %v12344_v40 = vmul.f32 -1.442695, %v10008_v3  ;;  %v18275_v51 = vld [vmem:[%s18544_s4 + $0xcc] ss:$16 sps:$4 sm:$0xff]  }
 0xc78   :  { %v13731_v50 = vpop.eup %13730  ;;  %v9962_v2 = vpop.f32.mrf.mxu0  ;;  %v9719_v16 = vmul.f32 %v13729_v37, %v13727_v43  ;;  %v18282_v23 = vld [vmem:[%s18544_s4 + $0xc0] ss:$16 sps:$4 sm:$0xff]   ;;  %v18287_v3 = vld [vmem:[%s18544_s4 + $0xc8] ss:$16 sps:$4 sm:$0xff]   ;;  %v18294_v43 = vld [vmem:[%s18544_s4 + $0xa4] ss:$16 sps:$4 sm:$0xff]  }
 0xc79   :  { %v10003_v62 = vpop.f32.mrf.mxu1  ;;  %v9718_v20 = vmul.f32 %v13731_v50, %v17927_v45  ;;  %13734 = vpow2.f32 %v12343_v47  ;;  %v18257_v45 = vld [vmem:[%s18544_s4 + $0xe0] ss:$16 sps:$4 sm:$0xff]   ;;  %v18299_v59 = vld [vmem:[%s18544_s4 + $0xac] ss:$16 sps:$4 sm:$0xff]  }
 0xc7a   :  { %13736 = vrcp.f32 %v9715_v36  ;;  %v18308_v50 = vld [vmem:[%s18544_s4 + $0xa0] ss:$16 sps:$4 sm:$0xff]   ;;  %v18313_v36 = vld [vmem:[%s18544_s4 + $0xa8] ss:$16 sps:$4 sm:$0xff]   ;;  %v18320_v62 = vld [vmem:[%s18544_s4 + $0x84] ss:$16 sps:$4 sm:$0xff]  }
 0xc7b   :  { %v18251_v35 = vadd.f32 %v9719_v16, %v9718_v20  ;;  %v18325_v16 = vld [vmem:[%s18544_s4 + $0x8c] ss:$16 sps:$4 sm:$0xff]  }
 0xc7d   :  { %13738 = vtanh.f32 %v18251_v35 }
 0xc7e   :  { %13740 = vtanh.f32 %v10007_v8 }
 0xc7f   :  { %13742 = vpow2.f32 %v12344_v40 }
 0xc84   :  { %v13733_v54 = vpop.eup %13732 }
 0xc85   :  { %v10012_v0 = vadd.f32 1.0, %v13733_v54 }
 0xc86   :  { %v13735_v11 = vpop.eup %13734 }
 0xc87   :  { %13744 = vrcp.f32 %v10012_v0  ;;  %v10018_v32 = vadd.f32 1.0, %v13735_v11  ;;  %v13737_v46 = vpop.eup %13736  ;;  %v18333_v0 = vld [vmem:[%s18544_s4 + $0x80] ss:$16 sps:$4 sm:$0xff]   ;;  %v18338_v11 = vld [vmem:[%s18544_s4 + $0x88] ss:$16 sps:$4 sm:$0xff]  }
 0xc89   :  { %13746 = vrcp.f32 %v10018_v32 }
 0xc8a   :  { %v13739_v34 = vpop.eup %13738 }
 0xc8b   :  { %v9722_v21 = vmul.f32 %v13739_v34, %v13737_v46  ;;  %v13741_v27 = vpop.eup %13740  ;;  %v18350_v46 = vld [vmem:[%s18544_s4 + $0x6c] ss:$16 sps:$4 sm:$0xff]   ;;  %v18357_v34 = vld [vmem:[%s18544_s4 + $0x60] ss:$16 sps:$4 sm:$0xff]  }
 0xc8c   :  { %v13743_v37 = vpop.eup %13742 }
 0xc8d   :  { %12309 = vst [vmem:[%s18546_s7 + $0x48] sm:$0xff] %v9722_v21  ;;  %v10065_v8 = vpack.c.bf16 %v9722_v21, %v9722_v21  ;;  %v10025_v40 = vadd.f32 1.0, %v13743_v37  ;;  %v18362_v21 = vld [vmem:[%s18544_s4 + $0x68] ss:$16 sps:$4 sm:$0xff]   ;;  %v18381_v37 = vld [vmem:[%s18544_s4 + $0x40] ss:$16 sps:$4 sm:$0xff]  }
 0xc8e   :  { %19281 = vst [vmem:[#allocation76_spill] sm:$0xff] %v18381_v37 }
 0xc8f   :  { %10291 = vmatmul.mubr.bf16.vlgmr.msra.gmra.mxu0 %v10065_v8  ;;  %10332 = vmatmul.mubr.bf16.vlgmr.msra.gmra.mxu1 %v10065_v8  ;;  %13748 = vrcp.f32 %v10025_v40  ;;  %v18369_v8 = vld [vmem:[%s18544_s4 + $0x44] ss:$16 sps:$4 sm:$0xff]   ;;  %v18405_v40 = vld [vmem:[%s18544_s4 + $0x20] ss:$16 sps:$4 sm:$0xff]  }
 0xc90   :  { %10501 = vmatpush1.bf16.msra.mxu0 %v18257_v45  ;;  %10542 = vmatpush1.bf16.msra.mxu1 %v18262_v18  ;;  %19279 = vst [vmem:[#allocation28_spill] sm:$0xff] %v18369_v8 }
 0xc91   :  { %10502 = vmatprep.subr.bf16.mxu0 %v18270_v31  ;;  %10543 = vmatprep.subr.bf16.mxu1 %v18275_v51 }
 0xc92   :  { %10532 = vmatprep.mubr.bf16.mxu0 %v18818_v63  ;;  %10573 = vmatprep.mubr.bf16.mxu1 %v18818_v63 }
 0xc94   :  { %v13745_v47 = vpop.eup %13744  ;;  %10503 = vmatpush1.bf16.msra.mxu0 %v18282_v23  ;;  %10544 = vmatpush1.bf16.msra.mxu1 %v18287_v3 }
 0xc95   :  { %v10029_v2 = vmul.f32 %v13745_v47, %v13741_v27  ;;  %10504 = vmatprep.subr.bf16.mxu0 %v18294_v43  ;;  %10545 = vmatprep.subr.bf16.mxu1 %v18299_v59  ;;  %v18374_v27 = vld [vmem:[%s18544_s4 + $0x4c] ss:$16 sps:$4 sm:$0xff]   ;;  %v18386_v47 = vld [vmem:[%s18544_s4 + $0x48] ss:$16 sps:$4 sm:$0xff]  }
 0xc96   :  { %v13747_v20 = vpop.eup %13746  ;;  %19280 = vst [vmem:[#allocation30_spill] sm:$0xff] %v18374_v27  ;;  %19282 = vst [vmem:[#allocation77_spill] sm:$0xff] %v18386_v47 }
 0xc97   :  { %v10028_v54 = vmul.f32 %v13747_v20, %v17947_v53  ;;  %v18345_v53 = vld [vmem:[%s18544_s4 + $0x64] ss:$16 sps:$4 sm:$0xff]   ;;  %v18398_v20 = vld [vmem:[%s18544_s4 + $0x2c] ss:$16 sps:$4 sm:$0xff]  }
 0xc98   :  { %10505 = vmatpush1.bf16.msra.mxu0 %v18308_v50  ;;  %10546 = vmatpush1.bf16.msra.mxu1 %v18313_v36  ;;  %19284 = vst [vmem:[#allocation79_spill] sm:$0xff] %v18398_v20 }
 0xc99   :  { %v10030_v32 = vadd.f32 %v10029_v2, %v10028_v54  ;;  %10506 = vmatprep.subr.bf16.mxu0 %v18320_v62  ;;  %10547 = vmatprep.subr.bf16.mxu1 %v18325_v16  ;;  %v18393_v2 = vld [vmem:[%s18544_s4 + $0x24] ss:$16 sps:$4 sm:$0xff]   ;;  %v18410_v54 = vld [vmem:[%s18544_s4 + $0x28] ss:$16 sps:$4 sm:$0xff]  }
 0xc9a   :  { %19283 = vst [vmem:[#allocation78_spill] sm:$0xff] %v18393_v2 }
 0xc9b   :  { %13750 = vtanh.f32 %v10030_v32  ;;  %v18417_v32 = vld [vmem:[%s18544_s4 + $0x4] ss:$16 sps:$4 sm:$0xff]  }
 0xc9c   :  { %10507 = vmatpush1.bf16.msra.mxu0 %v18333_v0  ;;  %10548 = vmatpush1.bf16.msra.mxu1 %v18338_v11 }
 0xc9d   :  { %10508 = vmatprep.subr.bf16.mxu0 %v18345_v53  ;;  %10549 = vmatprep.subr.bf16.mxu1 %v18350_v46 }
 0xca0   :  { %10509 = vmatpush1.bf16.msra.mxu0 %v18357_v34  ;;  %10550 = vmatpush1.bf16.msra.mxu1 %v18362_v21 }
 0xca1   :  { %10510 = vmatprep.subr.bf16.mxu0 %v18369_v8  ;;  %10551 = vmatprep.subr.bf16.mxu1 %v18374_v27 }
 0xca4   :  { %10511 = vmatpush1.bf16.msra.mxu0 %v18381_v37  ;;  %10552 = vmatpush1.bf16.msra.mxu1 %v18386_v47  ;;  %v18422_v47 = vld [vmem:[%s18544_s4 + $0xc] ss:$16 sps:$4 sm:$0xff]   ;;  %v13749_v37 = vpop.eup %13748 }
 0xca5   :  { %10512 = vmatprep.subr.bf16.mxu0 %v18393_v2  ;;  %10553 = vmatprep.subr.bf16.mxu1 %v18398_v20  ;;  %v18429_v20 = vld [vmem:[%s18544_s4] ss:$16 sps:$4 sm:$0xff]   ;;  %v18434_v2 = vld [vmem:[%s18544_s4 + $0x8] ss:$16 sps:$4 sm:$0xff]  }
 0xca8   :  { %v13751_v27 = vpop.eup %13750  ;;  %10513 = vmatpush1.bf16.msra.mxu0 %v18405_v40  ;;  %10554 = vmatpush1.bf16.msra.mxu1 %v18410_v54 }
 0xca9   :  { %10514 = vmatprep.subr.bf16.mxu0 %v18417_v32  ;;  %10555 = vmatprep.subr.bf16.mxu1 %v18422_v47  ;;  %v18438_v8 = vmul.f32 %v13751_v27, %v13749_v37 }
 0xcac   :  { %10515 = vmatpush1.bf16.msra.mxu0 %v18429_v20  ;;  %10556 = vmatpush1.bf16.msra.mxu1 %v18434_v2 }
 0xcad   :  { %10860 = vmatprep.subr.bf16.mxu0 %v18036_v48  ;;  %10901 = vmatprep.subr.bf16.mxu1 %v18041_v29  ;;  %v19286_v48 = vld [vmem:[#allocation27_spill] sm:$0xff] }
 0xcaf   :  { %10533 = vmatmul.mubr.bf16.vlgmr.msra.gmra.mxu0 %v18027_v7  ;;  %10574 = vmatmul.mubr.bf16.vlgmr.msra.gmra.mxu1 %v18027_v7  ;;  %v19285_v7 = vld [vmem:[#allocation29_spill] sm:$0xff] }
 0xcb0   :  { %10861 = vmatpush1.bf16.msra.mxu0 %v18046_v58  ;;  %10902 = vmatpush1.bf16.msra.mxu1 %v18051_v38 }
 0xcb1   :  { %10862 = vmatprep.subr.bf16.mxu0 %v18060_v10  ;;  %10903 = vmatprep.subr.bf16.mxu1 %v18065_v26 }
 0xcb2   :  { %10892 = vmatprep.mubr.bf16.mxu0 %v18818_v63  ;;  %10933 = vmatprep.mubr.bf16.mxu1 %v18818_v63 }
 0xcb4   :  { %10863 = vmatpush1.bf16.msra.mxu0 %v18070_v25  ;;  %10904 = vmatpush1.bf16.msra.mxu1 %v18075_v55 }
 0xcb5   :  { %10864 = vmatprep.subr.bf16.mxu0 %v18084_v61  ;;  %10905 = vmatprep.subr.bf16.mxu1 %v18089_v1  ;;  %v10582_v1 = vld [vmem:[%s18545_s6] sm:$0xf] }
 0xcb6   :  { %v10595_v27 = vrot.slane %v10582_v1, %v14171_v12 }
 0xcb8   :  { %10865 = vmatpush1.bf16.msra.mxu0 %v18094_v22  ;;  %10906 = vmatpush1.bf16.msra.mxu1 %v18099_v57  ;;  %v19287_v22 = vld [vmem:[#allocation3_spill] sm:$0xff] }
 0xcb9   :  { %10866 = vmatprep.subr.bf16.mxu0 %v18108_v4  ;;  %10907 = vmatprep.subr.bf16.mxu1 %v18113_v60  ;;  %v10587_v57 = vrot.slane %v10582_v1, %v19287_v22 }
 0xcbc   :  { %10867 = vmatpush1.bf16.msra.mxu0 %v18118_v30  ;;  %10908 = vmatpush1.bf16.msra.mxu1 %v18123_v56  ;;  %v19288_v56 = vld [vmem:[#allocation4_spill] sm:$0xff] }
 0xcbd   :  { %10868 = vmatprep.subr.bf16.mxu0 %v18132_v5  ;;  %10909 = vmatprep.subr.bf16.mxu1 %v18137_v17  ;;  %v10591_v5 = vrot.slane %v10582_v1, %v19288_v56 }
 0xcc0   :  { %10869 = vmatpush1.bf16.msra.mxu0 %v18142_v15  ;;  %10910 = vmatpush1.bf16.msra.mxu1 %v18147_v28 }
 0xcc1   :  { %10870 = vmatprep.subr.bf16.mxu0 %v18156_v42  ;;  %10911 = vmatprep.subr.bf16.mxu1 %v18161_v52 }
 0xcc4   :  { %10871 = vmatpush1.bf16.msra.mxu0 %v18166_v19  ;;  %10912 = vmatpush1.bf16.msra.mxu1 %v18171_v44 }
 0xcc5   :  { %10872 = vmatprep.subr.bf16.mxu0 %v18180_v41  ;;  %10913 = vmatprep.subr.bf16.mxu1 %v18185_v9 }
 0xcc8   :  { %10873 = vmatpush1.bf16.msra.mxu0 %v18190_v6  ;;  %10914 = vmatpush1.bf16.msra.mxu1 %v18195_v49 }
 0xcc9   :  { %10874 = vmatprep.subr.bf16.mxu0 %v18204_v14  ;;  %10915 = vmatprep.subr.bf16.mxu1 %v18209_v39  ;;  %v10599_v39 = vrot.slane %v10582_v1, %v14194_v24 }
 0xccc   :  { %10875 = vmatpush1.bf16.msra.mxu0 %v18214_v13  ;;  %10916 = vmatpush1.bf16.msra.mxu1 %v18219_v33 }
 0xccd   :  { %11102 = vmatprep.subr.bf16.mxu0 %v19285_v7  ;;  %11143 = vmatprep.subr.bf16.mxu1 %v19286_v48 }
 0xd4f   :  { %v10292_v29 = vpop.f32.mrf.mxu0  ;;  %v10333_v58 = vpop.f32.mrf.mxu1 }
 0xd51   :  { %v10294_v38 = vpop.f32.mrf.mxu0  ;;  %v10335_v10 = vpop.f32.mrf.mxu1 }
 0xd53   :  { %v10296_v26 = vpop.f32.mrf.mxu0  ;;  %v10337_v25 = vpop.f32.mrf.mxu1 }
 0xd55   :  { %v10297_v55 = vpop.f32.mrf.mxu0  ;;  %v10338_v61 = vpop.f32.mrf.mxu1 }
 0xd6f   :  { %v10534_v4 = vpop.f32.mrf.mxu0  ;;  %v10575_v60 = vpop.f32.mrf.mxu1 }
 0xd70   :  { %v10535_v30 = vadd.f32 %v10534_v4, %v10292_v29  ;;  %v10576_v33 = vadd.f32 %v10575_v60, %v10333_v58 }
 0xd71   :  { %v10536_v17 = vpop.f32.mrf.mxu0  ;;  %v10577_v15 = vpop.f32.mrf.mxu1 }
 0xd72   :  { %v10604_v28 = vadd.f32 %v10587_v57, %v10535_v30  ;;  %v10537_v42 = vadd.f32 %v10536_v17, %v10294_v38  ;;  %v10578_v14 = vadd.f32 %v10577_v15, %v10335_v10  ;;  %v10606_v48 = vadd.f32 %v10595_v27, %v10576_v33 }
 0xd73   :  { %v10538_v52 = vpop.f32.mrf.mxu0  ;;  %v10579_v19 = vpop.f32.mrf.mxu1 }
 0xd74   :  { %v12409_v44 = vmul.f32 -1.442695, %v10604_v28  ;;  %v10605_v41 = vadd.f32 %v10591_v5, %v10537_v42  ;;  %v10607_v13 = vadd.f32 %v10599_v39, %v10578_v14 }
 0xd75   :  { %v10539_v9 = vpop.f32.mrf.mxu0  ;;  %v10580_v6 = vpop.f32.mrf.mxu1 }
 0xd76   :  { %13752 = vpow2.f32 %v12409_v44  ;;  %v12410_v49 = vmul.f32 -1.442695, %v10605_v41  ;;  %v12411_v37 = vmul.f32 -1.442695, %v10607_v13 }
 0xd78   :  { %13754 = vpow2.f32 %v12410_v49 }
 0xd79   :  { %13756 = vpow2.f32 %v12411_v37 }
 0xd83   :  { %v13753_v7 = vpop.eup %13752 }
 0xd84   :  { %v10611_v29 = vadd.f32 1.0, %v13753_v7 }
 0xd85   :  { %v13755_v38 = vpop.eup %13754 }
 0xd86   :  { %13758 = vrcp.f32 %v10611_v29  ;;  %v10617_v26 = vadd.f32 1.0, %v13755_v38  ;;  %v13757_v25 = vpop.eup %13756 }
 0xd87   :  { %13760 = vtanh.f32 %v10606_v48  ;;  %v10624_v57 = vadd.f32 1.0, %v13757_v25 }
 0xd88   :  { %13762 = vrcp.f32 %v10617_v26 }
 0xd89   :  { %13764 = vrcp.f32 %v10624_v57 }
 0xd93   :  { %v13759_v55 = vpop.eup %13758 }
 0xd94   :  { %v13761_v61 = vpop.eup %13760 }
 0xd95   :  { %v13763_v10 = vpop.eup %13762  ;;  %v10628_v4 = vmul.f32 %v13761_v61, %v13759_v55 }
 0xd96   :  { %v10627_v58 = vmul.f32 %v13763_v10, %v18251_v35  ;;  %v13765_v1 = vpop.eup %13764  ;;  %v19290_v35 = vld [vmem:[#allocation30_spill] sm:$0xff] }
 0xd98   :  { %v18488_v60 = vadd.f32 %v10628_v4, %v10627_v58 }
 0xd9a   :  { %13766 = vtanh.f32 %v18488_v60 }
 0xda7   :  { %v13767_v30 = vpop.eup %13766 }
 0xda8   :  { %v10631_v5 = vmul.f32 %v13767_v30, %v13765_v1 }
 0xdaa   :  { %12412 = vst [vmem:[%s18546_s7 + $0x50] sm:$0xff] %v10631_v5  ;;  %v10667_v17 = vpack.c.bf16 %v10631_v5, %v10631_v5 }
 0xdac   :  { %10893 = vmatmul.mubr.bf16.vlgmr.msra.gmra.mxu0 %v10667_v17  ;;  %10934 = vmatmul.mubr.bf16.vlgmr.msra.gmra.mxu1 %v10667_v17 }
 0xdad   :  { %11103 = vmatpush1.bf16.msra.mxu0 %v18257_v45  ;;  %11144 = vmatpush1.bf16.msra.mxu1 %v18262_v18  ;;  %v19291_v45 = vld [vmem:[#allocation76_spill] sm:$0xff]  ;;  %v19292_v18 = vld [vmem:[#allocation77_spill] sm:$0xff] }
 0xdae   :  { %11104 = vmatprep.subr.bf16.mxu0 %v18270_v31  ;;  %11145 = vmatprep.subr.bf16.mxu1 %v18275_v51  ;;  %v19293_v31 = vld [vmem:[#allocation78_spill] sm:$0xff]  ;;  %v19294_v51 = vld [vmem:[#allocation79_spill] sm:$0xff] }
 0xdaf   :  { %11134 = vmatprep.mubr.bf16.mxu0 %v18818_v63  ;;  %11175 = vmatprep.mubr.bf16.mxu1 %v18818_v63  ;;  %v19289_v63 = vld [vmem:[#allocation28_spill] sm:$0xff] }
 0xdb1   :  { %11105 = vmatpush1.bf16.msra.mxu0 %v18282_v23  ;;  %11146 = vmatpush1.bf16.msra.mxu1 %v18287_v3  ;;  %v10634_v23 = vpack.c.bf16 %v18438_v8, %v18438_v8 }
 0xdb2   :  { %11106 = vmatprep.subr.bf16.mxu0 %v18294_v43  ;;  %11147 = vmatprep.subr.bf16.mxu1 %v18299_v59 }
 0xdb5   :  { %11107 = vmatpush1.bf16.msra.mxu0 %v18308_v50  ;;  %11148 = vmatpush1.bf16.msra.mxu1 %v18313_v36 }
 0xdb6   :  { %11108 = vmatprep.subr.bf16.mxu0 %v18320_v62  ;;  %11149 = vmatprep.subr.bf16.mxu1 %v18325_v16 }
 0xdb9   :  { %11109 = vmatpush1.bf16.msra.mxu0 %v18333_v0  ;;  %11150 = vmatpush1.bf16.msra.mxu1 %v18338_v11  ;;  %v11184_v11 = vld [vmem:[%s18545_s6] sm:$0xf] }
 0xdba   :  { %11110 = vmatprep.subr.bf16.mxu0 %v18345_v53  ;;  %11151 = vmatprep.subr.bf16.mxu1 %v18350_v46  ;;  %v11189_v53 = vrot.slane %v11184_v11, %v19287_v22  ;;  %v11193_v8 = vrot.slane %v11184_v11, %v19288_v56  ;;  %v11201_v22 = vrot.slane %v11184_v11, %v14194_v24 }
 0xdbb   :  { %v11197_v56 = vrot.slane %v11184_v11, %v14171_v12 }
 0xdbd   :  { %11111 = vmatpush1.bf16.msra.mxu0 %v18357_v34  ;;  %11152 = vmatpush1.bf16.msra.mxu1 %v18362_v21 }
 0xdbe   :  { %11112 = vmatprep.subr.bf16.mxu0 %v19289_v63  ;;  %11153 = vmatprep.subr.bf16.mxu1 %v19290_v35 }
 0xdc1   :  { %11113 = vmatpush1.bf16.msra.mxu0 %v19291_v45  ;;  %11154 = vmatpush1.bf16.msra.mxu1 %v19292_v18 }
 0xdc2   :  { %11114 = vmatprep.subr.bf16.mxu0 %v19293_v31  ;;  %11155 = vmatprep.subr.bf16.mxu1 %v19294_v51 }
 0xdc5   :  { %11115 = vmatpush1.bf16.msra.mxu0 %v18405_v40  ;;  %11156 = vmatpush1.bf16.msra.mxu1 %v18410_v54 }
 0xdc6   :  { %11116 = vmatprep.subr.bf16.mxu0 %v18417_v32  ;;  %11157 = vmatprep.subr.bf16.mxu1 %v18422_v47 }
 0xdc9   :  { %11117 = vmatpush1.bf16.msra.mxu0 %v18429_v20  ;;  %11158 = vmatpush1.bf16.msra.mxu1 %v18434_v2 }
 0xdcc   :  { %11135 = vmatmul.mubr.bf16.vlgmr.msra.gmra.mxu0 %v10634_v23  ;;  %11176 = vmatmul.mubr.bf16.vlgmr.msra.gmra.mxu1 %v10634_v23 }
 0xe6c   :  { %v10894_v3 = vpop.f32.mrf.mxu0  ;;  %v10935_v43 = vpop.f32.mrf.mxu1 }
 0xe6e   :  { %v10896_v59 = vpop.f32.mrf.mxu0  ;;  %v10937_v50 = vpop.f32.mrf.mxu1 }
 0xe70   :  { %v10898_v36 = vpop.f32.mrf.mxu0  ;;  %v10939_v62 = vpop.f32.mrf.mxu1 }
 0xe72   :  { %v10899_v16 = vpop.f32.mrf.mxu0  ;;  %v10940_v0 = vpop.f32.mrf.mxu1 }
 0xe8c   :  { %v11136_v46 = vpop.f32.mrf.mxu0  ;;  %v11177_v34 = vpop.f32.mrf.mxu1 }
 0xe8d   :  { %v11137_v21 = vadd.f32 %v11136_v46, %v10894_v3  ;;  %v11178_v9 = vadd.f32 %v11177_v34, %v10935_v43 }
 0xe8e   :  { %v11138_v47 = vpop.f32.mrf.mxu0  ;;  %v11179_v2 = vpop.f32.mrf.mxu1 }
 0xe8f   :  { %v11206_v20 = vadd.f32 %v11189_v53, %v11137_v21  ;;  %v11139_v40 = vadd.f32 %v11138_v47, %v10896_v59  ;;  %v11180_v44 = vadd.f32 %v11179_v2, %v10937_v50  ;;  %v11208_v14 = vadd.f32 %v11197_v56, %v11178_v9 }
 0xe90   :  { %v11140_v54 = vpop.f32.mrf.mxu0  ;;  %v11181_v32 = vpop.f32.mrf.mxu1 }
 0xe91   :  { %v12477_v15 = vmul.f32 -1.442695, %v11206_v20  ;;  %v11207_v28 = vadd.f32 %v11193_v8, %v11139_v40  ;;  %v11209_v41 = vadd.f32 %v11201_v22, %v11180_v44 }
 0xe92   :  { %v11141_v42 = vpop.f32.mrf.mxu0  ;;  %v11182_v52 = vpop.f32.mrf.mxu1 }
 0xe93   :  { %13768 = vpow2.f32 %v12477_v15  ;;  %v12478_v19 = vmul.f32 -1.442695, %v11207_v28  ;;  %v12479_v6 = vmul.f32 -1.442695, %v11209_v41 }
 0xe95   :  { %13770 = vpow2.f32 %v12478_v19 }
 0xe96   :  { %13772 = vpow2.f32 %v12479_v6 }
 0xea0   :  { %v13769_v49 = vpop.eup %13768 }
 0xea1   :  { %v11213_v39 = vadd.f32 1.0, %v13769_v49 }
 0xea2   :  { %v13771_v13 = vpop.eup %13770 }
 0xea3   :  { %13774 = vrcp.f32 %v11213_v39  ;;  %v11219_v33 = vadd.f32 1.0, %v13771_v13  ;;  %v13773_v27 = vpop.eup %13772 }
 0xea4   :  { %13776 = vtanh.f32 %v11208_v14  ;;  %v11226_v29 = vadd.f32 1.0, %v13773_v27 }
 0xea5   :  { %13778 = vrcp.f32 %v11219_v33 }
 0xea6   :  { %13780 = vrcp.f32 %v11226_v29 }
 0xeb0   :  { %v13775_v37 = vpop.eup %13774 }
 0xeb1   :  { %v13777_v7 = vpop.eup %13776 }
 0xeb2   :  { %v13779_v48 = vpop.eup %13778  ;;  %v11230_v24 = vmul.f32 %v13777_v7, %v13775_v37 }
 0xeb3   :  { %v11229_v38 = vmul.f32 %v13779_v48, %v18488_v60  ;;  %v13781_v12 = vpop.eup %13780 }
 0xeb5   :  { %v11231_v26 = vadd.f32 %v11230_v24, %v11229_v38 }
 0xeb7   :  { %13782 = vtanh.f32 %v11231_v26 }
 0xec4   :  { %v13783_v25 = vpop.eup %13782 }
 0xec5   :  { %v11233_v55 = vmul.f32 %v13783_v25, %v13781_v12 }
 0xec7   :  { %12480 = vst [vmem:[%s18546_s7 + $0x58] sm:$0xff] %v11233_v55 }

</bundles_post_ra>
